<compile_context>
chip_gen: v7x
topology: tpu7x:2x2x1
jax: 0.10.0
libtpu: 0.0.40
codegen_flags: <defaults>
</compile_context>

<pallas_src>
import functools

import jax
import jax.numpy as jnp
from jax import lax
from jax.experimental import pallas as pl
from jax.experimental.pallas import tpu as pltpu


def _ceil_to(x, m):
    return ((x + m - 1) // m) * m


# ----------------------------------------------------------------------------
# Fused Pallas kernel: (2x upsample x1) + concat x2 + conv1/BN/ReLU + conv2/BN/ReLU
# One grid step per image.
# ----------------------------------------------------------------------------
def _decoder_block_kernel(x1_ref, x2_ref, w1_ref, b1_ref, w2_ref, b2_ref, o_ref,
                          pad, ypad, p1):
    # x1_ref : (1, H0, W0, C1p)   f32   pre-upsample coarse features (NHWC)
    # x2_ref : (1, H, W, C2p)     bf16  skip features
    # w1_ref : (9*(C1p+C2p), Cop) bf16  conv1 weight, im2col rows, BN scale folded
    # b1_ref : (1, Cop)           f32   conv1 folded BN bias
    # w2_ref : (9, Cop, Cop)      bf16  conv2 weight taps, BN scale folded
    # b2_ref : (1, Cop)           f32   conv2 folded BN bias
    # o_ref  : (1, H, W, Cop)     bf16
    H0, W0, C1p = x1_ref.shape[1], x1_ref.shape[2], x1_ref.shape[3]
    C2p = x2_ref.shape[3]
    H, W, Cop = o_ref.shape[1], o_ref.shape[2], o_ref.shape[3]
    Ct = C1p + C2p

    # --- border-only zeroing of the halo buffers (interior is fully overwritten
    #     every step; per-step border zeroing stays correct with per-core scratch
    #     under a "parallel" batch axis on multi-TensorCore chips). --------------
    def zero_border(buf):
        C = buf.shape[2]
        buf[0:1, :, :] = jnp.zeros((1, W + 2, C), jnp.bfloat16)
        buf[H + 1:H + 2, :, :] = jnp.zeros((1, W + 2, C), jnp.bfloat16)
        buf[1:H + 1, 0:1, :] = jnp.zeros((H, 1, C), jnp.bfloat16)
        buf[1:H + 1, W + 1:W + 2, :] = jnp.zeros((H, 1, C), jnp.bfloat16)

    zero_border(pad)
    zero_border(ypad)

    # --- fused 2x nearest upsample of x1 + channel concat with x2, written into
    #     the single merged halo buffer: channels [0:C1p]=up(x1), [C1p:Ct]=x2. ----
    x1s = x1_ref[0]                                                     # (H0,W0,C1p) f32
    # H-repeat: broadcast + reshape touching leading dims only (free relayout).
    x1h = jnp.broadcast_to(x1s[:, None, :, :], (H0, 2, W0, C1p)).reshape(2 * H0, W0, C1p)
    # W-repeat: sublane broadcast + fold into the second-minor dim.
    x1u = jnp.broadcast_to(x1h[:, :, None, :], (H, W0, 2, C1p)).reshape(H, W, C1p)
    pad[1:H + 1, 1:W + 1, :] = jnp.concatenate(
        [x1u.astype(jnp.bfloat16), x2_ref[0]], axis=-1)

    # --- conv1: single im2col bf16 matmul (K = 9*Ct), f32 acc, bias+ReLU epilogue
    #     (BN scale was pre-folded into the weight columns at init time). ---------
    for t in range(9):
        ky, kx = t // 3, t % 3
        p1[:, t * Ct:(t + 1) * Ct] = pad[ky:ky + H, kx:kx + W, :].reshape(H * W, Ct)
    acc1 = jnp.dot(p1[...], w1_ref[...], preferred_element_type=jnp.float32)
    y1 = jnp.maximum(acc1 + b1_ref[...], 0.0)
    # conv1 activation stays in VMEM (bf16) with a 1-pixel halo; no HBM trip.
    ypad[1:H + 1, 1:W + 1, :] = y1.astype(jnp.bfloat16).reshape(H, W, Cop)

    # --- conv2: 9 tap matmuls accumulated in f32 (no (H*W, 9*Cop) im2col scratch).
    # TODO(synk): on v6e/v7x fuse taps in pairs (K = 2*Cop = 256) to fill the
    #             256-wide MXU when Cop == 128.
    acc2 = None
    for t in range(9):
        ky, kx = t // 3, t % 3
        patch = ypad[ky:ky + H, kx:kx + W, :].reshape(H * W, Cop)
        d = jnp.dot(patch, w2_ref[t], preferred_element_type=jnp.float32)
        acc2 = d if acc2 is None else acc2 + d
    y2 = jnp.maximum(acc2 + b2_ref[...], 0.0)
    o_ref[...] = y2.reshape(1, H, W, Cop).astype(o_ref.dtype)


def _fused_decoder_block(x1_nhwc, x2_nhwc, w1, b1, w2, b2):
    N, H0, W0, C1p = x1_nhwc.shape
    _, H, W, C2p = x2_nhwc.shape
    K1, Cop = w1.shape

    cost = pl.CostEstimate(
        flops=int(2 * N * H * W * Cop * (K1 + 9 * Cop)),
        transcendentals=0,
        bytes_accessed=int(x1_nhwc.size * 4 + x2_nhwc.size * 2
                           + (w1.size + w2.size) * 2 + N * H * W * Cop * 2))

    # Size the VMEM budget per generation (v5e/v6e 128 MiB, v7x 64 MiB).
    try:
        vmem_cap = int(pltpu.get_tpu_info().vmem_capacity_bytes)
    except Exception:
        vmem_cap = 64 * 1024 * 1024
    vmem_limit = max(32 * 1024 * 1024, min(vmem_cap * 3 // 4, 96 * 1024 * 1024))

    # TODO(synk): for production H/W add an H-tile grid axis (manual halo DMA of one
    # extra row per conv) so scratch / output blocks scale with the tile, and mark
    # that axis "parallel" so v7x's 2 TensorCores stay busy when N == 1.
    return pl.pallas_call(
        _decoder_block_kernel,
        out_shape=jax.ShapeDtypeStruct((N, H, W, Cop), jnp.bfloat16),
        grid=(N,),
        in_specs=[
            pl.BlockSpec((1, H0, W0, C1p), lambda n: (n, 0, 0, 0)),
            pl.BlockSpec((1, H, W, C2p), lambda n: (n, 0, 0, 0)),
            pl.BlockSpec((K1, Cop), lambda n: (0, 0)),
            pl.BlockSpec((1, Cop), lambda n: (0, 0)),
            pl.BlockSpec((9, Cop, Cop), lambda n: (0, 0, 0)),
            pl.BlockSpec((1, Cop), lambda n: (0, 0)),
        ],
        out_specs=pl.BlockSpec((1, H, W, Cop), lambda n: (n, 0, 0, 0)),
        scratch_shapes=[
            pltpu.VMEM((H + 2, W + 2, C1p + C2p), jnp.bfloat16),  # merged input halo
            pltpu.VMEM((H + 2, W + 2, Cop), jnp.bfloat16),        # conv1 act + halo
            pltpu.VMEM((H * W, K1), jnp.bfloat16),                # conv1 im2col patches
        ],
        compiler_params=pltpu.CompilerParams(
            dimension_semantics=("parallel",),                    # batch over TCs (v7x)
            vmem_limit_bytes=int(vmem_limit)),
        cost_estimate=cost,
    )(x1_nhwc, x2_nhwc, w1, b1, w2, b2)


# ----------------------------------------------------------------------------
# DecoderBlock parameters (deterministic synthetic init, BN folded for eval)
# ----------------------------------------------------------------------------
def init_decoder_block_params(key, cin, cadd, cout):
    eps = 1e-5
    cin_total = cin + cadd
    ks = jax.random.split(key, 10)

    def bn_fold(kg, kb, km, kv, c):
        gamma = 1.0 + 0.1 * jax.random.normal(kg, (c,), jnp.float32)
        beta = 0.1 * jax.random.normal(kb, (c,), jnp.float32)
        mean = 0.1 * jax.random.normal(km, (c,), jnp.float32)
        var = jnp.abs(jax.random.normal(kv, (c,), jnp.float32)) + 0.5
        scale = gamma / jnp.sqrt(var + eps)
        bias = beta - mean * scale
        return scale, bias

    # raw weights in HWIO (kh, kw, cin, cout)
    w1 = 0.1 * jax.random.normal(ks[0], (3, 3, cin_total, cout), jnp.float32)
    s1, b1 = bn_fold(ks[1], ks[2], ks[3], ks[4], cout)
    w2 = 0.1 * jax.random.normal(ks[5], (3, 3, cout, cout), jnp.float32)
    s2, b2 = bn_fold(ks[6], ks[7], ks[8], ks[9], cout)

    C1p = _ceil_to(cin, 8)                 # sublane-friendly x1 channels
    C2p = _ceil_to(max(cadd, 1), 8)        # sublane-friendly skip channels
    Ct = C1p + C2p
    Cop = _ceil_to(cout, 128)              # lane-dense output / intermediate channels

    # conv1 weight: per-tap rows laid out as [up(x1) channels | x2 channels],
    # channel zero-padded, BN scale folded into the output columns.
    s1p = jnp.pad(s1, (0, Cop - cout))
    w1p = jnp.zeros((3, 3, Ct, Cop), jnp.float32)
    w1p = w1p.at[:, :, :cin, :cout].set(w1[:, :, :cin, :])
    if cadd > 0:
        w1p = w1p.at[:, :, C1p:C1p + cadd, :cout].set(w1[:, :, cin:, :])
    w1_im2col = (w1p * s1p).reshape(9 * Ct, Cop).astype(jnp.bfloat16)

    # conv2 weight: per-tap (Cop_in, Cop_out) blocks, BN scale folded.
    s2p = jnp.pad(s2, (0, Cop - cout))
    w2p = jnp.zeros((3, 3, Cop, Cop), jnp.float32)
    w2p = w2p.at[:, :, :cout, :cout].set(w2)
    w2_taps = (w2p * s2p).reshape(9, Cop, Cop).astype(jnp.bfloat16)

    def pad_vec(v):
        return jnp.pad(v, (0, Cop - v.shape[0])).reshape(1, Cop).astype(jnp.float32)

    return dict(
        cin=cin, cadd=cadd, cout=cout, c1p=C1p, c2p=C2p, cop=Cop,
        # raw params (used by the pure-JAX reference)
        w1=w1, w2=w2, s1_raw=s1, b1_raw=b1, s2_raw=s2, b2_raw=b2,
        # preprocessed kernel params
        w1_im2col=w1_im2col, w2_taps=w2_taps,
        b1=pad_vec(b1), b2=pad_vec(b2),
    )


def decoder_block_forward(params, x1_nchw, x2_nchw=None):
    """Matches DecoderBlock.forward; inputs/outputs NCHW like the PyTorch module."""
    cin, cadd, cout = params["cin"], params["cadd"], params["cout"]
    C1p, C2p = params["c1p"], params["c2p"]

    N, c1, H0, W0 = x1_nchw.shape
    H, W = 2 * H0, 2 * W0
    assert c1 == cin, "x1 channel count must equal `cin`"
    assert H % 8 == 0 and W % 8 == 0, "upsampled spatial dims must be multiples of 8"

    # x1 stays at its coarse resolution: the 2x nearest upsample happens inside the
    # kernel while filling the halo buffer (no HBM pass over the 4x-larger tensor).
    x1 = jnp.transpose(x1_nchw, (0, 2, 3, 1)).astype(jnp.float32)
    x1 = jnp.pad(x1, ((0, 0), (0, 0), (0, 0), (0, C1p - cin)))

    if cadd > 0:
        assert x2_nchw is not None and x2_nchw.shape[1] >= cadd
        x2 = x2_nchw[:, :cadd]            # mirrors torch: cat(...)[:, :cin+cadd]
    else:
        # last decoder block has no skip; feed zero channels (matching w1 rows are 0)
        x2 = jnp.zeros((N, 1, H, W), x1_nchw.dtype)
    x2 = jnp.transpose(x2, (0, 2, 3, 1)).astype(jnp.bfloat16)
    x2 = jnp.pad(x2, ((0, 0), (0, 0), (0, 0), (0, C2p - x2.shape[-1])))

    y = _fused_decoder_block(x1, x2, params["w1_im2col"], params["b1"],
                             params["w2_taps"], params["b2"])

    # TODO(synk): downstream decoder stages should consume the bf16 NHWC output
    # directly; the NCHW/f32 conversion below only mirrors the PyTorch contract.
    return jnp.transpose(y[..., :cout].astype(jnp.float32), (0, 3, 1, 2))


# ----------------------------------------------------------------------------
# Pure-JAX reference (same bf16 operand quantisation, f32 accumulation)
# ----------------------------------------------------------------------------
def _ref_forward(params, x1_nchw, x2_nchw=None):
    cin, cadd = params["cin"], params["cadd"]
    x1 = jnp.repeat(jnp.repeat(x1_nchw, 2, axis=2), 2, axis=3)
    if x2_nchw is not None:
        x1 = jnp.concatenate([x1, x2_nchw], axis=1)
    x1 = x1[:, :cin + cadd]
    x = jnp.transpose(x1, (0, 2, 3, 1))

    def conv_bn_relu(x, w, s, b):
        y = lax.conv_general_dilated(
            x.astype(jnp.bfloat16), w.astype(jnp.bfloat16),
            window_strides=(1, 1), padding="SAME",
            dimension_numbers=("NHWC", "HWIO", "NHWC"),
            preferred_element_type=jnp.float32)
        return jnp.maximum(y * s + b, 0.0)

    x = conv_bn_relu(x, params["w1"], params["s1_raw"], params["b1_raw"])
    x = conv_bn_relu(x, params["w2"], params["s2_raw"], params["b2_raw"])
    return jnp.transpose(x, (0, 3, 1, 2))


if __name__ == "__main__":
    key = jax.random.PRNGKey(0)
    k1, k2, kp = jax.random.split(key, 3)

    # DecoderBlock(cin=4, cadd=2, cout=8): x1 is the coarse feature map,
    # x2 is the skip connection at the (already 2x larger) resolution.
    cin, cadd, cout = 4, 2, 8
    N, H0, W0 = 2, 8, 8
    x1 = jax.random.normal(k1, (N, cin, H0, W0), jnp.float32)          # NCHW
    x2 = jax.random.normal(k2, (N, cadd, 2 * H0, 2 * W0), jnp.float32)

    params = init_decoder_block_params(kp, cin, cadd, cout)

    fwd = jax.jit(functools.partial(decoder_block_forward, params))
    out = jax.block_until_ready(fwd(x1, x2))

    ref = jax.block_until_ready(_ref_forward(params, x1, x2))
    assert out.shape == (N, cout, 2 * H0, 2 * W0), out.shape
    max_err = float(jnp.max(jnp.abs(out - ref)))
    # bf16 output + BN scale folded into bf16 weights -> slightly looser than the
    # previous f32-output tolerance.
    assert jnp.allclose(out, ref, atol=3e-2, rtol=3e-2), max_err

    print("KERNEL_OK")
</pallas_src>

<mosaic_0001>
module attributes {stable_mosaic.version = 11 : i64} {
  func.func @_decoder_block_kernel(%arg0: i32, %arg1: memref<1x8x8x8xf32, #tpu.memory_space<vmem>>, %arg2: memref<1x16x16x8xbf16, #tpu.memory_space<vmem>>, %arg3: memref<144x128xbf16, #tpu.memory_space<vmem>>, %arg4: memref<1x128xf32, #tpu.memory_space<vmem>>, %arg5: memref<9x128x128xbf16, #tpu.memory_space<vmem>>, %arg6: memref<1x128xf32, #tpu.memory_space<vmem>>, %arg7: memref<1x16x16x128xbf16, #tpu.memory_space<vmem>>, %arg8: memref<18x18x16xbf16, #tpu.memory_space<vmem>>, %arg9: memref<18x18x128xbf16, #tpu.memory_space<vmem>>, %arg10: memref<256x144xbf16, #tpu.memory_space<vmem>>) attributes {dimension_semantics = [#tpu.dimension_semantics<parallel>], iteration_bounds = array<i64: 2>, scalar_prefetch = 0 : i64, scratch_operands = 3 : i64, tpu.core_type = #tpu.core_type<tc>, window_params = [{transform_indices = @transform_0, window_bounds = array<i64: 1, 8, 8, 8>}, {transform_indices = @transform_1, window_bounds = array<i64: 1, 16, 16, 8>}, {pipeline_mode = #tpu.pipeline_mode<synchronous>, transform_indices = @transform_2, window_bounds = array<i64: 144, 128>}, {pipeline_mode = #tpu.pipeline_mode<synchronous>, transform_indices = @transform_3, window_bounds = array<i64: 1, 128>}, {pipeline_mode = #tpu.pipeline_mode<synchronous>, transform_indices = @transform_4, window_bounds = array<i64: 9, 128, 128>}, {pipeline_mode = #tpu.pipeline_mode<synchronous>, transform_indices = @transform_5, window_bounds = array<i64: 1, 128>}, {transform_indices = @transform_6, window_bounds = array<i64: 1, 16, 16, 128>}]} {
    %cst = arith.constant 0.000000e+00 : bf16
    %0 = vector.broadcast %cst : bf16 to vector<1x18x16xbf16>
    %c0 = arith.constant 0 : index
    %c0_0 = arith.constant 0 : index
    %c0_1 = arith.constant 0 : index
    %1 = vector.load %arg8[%c0, %c0_0, %c0_1] : memref<18x18x16xbf16, #tpu.memory_space<vmem>>, vector<1x18x16xbf16>
    tpu.vector_store %arg8[%c0, %c0_0, %c0_1], %0 {strides = array<i32>} : memref<18x18x16xbf16, #tpu.memory_space<vmem>>, vector<1x18x16xbf16>,
    %cst_2 = arith.constant 0.000000e+00 : bf16
    %2 = vector.broadcast %cst_2 : bf16 to vector<1x18x16xbf16>
    %c17 = arith.constant 17 : index
    %c0_3 = arith.constant 0 : index
    %c0_4 = arith.constant 0 : index
    %3 = vector.load %arg8[%c17, %c0_3, %c0_4] : memref<18x18x16xbf16, #tpu.memory_space<vmem>>, vector<1x18x16xbf16>
    tpu.vector_store %arg8[%c17, %c0_3, %c0_4], %2 {strides = array<i32>} : memref<18x18x16xbf16, #tpu.memory_space<vmem>>, vector<1x18x16xbf16>,
    %cst_5 = arith.constant 0.000000e+00 : bf16
    %4 = vector.broadcast %cst_5 : bf16 to vector<16x1x16xbf16>
    %c1 = arith.constant 1 : index
    %c0_6 = arith.constant 0 : index
    %c0_7 = arith.constant 0 : index
    %5 = vector.load %arg8[%c1, %c0_6, %c0_7] : memref<18x18x16xbf16, #tpu.memory_space<vmem>>, vector<16x1x16xbf16>
    tpu.vector_store %arg8[%c1, %c0_6, %c0_7], %4 {strides = array<i32>} : memref<18x18x16xbf16, #tpu.memory_space<vmem>>, vector<16x1x16xbf16>,
    %cst_8 = arith.constant 0.000000e+00 : bf16
    %6 = vector.broadcast %cst_8 : bf16 to vector<16x1x16xbf16>
    %c1_9 = arith.constant 1 : index
    %c17_10 = arith.constant 17 : index
    %c0_11 = arith.constant 0 : index
    %7 = vector.load %arg8[%c1_9, %c17_10, %c0_11] : memref<18x18x16xbf16, #tpu.memory_space<vmem>>, vector<16x1x16xbf16>
    tpu.vector_store %arg8[%c1_9, %c17_10, %c0_11], %6 {strides = array<i32>} : memref<18x18x16xbf16, #tpu.memory_space<vmem>>, vector<16x1x16xbf16>,
    %cst_12 = arith.constant 0.000000e+00 : bf16
    %8 = vector.broadcast %cst_12 : bf16 to vector<1x18x128xbf16>
    %c0_13 = arith.constant 0 : index
    %c0_14 = arith.constant 0 : index
    %c0_15 = arith.constant 0 : index
    %9 = vector.load %arg9[%c0_13, %c0_14, %c0_15] : memref<18x18x128xbf16, #tpu.memory_space<vmem>>, vector<1x18x128xbf16>
    tpu.vector_store %arg9[%c0_13, %c0_14, %c0_15], %8 {strides = array<i32>} : memref<18x18x128xbf16, #tpu.memory_space<vmem>>, vector<1x18x128xbf16>,
    %cst_16 = arith.constant 0.000000e+00 : bf16
    %10 = vector.broadcast %cst_16 : bf16 to vector<1x18x128xbf16>
    %c17_17 = arith.constant 17 : index
    %c0_18 = arith.constant 0 : index
    %c0_19 = arith.constant 0 : index
    %11 = vector.load %arg9[%c17_17, %c0_18, %c0_19] : memref<18x18x128xbf16, #tpu.memory_space<vmem>>, vector<1x18x128xbf16>
    tpu.vector_store %arg9[%c17_17, %c0_18, %c0_19], %10 {strides = array<i32>} : memref<18x18x128xbf16, #tpu.memory_space<vmem>>, vector<1x18x128xbf16>,
    %cst_20 = arith.constant 0.000000e+00 : bf16
    %12 = vector.broadcast %cst_20 : bf16 to vector<16x1x128xbf16>
    %c1_21 = arith.constant 1 : index
    %c0_22 = arith.constant 0 : index
    %c0_23 = arith.constant 0 : index
    %13 = vector.load %arg9[%c1_21, %c0_22, %c0_23] : memref<18x18x128xbf16, #tpu.memory_space<vmem>>, vector<16x1x128xbf16>
    tpu.vector_store %arg9[%c1_21, %c0_22, %c0_23], %12 {strides = array<i32>} : memref<18x18x128xbf16, #tpu.memory_space<vmem>>, vector<16x1x128xbf16>,
    %cst_24 = arith.constant 0.000000e+00 : bf16
    %14 = vector.broadcast %cst_24 : bf16 to vector<16x1x128xbf16>
    %c1_25 = arith.constant 1 : index
    %c17_26 = arith.constant 17 : index
    %c0_27 = arith.constant 0 : index
    %15 = vector.load %arg9[%c1_25, %c17_26, %c0_27] : memref<18x18x128xbf16, #tpu.memory_space<vmem>>, vector<16x1x128xbf16>
    tpu.vector_store %arg9[%c1_25, %c17_26, %c0_27], %14 {strides = array<i32>} : memref<18x18x128xbf16, #tpu.memory_space<vmem>>, vector<16x1x128xbf16>,
    %c0_28 = arith.constant 0 : index
    %c0_29 = arith.constant 0 : index
    %c0_30 = arith.constant 0 : index
    %c0_31 = arith.constant 0 : index
    %16 = vector.load %arg1[%c0_28, %c0_29, %c0_30, %c0_31] : memref<1x8x8x8xf32, #tpu.memory_space<vmem>>, vector<1x8x8x8xf32>
    %17 = vector.shape_cast %16 : vector<1x8x8x8xf32> to vector<8x8x8xf32>
    %18 = vector.shape_cast %17 : vector<8x8x8xf32> to vector<8x1x8x8xf32>
    %19 = vector.shape_cast %18 : vector<8x1x8x8xf32> to vector<8x1x8x8xf32>
    %20 = vector.broadcast %19 : vector<8x1x8x8xf32> to vector<8x2x8x8xf32>
    %21 = vector.shape_cast %20 : vector<8x2x8x8xf32> to vector<16x8x8xf32>
    %22 = vector.shape_cast %21 : vector<16x8x8xf32> to vector<16x8x1x8xf32>
    %23 = vector.shape_cast %22 : vector<16x8x1x8xf32> to vector<16x8x1x8xf32>
    %24 = vector.broadcast %23 : vector<16x8x1x8xf32> to vector<16x8x2x8xf32>
    %25 = vector.shape_cast %24 : vector<16x8x2x8xf32> to vector<16x16x8xf32>
    %26 = arith.truncf %25 : vector<16x16x8xf32> to vector<16x16x8xbf16>
    %c0_32 = arith.constant 0 : index
    %c0_33 = arith.constant 0 : index
    %c0_34 = arith.constant 0 : index
    %c0_35 = arith.constant 0 : index
    %27 = vector.load %arg2[%c0_32, %c0_33, %c0_34, %c0_35] : memref<1x16x16x8xbf16, #tpu.memory_space<vmem>>, vector<1x16x16x8xbf16>
    %28 = vector.shape_cast %27 : vector<1x16x16x8xbf16> to vector<16x16x8xbf16>
    %29 = tpu.concatenate %26, %28 in 2 : vector<16x16x8xbf16>, vector<16x16x8xbf16> -> vector<16x16x16xbf16>
    %c1_36 = arith.constant 1 : index
    %c1_37 = arith.constant 1 : index
    %c0_38 = arith.constant 0 : index
    %30 = vector.load %arg8[%c1_36, %c1_37, %c0_38] : memref<18x18x16xbf16, #tpu.memory_space<vmem>>, vector<16x16x16xbf16>
    tpu.vector_store %arg8[%c1_36, %c1_37, %c0_38], %29 {strides = array<i32>} : memref<18x18x16xbf16, #tpu.memory_space<vmem>>, vector<16x16x16xbf16>,
    %c0_39 = arith.constant 0 : index
    %c0_40 = arith.constant 0 : index
    %c0_41 = arith.constant 0 : index
    %31 = vector.load %arg8[%c0_39, %c0_40, %c0_41] : memref<18x18x16xbf16, #tpu.memory_space<vmem>>, vector<16x16x16xbf16>
    %32 = vector.shape_cast %31 : vector<16x16x16xbf16> to vector<256x16xbf16>
    %c0_42 = arith.constant 0 : index
    %c0_43 = arith.constant 0 : index
    %33 = vector.load %arg10[%c0_42, %c0_43] : memref<256x144xbf16, #tpu.memory_space<vmem>>, vector<256x16xbf16>
    tpu.vector_store %arg10[%c0_42, %c0_43], %32 {strides = array<i32>} : memref<256x144xbf16, #tpu.memory_space<vmem>>, vector<256x16xbf16>,
    %c0_44 = arith.constant 0 : index
    %c1_45 = arith.constant 1 : index
    %c0_46 = arith.constant 0 : index
    %34 = vector.load %arg8[%c0_44, %c1_45, %c0_46] : memref<18x18x16xbf16, #tpu.memory_space<vmem>>, vector<16x16x16xbf16>
    %35 = vector.shape_cast %34 : vector<16x16x16xbf16> to vector<256x16xbf16>
    %c0_47 = arith.constant 0 : index
    %c16 = arith.constant 16 : index
    %36 = vector.load %arg10[%c0_47, %c16] : memref<256x144xbf16, #tpu.memory_space<vmem>>, vector<256x16xbf16>
    tpu.vector_store %arg10[%c0_47, %c16], %35 {strides = array<i32>} : memref<256x144xbf16, #tpu.memory_space<vmem>>, vector<256x16xbf16>,
    %c0_48 = arith.constant 0 : index
    %c2 = arith.constant 2 : index
    %c0_49 = arith.constant 0 : index
    %37 = vector.load %arg8[%c0_48, %c2, %c0_49] : memref<18x18x16xbf16, #tpu.memory_space<vmem>>, vector<16x16x16xbf16>
    %38 = vector.shape_cast %37 : vector<16x16x16xbf16> to vector<256x16xbf16>
    %c0_50 = arith.constant 0 : index
    %c32 = arith.constant 32 : index
    %39 = vector.load %arg10[%c0_50, %c32] : memref<256x144xbf16, #tpu.memory_space<vmem>>, vector<256x16xbf16>
    tpu.vector_store %arg10[%c0_50, %c32], %38 {strides = array<i32>} : memref<256x144xbf16, #tpu.memory_space<vmem>>, vector<256x16xbf16>,
    %c1_51 = arith.constant 1 : index
    %c0_52 = arith.constant 0 : index
    %c0_53 = arith.constant 0 : index
    %40 = vector.load %arg8[%c1_51, %c0_52, %c0_53] : memref<18x18x16xbf16, #tpu.memory_space<vmem>>, vector<16x16x16xbf16>
    %41 = vector.shape_cast %40 : vector<16x16x16xbf16> to vector<256x16xbf16>
    %c0_54 = arith.constant 0 : index
    %c48 = arith.constant 48 : index
    %42 = vector.load %arg10[%c0_54, %c48] : memref<256x144xbf16, #tpu.memory_space<vmem>>, vector<256x16xbf16>
    tpu.vector_store %arg10[%c0_54, %c48], %41 {strides = array<i32>} : memref<256x144xbf16, #tpu.memory_space<vmem>>, vector<256x16xbf16>,
    %c1_55 = arith.constant 1 : index
    %c1_56 = arith.constant 1 : index
    %c0_57 = arith.constant 0 : index
    %43 = vector.load %arg8[%c1_55, %c1_56, %c0_57] : memref<18x18x16xbf16, #tpu.memory_space<vmem>>, vector<16x16x16xbf16>
    %44 = vector.shape_cast %43 : vector<16x16x16xbf16> to vector<256x16xbf16>
    %c0_58 = arith.constant 0 : index
    %c64 = arith.constant 64 : index
    %45 = vector.load %arg10[%c0_58, %c64] : memref<256x144xbf16, #tpu.memory_space<vmem>>, vector<256x16xbf16>
    tpu.vector_store %arg10[%c0_58, %c64], %44 {strides = array<i32>} : memref<256x144xbf16, #tpu.memory_space<vmem>>, vector<256x16xbf16>,
    %c1_59 = arith.constant 1 : index
    %c2_60 = arith.constant 2 : index
    %c0_61 = arith.constant 0 : index
    %46 = vector.load %arg8[%c1_59, %c2_60, %c0_61] : memref<18x18x16xbf16, #tpu.memory_space<vmem>>, vector<16x16x16xbf16>
    %47 = vector.shape_cast %46 : vector<16x16x16xbf16> to vector<256x16xbf16>
    %c0_62 = arith.constant 0 : index
    %c80 = arith.constant 80 : index
    %48 = vector.load %arg10[%c0_62, %c80] : memref<256x144xbf16, #tpu.memory_space<vmem>>, vector<256x16xbf16>
    tpu.vector_store %arg10[%c0_62, %c80], %47 {strides = array<i32>} : memref<256x144xbf16, #tpu.memory_space<vmem>>, vector<256x16xbf16>,
    %c2_63 = arith.constant 2 : index
    %c0_64 = arith.constant 0 : index
    %c0_65 = arith.constant 0 : index
    %49 = vector.load %arg8[%c2_63, %c0_64, %c0_65] : memref<18x18x16xbf16, #tpu.memory_space<vmem>>, vector<16x16x16xbf16>
    %50 = vector.shape_cast %49 : vector<16x16x16xbf16> to vector<256x16xbf16>
    %c0_66 = arith.constant 0 : index
    %c96 = arith.constant 96 : index
    %51 = vector.load %arg10[%c0_66, %c96] : memref<256x144xbf16, #tpu.memory_space<vmem>>, vector<256x16xbf16>
    tpu.vector_store %arg10[%c0_66, %c96], %50 {strides = array<i32>} : memref<256x144xbf16, #tpu.memory_space<vmem>>, vector<256x16xbf16>,
    %c2_67 = arith.constant 2 : index
    %c1_68 = arith.constant 1 : index
    %c0_69 = arith.constant 0 : index
    %52 = vector.load %arg8[%c2_67, %c1_68, %c0_69] : memref<18x18x16xbf16, #tpu.memory_space<vmem>>, vector<16x16x16xbf16>
    %53 = vector.shape_cast %52 : vector<16x16x16xbf16> to vector<256x16xbf16>
    %c0_70 = arith.constant 0 : index
    %c112 = arith.constant 112 : index
    %54 = vector.load %arg10[%c0_70, %c112] : memref<256x144xbf16, #tpu.memory_space<vmem>>, vector<256x16xbf16>
    tpu.vector_store %arg10[%c0_70, %c112], %53 {strides = array<i32>} : memref<256x144xbf16, #tpu.memory_space<vmem>>, vector<256x16xbf16>,
    %c2_71 = arith.constant 2 : index
    %c2_72 = arith.constant 2 : index
    %c0_73 = arith.constant 0 : index
    %55 = vector.load %arg8[%c2_71, %c2_72, %c0_73] : memref<18x18x16xbf16, #tpu.memory_space<vmem>>, vector<16x16x16xbf16>
    %56 = vector.shape_cast %55 : vector<16x16x16xbf16> to vector<256x16xbf16>
    %c0_74 = arith.constant 0 : index
    %c128 = arith.constant 128 : index
    %57 = vector.load %arg10[%c0_74, %c128] : memref<256x144xbf16, #tpu.memory_space<vmem>>, vector<256x16xbf16>
    tpu.vector_store %arg10[%c0_74, %c128], %56 {strides = array<i32>} : memref<256x144xbf16, #tpu.memory_space<vmem>>, vector<256x16xbf16>,
    %c0_75 = arith.constant 0 : index
    %c0_76 = arith.constant 0 : index
    %58 = vector.load %arg10[%c0_75, %c0_76] : memref<256x144xbf16, #tpu.memory_space<vmem>>, vector<256x144xbf16>
    %c0_77 = arith.constant 0 : index
    %c0_78 = arith.constant 0 : index
    %59 = vector.load %arg3[%c0_77, %c0_78] : memref<144x128xbf16, #tpu.memory_space<vmem>>, vector<144x128xbf16>
    %cst_79 = arith.constant dense<0.000000e+00> : vector<256x128xf32>
    %60 = tpu.matmul %58, %59, %cst_79 {dimension_numbers = #tpu.dot_dimension_numbers<[1], [0], [0], [1], [0, 0, 1, 1], [], []>} : vector<256x144xbf16>, vector<144x128xbf16>, vector<256x128xf32> -> vector<256x128xf32>
    %c0_80 = arith.constant 0 : index
    %c0_81 = arith.constant 0 : index
    %61 = vector.load %arg4[%c0_80, %c0_81] : memref<1x128xf32, #tpu.memory_space<vmem>>, vector<1x128xf32>
    %62 = vector.broadcast %61 : vector<1x128xf32> to vector<256x128xf32>
    %63 = arith.addf %60, %62 : vector<256x128xf32>
    %cst_82 = arith.constant 0.000000e+00 : f32
    %64 = vector.broadcast %cst_82 : f32 to vector<256x128xf32>
    %65 = arith.maximumf %63, %64 : vector<256x128xf32>
    %66 = arith.truncf %65 : vector<256x128xf32> to vector<256x128xbf16>
    %67 = vector.shape_cast %66 : vector<256x128xbf16> to vector<16x16x128xbf16>
    %c1_83 = arith.constant 1 : index
    %c1_84 = arith.constant 1 : index
    %c0_85 = arith.constant 0 : index
    %68 = vector.load %arg9[%c1_83, %c1_84, %c0_85] : memref<18x18x128xbf16, #tpu.memory_space<vmem>>, vector<16x16x128xbf16>
    tpu.vector_store %arg9[%c1_83, %c1_84, %c0_85], %67 {strides = array<i32>} : memref<18x18x128xbf16, #tpu.memory_space<vmem>>, vector<16x16x128xbf16>,
    %c0_86 = arith.constant 0 : index
    %c0_87 = arith.constant 0 : index
    %c0_88 = arith.constant 0 : index
    %69 = vector.load %arg9[%c0_86, %c0_87, %c0_88] : memref<18x18x128xbf16, #tpu.memory_space<vmem>>, vector<16x16x128xbf16>
    %70 = vector.shape_cast %69 : vector<16x16x128xbf16> to vector<256x128xbf16>
    %c0_89 = arith.constant 0 : index
    %c0_90 = arith.constant 0 : index
    %c0_91 = arith.constant 0 : index
    %71 = vector.load %arg5[%c0_89, %c0_90, %c0_91] : memref<9x128x128xbf16, #tpu.memory_space<vmem>>, vector<1x128x128xbf16>
    %72 = vector.shape_cast %71 : vector<1x128x128xbf16> to vector<128x128xbf16>
    %cst_92 = arith.constant dense<0.000000e+00> : vector<256x128xf32>
    %73 = tpu.matmul %70, %72, %cst_92 {dimension_numbers = #tpu.dot_dimension_numbers<[1], [0], [0], [1], [0, 0, 1, 1], [], []>} : vector<256x128xbf16>, vector<128x128xbf16>, vector<256x128xf32> -> vector<256x128xf32>
    %c0_93 = arith.constant 0 : index
    %c1_94 = arith.constant 1 : index
    %c0_95 = arith.constant 0 : index
    %74 = vector.load %arg9[%c0_93, %c1_94, %c0_95] : memref<18x18x128xbf16, #tpu.memory_space<vmem>>, vector<16x16x128xbf16>
    %75 = vector.shape_cast %74 : vector<16x16x128xbf16> to vector<256x128xbf16>
    %c1_96 = arith.constant 1 : index
    %c0_97 = arith.constant 0 : index
    %c0_98 = arith.constant 0 : index
    %76 = vector.load %arg5[%c1_96, %c0_97, %c0_98] : memref<9x128x128xbf16, #tpu.memory_space<vmem>>, vector<1x128x128xbf16>
    %77 = vector.shape_cast %76 : vector<1x128x128xbf16> to vector<128x128xbf16>
    %cst_99 = arith.constant dense<0.000000e+00> : vector<256x128xf32>
    %78 = tpu.matmul %75, %77, %cst_99 {dimension_numbers = #tpu.dot_dimension_numbers<[1], [0], [0], [1], [0, 0, 1, 1], [], []>} : vector<256x128xbf16>, vector<128x128xbf16>, vector<256x128xf32> -> vector<256x128xf32>
    %79 = arith.addf %73, %78 : vector<256x128xf32>
    %c0_100 = arith.constant 0 : index
    %c2_101 = arith.constant 2 : index
    %c0_102 = arith.constant 0 : index
    %80 = vector.load %arg9[%c0_100, %c2_101, %c0_102] : memref<18x18x128xbf16, #tpu.memory_space<vmem>>, vector<16x16x128xbf16>
    %81 = vector.shape_cast %80 : vector<16x16x128xbf16> to vector<256x128xbf16>
    %c2_103 = arith.constant 2 : index
    %c0_104 = arith.constant 0 : index
    %c0_105 = arith.constant 0 : index
    %82 = vector.load %arg5[%c2_103, %c0_104, %c0_105] : memref<9x128x128xbf16, #tpu.memory_space<vmem>>, vector<1x128x128xbf16>
    %83 = vector.shape_cast %82 : vector<1x128x128xbf16> to vector<128x128xbf16>
    %cst_106 = arith.constant dense<0.000000e+00> : vector<256x128xf32>
    %84 = tpu.matmul %81, %83, %cst_106 {dimension_numbers = #tpu.dot_dimension_numbers<[1], [0], [0], [1], [0, 0, 1, 1], [], []>} : vector<256x128xbf16>, vector<128x128xbf16>, vector<256x128xf32> -> vector<256x128xf32>
    %85 = arith.addf %79, %84 : vector<256x128xf32>
    %c1_107 = arith.constant 1 : index
    %c0_108 = arith.constant 0 : index
    %c0_109 = arith.constant 0 : index
    %86 = vector.load %arg9[%c1_107, %c0_108, %c0_109] : memref<18x18x128xbf16, #tpu.memory_space<vmem>>, vector<16x16x128xbf16>
    %87 = vector.shape_cast %86 : vector<16x16x128xbf16> to vector<256x128xbf16>
    %c3 = arith.constant 3 : index
    %c0_110 = arith.constant 0 : index
    %c0_111 = arith.constant 0 : index
    %88 = vector.load %arg5[%c3, %c0_110, %c0_111] : memref<9x128x128xbf16, #tpu.memory_space<vmem>>, vector<1x128x128xbf16>
    %89 = vector.shape_cast %88 : vector<1x128x128xbf16> to vector<128x128xbf16>
    %cst_112 = arith.constant dense<0.000000e+00> : vector<256x128xf32>
    %90 = tpu.matmul %87, %89, %cst_112 {dimension_numbers = #tpu.dot_dimension_numbers<[1], [0], [0], [1], [0, 0, 1, 1], [], []>} : vector<256x128xbf16>, vector<128x128xbf16>, vector<256x128xf32> -> vector<256x128xf32>
    %91 = arith.addf %85, %90 : vector<256x128xf32>
    %c1_113 = arith.constant 1 : index
    %c1_114 = arith.constant 1 : index
    %c0_115 = arith.constant 0 : index
    %92 = vector.load %arg9[%c1_113, %c1_114, %c0_115] : memref<18x18x128xbf16, #tpu.memory_space<vmem>>, vector<16x16x128xbf16>
    %93 = vector.shape_cast %92 : vector<16x16x128xbf16> to vector<256x128xbf16>
    %c4 = arith.constant 4 : index
    %c0_116 = arith.constant 0 : index
    %c0_117 = arith.constant 0 : index
    %94 = vector.load %arg5[%c4, %c0_116, %c0_117] : memref<9x128x128xbf16, #tpu.memory_space<vmem>>, vector<1x128x128xbf16>
    %95 = vector.shape_cast %94 : vector<1x128x128xbf16> to vector<128x128xbf16>
    %cst_118 = arith.constant dense<0.000000e+00> : vector<256x128xf32>
    %96 = tpu.matmul %93, %95, %cst_118 {dimension_numbers = #tpu.dot_dimension_numbers<[1], [0], [0], [1], [0, 0, 1, 1], [], []>} : vector<256x128xbf16>, vector<128x128xbf16>, vector<256x128xf32> -> vector<256x128xf32>
    %97 = arith.addf %91, %96 : vector<256x128xf32>
    %c1_119 = arith.constant 1 : index
    %c2_120 = arith.constant 2 : index
    %c0_121 = arith.constant 0 : index
    %98 = vector.load %arg9[%c1_119, %c2_120, %c0_121] : memref<18x18x128xbf16, #tpu.memory_space<vmem>>, vector<16x16x128xbf16>
    %99 = vector.shape_cast %98 : vector<16x16x128xbf16> to vector<256x128xbf16>
    %c5 = arith.constant 5 : index
    %c0_122 = arith.constant 0 : index
    %c0_123 = arith.constant 0 : index
    %100 = vector.load %arg5[%c5, %c0_122, %c0_123] : memref<9x128x128xbf16, #tpu.memory_space<vmem>>, vector<1x128x128xbf16>
    %101 = vector.shape_cast %100 : vector<1x128x128xbf16> to vector<128x128xbf16>
    %cst_124 = arith.constant dense<0.000000e+00> : vector<256x128xf32>
    %102 = tpu.matmul %99, %101, %cst_124 {dimension_numbers = #tpu.dot_dimension_numbers<[1], [0], [0], [1], [0, 0, 1, 1], [], []>} : vector<256x128xbf16>, vector<128x128xbf16>, vector<256x128xf32> -> vector<256x128xf32>
    %103 = arith.addf %97, %102 : vector<256x128xf32>
    %c2_125 = arith.constant 2 : index
    %c0_126 = arith.constant 0 : index
    %c0_127 = arith.constant 0 : index
    %104 = vector.load %arg9[%c2_125, %c0_126, %c0_127] : memref<18x18x128xbf16, #tpu.memory_space<vmem>>, vector<16x16x128xbf16>
    %105 = vector.shape_cast %104 : vector<16x16x128xbf16> to vector<256x128xbf16>
    %c6 = arith.constant 6 : index
    %c0_128 = arith.constant 0 : index
    %c0_129 = arith.constant 0 : index
    %106 = vector.load %arg5[%c6, %c0_128, %c0_129] : memref<9x128x128xbf16, #tpu.memory_space<vmem>>, vector<1x128x128xbf16>
    %107 = vector.shape_cast %106 : vector<1x128x128xbf16> to vector<128x128xbf16>
    %cst_130 = arith.constant dense<0.000000e+00> : vector<256x128xf32>
    %108 = tpu.matmul %105, %107, %cst_130 {dimension_numbers = #tpu.dot_dimension_numbers<[1], [0], [0], [1], [0, 0, 1, 1], [], []>} : vector<256x128xbf16>, vector<128x128xbf16>, vector<256x128xf32> -> vector<256x128xf32>
    %109 = arith.addf %103, %108 : vector<256x128xf32>
    %c2_131 = arith.constant 2 : index
    %c1_132 = arith.constant 1 : index
    %c0_133 = arith.constant 0 : index
    %110 = vector.load %arg9[%c2_131, %c1_132, %c0_133] : memref<18x18x128xbf16, #tpu.memory_space<vmem>>, vector<16x16x128xbf16>
    %111 = vector.shape_cast %110 : vector<16x16x128xbf16> to vector<256x128xbf16>
    %c7 = arith.constant 7 : index
    %c0_134 = arith.constant 0 : index
    %c0_135 = arith.constant 0 : index
    %112 = vector.load %arg5[%c7, %c0_134, %c0_135] : memref<9x128x128xbf16, #tpu.memory_space<vmem>>, vector<1x128x128xbf16>
    %113 = vector.shape_cast %112 : vector<1x128x128xbf16> to vector<128x128xbf16>
    %cst_136 = arith.constant dense<0.000000e+00> : vector<256x128xf32>
    %114 = tpu.matmul %111, %113, %cst_136 {dimension_numbers = #tpu.dot_dimension_numbers<[1], [0], [0], [1], [0, 0, 1, 1], [], []>} : vector<256x128xbf16>, vector<128x128xbf16>, vector<256x128xf32> -> vector<256x128xf32>
    %115 = arith.addf %109, %114 : vector<256x128xf32>
    %c2_137 = arith.constant 2 : index
    %c2_138 = arith.constant 2 : index
    %c0_139 = arith.constant 0 : index
    %116 = vector.load %arg9[%c2_137, %c2_138, %c0_139] : memref<18x18x128xbf16, #tpu.memory_space<vmem>>, vector<16x16x128xbf16>
    %117 = vector.shape_cast %116 : vector<16x16x128xbf16> to vector<256x128xbf16>
    %c8 = arith.constant 8 : index
    %c0_140 = arith.constant 0 : index
    %c0_141 = arith.constant 0 : index
    %118 = vector.load %arg5[%c8, %c0_140, %c0_141] : memref<9x128x128xbf16, #tpu.memory_space<vmem>>, vector<1x128x128xbf16>
    %119 = vector.shape_cast %118 : vector<1x128x128xbf16> to vector<128x128xbf16>
    %cst_142 = arith.constant dense<0.000000e+00> : vector<256x128xf32>
    %120 = tpu.matmul %117, %119, %cst_142 {dimension_numbers = #tpu.dot_dimension_numbers<[1], [0], [0], [1], [0, 0, 1, 1], [], []>} : vector<256x128xbf16>, vector<128x128xbf16>, vector<256x128xf32> -> vector<256x128xf32>
    %121 = arith.addf %115, %120 : vector<256x128xf32>
    %c0_143 = arith.constant 0 : index
    %c0_144 = arith.constant 0 : index
    %122 = vector.load %arg6[%c0_143, %c0_144] : memref<1x128xf32, #tpu.memory_space<vmem>>, vector<1x128xf32>
    %123 = vector.broadcast %122 : vector<1x128xf32> to vector<256x128xf32>
    %124 = arith.addf %121, %123 : vector<256x128xf32>
    %cst_145 = arith.constant 0.000000e+00 : f32
    %125 = vector.broadcast %cst_145 : f32 to vector<256x128xf32>
    %126 = arith.maximumf %124, %125 : vector<256x128xf32>
    %127 = vector.shape_cast %126 : vector<256x128xf32> to vector<1x16x16x128xf32>
    %128 = arith.truncf %127 : vector<1x16x16x128xf32> to vector<1x16x16x128xbf16>
    %c0_146 = arith.constant 0 : index
    %c0_147 = arith.constant 0 : index
    %c0_148 = arith.constant 0 : index
    %c0_149 = arith.constant 0 : index
    %129 = vector.load %arg7[%c0_146, %c0_147, %c0_148, %c0_149] : memref<1x16x16x128xbf16, #tpu.memory_space<vmem>>, vector<1x16x16x128xbf16>
    tpu.vector_store %arg7[%c0_146, %c0_147, %c0_148, %c0_149], %128 {strides = array<i32>} : memref<1x16x16x128xbf16, #tpu.memory_space<vmem>>, vector<1x16x16x128xbf16>,
    return
  }
  func.func @transform_0(%arg0: i32) -> (i32, i32, i32, i32) {
    %c0_i32 = arith.constant 0 : i32
    %c0_i32_0 = arith.constant 0 : i32
    %c0_i32_1 = arith.constant 0 : i32
    %c0_i32_2 = arith.constant 0 : i32
    return %arg0, %c0_i32, %c0_i32_0, %c0_i32_1 : i32, i32, i32, i32
  }
  func.func @transform_1(%arg0: i32) -> (i32, i32, i32, i32) {
    %c0_i32 = arith.constant 0 : i32
    %c0_i32_0 = arith.constant 0 : i32
    %c0_i32_1 = arith.constant 0 : i32
    %c0_i32_2 = arith.constant 0 : i32
    return %arg0, %c0_i32, %c0_i32_0, %c0_i32_1 : i32, i32, i32, i32
  }
  func.func @transform_2(%arg0: i32) -> (i32, i32) {
    %c0_i32 = arith.constant 0 : i32
    %c0_i32_0 = arith.constant 0 : i32
    %c0_i32_1 = arith.constant 0 : i32
    return %c0_i32, %c0_i32_0 : i32, i32
  }
  func.func @transform_3(%arg0: i32) -> (i32, i32) {
    %c0_i32 = arith.constant 0 : i32
    %c0_i32_0 = arith.constant 0 : i32
    %c0_i32_1 = arith.constant 0 : i32
    return %c0_i32, %c0_i32_0 : i32, i32
  }
  func.func @transform_4(%arg0: i32) -> (i32, i32, i32) {
    %c0_i32 = arith.constant 0 : i32
    %c0_i32_0 = arith.constant 0 : i32
    %c0_i32_1 = arith.constant 0 : i32
    %c0_i32_2 = arith.constant 0 : i32
    return %c0_i32, %c0_i32_0, %c0_i32_1 : i32, i32, i32
  }
  func.func @transform_5(%arg0: i32) -> (i32, i32) {
    %c0_i32 = arith.constant 0 : i32
    %c0_i32_0 = arith.constant 0 : i32
    %c0_i32_1 = arith.constant 0 : i32
    return %c0_i32, %c0_i32_0 : i32, i32
  }
  func.func @transform_6(%arg0: i32) -> (i32, i32, i32, i32) {
    %c0_i32 = arith.constant 0 : i32
    %c0_i32_0 = arith.constant 0 : i32
    %c0_i32_1 = arith.constant 0 : i32
    %c0_i32_2 = arith.constant 0 : i32
    return %arg0, %c0_i32, %c0_i32_0, %c0_i32_1 : i32, i32, i32, i32
  }
}

</mosaic_0001>

<bundles_post_ra>
// kernel: decoder_block_forward.1
= control target key start
LH: loop header
LB: loop body
LE: loop exit
PB: predicated region body
PF: predicated region fallthrough
CT: control target
= control target key end

     0   :  { %s13358_s21 = smov 0   ;;  %s16920_s0 = inlined_call_operand.vmem [shape: f32[2,8,8,8], index: 0, kind: input, shape index: {}]   ;;  %s16921_s1 = inlined_call_operand.vmem [shape: bf16[2,16,16,8], index: 1, kind: input, shape index: {}]   ;;  %s16922_s2 = inlined_call_operand.vmem [shape: bf16[144,128], index: 2, kind: input, shape index: {}]   ;;  %s16923_s3 = inlined_call_operand.vmem [shape: f32[1,128], index: 3, kind: input, shape index: {}]   ;;  %s16924_s4 = inlined_call_operand.vmem [shape: bf16[9,128,128], index: 4, kind: input, shape index: {}]   ;;  %s16925_s5 = inlined_call_operand.vmem [shape: f32[1,128], index: 5, kind: input, shape index: {}]   ;;  %s16926_s6 = inlined_call_operand.vmem [shape: bf16[2,16,16,128], index: 6, kind: output, shape index: {}]  }
   0x1 LB: > { %s11205_s22 = sadd.s32 4294967295, %s13310_s21   ;;  %p11209_p0 = scmp.ge.s32.totalorder %s13310_s21, 1  ;;  %s13310_s21 = sphi %s13358_s21, %s16_s21  }
   0x2   : > { %p222_p1 = scmp.lt.s32.totalorder %s13310_s21, 3 }
   0x4   : > { %p223_p2 = pnand %p11209_p0, %p222_p1 }
   0x6   : > { %226 = sbr.rel (%p223_p2) target bundleno = 1408 (0x580), region = 44 }
   0xd   : > { %p257_p3 = scmp.lt.s32.totalorder %s11205_s22, 1  ;;  %vm276_vm0 = vcmask 122880   ;;  %vm284_vm1 = vsmask.f32 256  ;;  %v286_v1 = vld [vmem:[#allocation2 + $0xc] sm:$0x1] }
   0xe   : > { %vm13368_vm2 = vmand %vm276_vm0, %vm284_vm1  ;;  %vm334_vm3 = vsmask.f32 7938  ;;  %v336_v2 = vld [vmem:[#allocation2 + $0x14] sm:$0x1]  ;;  %vm273_vm5 = vcmask 125952   ;;  %v16927_v12 = vmov 0  }
   0xf   : > { %s17105_s22 = smov (!%p257_p3, %s11205_s22), 1  ;;  %v287_v3 = vsel %vm13368_vm2, 0, %v286_v1  ;;  %vm13378_vm4 = vmand %vm276_vm0, %vm334_vm3  ;;  %v292_v6 = vld [vmem:[#allocation2 + $0x24] sm:$0x1]  ;;  %v342_v8 = vld [vmem:[#allocation2 + $0x2c] sm:$0x1]  ;;  %5382 = vmatprep.subr.bf16.mxu0 %v16927_v12 }
  0x10   : > { %288 = vst [vmem:[#allocation2 + $0xc] sm:$0x1] %v287_v3  ;;  %v337_v5 = vsel %vm13378_vm4, 0, %v336_v2  ;;  %s11942_s23 = sshll.u32 %s17105_s22, 7  ;;  %v293_v7 = vsel %vm13368_vm2, 0, %v292_v6  ;;  %v343_v11 = vsel %vm13378_vm4, 0, %v342_v8  ;;  %vm13651_vm14 = vmand %vm273_vm5, %vm334_vm3 }
  0x11   : > { %338 = vst [vmem:[#allocation2 + $0x14] sm:$0x1] %v337_v5  ;;  %s13392_s26 = scalar_lea.vmem %s16921_s1, %s11942_s23  ;;  %294 = vst [vmem:[#allocation2 + $0x24] sm:$0x1] %v293_v7  ;;  %v289_v9 = vld [vmem:[#allocation2 + $0x18] sm:$0x1]  ;;  %v511_v5 = vlaneseq }
  0x12   : > { %v13042_v10 = vld [vmem:[%s13392_s26] sm:$0xff]   ;;  %274 = vst.msk [vmem:[#allocation2] sm:$0xf] %vm273_vm5, %v16927_v12  ;;  %275 = vst.msk [vmem:[#allocation2 + $0x4] sm:$0xf] %vm273_vm5, %v16927_v12  ;;  %v13043_v13 = vld [vmem:[%s13392_s26 + $0x10] sm:$0xff]  }
  0x13   : > { %277 = vst.msk [vmem:[#allocation2 + $0x8] sm:$0x1] %vm276_vm0, %v16927_v12  ;;  %281 = vst.msk [vmem:[#allocation2 + $0xd4] sm:$0x1] %vm276_vm0, %v16927_v12  ;;  %v290_v14 = vsel %vm13368_vm2, 0, %v289_v9  ;;  %s13313_s27 = smov 8  }
  0x14   : > { %279 = vst.msk [vmem:[#allocation2 + $0xcc] sm:$0xf] %vm273_vm5, %v16927_v12  ;;  %280 = vst.msk [vmem:[#allocation2 + $0xd0] sm:$0xf] %vm273_vm5, %v16927_v12  ;;  %1563 = vrot.lane.b32.xlu0 %v13042_v10, %s13313_s27  ;;  %v13044_v15 = vld [vmem:[%s13392_s26 + $0x8] sm:$0xff]   ;;  %1567 = vrot.lane.b32.xlu1 %v13043_v13, %s13313_s27  ;;  %v13045_v16 = vld [vmem:[%s13392_s26 + $0x18] sm:$0xff]  }
  0x15   : > { %384 = vst [vmem:[#allocation3] sm:$0xf] %v16927_v12  ;;  %385 = vst [vmem:[#allocation3 + $0x4] sm:$0xf] %v16927_v12  ;;  %v13046_v17 = vld [vmem:[%s13392_s26 + $0x20] sm:$0xff]   ;;  %v13048_v18 = vld [vmem:[%s13392_s26 + $0x28] sm:$0xff]  }
  0x16   : > { %386 = vst [vmem:[#allocation3 + $0x8] sm:$0x1] %v16927_v12  ;;  %388 = vst [vmem:[#allocation3 + $0xcc] sm:$0xf] %v16927_v12  ;;  %v13047_v19 = vld [vmem:[%s13392_s26 + $0x30] sm:$0xff]   ;;  %v13050_v20 = vld [vmem:[%s13392_s26 + $0x38] sm:$0xff]  }
  0x17   : > { %389 = vst [vmem:[#allocation3 + $0xd0] sm:$0xf] %v16927_v12  ;;  %390 = vst [vmem:[#allocation3 + $0xd4] sm:$0x1] %v16927_v12  ;;  %v339_v21 = vld [vmem:[#allocation2 + $0x20] sm:$0x1] }
  0x18   : > { %344 = vst [vmem:[#allocation2 + $0x2c] sm:$0x1] %v343_v11  ;;  %291 = vst [vmem:[#allocation2 + $0x18] sm:$0x1] %v290_v14  ;;  %1565 = vrot.lane.b32.xlu0 %v13044_v15, %s13313_s27  ;;  %1569 = vrot.lane.b32.xlu1 %v13045_v16, %s13313_s27  ;;  %v13049_v22 = vld [vmem:[%s13392_s26 + $0x40] sm:$0xff]   ;;  %v340_v23 = vsel %vm13378_vm4, 0, %v339_v21 }
  0x19   : > { %v13051_v24 = vld [vmem:[%s13392_s26 + $0x48] sm:$0xff]   ;;  %341 = vst [vmem:[#allocation2 + $0x20] sm:$0x1] %v340_v23  ;;  %v13055_v25 = vld [vmem:[%s13392_s26 + $0x50] sm:$0xff]   ;;  %v13053_v26 = vld [vmem:[%s13392_s26 + $0x58] sm:$0xff]   ;;  %vm2941_vm6 = vcmask 1042432  }
  0x1a   : > { %v2845_v27 = vld [vmem:[#allocation2] sm:$0xe]  ;;  %vm2942_vm7 = vcmask 1046532   ;;  %v2846_v28 = vld [vmem:[#allocation2 + $0x4] sm:$0xf]  ;;  %s13314_s28 = smov 32  }
  0x1b   : > { %v2847_v29 = vld [vmem:[#allocation2 + $0x8] sm:$0x1]  ;;  %v11296_v30 = vrot.slane %v2845_v27, 9  ;;  %v295_v31 = vld [vmem:[#allocation2 + $0x30] sm:$0x1]  ;;  %vm13443_vm8 = vmor %vm2941_vm6, %vm2942_vm7  ;;  %v2946_v36 = vrot.slane %v2846_v28, 5 }
  0x1c   : > { %1571 = vrot.lane.b32.xlu0 %v13046_v17, %s13313_s27  ;;  %1573 = vrot.lane.b32.xlu1 %v13048_v18, %s13313_s27  ;;  %v345_v32 = vld [vmem:[#allocation2 + $0x38] sm:$0x1]  ;;  %v298_v33 = vld [vmem:[#allocation2 + $0x3c] sm:$0x1]  ;;  %v348_v34 = vld [vmem:[#allocation2 + $0x44] sm:$0x1] }
  0x1d   : > { %v2949_v37 = vrot.slane %v2847_v29, 5  ;;  %v296_v38 = vsel %vm13368_vm2, 0, %v295_v31  ;;  %v304_v39 = vld [vmem:[#allocation2 + $0x54] sm:$0x1]  ;;  %v2947_v40 = vsel %vm13443_vm8, %v11296_v30, %v2946_v36  ;;  %v2948_v41 = vrot.slane %v2946_v36, 4  ;;  %v13056_v50 = vld [vmem:[%s13392_s26 + $0x60] sm:$0xff]  }
  0x1e   : > { %297 = vst [vmem:[#allocation2 + $0x30] sm:$0x1] %v296_v38  ;;  %v346_v42 = vsel %vm13378_vm4, 0, %v345_v32  ;;  %v354_v43 = vld [vmem:[#allocation2 + $0x5c] sm:$0x1]  ;;  %v299_v44 = vsel %vm13368_vm2, 0, %v298_v33 }
  0x1f   : > { %347 = vst [vmem:[#allocation2 + $0x38] sm:$0x1] %v346_v42  ;;  %v349_v45 = vsel %vm13378_vm4, 0, %v348_v34  ;;  %v2950_v46 = vsel %vm13443_vm8, %v2948_v41, %v2949_v37  ;;  %300 = vst [vmem:[#allocation2 + $0x3c] sm:$0x1] %v299_v44  ;;  %v305_v47 = vsel %vm13368_vm2, 0, %v304_v39 }
  0x20   : > { %1575 = vrot.lane.b32.xlu0 %v13047_v19, %s13313_s27  ;;  %1577 = vrot.lane.b32.xlu1 %v13050_v20, %s13313_s27  ;;  %350 = vst [vmem:[#allocation2 + $0x44] sm:$0x1] %v349_v45  ;;  %v11312_v48 = vcombine.low %v2947_v40, %v2950_v46  ;;  %306 = vst [vmem:[#allocation2 + $0x54] sm:$0x1] %v305_v47  ;;  %v355_v49 = vsel %vm13378_vm4, 0, %v354_v43  ;;  %v13058_v51 = vld [vmem:[%s13392_s26 + $0x68] sm:$0xff]  }
  0x21   : > { %356 = vst [vmem:[#allocation2 + $0x5c] sm:$0x1] %v355_v49  ;;  %v13060_v52 = vld [vmem:[%s13392_s26 + $0x70] sm:$0xff]   ;;  %v2297_v53 = vld [vmem:[#allocation2] sm:$0xf]  ;;  %v13061_v59 = vld [vmem:[%s13392_s26 + $0x78] sm:$0xff]  }
  0x22   : > { %vm2345_vm9 = vsmask.f32 3328  ;;  %v2298_v54 = vld [vmem:[#allocation2 + $0x4] sm:$0xf]  ;;  %v2299_v55 = vld [vmem:[#allocation2 + $0x8] sm:$0x1] }
  0x23   : > { %vm2346_vm10 = vsmask.f32 7440  ;;  %v301_v56 = vld [vmem:[#allocation2 + $0x48] sm:$0x1]  ;;  %v351_v57 = vld [vmem:[#allocation2 + $0x50] sm:$0x1] }
  0x24   : > { %1579 = vrot.lane.b32.xlu0 %v13049_v22, %s13313_s27  ;;  %1581 = vrot.lane.b32.xlu1 %v13051_v24, %s13313_s27  ;;  %v2349_v58 = vshrl.u32 %v2297_v53, 16  ;;  %v310_v60 = vld [vmem:[#allocation2 + $0x6c] sm:$0x1]  ;;  %v360_v61 = vld [vmem:[#allocation2 + $0x74] sm:$0x1]  ;;  %v2352_v62 = vshll.u32 %v2297_v53, 16  ;;  %vm13482_vm11 = vmor %vm2345_vm9, %vm2346_vm10 }
  0x25   : > { %v2358_v63 = vshll.u32 %v2298_v54, 16  ;;  %v307_v2 = vld [vmem:[#allocation2 + $0x60] sm:$0x1]  ;;  %v357_v3 = vld [vmem:[#allocation2 + $0x68] sm:$0x1]  ;;  %v2362_v8 = vshrl.u32 %v2298_v54, 16 }
  0x26   : > { %v2351_v1 = vrot.slane %v2349_v58, 4  ;;  %v2354_v6 = vrot.slane %v2352_v62, 5  ;;  %v313_v9 = vld [vmem:[#allocation2 + $0x78] sm:$0x1]  ;;  %v13315_v10 = vmov 1966171168  }
  0x27   : > { %v2360_v7 = vrot.slane %v2358_v63, 5  ;;  %v509_v11 = vunpack.c.l.s4 %v13315_v10  ;;  %v2368_v13 = vshll.u32 %v2299_v55, 16  ;;  %v302_v14 = vsel %vm13368_vm2, 0, %v301_v56  ;;  %v363_v16 = vld [vmem:[#allocation2 + $0x80] sm:$0x1]  ;;  %s11941_s29 = sshll.u32 %s17105_s22, 6 }
  0x28   : > { %1583 = vrot.lane.b32.xlu0 %v13055_v25, %s13313_s27  ;;  %1585 = vrot.lane.b32.xlu1 %v13053_v26, %s13313_s27  ;;  %v352_v15 = vsel %vm13378_vm4, 0, %v351_v57  ;;  %v2355_v17 = vor.u32 %v2354_v6, %v2351_v1  ;;  %v2364_v18 = vrot.slane %v2362_v8, 4  ;;  %303 = vst [vmem:[#allocation2 + $0x48] sm:$0x1] %v302_v14  ;;  %v311_v19 = vsel %vm13368_vm2, 0, %v310_v60  ;;  %s13500_s8 = scalar_lea.vmem %s16920_s0, %s11941_s29  ;;  %s13316_s9 = smov 16  }
  0x29   : > { %353 = vst [vmem:[#allocation2 + $0x50] sm:$0x1] %v352_v15  ;;  %v361_v20 = vsel %vm13378_vm4, 0, %v360_v61  ;;  %v2370_v22 = vrot.slane %v2368_v13, 5  ;;  %312 = vst [vmem:[#allocation2 + $0x6c] sm:$0x1] %v311_v19  ;;  %v510_v27 = vunpack.c.0.s8 %v509_v11 }
  0x2a   : > { %362 = vst [vmem:[#allocation2 + $0x74] sm:$0x1] %v361_v20  ;;  %v2356_v23 = vrot.slane %v2355_v17, 4  ;;  %v2365_v24 = vor.u32 %v2364_v18, %v2360_v7  ;;  %v308_v25 = vsel %vm13368_vm2, 0, %v307_v2  ;;  %v358_v26 = vsel %vm13378_vm4, 0, %v357_v3  ;;  %v491_v37 = vld [vmem:[%s13500_s8] sm:$0xff] }
  0x2b   : > { %v512_v28 = vshrl.u32 %v511_v5, 7  ;;  %309 = vst [vmem:[#allocation2 + $0x60] sm:$0x1] %v308_v25  ;;  %359 = vst [vmem:[#allocation2 + $0x68] sm:$0x1] %v358_v26  ;;  %v314_v29 = vsel %vm13368_vm2, 0, %v313_v9  ;;  %v507_v38 = vcombine.high %v491_v37, %v491_v37 }
  0x2c   : > { %3104 = vrot.lane.b32.xlu1 %v11312_v48, %s13314_s28  ;;  %v2361_v30 = vsel %vm13482_vm11, %v2356_v23, %v2360_v7  ;;  %v2366_v31 = vrot.slane %v2365_v24, 4  ;;  %315 = vst [vmem:[#allocation2 + $0x78] sm:$0x1] %v314_v29  ;;  %v364_v32 = vsel %vm13378_vm4, 0, %v363_v16  ;;  %v492_v41 = vld [vmem:[%s13500_s8 + $0x8] sm:$0xff]  ;;  %v493_v56 = vld [vmem:[%s13500_s8 + $0x10] sm:$0xff] }
  0x2d   : > { %365 = vst [vmem:[#allocation2 + $0x80] sm:$0x1] %v364_v32  ;;  %v13504_v34 = vsub.s32 %v510_v27, %v512_v28  ;;  %v13509_v40 = vsub.s32 0, %v512_v28  ;;  %v556_v44 = vcombine.high %v492_v41, %v492_v41  ;;  %v13317_v48 = vmov 1983009808   ;;  %v495_v5 = vld [vmem:[%s13500_s8 + $0x20] sm:$0xff] }
  0x2e   : > { %v2371_v33 = vsel %vm13482_vm11, %v2366_v31, %v2370_v22  ;;  %v1158_v49 = vunpack.c.l.s4 %v13317_v48  ;;  %v605_v8 = vcombine.high %v493_v56, %v493_v56  ;;  %v703_v24 = vcombine.high %v495_v5, %v495_v5  ;;  %s13318_s10 = smov 48   ;;  %s13319_s11 = smov 96  }
  0x2f   : > { %v11280_v36 = vcombine.low %v2361_v30, %v2371_v33  ;;  %v514_v39 = vrot.slane %v491_v37, %v13504_v34  ;;  %v521_v42 = vrot.slane %v507_v38, %v13504_v34  ;;  %v612_v20 = vrot.slane %v493_v56, %v13504_v34  ;;  %s13320_s12 = smov 80   ;;  %s13321_s13 = smov 64  }
  0x30   : > { %1587 = vrot.lane.b32.xlu1 %v13056_v50, %s13313_s27  ;;  %v563_v50 = vrot.slane %v492_v41, %v13504_v34  ;;  %v1159_v57 = vunpack.c.0.s8 %v1158_v49  ;;  %v619_v23 = vrot.slane %v605_v8, %v13504_v34  ;;  %v710_v41 = vrot.slane %v495_v5, %v13504_v34  ;;  %s13322_s14 = smov 112  }
  0x31   : > { %2780 = vrot.lane.b32.xlu0 %v11280_v36, %s13316_s9  ;;  %v522_v43 = vcombine.high %v514_v39, %v514_v39  ;;  %v523_v45 = vcombine.high %v521_v42, %v521_v42  ;;  %v530_v46 = vrot.slane %v514_v39, %v13504_v34  ;;  %v620_v37 = vcombine.high %v612_v20, %v612_v20 }
  0x32   : > { %v571_v58 = vcombine.high %v563_v50, %v563_v50  ;;  %v13528_v9 = vsub.s32 %v1159_v57, %v512_v28  ;;  %v579_v10 = vrot.slane %v563_v50, %v13504_v34  ;;  %v621_v39 = vcombine.high %v619_v23, %v619_v23 }
  0x33   : > { %v544_v47 = vrot.slane %v522_v43, %v13504_v34  ;;  %v551_v53 = vrot.slane %v523_v45, %v13504_v34  ;;  %v552_v54 = vcombine.high %v530_v46, %v530_v46  ;;  %v902_v60 = vrot.slane %v530_v46, %v13509_v40 }
  0x34   : > { %1589 = vrot.lane.b32.xlu1 %v13058_v51, %s13313_s27  ;;  %v570_v51 = vrot.slane %v556_v44, %v13504_v34  ;;  %v593_v11 = vrot.slane %v571_v58, %v13504_v34  ;;  %v601_v25 = vcombine.high %v579_v10, %v579_v10  ;;  %v934_v36 = vrot.slane %v579_v10, %v13509_v40 }
  0x35   : > { %v554_v55 = vcombine.high %v544_v47, %v544_v47  ;;  %v906_v61 = vrot.slane %v544_v47, %v13509_v40  ;;  %v555_v1 = vcombine.high %v551_v53, %v551_v53  ;;  %v910_v2 = vrot.slane %v552_v54, %v13509_v40 }
  0x36   : > { %v572_v62 = vcombine.high %v570_v51, %v570_v51  ;;  %v922_v7 = vrot.slane %v551_v53, %v13509_v40  ;;  %v586_v14 = vrot.slane %v570_v51, %v13504_v34  ;;  %v603_v26 = vcombine.high %v593_v11, %v593_v11 }
  0x37   : > { %v914_v3 = vrot.slane %v554_v55, %v13509_v40  ;;  %v13532_v13 = vcombine.low %v902_v60, %v906_v61  ;;  %v930_v18 = vrot.slane %v555_v1, %v13509_v40  ;;  %v938_v43 = vrot.slane %v593_v11, %v13509_v40 }
  0x38   : > { %1591 = vrot.lane.b32.xlu1 %v13060_v52, %s13313_s27  ;;  %v537_v52 = vrot.slane %v521_v42, %v13504_v34  ;;  %v600_v15 = vrot.slane %v572_v62, %v13504_v34  ;;  %v602_v29 = vcombine.high %v586_v14, %v586_v14  ;;  %v717_v42 = vrot.slane %v703_v24, %v13504_v34 }
  0x39   : > { %v1156_v19 = vcombine.low %v910_v2, %v914_v3  ;;  %v1163_v28 = vrot.slane %v13532_v13, %v13528_v9  ;;  %v13556_v44 = vrot.slane %v601_v25, %v13509_v40  ;;  %v13559_v45 = vrot.slane %v603_v26, %v13509_v40 }
  0x3a   : > { %v553_v63 = vcombine.high %v537_v52, %v537_v52  ;;  %v918_v6 = vrot.slane %v537_v52, %v13509_v40  ;;  %v604_v30 = vcombine.high %v600_v15, %v600_v15  ;;  %v950_v47 = vrot.slane %v586_v14, %v13509_v40 }
  0x3b   : > { %v13547_v32 = vrot.slane %v1156_v19, %v13528_v9  ;;  %v954_v48 = vrot.slane %v600_v15, %v13509_v40  ;;  %v13564_v49 = vrot.slane %v612_v20, %v13504_v34  ;;  %v958_v51 = vrot.slane %v602_v29, %v13509_v40 }
  0x3c   : > { %1593 = vrot.lane.b32.xlu1 %v13061_v59, %s13313_s27  ;;  %v494_v59 = vld [vmem:[%s13500_s8 + $0x18] sm:$0xff]  ;;  %v926_v17 = vrot.slane %v553_v63, %v13509_v40  ;;  %v13539_v22 = vcombine.low %v918_v6, %v922_v7  ;;  %v962_v52 = vrot.slane %v604_v30, %v13509_v40  ;;  %v635_v53 = vrot.slane %v619_v23, %v13504_v34 }
  0x3d   : > { %v654_v16 = vcombine.high %v494_v59, %v494_v59  ;;  %v661_v27 = vrot.slane %v494_v59, %v13504_v34  ;;  %v642_v54 = vrot.slane %v620_v37, %v13504_v34  ;;  %v649_v56 = vrot.slane %v621_v39, %v13504_v34 }
  0x3e   : > { %v1173_v33 = vcombine.low %v926_v17, %v930_v18  ;;  %v1180_v38 = vrot.slane %v13539_v22, %v13528_v9  ;;  %v718_v57 = vcombine.high %v710_v41, %v710_v41  ;;  %v719_v58 = vcombine.high %v717_v42, %v717_v42 }
  0x3f   : > { %v668_v31 = vrot.slane %v654_v16, %v13504_v34  ;;  %v669_v46 = vcombine.high %v661_v27, %v661_v27  ;;  %v13574_v59 = vcombine.low %v934_v36, %v938_v43  ;;  %v1190_v60 = vcombine.low %v13556_v44, %v13559_v45 }
  0x40   : > { %v13571_v55 = vrot.slane %v1173_v33, %v13528_v9  ;;  %v677_v61 = vrot.slane %v661_v27, %v13504_v34  ;;  %v13580_v63 = vcombine.low %v950_v47, %v954_v48  ;;  %v650_v1 = vcombine.high %v13564_v49, %v13564_v49 }
  0x41   : > { %v670_v50 = vcombine.high %v668_v31, %v668_v31  ;;  %v691_v62 = vrot.slane %v669_v46, %v13504_v34  ;;  %v684_v2 = vrot.slane %v668_v31, %v13504_v34  ;;  %v1207_v5 = vcombine.low %v958_v51, %v962_v52 }
  0x42   : > { %v651_v6 = vcombine.high %v635_v53, %v635_v53  ;;  %v652_v7 = vcombine.high %v642_v54, %v642_v54  ;;  %v726_v8 = vrot.slane %v710_v41, %v13504_v34  ;;  %v653_v10 = vcombine.high %v649_v56, %v649_v56 }
  0x43   : > { %v698_v3 = vrot.slane %v670_v50, %v13504_v34  ;;  %v733_v11 = vrot.slane %v717_v42, %v13504_v34  ;;  %v740_v14 = vrot.slane %v718_v57, %v13504_v34  ;;  %v747_v15 = vrot.slane %v719_v58, %v13504_v34 }
  0x44   : > { %v966_v16 = vrot.slane %v13564_v49, %v13509_v40  ;;  %v982_v17 = vrot.slane %v635_v53, %v13509_v40  ;;  %v699_v18 = vcombine.high %v677_v61, %v677_v61  ;;  %v701_v19 = vcombine.high %v691_v62, %v691_v62 }
  0x45   : > { %v970_v20 = vrot.slane %v642_v54, %v13509_v40  ;;  %v974_v23 = vrot.slane %v650_v1, %v13509_v40  ;;  %v700_v24 = vcombine.high %v684_v2, %v684_v2  ;;  %v702_v25 = vcombine.high %v698_v3, %v698_v3 }
  0x46   : > { %v978_v26 = vrot.slane %v652_v7, %v13509_v40  ;;  %v986_v27 = vrot.slane %v649_v56, %v13509_v40  ;;  %v990_v29 = vrot.slane %v651_v6, %v13509_v40  ;;  %v748_v30 = vcombine.high %v726_v8, %v726_v8 }
  0x47   : > { %v994_v31 = vrot.slane %v653_v10, %v13509_v40  ;;  %v749_v33 = vcombine.high %v733_v11, %v733_v11  ;;  %v750_v36 = vcombine.high %v740_v14, %v740_v14  ;;  %v751_v37 = vcombine.high %v747_v15, %v747_v15 }
  0x48   : > { %v998_v39 = vrot.slane %v677_v61, %v13509_v40  ;;  %v1002_v41 = vrot.slane %v691_v62, %v13509_v40  ;;  %v1006_v42 = vrot.slane %v699_v18, %v13509_v40  ;;  %v1010_v43 = vrot.slane %v701_v19, %v13509_v40 }
  0x49   : > { %v1014_v44 = vrot.slane %v684_v2, %v13509_v40  ;;  %v1018_v45 = vrot.slane %v698_v3, %v13509_v40  ;;  %v1022_v46 = vrot.slane %v700_v24, %v13509_v40  ;;  %v1026_v47 = vrot.slane %v702_v25, %v13509_v40 }
  0x4a   : > { %v1030_v48 = vrot.slane %v726_v8, %v13509_v40  ;;  %v1034_v49 = vrot.slane %v740_v14, %v13509_v40  ;;  %v1038_v50 = vrot.slane %v748_v30, %v13509_v40  ;;  %v1046_v51 = vrot.slane %v733_v11, %v13509_v40 }
  0x4b   : > { %v1042_v52 = vrot.slane %v750_v36, %v13509_v40  ;;  %v1050_v53 = vrot.slane %v747_v15, %v13509_v40  ;;  %v1054_v54 = vrot.slane %v749_v33, %v13509_v40  ;;  %v1058_v56 = vrot.slane %v751_v37, %v13509_v40 }
  0x4c   : > { %v1197_v57 = vrot.slane %v13574_v59, %v13528_v9  ;;  %v1204_v58 = vrot.slane %v1190_v60, %v13528_v9  ;;  %v1214_v61 = vrot.slane %v13580_v63, %v13528_v9  ;;  %v1221_v62 = vrot.slane %v1207_v5, %v13528_v9 }
  0x4d   : > { %v1223_v1 = vcombine.low %v966_v16, %v970_v20  ;;  %v1224_v2 = vcombine.low %v974_v23, %v978_v26  ;;  %v1240_v3 = vcombine.low %v982_v17, %v986_v27  ;;  %v1241_v6 = vcombine.low %v990_v29, %v994_v31 }
  0x4e   : > { %v1257_v7 = vcombine.low %v998_v39, %v1002_v41  ;;  %v1258_v8 = vcombine.low %v1006_v42, %v1010_v43  ;;  %v1274_v10 = vcombine.low %v1014_v44, %v1018_v45  ;;  %v1275_v11 = vcombine.low %v1022_v46, %v1026_v47 }
  0x4f   : > { %v1291_v14 = vcombine.low %v1030_v48, %v1034_v49  ;;  %v1292_v15 = vcombine.low %v1038_v50, %v1042_v52  ;;  %v1308_v18 = vcombine.low %v1046_v51, %v1050_v53  ;;  %v1309_v19 = vcombine.low %v1054_v54, %v1058_v56 }
  0x50   : > { %v1171_v59 = vcombine.low %v1163_v28, %v13547_v32  ;;  %v1188_v60 = vcombine.low %v1180_v38, %v13571_v55  ;;  %v1205_v63 = vcombine.low %v1197_v57, %v1204_v58  ;;  %v1222_v5 = vcombine.low %v1214_v61, %v1221_v62 }
  0x51   : > { %v1231_v16 = vrot.slane %v1223_v1, %v13528_v9  ;;  %v1238_v17 = vrot.slane %v1224_v2, %v13528_v9  ;;  %v1248_v20 = vrot.slane %v1240_v3, %v13528_v9  ;;  %v1255_v23 = vrot.slane %v1241_v6, %v13528_v9 }
  0x52   : > { %v1265_v24 = vrot.slane %v1257_v7, %v13528_v9  ;;  %v1272_v13 = vrot.slane %v1258_v8, %v13528_v9  ;;  %v1282_v28 = vrot.slane %v1274_v10, %v13528_v9  ;;  %v1289_v32 = vrot.slane %v1275_v11, %v13528_v9  ;;  %v2040_v11 = vld [vmem:[#allocation2 + $0xc] sm:$0xf] }
  0x53   : > { %v1299_v22 = vrot.slane %v1291_v14, %v13528_v9  ;;  %v1306_v38 = vrot.slane %v1292_v15, %v13528_v9  ;;  %v1316_v55 = vrot.slane %v1308_v18, %v13528_v9  ;;  %v1323_v25 = vrot.slane %v1309_v19, %v13528_v9  ;;  %v2044_v14 = vld [vmem:[#allocation2 + $0x14] sm:$0x1] }
  0x54   : > { %v1443_v26 = vpack.c.bf16 %v1188_v60, %v1171_v59  ;;  %vm1595_vm12 = vcmask 64512   ;;  %v1444_v27 = vpack.c.bf16 %v1222_v5, %v1205_v63  ;;  %v1239_v29 = vcombine.low %v1231_v16, %v1238_v17  ;;  %v2054_v17 = vld [vmem:[#allocation2 + $0x24] sm:$0xf] }
  0x55   : > { %v1256_v30 = vcombine.low %v1248_v20, %v1255_v23  ;;  %v1273_v31 = vcombine.low %v1265_v24, %v1272_v13  ;;  %v1290_v33 = vcombine.low %v1282_v28, %v1289_v32  ;;  %v1307_v36 = vcombine.low %v1299_v22, %v1306_v38  ;;  %v2058_v20 = vld [vmem:[#allocation2 + $0x2c] sm:$0x1] }
  0x56   : > { %v1324_v37 = vcombine.low %v1316_v55, %v1323_v25  ;;  %vm1716_vm13 = vsmask.f32 4368  ;;  %vm2280_vm0 = vcmask 130048   ;;  %vm2828_vm6 = vcmask 261248  }
  0x57   : > { %v13643_v46 = vpack.c.bf16 %v1256_v30, %v1239_v29  ;;  %v13645_v49 = vpack.c.bf16 %v1290_v33, %v1273_v31  ;;  %vm13659_vm15 = vmor %vm284_vm1, %vm1716_vm13  ;;  %vm3152_vm7 = vcmask 392448   ;;  %vm3329_vm9 = vcmask 523648  }
  0x58   : > { %v13647_v50 = vpack.c.bf16 %v1324_v37, %v1307_v36  ;;  %vm4918_vm10 = vcmask 1048448  }
  0x86   : > { %v1564_v39 = vpop.permute.xlu0 %1563  ;;  %v1568_v42 = vpop.permute.xlu1 %1567 }
  0x87   : > { %v1598_v41 = vsel %vm1595_vm12, %v1443_v26, %v1564_v39  ;;  %v1603_v45 = vsel %vm1595_vm12, %v1444_v27, %v1568_v42  ;;  %v2047_v42 = vld [vmem:[#allocation2 + $0x18] sm:$0xf] }
  0x88   : > { %v11232_v43 = vcombine.low %v1598_v41, %v1598_v41  ;;  %v11233_v44 = vcombine.high %v1598_v41, %v1598_v41  ;;  %v11236_v47 = vcombine.low %v1603_v45, %v1603_v45  ;;  %v11237_v48 = vcombine.high %v1603_v45, %v1603_v45 }
  0x8a   : > { %v1719_v51 = vshrl.u32 %v11232_v43, 16  ;;  %v1722_v52 = vshll.u32 %v11232_v43, 16  ;;  %v1727_v53 = vshrl.u32 %v11233_v44, 16  ;;  %v1730_v54 = vshll.u32 %v11233_v44, 16  ;;  %v1566_v56 = vpop.permute.xlu0 %1565  ;;  %v1570_v1 = vpop.permute.xlu1 %1569 }
  0x8b   : > { %v1753_v57 = vshrl.u32 %v11236_v47, 16  ;;  %v1756_v58 = vshll.u32 %v11236_v47, 16  ;;  %v1761_v61 = vshrl.u32 %v11237_v48, 16  ;;  %v1764_v62 = vshll.u32 %v11237_v48, 16 }
  0x8c   : > { %v1721_v3 = vrot.slane %v1719_v51, 7  ;;  %v1729_v6 = vrot.slane %v1727_v53, 7  ;;  %v1600_v7 = vsel %vm1595_vm12, %v1443_v26, %v1566_v56  ;;  %v1605_v8 = vsel %vm1595_vm12, %v1444_v27, %v1570_v1 }
  0x8d   : > { %v1755_v15 = vrot.slane %v1753_v57, 7  ;;  %v1763_v18 = vrot.slane %v1761_v61, 7  ;;  %v11234_v19 = vcombine.low %v1600_v7, %v1600_v7  ;;  %v11235_v59 = vcombine.high %v1600_v7, %v1600_v7 }
  0x8e   : > { %v1724_v60 = vor.u32 %v1722_v52, %v1721_v3  ;;  %v1725_v63 = vrot.slane %v1721_v3, 4  ;;  %v1732_v5 = vor.u32 %v1730_v54, %v1729_v6  ;;  %v1734_v16 = vrot.slane %v1729_v6, 4  ;;  %v1572_v23 = vpop.permute.xlu0 %1571  ;;  %v1574_v26 = vpop.permute.xlu1 %1573  ;;  %v2051_v54 = vld [vmem:[#allocation2 + $0x20] sm:$0x1]  ;;  %v2061_v6 = vld [vmem:[#allocation2 + $0x30] sm:$0xf] }
  0x8f   : > { %v1758_v24 = vor.u32 %v1756_v58, %v1755_v15  ;;  %v1759_v13 = vrot.slane %v1755_v15, 4  ;;  %v1766_v28 = vor.u32 %v1764_v62, %v1763_v18  ;;  %v1768_v32 = vrot.slane %v1763_v18, 4 }
  0x90   : > { %v1733_v22 = vsel %vm13659_vm15, %v1725_v63, %v1732_v5  ;;  %v2041_v38 = vsel %vm13651_vm14, %v1724_v60, %v2040_v11  ;;  %v2045_v55 = vsel %vm13368_vm2, %v1734_v16, %v2044_v14  ;;  %v1736_v25 = vshrl.u32 %v11234_v19, 16  ;;  %v2068_v63 = vld [vmem:[#allocation2 + $0x3c] sm:$0xf] }
  0x91   : > { %2042 = vst [vmem:[#allocation2 + $0xc] sm:$0xf] %v2041_v38  ;;  %2043 = vst.msk [vmem:[#allocation2 + $0x10] sm:$0xf] %vm273_vm5, %v1733_v22  ;;  %v1767_v27 = vsel %vm13659_vm15, %v1759_v13, %v1766_v28  ;;  %v2055_v29 = vsel %vm13651_vm14, %v1758_v24, %v2054_v17  ;;  %v2059_v30 = vsel %vm13368_vm2, %v1768_v32, %v2058_v20  ;;  %v1739_v31 = vshll.u32 %v11234_v19, 16 }
  0x92   : > { %2046 = vst [vmem:[#allocation2 + $0x14] sm:$0x1] %v2045_v55  ;;  %2056 = vst [vmem:[#allocation2 + $0x24] sm:$0xf] %v2055_v29  ;;  %v1738_v33 = vrot.slane %v1736_v25, 7  ;;  %v1744_v36 = vshrl.u32 %v11235_v59, 16  ;;  %v11238_v39 = vcombine.low %v1605_v8, %v1605_v8  ;;  %v1576_v41 = vpop.permute.xlu0 %1575  ;;  %v11239_v43 = vcombine.high %v1605_v8, %v1605_v8 }
  0x93   : > { %2057 = vst.msk [vmem:[#allocation2 + $0x28] sm:$0xf] %vm273_vm5, %v1767_v27  ;;  %2060 = vst [vmem:[#allocation2 + $0x2c] sm:$0x1] %v2059_v30  ;;  %v1747_v37 = vshll.u32 %v11235_v59, 16  ;;  %v1608_v44 = vsel %vm1595_vm12, %v13643_v46, %v1572_v23  ;;  %v1613_v45 = vsel %vm1595_vm12, %v13645_v49, %v1576_v41  ;;  %v1610_v47 = vsel %vm1595_vm12, %v13643_v46, %v1574_v26  ;;  %v1578_v26 = vpop.permute.xlu1 %1577 }
  0x94   : > { %v1741_v48 = vor.u32 %v1739_v31, %v1738_v33  ;;  %v1742_v51 = vrot.slane %v1738_v33, 4  ;;  %v1746_v52 = vrot.slane %v1744_v36, 7  ;;  %v1770_v53 = vshrl.u32 %v11238_v39, 16  ;;  %v2065_v8 = vld [vmem:[#allocation2 + $0x38] sm:$0x1] }
  0x95   : > { %v1773_v56 = vshll.u32 %v11238_v39, 16  ;;  %v1778_v57 = vshrl.u32 %v11239_v43, 16  ;;  %v1781_v58 = vshll.u32 %v11239_v43, 16  ;;  %v11240_v61 = vcombine.low %v1608_v44, %v1608_v44  ;;  %v2072_v33 = vld [vmem:[#allocation2 + $0x44] sm:$0x1] }
  0x96   : > { %v1749_v62 = vor.u32 %v1747_v37, %v1746_v52  ;;  %v1751_v1 = vrot.slane %v1746_v52, 4  ;;  %v2048_v3 = vsel %vm13651_vm14, %v1741_v48, %v2047_v42  ;;  %v1772_v7 = vrot.slane %v1770_v53, 7  ;;  %v2082_v37 = vld [vmem:[#allocation2 + $0x54] sm:$0xf] }
  0x97   : > { %2049 = vst [vmem:[#allocation2 + $0x18] sm:$0xf] %v2048_v3  ;;  %v1780_v11 = vrot.slane %v1778_v57, 7  ;;  %v11241_v46 = vcombine.high %v1608_v44, %v1608_v44  ;;  %v1787_v14 = vshrl.u32 %v11240_v61, 16  ;;  %v1790_v15 = vshll.u32 %v11240_v61, 16  ;;  %v1580_v57 = vpop.permute.xlu0 %1579 }
  0x98   : > { %v1750_v18 = vsel %vm13659_vm15, %v1742_v51, %v1749_v62  ;;  %v2052_v19 = vsel %vm13368_vm2, %v1751_v1, %v2051_v54  ;;  %v1775_v59 = vor.u32 %v1773_v56, %v1772_v7  ;;  %v1776_v60 = vrot.slane %v1772_v7, 4  ;;  %v13062_v5 = vld [vmem:[#allocation2 + $0xc] sm:$0xff]  }
  0x99   : > { %2050 = vst.msk [vmem:[#allocation2 + $0x1c] sm:$0xf] %vm273_vm5, %v1750_v18  ;;  %2053 = vst [vmem:[#allocation2 + $0x20] sm:$0x1] %v2052_v19  ;;  %v1783_v16 = vor.u32 %v1781_v58, %v1780_v11  ;;  %v1785_v17 = vrot.slane %v1780_v11, 4  ;;  %v1789_v20 = vrot.slane %v1787_v14, 7  ;;  %v11244_v28 = vcombine.low %v1613_v45, %v1613_v45  ;;  %3281 = vrot.lane.b32.xlu0 %v13062_v5, %s13318_s10  ;;  %v1582_v58 = vpop.permute.xlu1 %1581 }
  0x9a   : > { %v1795_v23 = vshrl.u32 %v11241_v46, 16  ;;  %v2062_v24 = vsel %vm13651_vm14, %v1775_v59, %v2061_v6  ;;  %v1798_v13 = vshll.u32 %v11241_v46, 16  ;;  %v11245_v32 = vcombine.high %v1613_v45, %v1613_v45  ;;  %v2086_v45 = vld [vmem:[#allocation2 + $0x5c] sm:$0x1]  ;;  %v2079_v18 = vld [vmem:[#allocation2 + $0x50] sm:$0x1] }
  0x9b   : > { %v1784_v22 = vsel %vm13659_vm15, %v1776_v60, %v1783_v16  ;;  %2063 = vst [vmem:[#allocation2 + $0x30] sm:$0xf] %v2062_v24  ;;  %v2066_v38 = vsel %vm13368_vm2, %v1785_v17, %v2065_v8  ;;  %v1792_v55 = vor.u32 %v1790_v15, %v1789_v20  ;;  %v1793_v25 = vrot.slane %v1789_v20, 4  ;;  %v2075_v8 = vld [vmem:[#allocation2 + $0x48] sm:$0xf] }
  0x9c   : > { %2064 = vst.msk [vmem:[#allocation2 + $0x34] sm:$0xf] %vm273_vm5, %v1784_v22  ;;  %2067 = vst [vmem:[#allocation2 + $0x38] sm:$0x1] %v2066_v38  ;;  %v1797_v27 = vrot.slane %v1795_v23, 7  ;;  %v1821_v29 = vshrl.u32 %v11244_v28, 16  ;;  %v11242_v41 = vcombine.low %v1610_v47, %v1610_v47  ;;  %v11243_v42 = vcombine.high %v1610_v47, %v1610_v47 }
  0x9d   : > { %v1824_v30 = vshll.u32 %v11244_v28, 16  ;;  %v1829_v31 = vshrl.u32 %v11245_v32, 16  ;;  %v2069_v36 = vsel %vm13651_vm14, %v1792_v55, %v2068_v63  ;;  %v1832_v39 = vshll.u32 %v11245_v32, 16  ;;  %v13067_v22 = vld [vmem:[#allocation2 + $0x24] sm:$0xff]  }
  0x9e   : > { %v1800_v43 = vor.u32 %v1798_v13, %v1797_v27  ;;  %v1802_v44 = vrot.slane %v1797_v27, 4  ;;  %2070 = vst [vmem:[#allocation2 + $0x3c] sm:$0xf] %v2069_v36  ;;  %v1823_v48 = vrot.slane %v1821_v29, 7  ;;  %v1804_v52 = vshrl.u32 %v11242_v41, 16  ;;  %v13066_v13 = vld [vmem:[#allocation2 + $0x24] sm:$0xff]  }
  0x9f   : > { %v1831_v51 = vrot.slane %v1829_v31, 7  ;;  %v1807_v53 = vshll.u32 %v11242_v41, 16  ;;  %v1812_v54 = vshrl.u32 %v11243_v42, 16  ;;  %v1815_v56 = vshll.u32 %v11243_v42, 16  ;;  %v2096_v29 = vld [vmem:[#allocation2 + $0x6c] sm:$0xf] }
  0xa0   : > { %v1801_v61 = vsel %vm13659_vm15, %v1793_v25, %v1800_v43  ;;  %v2073_v62 = vsel %vm13368_vm2, %v1802_v44, %v2072_v33  ;;  %v1826_v1 = vor.u32 %v1824_v30, %v1823_v48  ;;  %v1827_v47 = vrot.slane %v1823_v48, 4  ;;  %v13064_v3 = vld [vmem:[#allocation2 + $0x18] sm:$0xff]   ;;  %v2089_v42 = vld [vmem:[#allocation2 + $0x60] sm:$0xf] }
  0xa1   : > { %2071 = vst.msk [vmem:[#allocation2 + $0x40] sm:$0xf] %vm273_vm5, %v1801_v61  ;;  %2074 = vst [vmem:[#allocation2 + $0x44] sm:$0x1] %v2073_v62  ;;  %v1834_v6 = vor.u32 %v1832_v39, %v1831_v51  ;;  %v1836_v7 = vrot.slane %v1831_v51, 4  ;;  %v1806_v11 = vrot.slane %v1804_v52, 7  ;;  %v1618_v19 = vsel %vm1595_vm12, %v13647_v50, %v1580_v57  ;;  %4325 = vrot.lane.b32.xlu1 %v13064_v3, %s13319_s11 }
  0xa2   : > { %v1814_v46 = vrot.slane %v1812_v54, 7  ;;  %v13065_v14 = vld [vmem:[#allocation2 + $0x18] sm:$0xff]   ;;  %v2083_v15 = vsel %vm13651_vm14, %v1826_v1, %v2082_v37  ;;  %v1615_v59 = vsel %vm1595_vm12, %v13645_v49, %v1578_v26  ;;  %v1620_v60 = vsel %vm1595_vm12, %v13647_v50, %v1582_v58  ;;  %v2100_v39 = vld [vmem:[#allocation2 + $0x74] sm:$0x1]  ;;  %v2093_v52 = vld [vmem:[#allocation2 + $0x68] sm:$0x1] }
  0xa3   : > { %v1835_v63 = vsel %vm13659_vm15, %v1827_v47, %v1834_v6  ;;  %2084 = vst [vmem:[#allocation2 + $0x54] sm:$0xf] %v2083_v15  ;;  %v2087_v5 = vsel %vm13368_vm2, %v1836_v7, %v2086_v45  ;;  %v1809_v16 = vor.u32 %v1807_v53, %v1806_v11  ;;  %v1810_v17 = vrot.slane %v1806_v11, 4  ;;  %3283 = vrot.lane.b32.xlu0 %v13065_v14, %s13318_s10  ;;  %v13068_v37 = vld [vmem:[#allocation2 + $0x30] sm:$0xff]   ;;  %v4935_v1 = vld [vmem:[#allocation2 + $0x18] sm:$0xe] }
  0xa4   : > { %2085 = vst.msk [vmem:[#allocation2 + $0x58] sm:$0xf] %vm273_vm5, %v1835_v63  ;;  %2088 = vst [vmem:[#allocation2 + $0x5c] sm:$0x1] %v2087_v5  ;;  %v1817_v20 = vor.u32 %v1815_v56, %v1814_v46  ;;  %v1819_v23 = vrot.slane %v1814_v46, 4  ;;  %v11248_v49 = vcombine.low %v1618_v19, %v1618_v19  ;;  %v11249_v24 = vcombine.high %v1618_v19, %v1618_v19  ;;  %v13069_v45 = vld [vmem:[#allocation2 + $0x30] sm:$0xff]  }
  0xa5   : > { %v2076_v50 = vsel %vm13651_vm14, %v1809_v16, %v2075_v8  ;;  %v11246_v28 = vcombine.low %v1615_v59, %v1615_v59  ;;  %v11247_v32 = vcombine.high %v1615_v59, %v1615_v59  ;;  %v13722_v38 = vcombine.low %v1620_v60, %v1620_v60  ;;  %4327 = vrot.lane.b32.xlu1 %v13066_v13, %s13319_s11  ;;  %v4936_v47 = vld [vmem:[#allocation2 + $0x1c] sm:$0xf]  ;;  %v2103_v11 = vld [vmem:[#allocation2 + $0x78] sm:$0xf]  ;;  %v4937_v14 = vld [vmem:[#allocation2 + $0x20] sm:$0x1] }
  0xa6   : > { %v1818_v55 = vsel %vm13659_vm15, %v1810_v17, %v1817_v20  ;;  %2077 = vst [vmem:[#allocation2 + $0x48] sm:$0xf] %v2076_v50  ;;  %v2080_v25 = vsel %vm13368_vm2, %v1819_v23, %v2079_v18  ;;  %v1855_v26 = vshrl.u32 %v11248_v49, 16  ;;  %v1858_v27 = vshll.u32 %v11248_v49, 16  ;;  %v3891_v15 = vld [vmem:[#allocation2 + $0xc] sm:$0xe] }
  0xa7   : > { %2078 = vst.msk [vmem:[#allocation2 + $0x4c] sm:$0xf] %vm273_vm5, %v1818_v55  ;;  %2081 = vst [vmem:[#allocation2 + $0x50] sm:$0x1] %v2080_v25  ;;  %v1863_v30 = vshrl.u32 %v11249_v24, 16  ;;  %v1866_v31 = vshll.u32 %v11249_v24, 16  ;;  %3285 = vrot.lane.b32.xlu0 %v13067_v22, %s13318_s10  ;;  %v11251_v48 = vcombine.high %v1620_v60, %v1620_v60 }
  0xa8   : > { %v1838_v33 = vshrl.u32 %v11246_v28, 16  ;;  %v1841_v36 = vshll.u32 %v11246_v28, 16  ;;  %v1857_v41 = vrot.slane %v1855_v26, 7  ;;  %v1846_v43 = vshrl.u32 %v11247_v32, 16  ;;  %v13070_v46 = vld [vmem:[#allocation2 + $0x3c] sm:$0xff]  }
  0xa9   : > { %v1849_v44 = vshll.u32 %v11247_v32, 16  ;;  %v1865_v51 = vrot.slane %v1863_v30, 7  ;;  %v1872_v54 = vshrl.u32 %v13722_v38, 16  ;;  %v1875_v56 = vshll.u32 %v13722_v38, 16  ;;  %4329 = vrot.lane.b32.xlu1 %v13068_v37, %s13319_s11  ;;  %v3892_v18 = vld [vmem:[#allocation2 + $0x10] sm:$0xf] }
  0xaa   : > { %v1840_v53 = vrot.slane %v1838_v33, 7  ;;  %v1860_v57 = vor.u32 %v1858_v27, %v1857_v41  ;;  %v1861_v58 = vrot.slane %v1857_v41, 4  ;;  %v1848_v61 = vrot.slane %v1846_v43, 7  ;;  %v2107_v63 = vld [vmem:[#allocation2 + $0x80] sm:$0x1] }
  0xab   : > { %v1880_v62 = vshrl.u32 %v11251_v48, 16  ;;  %v1868_v3 = vor.u32 %v1866_v31, %v1865_v51  ;;  %v1870_v6 = vrot.slane %v1865_v51, 4  ;;  %3287 = vrot.lane.b32.xlu0 %v13069_v45, %s13318_s10  ;;  %v1874_v5 = vrot.slane %v1872_v54, 7  ;;  %v13071_v49 = vld [vmem:[#allocation2 + $0x3c] sm:$0xff]   ;;  %v3893_v24 = vld [vmem:[#allocation2 + $0x14] sm:$0x1] }
  0xac   : > { %v1843_v7 = vor.u32 %v1841_v36, %v1840_v53  ;;  %v1844_v8 = vrot.slane %v1840_v53, 4  ;;  %v2097_v19 = vsel %vm13651_vm14, %v1860_v57, %v2096_v29  ;;  %v1851_v59 = vor.u32 %v1849_v44, %v1848_v61  ;;  %v3894_v13 = vld [vmem:[#allocation2 + $0x18] sm:$0xe]  ;;  %v3895_v29 = vld [vmem:[#allocation2 + $0x1c] sm:$0xf] }
  0xad   : > { %v1853_v60 = vrot.slane %v1848_v61, 4  ;;  %v1869_v16 = vsel %vm13659_vm15, %v1861_v58, %v1868_v3  ;;  %2098 = vst [vmem:[#allocation2 + $0x6c] sm:$0xf] %v2097_v19  ;;  %v2101_v17 = vsel %vm13368_vm2, %v1870_v6, %v2100_v39  ;;  %v1882_v23 = vrot.slane %v1880_v62, 7  ;;  %4331 = vrot.lane.b32.xlu1 %v13070_v46, %s13319_s11  ;;  %v3896_v37 = vld [vmem:[#allocation2 + $0x20] sm:$0x1] }
  0xae   : > { %v2090_v20 = vsel %vm13651_vm14, %v1843_v7, %v2089_v42  ;;  %2099 = vst.msk [vmem:[#allocation2 + $0x70] sm:$0xf] %vm273_vm5, %v1869_v16  ;;  %2102 = vst [vmem:[#allocation2 + $0x74] sm:$0x1] %v2101_v17  ;;  %v1852_v50 = vsel %vm13659_vm15, %v1844_v8, %v1851_v59  ;;  %v1877_v32 = vor.u32 %v1875_v56, %v1874_v5  ;;  %v1878_v22 = vrot.slane %v1874_v5, 4  ;;  %v13072_v38 = vld [vmem:[#allocation2 + $0x48] sm:$0xff]  }
  0xaf   : > { %2091 = vst [vmem:[#allocation2 + $0x60] sm:$0xf] %v2090_v20  ;;  %v2094_v28 = vsel %vm13368_vm2, %v1853_v60, %v2093_v52  ;;  %2092 = vst.msk [vmem:[#allocation2 + $0x64] sm:$0xf] %vm273_vm5, %v1852_v50  ;;  %v1883_v55 = vshll.u32 %v11251_v48, 16  ;;  %v1887_v25 = vrot.slane %v1882_v23, 4  ;;  %3289 = vrot.lane.b32.xlu0 %v13071_v49, %s13318_s10 }
  0xb0   : > { %2095 = vst [vmem:[#allocation2 + $0x68] sm:$0x1] %v2094_v28  ;;  %v11424_v26 = vrot.slane %v4935_v1, 9  ;;  %v5033_v27 = vrot.slane %v4936_v47, 5  ;;  %v2104_v30 = vsel %vm13651_vm14, %v1877_v32, %v2103_v11  ;;  %v5036_v31 = vrot.slane %v4937_v14, 5  ;;  %v13073_v44 = vld [vmem:[#allocation2 + $0x54] sm:$0xff]  }
  0xb1   : > { %v11360_v33 = vrot.slane %v3891_v15, 9  ;;  %v3989_v36 = vrot.slane %v3892_v18, 5  ;;  %v1885_v39 = vor.u32 %v1883_v55, %v1882_v23  ;;  %2105 = vst [vmem:[#allocation2 + $0x78] sm:$0xf] %v2104_v30  ;;  %v2108_v41 = vsel %vm13368_vm2, %v1887_v25, %v2107_v63  ;;  %v2848_v45 = vld [vmem:[#allocation2 + $0xc] sm:$0xe]  ;;  %4333 = vrot.lane.b32.xlu1 %v13072_v38, %s13319_s11 }
  0xb2   : > { %v5034_v42 = vsel %vm13443_vm8, %v11424_v26, %v5033_v27  ;;  %v5035_v43 = vrot.slane %v5033_v27, 4  ;;  %v2849_v48 = vld [vmem:[#allocation2 + $0x10] sm:$0xf]  ;;  %2109 = vst [vmem:[#allocation2 + $0x80] sm:$0x1] %v2108_v41  ;;  %v13074_v51 = vld [vmem:[#allocation2 + $0x48] sm:$0xff]  }
  0xb3   : > { %v13760_v52 = vsel %vm13443_vm8, %v11360_v33, %v3989_v36  ;;  %v3991_v53 = vrot.slane %v3989_v36, 4  ;;  %v3992_v54 = vrot.slane %v3893_v24, 5  ;;  %v11361_v56 = vrot.slane %v3894_v13, 9  ;;  %v2850_v57 = vld [vmem:[#allocation2 + $0x14] sm:$0x1]  ;;  %v496_v58 = vld [vmem:[%s13500_s8 + $0x28] sm:$0xff]  ;;  %4335 = vrot.lane.b32.xlu0 %v13073_v44, %s13319_s11 }
  0xb4   : > { %v13764_v61 = vld [vmem:[%s13500_s8 + $0x30] sm:$0xff]  ;;  %v1886_v62 = vsel %vm13659_vm15, %v1878_v22, %v1885_v39  ;;  %v5037_v1 = vsel %vm13443_vm8, %v5035_v43, %v5036_v31  ;;  %v3996_v47 = vrot.slane %v3895_v29, 5  ;;  %v3999_v3 = vrot.slane %v3896_v37, 5  ;;  %v3897_v6 = vld [vmem:[#allocation2 + $0x24] sm:$0xe] }
  0xb5   : > { %v3898_v7 = vld [vmem:[#allocation2 + $0x28] sm:$0xf]  ;;  %v3899_v8 = vld [vmem:[#allocation2 + $0x2c] sm:$0x1]  ;;  %2106 = vst.msk [vmem:[#allocation2 + $0x7c] sm:$0xf] %vm273_vm5, %v1886_v62  ;;  %v11440_v11 = vcombine.low %v5034_v42, %v5037_v1  ;;  %v13774_v46 = vsel %vm13443_vm8, %v3991_v53, %v3992_v54  ;;  %v752_v17 = vcombine.high %v496_v58, %v496_v58  ;;  %3291 = vrot.lane.b32.xlu1 %v13074_v51, %s13318_s10 }
  0xb6   : > { %v11297_v14 = vrot.slane %v2848_v45, 9  ;;  %v2953_v15 = vrot.slane %v2849_v48, 5  ;;  %v2851_v18 = vld [vmem:[#allocation2 + $0x18] sm:$0xe]  ;;  %v2852_v19 = vld [vmem:[#allocation2 + $0x1c] sm:$0xf]  ;;  %v11376_v63 = vcombine.low %v13760_v52, %v13774_v46  ;;  %v13780_v5 = vsel %vm13443_vm8, %v11361_v56, %v3996_v47 }
  0xb7   : > { %v2853_v59 = vld [vmem:[#allocation2 + $0x20] sm:$0x1]  ;;  %v13075_v60 = vld [vmem:[#allocation2 + $0x54] sm:$0xff]   ;;  %v3998_v16 = vrot.slane %v3996_v47, 4  ;;  %5207 = vst.msk [vmem:[#allocation4 + $0x8] sm:$0xff] %vm2280_vm0, %v11440_v11  ;;  %v13789_v24 = vrot.slane %v496_v58, %v13504_v34  ;;  %v801_v13 = vcombine.high %v13764_v61, %v13764_v61  ;;  %v2956_v28 = vrot.slane %v2850_v57, 5 }
  0xb8   : > { %v13076_v20 = vld [vmem:[#allocation2 + $0x60] sm:$0xff]   ;;  %v13786_v23 = vsel %vm13443_vm8, %v11297_v14, %v2953_v15  ;;  %v2955_v49 = vrot.slane %v2953_v15, 4  ;;  %3293 = vrot.lane.b32.xlu0 %v13075_v60, %s13318_s10  ;;  %v13799_v32 = vrot.slane %v752_v17, %v13504_v34  ;;  %v13803_v22 = vrot.slane %v13764_v61, %v13504_v34  ;;  %v13077_v38 = vld [vmem:[#allocation2 + $0x6c] sm:$0xff]   ;;  %v3901_v43 = vld [vmem:[#allocation2 + $0x34] sm:$0xf] }
  0xb9   : > { %v13796_v50 = vsel %vm13443_vm8, %v3998_v16, %v3999_v3  ;;  %v11362_v25 = vrot.slane %v3897_v6, 9  ;;  %v4003_v26 = vrot.slane %v3898_v7, 5  ;;  %v4006_v27 = vrot.slane %v3899_v8, 5  ;;  %v13078_v29 = vld [vmem:[#allocation2 + $0x60] sm:$0xff]   ;;  %v3900_v37 = vld [vmem:[#allocation2 + $0x30] sm:$0xe]  ;;  %4337 = vrot.lane.b32.xlu1 %v13076_v20, %s13319_s11 }
  0xba   : > { %v11377_v55 = vcombine.low %v13780_v5, %v13796_v50  ;;  %v13809_v30 = vsel %vm13443_vm8, %v2955_v49, %v2956_v28  ;;  %v11298_v31 = vrot.slane %v2851_v18, 9  ;;  %v2960_v33 = vrot.slane %v2852_v19, 5  ;;  %v3902_v44 = vld [vmem:[#allocation2 + $0x38] sm:$0x1]  ;;  %v13079_v48 = vld [vmem:[#allocation2 + $0x6c] sm:$0xff]  }
  0xbb   : > { %v2963_v36 = vrot.slane %v2853_v59, 5  ;;  %v11313_v39 = vcombine.low %v13786_v23, %v13809_v30  ;;  %v13816_v41 = vsel %vm13443_vm8, %v11362_v25, %v4003_v26  ;;  %v4005_v42 = vrot.slane %v4003_v26, 4  ;;  %v2854_v58 = vld [vmem:[#allocation2 + $0x24] sm:$0xe]  ;;  %v2855_v62 = vld [vmem:[#allocation2 + $0x28] sm:$0xf] }
  0xbc   : > { %v11363_v45 = vrot.slane %v3900_v37, 9  ;;  %4339 = vrot.lane.b32.xlu0 %v13077_v38, %s13319_s11  ;;  %v13821_v51 = vsel %vm13443_vm8, %v11298_v31, %v2960_v33  ;;  %v2962_v53 = vrot.slane %v2960_v33, 4  ;;  %v4010_v54 = vrot.slane %v3901_v43, 5  ;;  %v2856_v1 = vld [vmem:[#allocation2 + $0x2c] sm:$0x1]  ;;  %v13080_v60 = vld [vmem:[#allocation2 + $0x78] sm:$0xff]  }
  0xbd   : > { %v4013_v56 = vrot.slane %v3902_v44, 5  ;;  %v13825_v57 = vsel %vm13443_vm8, %v4005_v42, %v4006_v27  ;;  %v767_v47 = vcombine.high %v13789_v24, %v13789_v24  ;;  %v768_v3 = vcombine.high %v13799_v32, %v13799_v32  ;;  %v3903_v18 = vld [vmem:[#allocation2 + $0x3c] sm:$0xe]  ;;  %v3904_v19 = vld [vmem:[#allocation2 + $0x40] sm:$0xf]  ;;  %3295 = vrot.lane.b32.xlu1 %v13078_v29, %s13318_s10 }
  0xbe   : > { %v13833_v6 = vrot.slane %v13789_v24, %v13504_v34  ;;  %v5224_v7 = vld [vmem:[#allocation4 + $0x8] sm:$0xff]  ;;  %v11378_v8 = vcombine.low %v13816_v41, %v13825_v57  ;;  %v13839_v11 = vsel %vm13443_vm8, %v2962_v53, %v2963_v36  ;;  %v13843_v14 = vsel %vm13443_vm8, %v11363_v45, %v4010_v54  ;;  %v319_v59 = vld [vmem:[#allocation2 + $0x90] sm:$0x1]  ;;  %v3905_v24 = vld [vmem:[#allocation2 + $0x44] sm:$0x1] }
  0xbf   : > { %v4012_v15 = vrot.slane %v4010_v54, 4  ;;  %11466 = vmatprep.mubr.msk.bf16.mxu0 %vm2280_vm0, %v5224_v7  ;;  %v11314_v16 = vcombine.low %v13821_v51, %v13839_v11  ;;  %v11299_v17 = vrot.slane %v2854_v58, 9  ;;  %v2967_v20 = vrot.slane %v2855_v62, 5  ;;  %v2857_v27 = vld [vmem:[#allocation2 + $0x30] sm:$0xe] }
  0xc0   : > { %v2970_v49 = vrot.slane %v2856_v1, 5  ;;  %3297 = vrot.lane.b32.xlu0 %v13079_v48, %s13318_s10  ;;  %v11364_v38 = vrot.slane %v3903_v18, 9  ;;  %v4017_v25 = vrot.slane %v3904_v19, 5  ;;  %v4020_v26 = vrot.slane %v3905_v24, 5  ;;  %v2858_v36 = vld [vmem:[#allocation2 + $0x34] sm:$0xf] }
  0xc1   : > { %v13852_v28 = vsel %vm13443_vm8, %v4012_v15, %v4013_v56  ;;  %v13858_v31 = vsel %vm13443_vm8, %v11299_v17, %v2967_v20  ;;  %v2969_v33 = vrot.slane %v2967_v20, 4  ;;  %v2859_v37 = vld [vmem:[#allocation2 + $0x38] sm:$0x1]  ;;  %v11300_v42 = vrot.slane %v2857_v27, 9  ;;  %v2860_v53 = vld [vmem:[#allocation2 + $0x3c] sm:$0xe]  ;;  %4341 = vrot.lane.b32.xlu1 %v13080_v60, %s13319_s11 }
  0xc2   : > { %v11379_v29 = vcombine.low %v13843_v14, %v13852_v28  ;;  %v13862_v43 = vsel %vm13443_vm8, %v11364_v38, %v4017_v25  ;;  %v4019_v44 = vrot.slane %v4017_v25, 4  ;;  %v2974_v45 = vrot.slane %v2858_v36, 5  ;;  %v2861_v56 = vld [vmem:[#allocation2 + $0x40] sm:$0xf]  ;;  %v2862_v58 = vld [vmem:[#allocation2 + $0x44] sm:$0x1] }
  0xc3   : > { %v2977_v48 = vrot.slane %v2859_v37, 5  ;;  %v13867_v54 = vsel %vm13443_vm8, %v2969_v33, %v2970_v49  ;;  %v11301_v62 = vrot.slane %v2860_v53, 9  ;;  %v320_v1 = vsel %vm13368_vm2, 0, %v319_v59  ;;  %v3906_v60 = vld [vmem:[#allocation2 + $0x48] sm:$0xe] }
  0xc4   : > { %v13873_v7 = vrot.slane %v13799_v32, %v13504_v34  ;;  %4147 = vrot.lane.b32.xlu0 %v11376_v63, %s13320_s12  ;;  %v11315_v15 = vcombine.low %v13858_v31, %v13867_v54  ;;  %v13883_v18 = vsel %vm13443_vm8, %v4019_v44, %v4020_v26  ;;  %v13887_v19 = vsel %vm13443_vm8, %v11300_v42, %v2974_v45  ;;  %v3907_v17 = vld [vmem:[#allocation2 + $0x4c] sm:$0xf]  ;;  %v3908_v63 = vld [vmem:[#allocation2 + $0x50] sm:$0x1]  ;;  %v3909_v26 = vld [vmem:[#allocation2 + $0x54] sm:$0xe] }
  0xc5   : > { %v2976_v59 = vrot.slane %v2974_v45, 4  ;;  %321 = vst [vmem:[#allocation2 + $0x90] sm:$0x1] %v320_v1  ;;  %v11380_v20 = vcombine.low %v13862_v43, %v13883_v18  ;;  %v2981_v52 = vrot.slane %v2861_v56, 5  ;;  %v2984_v46 = vrot.slane %v2862_v58, 5  ;;  %3106 = vrot.lane.b32.xlu1 %v11313_v39, %s13314_s28 }
  0xc6   : > { %v11365_v49 = vrot.slane %v3906_v60, 9  ;;  %v4024_v38 = vrot.slane %v3907_v17, 5  ;;  %v4027_v25 = vrot.slane %v3908_v63, 5  ;;  %v3910_v27 = vld [vmem:[#allocation2 + $0x58] sm:$0xf]  ;;  %v13896_v33 = vrot.slane %v767_v47, %v13504_v34 }
  0xc7   : > { %v13893_v24 = vsel %vm13443_vm8, %v2976_v59, %v2977_v48  ;;  %v13906_v37 = vsel %vm13443_vm8, %v11301_v62, %v2981_v52  ;;  %v2983_v42 = vrot.slane %v2981_v52, 4  ;;  %v3911_v44 = vld [vmem:[#allocation2 + $0x5c] sm:$0x1]  ;;  %v11366_v45 = vrot.slane %v3909_v26, 9  ;;  %v2863_v48 = vld [vmem:[#allocation2 + $0x48] sm:$0xe] }
  0xc8   : > { %v11316_v36 = vcombine.low %v13887_v19, %v13893_v24  ;;  %4149 = vrot.lane.b32.xlu0 %v11377_v55, %s13320_s12  ;;  %v13914_v23 = vsel %vm13443_vm8, %v11365_v49, %v4024_v38  ;;  %v4026_v30 = vrot.slane %v4024_v38, 4  ;;  %v4031_v39 = vrot.slane %v3910_v27, 5  ;;  %v2864_v53 = vld [vmem:[#allocation2 + $0x4c] sm:$0xf]  ;;  %v2865_v58 = vld [vmem:[#allocation2 + $0x50] sm:$0x1] }
  0xc9   : > { %v4034_v47 = vrot.slane %v3911_v44, 5  ;;  %v13918_v56 = vsel %vm13443_vm8, %v2983_v42, %v2984_v46  ;;  %v11302_v62 = vrot.slane %v2863_v48, 9  ;;  %v2988_v1 = vrot.slane %v2864_v53, 5  ;;  %v2866_v59 = vld [vmem:[#allocation2 + $0x54] sm:$0xe]  ;;  %3108 = vrot.lane.b32.xlu1 %v11314_v16, %s13314_s28 }
  0xca   : > { %v13924_v5 = vrot.slane %v768_v3, %v13504_v34  ;;  %v11317_v50 = vcombine.low %v13906_v37, %v13918_v56  ;;  %v13930_v55 = vsel %vm13443_vm8, %v4026_v30, %v4027_v25  ;;  %v13934_v60 = vsel %vm13443_vm8, %v11366_v45, %v4031_v39  ;;  %v2867_v52 = vld [vmem:[#allocation2 + $0x58] sm:$0xf]  ;;  %v2868_v46 = vld [vmem:[#allocation2 + $0x5c] sm:$0x1]  ;;  %v3912_v38 = vld [vmem:[#allocation2 + $0x60] sm:$0xe] }
  0xcb   : > { %v4033_v17 = vrot.slane %v4031_v39, 4  ;;  %v11381_v32 = vcombine.low %v13914_v23, %v13930_v55  ;;  %v13944_v3 = vsel %vm13443_vm8, %v11302_v62, %v2988_v1  ;;  %v2990_v63 = vrot.slane %v2988_v1, 4  ;;  %v3913_v25 = vld [vmem:[#allocation2 + $0x64] sm:$0xf]  ;;  %v3914_v27 = vld [vmem:[#allocation2 + $0x68] sm:$0x1] }
  0xcc   : > { %v2991_v49 = vrot.slane %v2865_v58, 5  ;;  %4151 = vrot.lane.b32.xlu0 %v11378_v8, %s13320_s12  ;;  %v11303_v11 = vrot.slane %v2866_v59, 9  ;;  %v2995_v16 = vrot.slane %v2867_v52, 5  ;;  %v2998_v26 = vrot.slane %v2868_v46, 5  ;;  %v3915_v30 = vld [vmem:[#allocation2 + $0x6c] sm:$0xe] }
  0xcd   : > { %v13952_v51 = vsel %vm13443_vm8, %v4033_v17, %v4034_v47  ;;  %v11367_v45 = vrot.slane %v3912_v38, 9  ;;  %v4038_v48 = vrot.slane %v3913_v25, 5  ;;  %v3916_v41 = vld [vmem:[#allocation2 + $0x70] sm:$0xf]  ;;  %v4041_v47 = vrot.slane %v3914_v27, 5  ;;  %3110 = vrot.lane.b32.xlu1 %v11315_v15, %s13314_s28 }
  0xce   : > { %v11382_v42 = vcombine.low %v13934_v60, %v13952_v51  ;;  %v13958_v44 = vsel %vm13443_vm8, %v2990_v63, %v2991_v49  ;;  %v13964_v8 = vsel %vm13443_vm8, %v11303_v11, %v2995_v16  ;;  %v2997_v39 = vrot.slane %v2995_v16, 4  ;;  %v3917_v53 = vld [vmem:[#allocation2 + $0x74] sm:$0x1]  ;;  %v2869_v58 = vld [vmem:[#allocation2 + $0x60] sm:$0xe] }
  0xcf   : > { %v11318_v57 = vcombine.low %v13944_v3, %v13958_v44  ;;  %v13972_v62 = vsel %vm13443_vm8, %v11367_v45, %v4038_v48  ;;  %v4040_v1 = vrot.slane %v4038_v48, 4  ;;  %v11368_v59 = vrot.slane %v3915_v30, 9  ;;  %v2870_v52 = vld [vmem:[#allocation2 + $0x64] sm:$0xf]  ;;  %v2871_v31 = vld [vmem:[#allocation2 + $0x68] sm:$0x1] }
  0xd0   : > { %v4045_v17 = vrot.slane %v3916_v41, 5  ;;  %4153 = vrot.lane.b32.xlu0 %v11379_v29, %s13320_s12  ;;  %v13980_v46 = vsel %vm13443_vm8, %v2997_v39, %v2998_v26  ;;  %v4048_v63 = vrot.slane %v3917_v53, 5  ;;  %v11304_v54 = vrot.slane %v2869_v58, 9  ;;  %v4390_v28 = vld [vmem:[#allocation2 + $0x18] sm:$0xf] }
  0xd1   : > { %v3002_v15 = vrot.slane %v2870_v52, 5  ;;  %v11319_v49 = vcombine.low %v13964_v8, %v13980_v46  ;;  %v13986_v38 = vsel %vm13443_vm8, %v4040_v1, %v4041_v47  ;;  %v4391_v29 = vld [vmem:[#allocation2 + $0x1c] sm:$0xf]  ;;  %v3005_v27 = vrot.slane %v2871_v31, 5  ;;  %v4392_v45 = vld [vmem:[#allocation2 + $0x20] sm:$0x1]  ;;  %3112 = vrot.lane.b32.xlu1 %v11316_v36, %s13314_s28 }
  0xd2   : > { %v13990_v25 = vsel %vm13443_vm8, %v11368_v59, %v4045_v17  ;;  %v4047_v14 = vrot.slane %v4045_v17, 4  ;;  %v11383_v11 = vcombine.low %v13972_v62, %v13986_v38  ;;  %v4439_v30 = vshrl.u32 %v4390_v28, 16  ;;  %v3346_v47 = vld [vmem:[#allocation2 + $0xc] sm:$0xf]  ;;  %v3347_v58 = vld [vmem:[#allocation2 + $0x10] sm:$0xf] }
  0xd3   : > { %v13996_v16 = vsel %vm13443_vm8, %v11304_v54, %v3002_v15  ;;  %v3004_v26 = vrot.slane %v3002_v15, 4  ;;  %v4442_v41 = vshll.u32 %v4390_v28, 16  ;;  %v4448_v39 = vshll.u32 %v4391_v29, 16  ;;  %v3348_v1 = vld [vmem:[#allocation2 + $0x14] sm:$0x1] }
  0xd4   : > { %v14004_v48 = vsel %vm13443_vm8, %v4047_v14, %v4048_v63  ;;  %4155 = vrot.lane.b32.xlu0 %v11380_v20, %s13320_s12  ;;  %v4452_v24 = vshrl.u32 %v4391_v29, 16  ;;  %v4458_v36 = vshll.u32 %v4392_v45, 16  ;;  %v4441_v17 = vrot.slane %v4439_v30, 4  ;;  %v3349_v31 = vld [vmem:[#allocation2 + $0x18] sm:$0xf] }
  0xd5   : > { %v11384_v53 = vcombine.low %v13990_v25, %v14004_v48  ;;  %v14014_v19 = vsel %vm13443_vm8, %v3004_v26, %v3005_v27  ;;  %v4444_v52 = vrot.slane %v4442_v41, 5  ;;  %v4450_v63 = vrot.slane %v4448_v39, 5  ;;  %4157 = vrot.lane.b32.xlu1 %v11381_v32, %s13320_s12  ;;  %v3350_v30 = vld [vmem:[#allocation2 + $0x1c] sm:$0xf]  ;;  %v3351_v23 = vld [vmem:[#allocation2 + $0x20] sm:$0x1] }
  0xd6   : > { %v11320_v59 = vcombine.low %v13996_v16, %v14014_v19  ;;  %v4454_v43 = vrot.slane %v4452_v24, 4  ;;  %v4460_v18 = vrot.slane %v4458_v36, 5  ;;  %v3395_v20 = vshrl.u32 %v3346_v47, 16  ;;  %v2301_v3 = vld [vmem:[#allocation2 + $0x10] sm:$0xf] }
  0xd7   : > { %v3398_v54 = vshll.u32 %v3346_v47, 16  ;;  %v4445_v15 = vor.u32 %v4444_v52, %v4441_v17  ;;  %v3404_v14 = vshll.u32 %v3347_v58, 16  ;;  %v3408_v28 = vshrl.u32 %v3347_v58, 16  ;;  %v2300_v52 = vld [vmem:[#allocation2 + $0xc] sm:$0xf] }
  0xd8   : > { %v3414_v29 = vshll.u32 %v3348_v1, 16  ;;  %3114 = vrot.lane.b32.xlu0 %v11317_v50, %s13314_s28  ;;  %v4455_v26 = vor.u32 %v4454_v43, %v4450_v63  ;;  %v3397_v27 = vrot.slane %v3395_v20, 4  ;;  %v3419_v41 = vshrl.u32 %v3349_v31, 16  ;;  %v3369_v2 = vld [vmem:[#allocation2 + $0x68] sm:$0x1] }
  0xd9   : > { %v3400_v45 = vrot.slane %v3398_v54, 5  ;;  %v4446_v39 = vrot.slane %v4445_v15, 4  ;;  %v3406_v47 = vrot.slane %v3404_v14, 5  ;;  %v3410_v24 = vrot.slane %v3408_v28, 4  ;;  %3116 = vrot.lane.b32.xlu1 %v11318_v57, %s13314_s28 }
  0xda   : > { %v3416_v36 = vrot.slane %v3414_v29, 5  ;;  %v4456_v55 = vrot.slane %v4455_v26, 4  ;;  %v3421_v17 = vrot.slane %v3419_v41, 4  ;;  %v3422_v58 = vshll.u32 %v3349_v31, 16  ;;  %v2302_v26 = vld [vmem:[#allocation2 + $0x14] sm:$0x1] }
  0xdb   : > { %v3401_v32 = vor.u32 %v3400_v45, %v3397_v27  ;;  %v4451_v37 = vsel %vm13482_vm11, %v4446_v39, %v4450_v63  ;;  %v3411_v56 = vor.u32 %v3410_v24, %v3406_v47  ;;  %v3428_v50 = vshll.u32 %v3350_v30, 16  ;;  %v3352_v45 = vld [vmem:[#allocation2 + $0x24] sm:$0xf]  ;;  %v3353_v24 = vld [vmem:[#allocation2 + $0x28] sm:$0xf] }
  0xdc   : > { %v3432_v1 = vshrl.u32 %v3350_v30, 16  ;;  %4159 = vrot.lane.b32.xlu0 %v11382_v42, %s13320_s12  ;;  %v4461_v31 = vsel %vm13482_vm11, %v4456_v55, %v4460_v18  ;;  %v3424_v20 = vrot.slane %v3422_v58, 5  ;;  %v3438_v54 = vshll.u32 %v3351_v23, 16 }
  0xdd   : > { %v3402_v43 = vrot.slane %v3401_v32, 4  ;;  %v11408_v44 = vcombine.low %v4451_v37, %v4461_v31  ;;  %v3412_v57 = vrot.slane %v3411_v56, 4  ;;  %v3430_v15 = vrot.slane %v3428_v50, 5  ;;  %4161 = vrot.lane.b32.xlu1 %v11383_v11, %s13320_s12  ;;  %v3354_v32 = vld [vmem:[#allocation2 + $0x2c] sm:$0x1] }
  0xde   : > { %v3434_v63 = vrot.slane %v3432_v1, 4  ;;  %v3425_v28 = vor.u32 %v3424_v20, %v3421_v17  ;;  %v3440_v29 = vrot.slane %v3438_v54, 5  ;;  %v2373_v27 = vshrl.u32 %v2300_v52, 16  ;;  %v4393_v56 = vld [vmem:[#allocation2 + $0x24] sm:$0xf] }
  0xdf   : > { %v3407_v14 = vsel %vm13482_vm11, %v3402_v43, %v3406_v47  ;;  %v3417_v60 = vsel %vm13482_vm11, %v3412_v57, %v3416_v36  ;;  %v2376_v42 = vshll.u32 %v2300_v52, 16  ;;  %v2382_v18 = vshll.u32 %v2301_v3, 16  ;;  %v4394_v43 = vld [vmem:[#allocation2 + $0x28] sm:$0xf]  ;;  %v4395_v57 = vld [vmem:[#allocation2 + $0x2c] sm:$0x1] }
  0xe0   : > { %v3435_v51 = vor.u32 %v3434_v63, %v3430_v15  ;;  %3118 = vrot.lane.b32.xlu0 %v11319_v49, %s13314_s28  ;;  %v11344_v30 = vcombine.low %v3407_v14, %v3417_v60  ;;  %v3426_v41 = vrot.slane %v3425_v28, 4  ;;  %v2375_v39 = vrot.slane %v2373_v27, 4  ;;  %v13084_v14 = vld [vmem:[#allocation2] sm:$0xff]  }
  0xe1   : > { %v2386_v47 = vshrl.u32 %v2301_v3, 16  ;;  %v2378_v62 = vrot.slane %v2376_v42, 5  ;;  %v2384_v38 = vrot.slane %v2382_v18, 5  ;;  %v2392_v11 = vshll.u32 %v2302_v26, 16  ;;  %3120 = vrot.lane.b32.xlu1 %v11320_v59, %s13314_s28  ;;  %v13101_v26 = vld [vmem:[#allocation2 + $0xc] sm:$0xff]   ;;  %2281 = vst.msk [vmem:[#allocation4] sm:$0xff] %vm2280_vm0, %v13084_v14 }
  0xe2   : > { %v3436_v23 = vrot.slane %v3435_v51, 4  ;;  %v3431_v36 = vsel %vm13482_vm11, %v3426_v41, %v3430_v15  ;;  %v3443_v17 = vshrl.u32 %v3352_v45, 16  ;;  %v3446_v58 = vshll.u32 %v3352_v45, 16  ;;  %v3356_v18 = vld [vmem:[#allocation2 + $0x34] sm:$0xf]  ;;  %2282 = vst.msk [vmem:[#allocation4 + $0x10] sm:$0xff] %vm2280_vm0, %v13101_v26 }
  0xe3   : > { %v2388_v55 = vrot.slane %v2386_v47, 4  ;;  %v2379_v46 = vor.u32 %v2378_v62, %v2375_v39  ;;  %v2394_v49 = vrot.slane %v2392_v11, 5  ;;  %v3452_v37 = vshll.u32 %v3353_v24, 16  ;;  %v3357_v11 = vld [vmem:[#allocation2 + $0x38] sm:$0x1] }
  0xe4   : > { %v3441_v8 = vsel %vm13482_vm11, %v3436_v23, %v3440_v29  ;;  %4163 = vrot.lane.b32.xlu0 %v11384_v53, %s13320_s12  ;;  %v3445_v52 = vrot.slane %v3443_v17, 4  ;;  %v3448_v31 = vrot.slane %v3446_v58, 5  ;;  %v3456_v19 = vshrl.u32 %v3353_v24, 16  ;;  %v3355_v29 = vld [vmem:[#allocation2 + $0x30] sm:$0xf] }
  0xe5   : > { %v11345_v50 = vcombine.low %v3431_v36, %v3441_v8  ;;  %v2389_v1 = vor.u32 %v2388_v55, %v2384_v38  ;;  %v2380_v20 = vrot.slane %v2379_v46, 4  ;;  %v3454_v16 = vrot.slane %v3452_v37, 5  ;;  %3826 = vrot.lane.b32.xlu1 %v11344_v30, %s13321_s13  ;;  %v2303_v46 = vld [vmem:[#allocation2 + $0x18] sm:$0xf] }
  0xe6   : > { %v3462_v59 = vshll.u32 %v3354_v32, 16  ;;  %v3449_v3 = vor.u32 %v3448_v31, %v3445_v52  ;;  %v4463_v15 = vshrl.u32 %v4393_v56, 16  ;;  %v4466_v63 = vshll.u32 %v4393_v56, 16  ;;  %v2304_v52 = vld [vmem:[#allocation2 + $0x1c] sm:$0xf] }
  0xe7   : > { %v2390_v54 = vrot.slane %v2389_v1, 4  ;;  %v2385_v25 = vsel %vm13482_vm11, %v2380_v20, %v2384_v38  ;;  %v3458_v48 = vrot.slane %v3456_v19, 4  ;;  %v4472_v28 = vshll.u32 %v4394_v43, 16 }
  0xe8   : > { %v3464_v53 = vrot.slane %v3462_v59, 5  ;;  %4870 = vrot.lane.b32.xlu0 %v11408_v44, %s13322_s14  ;;  %v3450_v60 = vrot.slane %v3449_v3, 4  ;;  %v4465_v51 = vrot.slane %v4463_v15, 4  ;;  %v4468_v42 = vrot.slane %v4466_v63, 5  ;;  %v2305_v59 = vld [vmem:[#allocation2 + $0x20] sm:$0x1] }
  0xe9   : > { %v2395_v27 = vsel %vm13482_vm11, %v2390_v54, %v2394_v49  ;;  %v3459_v30 = vor.u32 %v3458_v48, %v3454_v16  ;;  %v4474_v41 = vrot.slane %v4472_v28, 5  ;;  %v4476_v39 = vshrl.u32 %v4394_v43, 16  ;;  %3828 = vrot.lane.b32.xlu1 %v11345_v50, %s13321_s13  ;;  %v3358_v48 = vld [vmem:[#allocation2 + $0x3c] sm:$0xf] }
  0xea   : > { %v11281_v45 = vcombine.low %v2385_v25, %v2395_v27  ;;  %v3455_v47 = vsel %vm13482_vm11, %v3450_v60, %v3454_v16  ;;  %v4469_v24 = vor.u32 %v4468_v42, %v4465_v51  ;;  %v4482_v44 = vshll.u32 %v4395_v57, 16  ;;  %v13106_v57 = vld [vmem:[#allocation2 + $0x18] sm:$0xff]   ;;  %v3359_v27 = vld [vmem:[#allocation2 + $0x40] sm:$0xf]  ;;  %v14081_v60 = vpop.permute.xlu1 %1585 }
  0xeb   : > { %v3467_v23 = vshrl.u32 %v3355_v29, 16  ;;  %v3460_v62 = vrot.slane %v3459_v30, 4  ;;  %v4478_v38 = vrot.slane %v4476_v39, 4  ;;  %v3470_v36 = vshll.u32 %v3355_v29, 16  ;;  %2283 = vst.msk [vmem:[#allocation4 + $0x20] sm:$0xff] %vm2280_vm0, %v13106_v57 }
  0xec   : > { %v3476_v55 = vshll.u32 %v3356_v18, 16  ;;  %2782 = vrot.lane.b32.xlu0 %v11281_v45, %s13316_s9  ;;  %v4470_v32 = vrot.slane %v4469_v24, 4  ;;  %v4484_v17 = vrot.slane %v4482_v44, 5  ;;  %v3480_v8 = vshrl.u32 %v3356_v18, 16 }
  0xed   : > { %v3469_v58 = vrot.slane %v3467_v23, 4  ;;  %v3465_v49 = vsel %vm13482_vm11, %v3460_v62, %v3464_v53  ;;  %v4479_v37 = vor.u32 %v4478_v38, %v4474_v41  ;;  %v3472_v56 = vrot.slane %v3470_v36, 5  ;;  %v3360_v23 = vld [vmem:[#allocation2 + $0x44] sm:$0x1] }
  0xee   : > { %v3478_v1 = vrot.slane %v3476_v55, 5  ;;  %v11346_v50 = vcombine.low %v3455_v47, %v3465_v49  ;;  %v4475_v31 = vsel %vm13482_vm11, %v4470_v32, %v4474_v41  ;;  %v3482_v43 = vrot.slane %v3480_v8, 4 }
  0xef   : > { %v3486_v20 = vshll.u32 %v3357_v11, 16  ;;  %v4480_v16 = vrot.slane %v4479_v37, 4  ;;  %v3473_v19 = vor.u32 %v3472_v56, %v3469_v58  ;;  %v2397_v54 = vshrl.u32 %v2303_v46, 16  ;;  %v4396_v11 = vld [vmem:[#allocation2 + $0x30] sm:$0xf] }
  0xf0   : > { %v2400_v3 = vshll.u32 %v2303_v46, 16  ;;  %3830 = vrot.lane.b32.xlu1 %v11346_v50, %s13321_s13  ;;  %v3483_v15 = vor.u32 %v3482_v43, %v3478_v1  ;;  %v2406_v14 = vshll.u32 %v2304_v52, 16  ;;  %v2410_v25 = vshrl.u32 %v2304_v52, 16  ;;  %v4397_v58 = vld [vmem:[#allocation2 + $0x34] sm:$0xf] }
  0xf1   : > { %v3488_v63 = vrot.slane %v3486_v20, 5  ;;  %v4485_v53 = vsel %vm13482_vm11, %v4480_v16, %v4484_v17  ;;  %v3474_v28 = vrot.slane %v3473_v19, 4  ;;  %v2399_v29 = vrot.slane %v2397_v54, 4  ;;  %v4398_v19 = vld [vmem:[#allocation2 + $0x38] sm:$0x1] }
  0xf2   : > { %v2402_v26 = vrot.slane %v2400_v3, 5  ;;  %v11409_v51 = vcombine.low %v4475_v31, %v4485_v53  ;;  %v3484_v42 = vrot.slane %v3483_v15, 4  ;;  %v2408_v18 = vrot.slane %v2406_v14, 5  ;;  %v14092_v31 = vpop.permute.xlu1 %3104  ;;  %v2312_v54 = vld [vmem:[#allocation2 + $0x3c] sm:$0xf] }
  0xf3   : > { %v2412_v45 = vrot.slane %v2410_v25, 4  ;;  %v3479_v30 = vsel %vm13482_vm11, %v3474_v28, %v3478_v1  ;;  %v2416_v39 = vshll.u32 %v2305_v59, 16  ;;  %v3491_v47 = vshrl.u32 %v3358_v48, 16  ;;  %v2313_v14 = vld [vmem:[#allocation2 + $0x40] sm:$0xf] }
  0xf4   : > { %v2403_v41 = vor.u32 %v2402_v26, %v2399_v29  ;;  %4872 = vrot.lane.b32.xlu0 %v11409_v51, %s13322_s14  ;;  %v3489_v24 = vsel %vm13482_vm11, %v3484_v42, %v3488_v63  ;;  %v3494_v62 = vshll.u32 %v3358_v48, 16  ;;  %v3500_v38 = vshll.u32 %v3359_v27, 16 }
  0xf5   : > { %v2413_v44 = vor.u32 %v2412_v45, %v2408_v18  ;;  %v11347_v36 = vcombine.low %v3479_v30, %v3489_v24  ;;  %v2418_v32 = vrot.slane %v2416_v39, 5  ;;  %v3493_v17 = vrot.slane %v3491_v47, 4  ;;  %v2314_v30 = vld [vmem:[#allocation2 + $0x44] sm:$0x1] }
  0xf6   : > { %v2404_v55 = vrot.slane %v2403_v41, 4  ;;  %v3496_v46 = vrot.slane %v3494_v62, 5  ;;  %v3502_v49 = vrot.slane %v3500_v38, 5  ;;  %v3504_v37 = vshrl.u32 %v3359_v27, 16  ;;  %v14099_v62 = vpop.permute.xlu1 %1587 }
  0xf7   : > { %v2414_v8 = vrot.slane %v2413_v44, 4  ;;  %3832 = vrot.lane.b32.xlu1 %v11347_v36, %s13321_s13  ;;  %v3510_v1 = vshll.u32 %v3360_v23, 16  ;;  %v4487_v52 = vshrl.u32 %v4396_v11, 16  ;;  %v4490_v50 = vshll.u32 %v4396_v11, 16  ;;  %v2306_v23 = vld [vmem:[#allocation2 + $0x24] sm:$0xf] }
  0xf8   : > { %v2409_v56 = vsel %vm13482_vm11, %v2404_v55, %v2408_v18  ;;  %v3497_v20 = vor.u32 %v3496_v46, %v3493_v17  ;;  %v3506_v16 = vrot.slane %v3504_v37, 4  ;;  %v4496_v59 = vshll.u32 %v4397_v58, 16 }
  0xf9   : > { %v2419_v43 = vsel %vm13482_vm11, %v2414_v8, %v2418_v32  ;;  %v3512_v57 = vrot.slane %v3510_v1, 5  ;;  %v4489_v15 = vrot.slane %v4487_v52, 4  ;;  %v4492_v63 = vrot.slane %v4490_v50, 5  ;;  %v2307_v32 = vld [vmem:[#allocation2 + $0x28] sm:$0xf] }
  0xfa   : > { %v11282_v3 = vcombine.low %v2409_v56, %v2419_v43  ;;  %v3498_v25 = vrot.slane %v3497_v20, 4  ;;  %v3507_v48 = vor.u32 %v3506_v16, %v3502_v49  ;;  %v4498_v53 = vrot.slane %v4496_v59, 5  ;;  %v369_v52 = vld [vmem:[#allocation2 + $0x98] sm:$0x1]  ;;  %v2308_v20 = vld [vmem:[#allocation2 + $0x2c] sm:$0x1] }
  0xfb   : > { %v4500_v28 = vshrl.u32 %v4397_v58, 16  ;;  %v4493_v29 = vor.u32 %v4492_v63, %v4489_v15  ;;  %v4506_v26 = vshll.u32 %v4398_v19, 16  ;;  %v2469_v27 = vshrl.u32 %v2312_v54, 16 }
  0xfc   : > { %2784 = vrot.lane.b32.xlu0 %v11282_v3, %s13316_s9  ;;  %v2472_v51 = vshll.u32 %v2312_v54, 16  ;;  %v3503_v42 = vsel %vm13482_vm11, %v3498_v25, %v3502_v49  ;;  %v3508_v18 = vrot.slane %v3507_v48, 4  ;;  %v2478_v41 = vshll.u32 %v2313_v14, 16  ;;  %v14110_v48 = vpop.permute.xlu1 %1589 }
  0xfd   : > { %v4502_v45 = vrot.slane %v4500_v28, 4  ;;  %v4494_v39 = vrot.slane %v4493_v29, 4  ;;  %v4508_v47 = vrot.slane %v4506_v26, 5  ;;  %v2471_v24 = vrot.slane %v2469_v27, 4 }
  0xfe   : > { %v2474_v44 = vrot.slane %v2472_v51, 5  ;;  %v3513_v38 = vsel %vm13482_vm11, %v3508_v18, %v3512_v57  ;;  %v2480_v36 = vrot.slane %v2478_v41, 5  ;;  %v2482_v55 = vshrl.u32 %v2313_v14, 16 }
  0xff   : > { %v4503_v11 = vor.u32 %v4502_v45, %v4498_v53  ;;  %v11348_v17 = vcombine.low %v3503_v42, %v3513_v38  ;;  %v4499_v58 = vsel %vm13482_vm11, %v4494_v39, %v4498_v53  ;;  %v2488_v46 = vshll.u32 %v2314_v30, 16 }
 0x100   : > { %v2475_v8 = vor.u32 %v2474_v44, %v2471_v24  ;;  %v2484_v37 = vrot.slane %v2482_v55, 4  ;;  %v2421_v56 = vshrl.u32 %v2306_v23, 16  ;;  %v2424_v1 = vshll.u32 %v2306_v23, 16 }
 0x101   : > { %v4504_v49 = vrot.slane %v4503_v11, 4  ;;  %3834 = vrot.lane.b32.xlu1 %v11348_v17, %s13321_s13  ;;  %v2490_v43 = vrot.slane %v2488_v46, 5  ;;  %v2430_v16 = vshll.u32 %v2307_v32, 16  ;;  %v2434_v19 = vshrl.u32 %v2307_v32, 16  ;;  %v4405_v11 = vld [vmem:[#allocation2 + $0x54] sm:$0xf] }
 0x102   : > { %v2476_v50 = vrot.slane %v2475_v8, 4  ;;  %v2485_v54 = vor.u32 %v2484_v37, %v2480_v36  ;;  %v2423_v3 = vrot.slane %v2421_v56, 4  ;;  %v2426_v57 = vrot.slane %v2424_v1, 5 }
 0x103   : > { %v4509_v59 = vsel %vm13482_vm11, %v4504_v49, %v4508_v47  ;;  %v2432_v14 = vrot.slane %v2430_v16, 5  ;;  %v2436_v25 = vrot.slane %v2434_v19, 4  ;;  %v2440_v29 = vshll.u32 %v2308_v20, 16  ;;  %v14125_v47 = vpop.permute.xlu0 %1583  ;;  %v14144_v49 = vpop.permute.xlu1 %1591  ;;  %v4407_v20 = vld [vmem:[#allocation2 + $0x5c] sm:$0x1] }
 0x104   : > { %v11410_v15 = vcombine.low %v4499_v58, %v4509_v59  ;;  %v2481_v63 = vsel %vm13482_vm11, %v2476_v50, %v2480_v36  ;;  %v2486_v53 = vrot.slane %v2485_v54, 4  ;;  %v2427_v28 = vor.u32 %v2426_v57, %v2423_v3  ;;  %v4406_v58 = vld [vmem:[#allocation2 + $0x58] sm:$0xf]  ;;  %v4399_v59 = vld [vmem:[#allocation2 + $0x3c] sm:$0xf] }
 0x105   : > { %v370_v26 = vsel %vm13378_vm4, 0, %v369_v52  ;;  %v2437_v27 = vor.u32 %v2436_v25, %v2432_v14  ;;  %v797_v51 = vcombine.high %v13833_v6, %v13833_v6  ;;  %v798_v42 = vcombine.high %v13873_v7, %v13873_v7 }
 0x106   : > { %4874 = vrot.lane.b32.xlu0 %v11410_v15, %s13322_s14  ;;  %371 = vst [vmem:[#allocation2 + $0x98] sm:$0x1] %v370_v26  ;;  %v799_v18 = vcombine.high %v13896_v33, %v13896_v33  ;;  %v2491_v45 = vsel %vm13482_vm11, %v2486_v53, %v2490_v43  ;;  %v2428_v30 = vrot.slane %v2427_v28, 4  ;;  %v2442_v41 = vrot.slane %v2440_v29, 5  ;;  %v4400_v15 = vld [vmem:[#allocation2 + $0x40] sm:$0xf] }
 0x107   : > { %v800_v39 = vcombine.high %v13924_v5, %v13924_v5  ;;  %v11285_v24 = vcombine.low %v2481_v63, %v2491_v45  ;;  %v2438_v44 = vrot.slane %v2437_v27, 4  ;;  %v1062_v23 = vrot.slane %v13833_v6, %v13509_v40 }
 0x108   : > { %v1066_v38 = vrot.slane %v13896_v33, %v13509_v40  ;;  %v2433_v36 = vsel %vm13482_vm11, %v2428_v30, %v2432_v14  ;;  %v1070_v55 = vrot.slane %v797_v51, %v13509_v40  ;;  %v1074_v32 = vrot.slane %v799_v18, %v13509_v40  ;;  %v4401_v18 = vld [vmem:[#allocation2 + $0x44] sm:$0x1] }
 0x109   : > { %v1078_v17 = vrot.slane %v13873_v7, %v13509_v40  ;;  %2790 = vrot.lane.b32.xlu1 %v11285_v24, %s13316_s9  ;;  %v2443_v6 = vsel %vm13482_vm11, %v2438_v44, %v2442_v41  ;;  %v1082_v33 = vrot.slane %v13924_v5, %v13509_v40  ;;  %v1086_v8 = vrot.slane %v798_v42, %v13509_v40  ;;  %v14146_v7 = vpop.permute.xlu0 %2780  ;;  %v316_v41 = vld [vmem:[#allocation2 + $0x84] sm:$0x1] }
 0x10a   : > { %v1090_v46 = vrot.slane %v800_v39, %v13509_v40  ;;  %v11283_v37 = vcombine.low %v2433_v36, %v2443_v6  ;;  %v1325_v56 = vcombine.low %v1062_v23, %v1066_v38  ;;  %v1326_v1 = vcombine.low %v1070_v55, %v1074_v32  ;;  %v14153_v39 = vpop.permute.xlu1 %1593  ;;  %2829 = vst.msk [vmem:[#allocation4] sm:$0xff] %vm2828_vm6, %v14146_v7 }
 0x10b   : > { %v4559_v52 = vshrl.u32 %v4405_v11, 16  ;;  %v1342_v50 = vcombine.low %v1078_v17, %v1082_v33  ;;  %v4562_v16 = vshll.u32 %v4405_v11, 16  ;;  %v4568_v19 = vshll.u32 %v4406_v58, 16  ;;  %v366_v11 = vld [vmem:[#allocation2 + $0x8c] sm:$0x1]  ;;  %3153 = vst.msk [vmem:[#allocation4] sm:$0xff] %vm3152_vm7, %v14092_v31 }
 0x10c   : > { %v1343_v43 = vcombine.low %v1086_v8, %v1090_v46  ;;  %2786 = vrot.lane.b32.xlu0 %v11283_v37, %s13316_s9  ;;  %v1333_v5 = vrot.slane %v1325_v56, %v13528_v9  ;;  %v1340_v54 = vrot.slane %v1326_v1, %v13528_v9  ;;  %v4572_v57 = vshrl.u32 %v4406_v58, 16 }
 0x10d   : > { %v4561_v3 = vrot.slane %v4559_v52, 4  ;;  %v1350_v63 = vrot.slane %v1342_v50, %v13528_v9  ;;  %v4564_v25 = vrot.slane %v4562_v16, 5  ;;  %v4570_v53 = vrot.slane %v4568_v19, 5  ;;  %v14155_v36 = vpop.permute.xlu0 %3281 }
 0x10e   : > { %v1357_v14 = vrot.slane %v1343_v43, %v13528_v9  ;;  %v1341_v28 = vcombine.low %v1333_v5, %v1340_v54  ;;  %v4574_v29 = vrot.slane %v4572_v57, 4  ;;  %v4578_v26 = vshll.u32 %v4407_v20, 16  ;;  %v3364_v54 = vld [vmem:[#allocation2 + $0x54] sm:$0xf]  ;;  %3330 = vst.msk [vmem:[#allocation4] sm:$0xff] %vm3329_vm9, %v14155_v36 }
 0x10f   : > { %v4511_v27 = vshrl.u32 %v4399_v59, 16  ;;  %v4565_v42 = vor.u32 %v4564_v25, %v4561_v3  ;;  %v4514_v45 = vshll.u32 %v4399_v59, 16  ;;  %v4520_v30 = vshll.u32 %v4400_v15, 16 }
 0x110   : > { %v1358_v51 = vcombine.low %v1350_v63, %v1357_v14  ;;  %v4575_v24 = vor.u32 %v4574_v29, %v4570_v53  ;;  %v4580_v44 = vrot.slane %v4578_v26, 5  ;;  %v4524_v38 = vshrl.u32 %v4400_v15, 16 }
 0x111   : > { %v4513_v23 = vrot.slane %v4511_v27, 4  ;;  %v4566_v32 = vrot.slane %v4565_v42, 4  ;;  %v4516_v17 = vrot.slane %v4514_v45, 5  ;;  %v4522_v58 = vrot.slane %v4520_v30, 5  ;;  %v2117_v27 = vld [vmem:[#allocation2 + $0x90] sm:$0xf] }
 0x112   : > { %v1448_v55 = vpack.c.bf16 %v1358_v51, %v1341_v28  ;;  %v4576_v6 = vrot.slane %v4575_v24, 4  ;;  %v4526_v33 = vrot.slane %v4524_v38, 4  ;;  %v4530_v8 = vshll.u32 %v4401_v18, 16  ;;  %v2121_v45 = vld [vmem:[#allocation2 + $0x98] sm:$0x1] }
 0x113   : > { %v317_v46 = vsel %vm13368_vm2, 0, %v316_v41  ;;  %v4571_v56 = vsel %vm13482_vm11, %v4566_v32, %v4570_v53  ;;  %v4517_v1 = vor.u32 %v4516_v17, %v4513_v23  ;;  %v367_v52 = vsel %vm13378_vm4, 0, %v366_v11  ;;  %v14169_v3 = vpop.permute.xlu1 %4325  ;;  %v3365_v23 = vld [vmem:[#allocation2 + $0x58] sm:$0xf]  ;;  %v3366_v38 = vld [vmem:[#allocation2 + $0x5c] sm:$0x1] }
 0x114   : > { %v1625_v37 = vsel %vm1595_vm12, %v1448_v55, %v14081_v60  ;;  %318 = vst [vmem:[#allocation2 + $0x84] sm:$0x1] %v317_v46  ;;  %v4581_v20 = vsel %vm13482_vm11, %v4576_v6, %v4580_v44  ;;  %v4527_v16 = vor.u32 %v4526_v33, %v4522_v58  ;;  %368 = vst [vmem:[#allocation2 + $0x8c] sm:$0x1] %v367_v52  ;;  %v4532_v5 = vrot.slane %v4530_v8, 5 }
 0x115   : > { %v11254_v50 = vcombine.low %v1625_v37, %v1625_v37  ;;  %v11255_v43 = vcombine.high %v1625_v37, %v1625_v37  ;;  %v11413_v19 = vcombine.low %v4571_v56, %v4581_v20  ;;  %v4518_v59 = vrot.slane %v4517_v1, 4  ;;  %v14171_v25 = vpop.permute.xlu0 %3283  ;;  %v2309_v33 = vld [vmem:[#allocation2 + $0x30] sm:$0xf] }
 0x116   : > { %v1623_v60 = vsel %vm1595_vm12, %v1448_v55, %v14125_v47  ;;  %v4528_v28 = vrot.slane %v4527_v16, 4  ;;  %v3539_v42 = vshrl.u32 %v3364_v54, 16  ;;  %v3542_v18 = vshll.u32 %v3364_v54, 16 }
 0x117   : > { %v1906_v57 = vshrl.u32 %v11254_v50, 16  ;;  %v1909_v15 = vshll.u32 %v11254_v50, 16  ;;  %v1914_v63 = vshrl.u32 %v11255_v43, 16  ;;  %v1917_v14 = vshll.u32 %v11255_v43, 16  ;;  %4880 = vrot.lane.b32.xlu1 %v11413_v19, %s13322_s14  ;;  %v14178_v11 = vpop.permute.xlu1 %4327  ;;  %v2310_v19 = vld [vmem:[#allocation2 + $0x34] sm:$0xf] }
 0x118   : > { %v4523_v53 = vsel %vm13482_vm11, %v4518_v59, %v4522_v58  ;;  %v11252_v29 = vcombine.low %v1623_v60, %v1623_v60  ;;  %v11253_v26 = vcombine.high %v1623_v60, %v1623_v60  ;;  %v4533_v30 = vsel %vm13482_vm11, %v4528_v28, %v4532_v5 }
 0x119   : > { %v1908_v51 = vrot.slane %v1906_v57, 7  ;;  %v1916_v47 = vrot.slane %v1914_v63, 7  ;;  %v14180_v8 = vpop.permute.xlu0 %3285  ;;  %v11411_v46 = vcombine.low %v4523_v53, %v4533_v30  ;;  %v3541_v16 = vrot.slane %v3539_v42, 4  ;;  %v2311_v57 = vld [vmem:[#allocation2 + $0x38] sm:$0x1] }
 0x11a   : > { %v1889_v41 = vshrl.u32 %v11252_v29, 16  ;;  %v1892_v24 = vshll.u32 %v11252_v29, 16  ;;  %v1897_v44 = vshrl.u32 %v11253_v26, 16  ;;  %v1900_v52 = vshll.u32 %v11253_v26, 16  ;;  %v322_v29 = vld [vmem:[#allocation2 + $0x9c] sm:$0x1] }
 0x11b   : > { %v1911_v55 = vor.u32 %v1909_v15, %v1908_v51  ;;  %v1912_v32 = vrot.slane %v1908_v51, 4  ;;  %v1919_v17 = vor.u32 %v1917_v14, %v1916_v47  ;;  %v1921_v58 = vrot.slane %v1916_v47, 4  ;;  %v2110_v6 = vld [vmem:[#allocation2 + $0x84] sm:$0xf]  ;;  %v2114_v37 = vld [vmem:[#allocation2 + $0x8c] sm:$0x1]  ;;  %4876 = vrot.lane.b32.xlu0 %v11411_v46, %s13322_s14  ;;  %v14190_v15 = vpop.permute.xlu1 %4329 }
 0x11c   : > { %v1891_v56 = vrot.slane %v1889_v41, 7  ;;  %v1899_v1 = vrot.slane %v1897_v44, 7  ;;  %v3544_v63 = vrot.slane %v3542_v18, 5  ;;  %v3548_v14 = vshll.u32 %v3365_v23, 16 }
 0x11d   : > { %v1920_v50 = vsel %vm13659_vm15, %v1912_v32, %v1919_v17  ;;  %v2118_v43 = vsel %vm13651_vm14, %v1911_v55, %v2117_v27  ;;  %v2122_v20 = vsel %vm13368_vm2, %v1921_v58, %v2121_v45  ;;  %v3552_v53 = vshrl.u32 %v3365_v23, 16  ;;  %v14192_v26 = vpop.permute.xlu0 %3287  ;;  %v372_v45 = vld [vmem:[#allocation2 + $0xa4] sm:$0x1]  ;;  %v14201_v32 = vld [vmem:[#allocation2 + $0x54] sm:$0xf] }
 0x11e   : > { %2119 = vst [vmem:[#allocation2 + $0x90] sm:$0xf] %v2118_v43  ;;  %2120 = vst.msk [vmem:[#allocation2 + $0x94] sm:$0xf] %vm273_vm5, %v1920_v50  ;;  %v1894_v59 = vor.u32 %v1892_v24, %v1891_v56  ;;  %v1895_v5 = vrot.slane %v1891_v56, 4  ;;  %v1902_v60 = vor.u32 %v1900_v52, %v1899_v1  ;;  %v1904_v54 = vrot.slane %v1899_v1, 4 }
 0x11f   : > { %2123 = vst [vmem:[#allocation2 + $0x98] sm:$0x1] %v2122_v20  ;;  %v3558_v28 = vshll.u32 %v3366_v38, 16  ;;  %v2445_v42 = vshrl.u32 %v2309_v33, 16  ;;  %v3545_v18 = vor.u32 %v3544_v63, %v3541_v16  ;;  %v3550_v30 = vrot.slane %v3548_v14, 5  ;;  %v14203_v17 = vpop.permute.xlu1 %4331 }
 0x120   : > { %v1903_v27 = vsel %vm13659_vm15, %v1895_v5, %v1902_v60  ;;  %v2111_v51 = vsel %vm13651_vm14, %v1894_v59, %v2110_v6  ;;  %v2115_v47 = vsel %vm13368_vm2, %v1904_v54, %v2114_v37  ;;  %v3554_v41 = vrot.slane %v3552_v53, 4 }
 0x121   : > { %2112 = vst [vmem:[#allocation2 + $0x84] sm:$0xf] %v2111_v51  ;;  %2113 = vst.msk [vmem:[#allocation2 + $0x88] sm:$0xf] %vm273_vm5, %v1903_v27  ;;  %v3560_v24 = vrot.slane %v3558_v28, 5  ;;  %v2447_v44 = vrot.slane %v2445_v42, 4  ;;  %v14207_v56 = vpop.permute.xlu0 %3289  ;;  %v816_v60 = vcombine.high %v13803_v22, %v13803_v22  ;;  %v824_v54 = vrot.slane %v13803_v22, %v13504_v34 }
 0x122   : > { %2116 = vst [vmem:[#allocation2 + $0x8c] sm:$0x1] %v2115_v47  ;;  %v2448_v23 = vshll.u32 %v2309_v33, 16  ;;  %v2454_v38 = vshll.u32 %v2310_v19, 16  ;;  %v2458_v55 = vshrl.u32 %v2310_v19, 16  ;;  %v3546_v58 = vrot.slane %v3545_v18, 4 }
 0x123   : > { %v3555_v6 = vor.u32 %v3554_v41, %v3550_v30  ;;  %v2464_v46 = vshll.u32 %v2311_v57, 16  ;;  %v323_v37 = vsel %vm13368_vm2, 0, %v322_v29  ;;  %v373_v33 = vsel %vm13378_vm4, 0, %v372_v45  ;;  %v14221_v57 = vpop.permute.xlu1 %4333 }
 0x124   : > { %v2450_v1 = vrot.slane %v2448_v23, 5  ;;  %v2456_v52 = vrot.slane %v2454_v38, 5  ;;  %v2460_v50 = vrot.slane %v2458_v55, 4  ;;  %324 = vst [vmem:[#allocation2 + $0x9c] sm:$0x1] %v323_v37  ;;  %v3551_v43 = vsel %vm13482_vm11, %v3546_v58, %v3550_v30 }
 0x125   : > { %v3556_v20 = vrot.slane %v3555_v6, 4  ;;  %v2466_v16 = vrot.slane %v2464_v46, 5  ;;  %374 = vst [vmem:[#allocation2 + $0xa4] sm:$0x1] %v373_v33  ;;  %v815_v19 = vrot.slane %v801_v13, %v13504_v34  ;;  %v2517_v28 = vshrl.u32 %v14201_v32, 16  ;;  %v14227_v61 = vpop.permute.xlu0 %4335 }
 0x126   : > { %v2451_v59 = vor.u32 %v2450_v1, %v2447_v44  ;;  %v2461_v5 = vor.u32 %v2460_v50, %v2456_v52  ;;  %16978 = vst [vmem:[#allocation5_spill] sm:$0xff] %v14227_v61  ;;  %v838_v51 = vrot.slane %v816_v60, %v13504_v34  ;;  %v846_v22 = vcombine.high %v824_v54, %v824_v54  ;;  %v2319_v44 = vld [vmem:[#allocation2 + $0x58] sm:$0xf]  ;;  %v2320_v33 = vld [vmem:[#allocation2 + $0x5c] sm:$0x1] }
 0x127   : > { %v3561_v63 = vsel %vm13482_vm11, %v3556_v20, %v3560_v24  ;;  %v817_v14 = vcombine.high %v815_v19, %v815_v19  ;;  %v831_v53 = vrot.slane %v815_v19, %v13504_v34  ;;  %v1094_v45 = vrot.slane %v824_v54, %v13509_v40  ;;  %v14238_v23 = vpop.permute.xlu1 %3291 }
 0x128   : > { %v11350_v13 = vcombine.low %v3551_v43, %v3561_v63  ;;  %v2452_v29 = vrot.slane %v2451_v59, 4  ;;  %v2462_v27 = vrot.slane %v2461_v5, 4  ;;  %v848_v41 = vcombine.high %v838_v51, %v838_v51  ;;  %v4402_v43 = vld [vmem:[#allocation2 + $0x48] sm:$0xf] }
 0x129   : > { %v845_v47 = vrot.slane %v817_v14, %v13504_v34  ;;  %v847_v42 = vcombine.high %v831_v53, %v831_v53  ;;  %v1098_v24 = vrot.slane %v838_v51, %v13509_v40  ;;  %v1102_v58 = vrot.slane %v846_v22, %v13509_v40 }
 0x12a   : > { %3838 = vrot.lane.b32.xlu1 %v11350_v13, %s13321_s13  ;;  %v2457_v18 = vsel %vm13482_vm11, %v2452_v29, %v2456_v52  ;;  %v2467_v30 = vsel %vm13482_vm11, %v2462_v27, %v2466_v16  ;;  %v1110_v6 = vrot.slane %v831_v53, %v13509_v40  ;;  %v14242_v46 = vpop.permute.xlu0 %3293  ;;  %v1106_v37 = vrot.slane %v848_v41, %v13509_v40  ;;  %v13090_v53 = vld [vmem:[%s16922_s2] sm:$0xff]  }
 0x12b   : > { %v11284_v38 = vcombine.low %v2457_v18, %v2467_v30  ;;  %v849_v55 = vcombine.high %v845_v47, %v845_v47  ;;  %16979 = vst [vmem:[#allocation6_spill] sm:$0xff] %v14242_v46  ;;  %v1114_v1 = vrot.slane %v845_v47, %v13509_v40  ;;  %v1118_v52 = vrot.slane %v847_v42, %v13509_v40  ;;  %v14251_v14 = vpop.permute.xlu1 %4337  ;;  %v4403_v47 = vld [vmem:[#allocation2 + $0x4c] sm:$0xf] }
 0x12c   : > { %v1359_v50 = vcombine.low %v1094_v45, %v1098_v24  ;;  %v2519_v16 = vrot.slane %v2517_v28, 4  ;;  %v2520_v19 = vshll.u32 %v14201_v32, 16  ;;  %v2526_v59 = vshll.u32 %v2319_v44, 16  ;;  %16980 = vst [vmem:[#allocation7_spill] sm:$0xff] %v14251_v14  ;;  %5383 = vmatpush1.bf16.msra.mxu0 %v13090_v53  ;;  %v4404_v24 = vld [vmem:[#allocation2 + $0x50] sm:$0x1] }
 0x12d   : > { %2788 = vrot.lane.b32.xlu0 %v11284_v38, %s13316_s9  ;;  %v1122_v20 = vrot.slane %v849_v55, %v13509_v40  ;;  %v1360_v5 = vcombine.low %v1102_v58, %v1106_v37  ;;  %v1376_v54 = vcombine.low %v1110_v6, %v1114_v1  ;;  %v2530_v63 = vshrl.u32 %v2319_v44, 16  ;;  %v325_v38 = vld [vmem:[#allocation2 + $0xa8] sm:$0x1]  ;;  %5384 = vmatprep.subr.bf16.mxu0 %v16927_v12  ;;  %v375_v1 = vld [vmem:[#allocation2 + $0xb0] sm:$0x1] }
 0x12e   : > { %v1367_v60 = vrot.slane %v1359_v50, %v13528_v9  ;;  %v2522_v29 = vrot.slane %v2520_v19, 5  ;;  %v2528_v27 = vrot.slane %v2526_v59, 5  ;;  %v2536_v51 = vshll.u32 %v2320_v33, 16  ;;  %v14256_v28 = vpop.permute.xlu0 %4339  ;;  %v14264_v59 = vld [vmem:[#allocation2 + $0x6c] sm:$0xf] }
 0x12f   : > { %v1377_v13 = vcombine.low %v1118_v52, %v1122_v20  ;;  %16981 = vst [vmem:[#allocation8_spill] sm:$0xff] %v14256_v28  ;;  %v1374_v32 = vrot.slane %v1360_v5, %v13528_v9  ;;  %v1384_v22 = vrot.slane %v1376_v54, %v13528_v9  ;;  %v2532_v42 = vrot.slane %v2530_v63, 4  ;;  %v14262_v52 = vpop.permute.xlu1 %3295  ;;  %v2316_v14 = vld [vmem:[#allocation2 + $0x4c] sm:$0xf] }
 0x130   : > { %v4535_v45 = vshrl.u32 %v4402_v43, 16  ;;  %v2523_v30 = vor.u32 %v2522_v29, %v2519_v16  ;;  %v2538_v41 = vrot.slane %v2536_v51, 5  ;;  %v4538_v44 = vshll.u32 %v4402_v43, 16  ;;  %v13091_v43 = vld [vmem:[%s16922_s2 + $0x8] sm:$0xff]  }
 0x131   : > { %v1391_v18 = vrot.slane %v1377_v13, %v13528_v9  ;;  %v1375_v55 = vcombine.low %v1367_v60, %v1374_v32  ;;  %v2533_v58 = vor.u32 %v2532_v42, %v2528_v27  ;;  %v4544_v37 = vshll.u32 %v4403_v47, 16  ;;  %5385 = vmatpush1.bf16.msra.mxu0 %v13091_v43 }
 0x132   : > { %v4537_v6 = vrot.slane %v4535_v45, 4  ;;  %v2524_v33 = vrot.slane %v2523_v30, 4  ;;  %v4540_v20 = vrot.slane %v4538_v44, 5  ;;  %v4548_v19 = vshrl.u32 %v4403_v47, 16  ;;  %v14266_v16 = vpop.permute.xlu0 %3297  ;;  %v13094_v47 = vld [vmem:[%s16922_s2 + $0x10] sm:$0xff]   ;;  %5386 = vmatprep.subr.bf16.mxu0 %v16927_v12 }
 0x133   : > { %v1392_v50 = vcombine.low %v1384_v22, %v1391_v18  ;;  %16982 = vst [vmem:[#allocation9_spill] sm:$0xff] %v14266_v16  ;;  %v2534_v5 = vrot.slane %v2533_v58, 4  ;;  %v4546_v60 = vrot.slane %v4544_v37, 5  ;;  %v4554_v54 = vshll.u32 %v4404_v24, 16  ;;  %v14283_v18 = vpop.permute.xlu1 %4341 }
 0x134   : > { %v326_v63 = vsel %vm13368_vm2, 0, %v325_v38  ;;  %v2529_v13 = vsel %vm13482_vm11, %v2524_v33, %v2528_v27  ;;  %v4541_v29 = vor.u32 %v4540_v20, %v4537_v6  ;;  %v4550_v51 = vrot.slane %v4548_v19, 4  ;;  %16983 = vst [vmem:[#allocation10_spill] sm:$0xff] %v14283_v18  ;;  %v14297_v33 = vld [vmem:[#allocation2 + $0x70] sm:$0xf] }
 0x135   : > { %v1449_v53 = vpack.c.bf16 %v1392_v50, %v1375_v55  ;;  %327 = vst [vmem:[#allocation2 + $0xa8] sm:$0x1] %v326_v63  ;;  %v2539_v32 = vsel %vm13482_vm11, %v2534_v5, %v2538_v41  ;;  %v4556_v22 = vrot.slane %v4554_v54, 5  ;;  %v376_v42 = vsel %vm13378_vm4, 0, %v375_v1  ;;  %5387 = vmatpush1.bf16.msra.mxu0 %v13094_v47  ;;  %v2128_v63 = vld [vmem:[#allocation2 + $0xa4] sm:$0x1] }
 0x136   : > { %v4607_v45 = vshrl.u32 %v14264_v59, 16  ;;  %v11287_v30 = vcombine.low %v2529_v13, %v2539_v32  ;;  %v4542_v24 = vrot.slane %v4541_v29, 4  ;;  %v4551_v44 = vor.u32 %v4550_v51, %v4546_v60  ;;  %377 = vst [vmem:[#allocation2 + $0xb0] sm:$0x1] %v376_v42  ;;  %v14288_v38 = vpop.permute.xlu0 %4147  ;;  %5388 = vmatprep.subr.bf16.mxu0 %v16927_v12  ;;  %v13095_v47 = vld [vmem:[%s16922_s2 + $0x18] sm:$0xff]  }
 0x137   : > { %v1628_v27 = vsel %vm1595_vm12, %v1449_v53, %v14099_v62  ;;  %v1630_v58 = vsel %vm1595_vm12, %v1449_v53, %v14110_v48  ;;  %v14299_v54 = vpop.permute.xlu1 %3106  ;;  %v2124_v48 = vld [vmem:[#allocation2 + $0x9c] sm:$0xf] }
 0x138   : > { %v11256_v41 = vcombine.low %v1628_v27, %v1628_v27  ;;  %v11257_v55 = vcombine.high %v1628_v27, %v1628_v27  ;;  %v14292_v6 = vrot.slane %v4607_v45, 4  ;;  %2794 = vrot.lane.b32.xlu1 %v11287_v30, %s13316_s9  ;;  %v4547_v37 = vsel %vm13482_vm11, %v4542_v24, %v4546_v60 }
 0x139   : > { %v4552_v1 = vrot.slane %v4551_v44, 4  ;;  %v11258_v62 = vcombine.low %v1630_v58, %v1630_v58  ;;  %v11259_v50 = vcombine.high %v1630_v58, %v1630_v58  ;;  %v3361_v58 = vld [vmem:[#allocation2 + $0x48] sm:$0xf]  ;;  %5389 = vmatpush1.bf16.msra.mxu0 %v13095_v47 }
 0x13a   : > { %v1923_v20 = vshrl.u32 %v11256_v41, 16  ;;  %v1926_v19 = vshll.u32 %v11256_v41, 16  ;;  %v1931_v43 = vshrl.u32 %v11257_v55, 16  ;;  %v1934_v5 = vshll.u32 %v11257_v55, 16  ;;  %v14304_v51 = vpop.permute.xlu0 %4149  ;;  %v4413_v41 = vld [vmem:[#allocation2 + $0x74] sm:$0x1] }
 0x13b   : > { %v4557_v53 = vsel %vm13482_vm11, %v4552_v1, %v4556_v22  ;;  %v1940_v60 = vshrl.u32 %v11258_v62, 16  ;;  %v1943_v13 = vshll.u32 %v11258_v62, 16  ;;  %v1948_v29 = vshrl.u32 %v11259_v50, 16 }
 0x13c   : > { %v1925_v32 = vrot.slane %v1923_v20, 7  ;;  %v1933_v42 = vrot.slane %v1931_v43, 7  ;;  %v11412_v45 = vcombine.low %v4547_v37, %v4557_v53  ;;  %v2131_v27 = vld [vmem:[#allocation2 + $0xa8] sm:$0xf]  ;;  %v1951_v30 = vshll.u32 %v11259_v50, 16  ;;  %v14312_v53 = vpop.permute.xlu1 %3108 }
 0x13d   : > { %v1942_v24 = vrot.slane %v1940_v60, 7  ;;  %v1950_v44 = vrot.slane %v1948_v29, 7  ;;  %v4610_v55 = vshll.u32 %v14264_v59, 16  ;;  %v4616_v22 = vshll.u32 %v14297_v33, 16  ;;  %v2135_v20 = vld [vmem:[#allocation2 + $0xb0] sm:$0x1] }
 0x13e   : > { %v1928_v1 = vor.u32 %v1926_v19, %v1925_v32  ;;  %v1929_v62 = vrot.slane %v1925_v32, 4  ;;  %v1936_v12 = vor.u32 %v1934_v5, %v1933_v42  ;;  %v1938_v18 = vrot.slane %v1933_v42, 4  ;;  %4878 = vrot.lane.b32.xlu0 %v11412_v45, %s13322_s14  ;;  %v3362_v43 = vld [vmem:[#allocation2 + $0x4c] sm:$0xf]  ;;  %v3363_v37 = vld [vmem:[#allocation2 + $0x50] sm:$0x1]  ;;  %v14315_v28 = vpop.permute.xlu0 %4151 }
 0x13f   : > { %v16984_v50 = vmov 0   ;;  %v1945_v60 = vor.u32 %v1943_v13, %v1942_v24  ;;  %v1946_v29 = vrot.slane %v1942_v24, 4  ;;  %v1953_v59 = vor.u32 %v1951_v30, %v1950_v44  ;;  %v13098_v19 = vld [vmem:[%s16922_s2 + $0x20] sm:$0xff]   ;;  %v328_v24 = vld [vmem:[#allocation2 + $0xb4] sm:$0x1] }
 0x140   : > { %5390 = vmatprep.subr.bf16.mxu0 %v16984_v50  ;;  %v1955_v16 = vrot.slane %v1950_v44, 4  ;;  %v1937_v5 = vsel %vm13659_vm15, %v1929_v62, %v1936_v12  ;;  %v2125_v47 = vsel %vm13651_vm14, %v1928_v1, %v2124_v48  ;;  %v2129_v32 = vsel %vm13368_vm2, %v1938_v18, %v2128_v63  ;;  %v378_v48 = vld [vmem:[#allocation2 + $0xbc] sm:$0x1]  ;;  %v14336_v1 = vpop.permute.xlu1 %3110 }
 0x141   : > { %v4612_v42 = vrot.slane %v4610_v55, 5  ;;  %2126 = vst [vmem:[#allocation2 + $0x9c] sm:$0xf] %v2125_v47  ;;  %2127 = vst.msk [vmem:[#allocation2 + $0xa0] sm:$0xf] %vm273_vm5, %v1937_v5  ;;  %v1954_v13 = vsel %vm13659_vm15, %v1946_v29, %v1953_v59  ;;  %v2132_v45 = vsel %vm13651_vm14, %v1945_v60, %v2131_v27  ;;  %v4618_v30 = vrot.slane %v4616_v22, 5  ;;  %5391 = vmatpush1.bf16.msra.mxu0 %v13098_v19 }
 0x142   : > { %2130 = vst [vmem:[#allocation2 + $0xa4] sm:$0x1] %v2129_v32  ;;  %v2136_v12 = vsel %vm13368_vm2, %v1955_v16, %v2135_v20  ;;  %2133 = vst [vmem:[#allocation2 + $0xa8] sm:$0xf] %v2132_v45  ;;  %v4620_v63 = vshrl.u32 %v14297_v33, 16  ;;  %v4626_v44 = vshll.u32 %v4413_v41, 16  ;;  %5392 = vmatprep.subr.bf16.mxu0 %v16984_v50  ;;  %v14340_v29 = vpop.permute.xlu0 %4153 }
 0x143   : > { %2134 = vst.msk [vmem:[#allocation2 + $0xac] sm:$0xf] %vm273_vm5, %v1954_v13  ;;  %2137 = vst [vmem:[#allocation2 + $0xb0] sm:$0x1] %v2136_v12  ;;  %v4613_v18 = vor.u32 %v4612_v42, %v14292_v6  ;;  %v3515_v55 = vshrl.u32 %v3361_v58, 16  ;;  %v3518_v16 = vshll.u32 %v3361_v58, 16 }
 0x144   : > { %v3524_v27 = vshll.u32 %v3362_v43, 16  ;;  %v3528_v22 = vshrl.u32 %v3362_v43, 16  ;;  %v3534_v62 = vshll.u32 %v3363_v37, 16  ;;  %v498_v20 = vld [vmem:[%s13500_s8 + $0x38] sm:$0xff]  ;;  %v3370_v60 = vld [vmem:[#allocation2 + $0x6c] sm:$0xf]  ;;  %v14351_v45 = vpop.permute.xlu1 %3112 }
 0x145   : > { %v13099_v6 = vld [vmem:[%s16922_s2 + $0x28] sm:$0xff]   ;;  %v4614_v59 = vrot.slane %v4613_v18, 4  ;;  %v4622_v33 = vrot.slane %v4620_v63, 4  ;;  %v4628_v41 = vrot.slane %v4626_v44, 5  ;;  %v3517_v19 = vrot.slane %v3515_v55, 4 }
 0x146   : > { %v3520_v5 = vrot.slane %v3518_v16, 5  ;;  %v3526_v47 = vrot.slane %v3524_v27, 5  ;;  %v3530_v32 = vrot.slane %v3528_v22, 4  ;;  %v3536_v42 = vrot.slane %v3534_v62, 5  ;;  %5393 = vmatpush1.bf16.msra.mxu0 %v13099_v6  ;;  %v14355_v55 = vpop.permute.xlu0 %4155 }
 0x147   : > { %v4619_v58 = vsel %vm13482_vm11, %v4614_v59, %v4618_v30  ;;  %v4623_v43 = vor.u32 %v4622_v33, %v4618_v30  ;;  %v329_v37 = vsel %vm13368_vm2, 0, %v328_v24  ;;  %v379_v13 = vsel %vm13378_vm4, 0, %v378_v48  ;;  %5394 = vmatprep.subr.bf16.mxu0 %v16984_v50  ;;  %v13100_v30 = vld [vmem:[%s16922_s2 + $0x30] sm:$0xff]  }
 0x148   : > { %v3521_v12 = vor.u32 %v3520_v5, %v3517_v19  ;;  %v3531_v18 = vor.u32 %v3530_v32, %v3526_v47  ;;  %330 = vst [vmem:[#allocation2 + $0xb4] sm:$0x1] %v329_v37  ;;  %380 = vst [vmem:[#allocation2 + $0xbc] sm:$0x1] %v379_v13  ;;  %v850_v63 = vcombine.high %v498_v20, %v498_v20  ;;  %v3587_v48 = vshrl.u32 %v3370_v60, 16  ;;  %v14366_v32 = vpop.permute.xlu1 %4157 }
 0x149   : > { %v857_v44 = vrot.slane %v498_v20, %v13504_v34  ;;  %v4624_v24 = vrot.slane %v4623_v43, 4  ;;  %v3590_v16 = vshll.u32 %v3370_v60, 16  ;;  %v3371_v33 = vld [vmem:[#allocation2 + $0x70] sm:$0xf]  ;;  %16985 = vst [vmem:[#allocation11_spill] sm:$0xff] %v14366_v32 }
 0x14a   : > { %v3522_v27 = vrot.slane %v3521_v12, 4  ;;  %v3532_v22 = vrot.slane %v3531_v18, 4  ;;  %v864_v62 = vrot.slane %v850_v63, %v13504_v34  ;;  %5395 = vmatpush1.bf16.msra.mxu0 %v13100_v30  ;;  %v3589_v19 = vrot.slane %v3587_v48, 4  ;;  %v14373_v13 = vpop.permute.xlu0 %3114 }
 0x14b   : > { %v865_v6 = vcombine.high %v857_v44, %v857_v44  ;;  %v4629_v20 = vsel %vm13482_vm11, %v4624_v24, %v4628_v41  ;;  %v873_v59 = vrot.slane %v857_v44, %v13504_v34  ;;  %v3592_v5 = vrot.slane %v3590_v16, 5  ;;  %5396 = vmatprep.subr.bf16.mxu0 %v16984_v50 }
 0x14c   : > { %v11415_v60 = vcombine.low %v4619_v58, %v4629_v20  ;;  %v3527_v43 = vsel %vm13482_vm11, %v3522_v27, %v3526_v47  ;;  %v3537_v7 = vsel %vm13482_vm11, %v3532_v22, %v3536_v42  ;;  %v866_v37 = vcombine.high %v864_v62, %v864_v62  ;;  %v3372_v27 = vld [vmem:[#allocation2 + $0x74] sm:$0x1]  ;;  %v2315_v22 = vld [vmem:[#allocation2 + $0x48] sm:$0xf] }
 0x14d   : > { %v11349_v41 = vcombine.low %v3527_v43, %v3537_v7  ;;  %v880_v12 = vrot.slane %v864_v62, %v13504_v34  ;;  %v887_v18 = vrot.slane %v865_v6, %v13504_v34  ;;  %v895_v63 = vcombine.high %v873_v59, %v873_v59  ;;  %v14383_v62 = vpop.permute.xlu1 %3116 }
 0x14e   : > { %4884 = vrot.lane.b32.xlu1 %v11415_v60, %s13322_s14  ;;  %v894_v44 = vrot.slane %v866_v37, %v13504_v34  ;;  %v1126_v58 = vrot.slane %v873_v59, %v13509_v40  ;;  %v3593_v30 = vor.u32 %v3592_v5, %v3589_v19  ;;  %v3596_v47 = vshll.u32 %v3371_v33, 16  ;;  %16986 = vst [vmem:[#allocation12_spill] sm:$0xff] %v14383_v62  ;;  %v14389_v19 = vpop.permute.xlu0 %4159 }
 0x14f   : > { %3836 = vrot.lane.b32.xlu0 %v11349_v41, %s13321_s13  ;;  %v896_v42 = vcombine.high %v880_v12, %v880_v12  ;;  %v897_v24 = vcombine.high %v887_v18, %v887_v18  ;;  %v1130_v48 = vrot.slane %v887_v18, %v13509_v40  ;;  %v1134_v16 = vrot.slane %v895_v63, %v13509_v40 }
 0x150   : > { %v898_v6 = vcombine.high %v894_v44, %v894_v44  ;;  %v1142_v20 = vrot.slane %v880_v12, %v13509_v40  ;;  %v1146_v34 = vrot.slane %v894_v44, %v13509_v40  ;;  %v14387_v59 = vrot.slane %v3593_v30, 4  ;;  %16987 = vst [vmem:[#allocation13_spill] sm:$0xff] %v14389_v19  ;;  %v2317_v30 = vld [vmem:[#allocation2 + $0x50] sm:$0x1] }
 0x151   : > { %v1138_v5 = vrot.slane %v897_v24, %v13509_v40  ;;  %v1150_v60 = vrot.slane %v896_v42, %v13509_v40  ;;  %v1393_v43 = vcombine.low %v1126_v58, %v1130_v48  ;;  %v3598_v7 = vrot.slane %v3596_v47, 5  ;;  %v14398_v24 = vpop.permute.xlu1 %4161  ;;  %v13102_v58 = vld [vmem:[%s16922_s2 + $0x38] sm:$0xff]   ;;  %v331_v48 = vld [vmem:[#allocation2 + $0xc0] sm:$0x1] }
 0x152   : > { %v1154_v37 = vrot.slane %v898_v6, %v13509_v40  ;;  %v1410_v41 = vcombine.low %v1142_v20, %v1146_v34  ;;  %v3600_v18 = vshrl.u32 %v3371_v33, 16  ;;  %v3606_v63 = vshll.u32 %v3372_v27, 16  ;;  %16988 = vst [vmem:[#allocation14_spill] sm:$0xff] %v14398_v24  ;;  %5397 = vmatpush1.bf16.msra.mxu0 %v13102_v58 }
 0x153   : > { %v1394_v46 = vcombine.low %v1134_v16, %v1138_v5  ;;  %v1401_v12 = vrot.slane %v1393_v43, %v13528_v9  ;;  %v3599_v44 = vsel %vm13482_vm11, %v14387_v59, %v3598_v7  ;;  %v2493_v19 = vshrl.u32 %v2315_v22, 16  ;;  %v14404_v16 = vpop.permute.xlu0 %3118  ;;  %v13103_v59 = vld [vmem:[%s16922_s2 + $0x40] sm:$0xff]   ;;  %5398 = vmatprep.subr.bf16.mxu0 %v16984_v50 }
 0x154   : > { %v1411_v40 = vcombine.low %v1150_v60, %v1154_v37  ;;  %v1418_v33 = vrot.slane %v1410_v41, %v13528_v9  ;;  %v3602_v47 = vrot.slane %v3600_v18, 4  ;;  %v3608_v42 = vrot.slane %v3606_v63, 5  ;;  %v381_v41 = vld [vmem:[#allocation2 + $0xc8] sm:$0x1] }
 0x155   : > { %v1408_v27 = vrot.slane %v1394_v46, %v13528_v9  ;;  %v2495_v6 = vrot.slane %v2493_v19, 4  ;;  %v2496_v20 = vshll.u32 %v2315_v22, 16  ;;  %v2502_v34 = vshll.u32 %v2316_v14, 16  ;;  %v2324_v22 = vld [vmem:[#allocation2 + $0x6c] sm:$0xf]  ;;  %v13109_v19 = vld [vmem:[#allocation2 + $0x3c] sm:$0xff]  }
 0x156   : > { %v1425_v5 = vrot.slane %v1411_v40, %v13528_v9  ;;  %v3603_v60 = vor.u32 %v3602_v47, %v3598_v7  ;;  %v2506_v43 = vshrl.u32 %v2316_v14, 16  ;;  %v2512_v37 = vshll.u32 %v2317_v30, 16  ;;  %v14414_v9 = vld [vmem:[#allocation2 + $0x70] sm:$0xf]  ;;  %v13110_v7 = vld [vmem:[#allocation2 + $0x24] sm:$0xff]   ;;  %5399 = vmatpush1.bf16.msra.mxu0 %v13103_v59  ;;  %2286 = vst.msk [vmem:[#allocation4 + $0x50] sm:$0xff] %vm2280_vm0, %v13109_v19 }
 0x157   : > { %v1409_v18 = vcombine.low %v1401_v12, %v1408_v27  ;;  %v2498_v63 = vrot.slane %v2496_v20, 5  ;;  %v2504_v24 = vrot.slane %v2502_v34, 5  ;;  %v332_v46 = vsel %vm13368_vm2, 0, %v331_v48  ;;  %v14416_v14 = vpop.permute.xlu0 %4163  ;;  %v14420_v12 = vpop.permute.xlu1 %3120  ;;  %v13111_v40 = vld [vmem:[#allocation2 + $0x30] sm:$0xff]   ;;  %2284 = vst.msk [vmem:[#allocation4 + $0x30] sm:$0xff] %vm2280_vm0, %v13110_v7 }
 0x158   : > { %v1426_v58 = vcombine.low %v1418_v33, %v1425_v5  ;;  %v3604_v62 = vrot.slane %v3603_v60, 4  ;;  %v2508_v61 = vrot.slane %v2506_v43, 4  ;;  %v2514_v32 = vrot.slane %v2512_v37, 5  ;;  %333 = vst [vmem:[#allocation2 + $0xc0] sm:$0x1] %v332_v46  ;;  %2285 = vst.msk [vmem:[#allocation4 + $0x40] sm:$0xff] %vm2280_vm0, %v13111_v40 }
 0x159   : > { %v2499_v30 = vor.u32 %v2498_v63, %v2495_v6  ;;  %v382_v50 = vsel %vm13378_vm4, 0, %v381_v41  ;;  %v2565_v27 = vshrl.u32 %v2324_v22, 16  ;;  %v2568_v20 = vshll.u32 %v2324_v22, 16  ;;  %v2326_v22 = vld [vmem:[#allocation2 + $0x74] sm:$0x1] }
 0x15a   : > { %v1450_v33 = vpack.c.bf16 %v1426_v58, %v1409_v18  ;;  %v3609_v47 = vsel %vm13482_vm11, %v3604_v62, %v3608_v42  ;;  %v2509_v48 = vor.u32 %v2508_v61, %v2504_v24  ;;  %383 = vst [vmem:[#allocation2 + $0xc8] sm:$0x1] %v382_v50  ;;  %v2574_v34 = vshll.u32 %v14414_v9, 16  ;;  %v2138_v40 = vld [vmem:[#allocation2 + $0xb4] sm:$0xf] }
 0x15b   : > { %v11352_v4 = vcombine.low %v3599_v44, %v3609_v47  ;;  %v2500_v6 = vrot.slane %v2499_v30, 4  ;;  %v2567_v42 = vrot.slane %v2565_v27, 4  ;;  %v14436_v59 = vpop.permute.xlu0 %4870  ;;  %v14445_v19 = vpop.permute.xlu1 %3826  ;;  %v2142_v27 = vld [vmem:[#allocation2 + $0xbc] sm:$0x1]  ;;  %vm4195_vm4 = vcmask 786048  }
 0x15c   : > { %v1633_v61 = vsel %vm1595_vm12, %v1450_v33, %v14144_v49  ;;  %v2510_v62 = vrot.slane %v2509_v48, 4  ;;  %v1635_v31 = vsel %vm1595_vm12, %v1450_v33, %v14153_v39  ;;  %v2570_v49 = vrot.slane %v2568_v20, 5 }
 0x15d   : > { %v11260_v44 = vcombine.low %v1633_v61, %v1633_v61  ;;  %v11261_v5 = vcombine.high %v1633_v61, %v1633_v61  ;;  %3842 = vrot.lane.b32.xlu1 %v11352_v4, %s13321_s13  ;;  %v2505_v36 = vsel %vm13482_vm11, %v2500_v6, %v2504_v24  ;;  %v11262_v60 = vcombine.low %v1635_v31, %v1635_v31  ;;  %v4408_v61 = vld [vmem:[#allocation2 + $0x60] sm:$0xf] }
 0x15e   : > { %v2515_v43 = vsel %vm13482_vm11, %v2510_v62, %v2514_v32  ;;  %v11263_v37 = vcombine.high %v1635_v31, %v1635_v31  ;;  %v14443_v41 = vrot.slane %v2574_v34, 5  ;;  %v2571_v48 = vor.u32 %v2570_v49, %v2567_v42 }
 0x15f   : > { %v1957_v18 = vshrl.u32 %v11260_v44, 16  ;;  %v1960_v39 = vshll.u32 %v11260_v44, 16  ;;  %v1965_v63 = vshrl.u32 %v11261_v5, 16  ;;  %v1968_v46 = vshll.u32 %v11261_v5, 16  ;;  %v2783_v24 = vpop.permute.xlu0 %2782 }
 0x160   : > { %v11286_v58 = vcombine.low %v2505_v36, %v2515_v43  ;;  %v1974_v7 = vshrl.u32 %v11262_v60, 16  ;;  %v1977_v30 = vshll.u32 %v11262_v60, 16  ;;  %v1982_v50 = vshrl.u32 %v11263_v37, 16  ;;  %2830 = vst.msk [vmem:[#allocation4 + $0x10] sm:$0xff] %vm2828_vm6, %v2783_v24  ;;  %v2145_v36 = vld [vmem:[#allocation2 + $0xc0] sm:$0xf] }
 0x161   : > { %v1959_v33 = vrot.slane %v1957_v18, 7  ;;  %v1967_v47 = vrot.slane %v1965_v63, 7  ;;  %v1985_v32 = vshll.u32 %v11263_v37, 16  ;;  %v2578_v20 = vshrl.u32 %v14414_v9, 16  ;;  %3154 = vst.msk [vmem:[#allocation4 + $0x10] sm:$0xff] %vm3152_vm7, %v14299_v54  ;;  %v13112_v9 = vld [vmem:[#allocation2 + $0x54] sm:$0xff]  }
 0x162   : > { %2792 = vrot.lane.b32.xlu0 %v11286_v58, %s13316_s9  ;;  %v1976_v4 = vrot.slane %v1974_v7, 7  ;;  %v1984_v6 = vrot.slane %v1982_v50, 7  ;;  %v2584_v34 = vshll.u32 %v2326_v22, 16  ;;  %v2149_v42 = vld [vmem:[#allocation2 + $0xc8] sm:$0x1]  ;;  %3331 = vst.msk [vmem:[#allocation4 + $0x10] sm:$0xff] %vm3329_vm9, %v14171_v25  ;;  %v14460_v7 = vpop.permute.xlu1 %3828 }
 0x163   : > { %v1962_v62 = vor.u32 %v1960_v39, %v1959_v33  ;;  %v1963_v31 = vrot.slane %v1959_v33, 4  ;;  %v1970_v44 = vor.u32 %v1968_v46, %v1967_v47  ;;  %v1972_v5 = vrot.slane %v1967_v47, 4  ;;  %v4409_v18 = vld [vmem:[#allocation2 + $0x64] sm:$0xf]  ;;  %v4410_v22 = vld [vmem:[#allocation2 + $0x68] sm:$0x1] }
 0x164   : > { %v1979_v60 = vor.u32 %v1977_v30, %v1976_v4  ;;  %v1980_v43 = vrot.slane %v1976_v4, 4  ;;  %v1987_v37 = vor.u32 %v1985_v32, %v1984_v6  ;;  %v1989_v49 = vrot.slane %v1984_v6, 4  ;;  %v3367_v58 = vld [vmem:[#allocation2 + $0x60] sm:$0xf]  ;;  %2288 = vst.msk [vmem:[#allocation4 + $0x70] sm:$0xff] %vm2280_vm0, %v13112_v9 }
 0x165   : > { %v1971_v63 = vsel %vm13659_vm15, %v1963_v31, %v1970_v44  ;;  %v2139_v54 = vsel %vm13651_vm14, %v1962_v62, %v2138_v40  ;;  %v2143_v39 = vsel %vm13368_vm2, %v1972_v5, %v2142_v27  ;;  %v2572_v46 = vrot.slane %v2571_v48, 4  ;;  %v3368_v40 = vld [vmem:[#allocation2 + $0x64] sm:$0xf]  ;;  %v3918_v9 = vld [vmem:[#allocation2 + $0x78] sm:$0xe] }
 0x166   : > { %2140 = vst [vmem:[#allocation2 + $0xb4] sm:$0xf] %v2139_v54  ;;  %2141 = vst.msk [vmem:[#allocation2 + $0xb8] sm:$0xf] %vm273_vm5, %v1971_v63  ;;  %v1988_v25 = vsel %vm13659_vm15, %v1980_v43, %v1987_v37  ;;  %v2146_v30 = vsel %vm13651_vm14, %v1979_v60, %v2145_v36  ;;  %v2150_v50 = vsel %vm13368_vm2, %v1989_v49, %v2149_v42  ;;  %v2580_v24 = vrot.slane %v2578_v20, 4  ;;  %v14475_v5 = vpop.permute.xlu0 %4872  ;;  %v14477_v63 = vpop.permute.xlu1 %3830 }
 0x167   : > { %2144 = vst [vmem:[#allocation2 + $0xbc] sm:$0x1] %v2143_v39  ;;  %2147 = vst [vmem:[#allocation2 + $0xc0] sm:$0xf] %v2146_v30  ;;  %v2577_v33 = vsel %vm13482_vm11, %v2572_v46, %v14443_v41  ;;  %v2586_v47 = vrot.slane %v2584_v34, 5  ;;  %v4583_v32 = vshrl.u32 %v4408_v61, 16 }
 0x168   : > { %2148 = vst.msk [vmem:[#allocation2 + $0xc4] sm:$0xf] %vm273_vm5, %v1988_v25  ;;  %2151 = vst [vmem:[#allocation2 + $0xc8] sm:$0x1] %v2150_v50  ;;  %v4586_v48 = vshll.u32 %v4408_v61, 16  ;;  %v2581_v27 = vor.u32 %v2580_v24, %v14443_v41  ;;  %v4592_v0 = vshll.u32 %v4409_v18, 16 }
 0x169   : > { %v4596_v4 = vshrl.u32 %v4409_v18, 16  ;;  %v4602_v6 = vshll.u32 %v4410_v22, 16  ;;  %v4585_v20 = vrot.slane %v4583_v32, 4  ;;  %v3563_v31 = vshrl.u32 %v3367_v58, 16  ;;  %v13115_v41 = vld [vmem:[#allocation2 + $0x6c] sm:$0xff]  }
 0x16a   : > { %v4588_v62 = vrot.slane %v4586_v48, 5  ;;  %v3566_v44 = vshll.u32 %v3367_v58, 16  ;;  %v2582_v36 = vrot.slane %v2581_v27, 4  ;;  %v4594_v42 = vrot.slane %v4592_v0, 5  ;;  %v3919_v22 = vld [vmem:[#allocation2 + $0x7c] sm:$0xf] }
 0x16b   : > { %v4598_v60 = vrot.slane %v4596_v4, 4  ;;  %v4604_v43 = vrot.slane %v4602_v6, 5  ;;  %v3565_v34 = vrot.slane %v3563_v31, 4  ;;  %v3572_v61 = vshll.u32 %v3368_v40, 16  ;;  %v3920_v58 = vld [vmem:[#allocation2 + $0x80] sm:$0x1] }
 0x16c   : > { %v4589_v37 = vor.u32 %v4588_v62, %v4585_v20  ;;  %v3568_v49 = vrot.slane %v3566_v44, 5  ;;  %v2587_v18 = vsel %vm13482_vm11, %v2582_v36, %v2586_v47  ;;  %v3576_v39 = vshrl.u32 %v3368_v40, 16  ;;  %v2321_v32 = vld [vmem:[#allocation2 + $0x60] sm:$0xf]  ;;  %2290 = vst.msk [vmem:[#allocation4 + $0x90] sm:$0xff] %vm2280_vm0, %v13115_v41 }
 0x16d   : > { %v4599_v54 = vor.u32 %v4598_v60, %v4594_v42  ;;  %v3582_v46 = vshll.u32 %v3369_v2, 16  ;;  %v11289_v25 = vcombine.low %v2577_v33, %v2587_v18  ;;  %v3574_v24 = vrot.slane %v3572_v61, 5  ;;  %v2322_v20 = vld [vmem:[#allocation2 + $0x64] sm:$0xf]  ;;  %v2323_v44 = vld [vmem:[#allocation2 + $0x68] sm:$0x1]  ;;  %v14492_v18 = vpop.permute.xlu1 %3832 }
 0x16e   : > { %v4590_v30 = vrot.slane %v4589_v37, 4  ;;  %v3569_v50 = vor.u32 %v3568_v49, %v3565_v34  ;;  %v3578_v27 = vrot.slane %v3576_v39, 4  ;;  %v11369_v4 = vrot.slane %v3918_v9, 9  ;;  %v2785_v33 = vpop.permute.xlu0 %2784  ;;  %v4417_v37 = vld [vmem:[#allocation2 + $0x84] sm:$0xf]  ;;  %v13085_v49 = vld [vmem:[#allocation2 + $0x78] sm:$0xff]  }
 0x16f   : > { %v4600_v48 = vrot.slane %v4599_v54, 4  ;;  %v3584_v0 = vrot.slane %v3582_v46, 5  ;;  %2798 = vrot.lane.b32.xlu1 %v11289_v25, %s13316_s9  ;;  %v4052_v2 = vrot.slane %v3919_v22, 5  ;;  %v4055_v6 = vrot.slane %v3920_v58, 5  ;;  %2831 = vst.msk [vmem:[#allocation4 + $0x20] sm:$0xff] %vm2828_vm6, %v2785_v33  ;;  %v13114_v33 = vld [vmem:[#allocation2 + $0x48] sm:$0xff]  }
 0x170   : > { %v4595_v47 = vsel %vm13482_vm11, %v4590_v30, %v4594_v42  ;;  %v3570_v40 = vrot.slane %v3569_v50, 4  ;;  %v3579_v31 = vor.u32 %v3578_v27, %v3574_v24  ;;  %v2541_v36 = vshrl.u32 %v2321_v32, 16  ;;  %v4418_v41 = vld [vmem:[#allocation2 + $0x88] sm:$0xf]  ;;  %3155 = vst.msk [vmem:[#allocation4 + $0x20] sm:$0xff] %vm3152_vm7, %v14312_v53 }
 0x171   : > { %v4605_v62 = vsel %vm13482_vm11, %v4600_v48, %v4604_v43  ;;  %v2544_v60 = vshll.u32 %v2321_v32, 16  ;;  %v4053_v61 = vsel %vm13443_vm8, %v11369_v4, %v4052_v2  ;;  %v4054_v9 = vrot.slane %v4052_v2, 4  ;;  %3332 = vst.msk [vmem:[#allocation4 + $0x20] sm:$0xff] %vm3329_vm9, %v14180_v8  ;;  %v4419_v48 = vld [vmem:[#allocation2 + $0x8c] sm:$0x1] }
 0x172   : > { %v11414_v34 = vcombine.low %v4595_v47, %v4605_v62  ;;  %v3575_v42 = vsel %vm13482_vm11, %v3570_v40, %v3574_v24  ;;  %v3580_v43 = vrot.slane %v3579_v31, 4  ;;  %v2543_v54 = vrot.slane %v2541_v36, 4  ;;  %v4414_v27 = vld [vmem:[#allocation2 + $0x78] sm:$0xf]  ;;  %v4415_v2 = vld [vmem:[#allocation2 + $0x7c] sm:$0xf] }
 0x173   : > { %v2546_v39 = vrot.slane %v2544_v60, 5  ;;  %v2550_v46 = vshll.u32 %v2322_v20, 16  ;;  %3299 = vrot.lane.b32.xlu1 %v13085_v49, %s13318_s10  ;;  %v4056_v22 = vsel %vm13443_vm8, %v4054_v9, %v4055_v6  ;;  %v2554_v58 = vshrl.u32 %v2322_v20, 16  ;;  %v2875_v36 = vld [vmem:[#allocation2 + $0x78] sm:$0xe]  ;;  %2287 = vst.msk [vmem:[#allocation4 + $0x60] sm:$0xff] %vm2280_vm0, %v13114_v33 }
 0x174   : > { %4882 = vrot.lane.b32.xlu0 %v11414_v34, %s13322_s14  ;;  %v2560_v25 = vshll.u32 %v2323_v44, 16  ;;  %v4655_v30 = vshrl.u32 %v4417_v37, 16  ;;  %v3585_v53 = vsel %vm13482_vm11, %v3580_v43, %v3584_v0  ;;  %v11385_v50 = vcombine.low %v4053_v61, %v4056_v22  ;;  %v4416_v44 = vld [vmem:[#allocation2 + $0x80] sm:$0x1]  ;;  %v2873_v33 = vld [vmem:[#allocation2 + $0x70] sm:$0xf] }
 0x175   : > { %v2547_v24 = vor.u32 %v2546_v39, %v2543_v54  ;;  %v2552_v32 = vrot.slane %v2550_v46, 5  ;;  %v11351_v4 = vcombine.low %v3575_v42, %v3585_v53  ;;  %v2556_v8 = vrot.slane %v2554_v58, 4  ;;  %v14506_v42 = vpop.permute.xlu1 %3834  ;;  %v2876_v53 = vld [vmem:[#allocation2 + $0x7c] sm:$0xf] }
 0x176   : > { %v2562_v47 = vrot.slane %v2560_v25, 5  ;;  %v4657_v40 = vrot.slane %v4655_v30, 4  ;;  %v4658_v31 = vshll.u32 %v4417_v37, 16  ;;  %v4664_v6 = vshll.u32 %v4418_v41, 16 }
 0x177   : > { %v2548_v62 = vrot.slane %v2547_v24, 4  ;;  %v4668_v20 = vshrl.u32 %v4418_v41, 16  ;;  %4165 = vrot.lane.b32.xlu1 %v11385_v50, %s13320_s12  ;;  %v2557_v0 = vor.u32 %v2556_v8, %v2552_v32  ;;  %v4674_v60 = vshll.u32 %v4419_v48, 16  ;;  %v2877_v50 = vld [vmem:[#allocation2 + $0x80] sm:$0x1] }
 0x178   : > { %3840 = vrot.lane.b32.xlu0 %v11351_v4, %s13321_s13  ;;  %v4631_v34 = vshrl.u32 %v4414_v27, 16  ;;  %v4634_v49 = vshll.u32 %v4414_v27, 16  ;;  %v4660_v37 = vrot.slane %v4658_v31, 5  ;;  %v4666_v9 = vrot.slane %v4664_v6, 5  ;;  %v14511_v24 = vpop.permute.xlu0 %4874  ;;  %v2872_v8 = vld [vmem:[#allocation2 + $0x6c] sm:$0xe] }
 0x179   : > { %v2553_v61 = vsel %vm13482_vm11, %v2548_v62, %v2552_v32  ;;  %v4670_v41 = vrot.slane %v4668_v20, 4  ;;  %v2558_v43 = vrot.slane %v2557_v0, 4  ;;  %v4676_v54 = vrot.slane %v4674_v60, 5  ;;  %v13116_v0 = vld [vmem:[#allocation2 + $0x60] sm:$0xff]  }
 0x17a   : > { %v4633_v39 = vrot.slane %v4631_v34, 4  ;;  %v4636_v46 = vrot.slane %v4634_v49, 5  ;;  %v4661_v22 = vor.u32 %v4660_v37, %v4657_v40  ;;  %v4640_v25 = vshll.u32 %v4415_v2, 16  ;;  %v2874_v40 = vld [vmem:[#allocation2 + $0x74] sm:$0x1]  ;;  %2289 = vst.msk [vmem:[#allocation4 + $0x80] sm:$0xff] %vm2280_vm0, %v13116_v0 }
 0x17b   : > { %v4671_v58 = vor.u32 %v4670_v41, %v4666_v9  ;;  %v4644_v30 = vshrl.u32 %v4415_v2, 16  ;;  %v2563_v48 = vsel %vm13482_vm11, %v2558_v43, %v2562_v47  ;;  %v4650_v32 = vshll.u32 %v4416_v44, 16  ;;  %v3376_v37 = vld [vmem:[#allocation2 + $0x84] sm:$0xf]  ;;  %v2791_v41 = vpop.permute.xlu1 %2790  ;;  %v3377_v43 = vld [vmem:[#allocation2 + $0x88] sm:$0xf] }
 0x17c   : > { %v4637_v27 = vor.u32 %v4636_v46, %v4633_v39  ;;  %v11306_v4 = vrot.slane %v2875_v36, 9  ;;  %v11288_v62 = vcombine.low %v2553_v61, %v2563_v48  ;;  %v4662_v31 = vrot.slane %v4661_v22, 4  ;;  %2834 = vst.msk [vmem:[#allocation4 + $0x50] sm:$0xff] %vm2828_vm6, %v2791_v41  ;;  %v3378_v48 = vld [vmem:[#allocation2 + $0x8c] sm:$0x1] }
 0x17d   : > { %v4672_v6 = vrot.slane %v4671_v58, 4  ;;  %v4642_v20 = vrot.slane %v4640_v25, 5  ;;  %v4646_v2 = vrot.slane %v4644_v30, 4  ;;  %v4652_v34 = vrot.slane %v4650_v32, 5  ;;  %3158 = vst.msk [vmem:[#allocation4 + $0x50] sm:$0xff] %vm3152_vm7, %v14373_v13 }
 0x17e   : > { %v4638_v60 = vrot.slane %v4637_v27, 4  ;;  %v3016_v49 = vrot.slane %v2876_v53, 5  ;;  %2796 = vrot.lane.b32.xlu0 %v11288_v62, %s13316_s9  ;;  %v4667_v47 = vsel %vm13482_vm11, %v4662_v31, %v4666_v9  ;;  %v3019_v36 = vrot.slane %v2877_v50, 5  ;;  %3335 = vst.msk [vmem:[#allocation4 + $0x50] sm:$0xff] %vm3329_vm9, %v14238_v23  ;;  %v2787_v53 = vpop.permute.xlu0 %2786  ;;  %v3373_v31 = vld [vmem:[#allocation2 + $0x78] sm:$0xf] }
 0x17f   : > { %v4677_v44 = vsel %vm13482_vm11, %v4672_v6, %v4676_v54  ;;  %v11305_v61 = vrot.slane %v2872_v8, 9  ;;  %v4647_v22 = vor.u32 %v4646_v2, %v4642_v20  ;;  %v3009_v54 = vrot.slane %v2873_v33, 5  ;;  %2832 = vst.msk [vmem:[#allocation4 + $0x30] sm:$0xff] %vm2828_vm6, %v2787_v53  ;;  %v3374_v0 = vld [vmem:[#allocation2 + $0x7c] sm:$0xf] }
 0x180   : > { %v11417_v39 = vcombine.low %v4667_v47, %v4677_v44  ;;  %v4643_v46 = vsel %vm13482_vm11, %v4638_v60, %v4642_v20  ;;  %v3017_v58 = vsel %vm13443_vm8, %v11306_v4, %v3016_v49  ;;  %v3018_v9 = vrot.slane %v3016_v49, 4  ;;  %3156 = vst.msk [vmem:[#allocation4 + $0x30] sm:$0xff] %vm3152_vm7, %v14336_v1  ;;  %v3375_v41 = vld [vmem:[#allocation2 + $0x80] sm:$0x1] }
 0x181   : > { %v3012_v25 = vrot.slane %v2874_v40, 5  ;;  %v3635_v30 = vshrl.u32 %v3376_v37, 16  ;;  %v4648_v50 = vrot.slane %v4647_v22, 4  ;;  %v3638_v27 = vshll.u32 %v3376_v37, 16  ;;  %3333 = vst.msk [vmem:[#allocation4 + $0x30] sm:$0xff] %vm3329_vm9, %v14192_v26 }
 0x182   : > { %4888 = vrot.lane.b32.xlu1 %v11417_v39, %s13322_s14  ;;  %v3644_v32 = vshll.u32 %v3377_v43, 16  ;;  %v3648_v8 = vshrl.u32 %v3377_v43, 16  ;;  %v3020_v13 = vsel %vm13443_vm8, %v3018_v9, %v3019_v36  ;;  %v3010_v4 = vsel %vm13443_vm8, %v11305_v61, %v3009_v54  ;;  %v2330_v36 = vld [vmem:[#allocation2 + $0x84] sm:$0xf] }
 0x183   : > { %v3011_v33 = vrot.slane %v3009_v54, 4  ;;  %v3637_v62 = vrot.slane %v3635_v30, 4  ;;  %v4653_v23 = vsel %vm13482_vm11, %v4648_v50, %v4652_v34  ;;  %v11322_v6 = vcombine.low %v3017_v58, %v3020_v13  ;;  %v2331_v54 = vld [vmem:[#allocation2 + $0x88] sm:$0xf] }
 0x184   : > { %v3640_v20 = vrot.slane %v3638_v27, 5  ;;  %v3646_v40 = vrot.slane %v3644_v32, 5  ;;  %v11416_v60 = vcombine.low %v4643_v46, %v4653_v23  ;;  %v3650_v49 = vrot.slane %v3648_v8, 4  ;;  %v2332_v8 = vld [vmem:[#allocation2 + $0x8c] sm:$0x1] }
 0x185   : > { %v3013_v2 = vsel %vm13443_vm8, %v3011_v33, %v3012_v25  ;;  %v3654_v37 = vshll.u32 %v3378_v48, 16  ;;  %v3611_v44 = vshrl.u32 %v3373_v31, 16  ;;  %v3614_v34 = vshll.u32 %v3373_v31, 16 }
 0x186   : > { %3124 = vrot.lane.b32.xlu1 %v11322_v6, %s13314_s28  ;;  %v11321_v1 = vcombine.low %v3010_v4, %v3013_v2  ;;  %v3641_v47 = vor.u32 %v3640_v20, %v3637_v62  ;;  %4886 = vrot.lane.b32.xlu0 %v11416_v60, %s13322_s14  ;;  %v3651_v61 = vor.u32 %v3650_v49, %v3646_v40  ;;  %v3620_v39 = vshll.u32 %v3374_v0, 16  ;;  %v2327_v4 = vld [vmem:[#allocation2 + $0x78] sm:$0xf]  ;;  %v2328_v6 = vld [vmem:[#allocation2 + $0x7c] sm:$0xf] }
 0x187   : > { %v3656_v43 = vrot.slane %v3654_v37, 5  ;;  %v3624_v26 = vshrl.u32 %v3374_v0, 16  ;;  %v3613_v22 = vrot.slane %v3611_v44, 4  ;;  %v3616_v58 = vrot.slane %v3614_v34, 5  ;;  %v2329_v49 = vld [vmem:[#allocation2 + $0x80] sm:$0x1] }
 0x188   : > { %v3642_v46 = vrot.slane %v3641_v47, 4  ;;  %v3630_v9 = vshll.u32 %v3375_v41, 16  ;;  %v3652_v25 = vrot.slane %v3651_v61, 4  ;;  %v3622_v30 = vrot.slane %v3620_v39, 5  ;;  %v3924_v34 = vld [vmem:[#allocation2 + $0x90] sm:$0xe] }
 0x189   : > { %v3626_v53 = vrot.slane %v3624_v26, 4  ;;  %v2613_v50 = vshrl.u32 %v2330_v36, 16  ;;  %v3617_v27 = vor.u32 %v3616_v58, %v3613_v22  ;;  %v2616_v13 = vshll.u32 %v2330_v36, 16  ;;  %v13086_v26 = vld [vmem:[#allocation2 + $0x90] sm:$0xff]  }
 0x18a   : > { %v3647_v48 = vsel %vm13482_vm11, %v3642_v46, %v3646_v40  ;;  %v3632_v32 = vrot.slane %v3630_v9, 5  ;;  %3122 = vrot.lane.b32.xlu0 %v11321_v1, %s13314_s28  ;;  %v3657_v33 = vsel %vm13482_vm11, %v3652_v25, %v3656_v43  ;;  %v2622_v23 = vshll.u32 %v2331_v54, 16  ;;  %v13118_v40 = vld [vmem:[#allocation2 + $0x78] sm:$0xff]   ;;  %v3925_v9 = vld [vmem:[#allocation2 + $0x94] sm:$0xf] }
 0x18b   : > { %v3627_v62 = vor.u32 %v3626_v53, %v3622_v30  ;;  %v2615_v31 = vrot.slane %v2613_v50, 4  ;;  %v11354_v20 = vcombine.low %v3647_v48, %v3657_v33  ;;  %v3618_v0 = vrot.slane %v3617_v27, 4  ;;  %2291 = vst.msk [vmem:[#allocation4 + $0xa0] sm:$0xff] %vm2280_vm0, %v13118_v40  ;;  %v3926_v48 = vld [vmem:[#allocation2 + $0x98] sm:$0x1]  ;;  %v13117_v33 = vld [vmem:[#allocation2 + $0x84] sm:$0xff]  }
 0x18c   : > { %v2618_v60 = vrot.slane %v2616_v13, 5  ;;  %v2626_v2 = vshrl.u32 %v2331_v54, 16  ;;  %v2624_v41 = vrot.slane %v2622_v23, 5  ;;  %v2632_v47 = vshll.u32 %v2332_v8, 16  ;;  %v3921_v27 = vld [vmem:[#allocation2 + $0x84] sm:$0xe] }
 0x18d   : > { %v3628_v37 = vrot.slane %v3627_v62, 4  ;;  %v2589_v44 = vshrl.u32 %v2327_v4, 16  ;;  %3846 = vrot.lane.b32.xlu1 %v11354_v20, %s13321_s13  ;;  %v3623_v1 = vsel %vm13482_vm11, %v3618_v0, %v3622_v30  ;;  %v2592_v43 = vshll.u32 %v2327_v4, 16  ;;  %v3922_v20 = vld [vmem:[#allocation2 + $0x88] sm:$0xf]  ;;  %2292 = vst.msk [vmem:[#allocation4 + $0xb0] sm:$0xff] %vm2280_vm0, %v13117_v33 }
 0x18e   : > { %v2619_v36 = vor.u32 %v2618_v60, %v2615_v31  ;;  %v2628_v61 = vrot.slane %v2626_v2, 4  ;;  %v2634_v46 = vrot.slane %v2632_v47, 5  ;;  %v2598_v58 = vshll.u32 %v2328_v6, 16  ;;  %v3923_v0 = vld [vmem:[#allocation2 + $0x8c] sm:$0x1] }
 0x18f   : > { %v3633_v39 = vsel %vm13482_vm11, %v3628_v37, %v3632_v32  ;;  %v2591_v22 = vrot.slane %v2589_v44, 4  ;;  %v2594_v50 = vrot.slane %v2592_v43, 5  ;;  %v2602_v8 = vshrl.u32 %v2328_v6, 16  ;;  %v4423_v6 = vld [vmem:[#allocation2 + $0x9c] sm:$0xf] }
 0x190   : > { %v11353_v54 = vcombine.low %v3623_v1, %v3633_v39  ;;  %v2620_v25 = vrot.slane %v2619_v36, 4  ;;  %v2629_v53 = vor.u32 %v2628_v61, %v2624_v41  ;;  %v2600_v30 = vrot.slane %v2598_v58, 5  ;;  %v4424_v39 = vld [vmem:[#allocation2 + $0xa0] sm:$0xf]  ;;  %v4425_v58 = vld [vmem:[#allocation2 + $0xa4] sm:$0x1] }
 0x191   : > { %v2608_v13 = vshll.u32 %v2329_v49, 16  ;;  %v11371_v4 = vrot.slane %v3924_v34, 9  ;;  %4345 = vrot.lane.b32.xlu1 %v13086_v26, %s13319_s11  ;;  %v2595_v31 = vor.u32 %v2594_v50, %v2591_v22  ;;  %v4066_v23 = vrot.slane %v3925_v9, 5  ;;  %v13087_v49 = vld [vmem:[#allocation2 + $0x84] sm:$0xff]  }
 0x192   : > { %3844 = vrot.lane.b32.xlu0 %v11353_v54, %s13321_s13  ;;  %v2625_v32 = vsel %vm13482_vm11, %v2620_v25, %v2624_v41  ;;  %v2630_v62 = vrot.slane %v2629_v53, 4  ;;  %v2604_v60 = vrot.slane %v2602_v8, 4  ;;  %v4069_v40 = vrot.slane %v3926_v48, 5  ;;  %v4420_v54 = vld [vmem:[#allocation2 + $0x90] sm:$0xf] }
 0x193   : > { %v2610_v2 = vrot.slane %v2608_v13, 5  ;;  %v11370_v37 = vrot.slane %v3921_v27, 9  ;;  %v2596_v44 = vrot.slane %v2595_v31, 4  ;;  %v4067_v41 = vsel %vm13443_vm8, %v11371_v4, %v4066_v23  ;;  %v13088_v27 = vld [vmem:[#allocation2 + $0x90] sm:$0xff]  }
 0x194   : > { %v2635_v47 = vsel %vm13482_vm11, %v2630_v62, %v2634_v46  ;;  %v4068_v34 = vrot.slane %v4066_v23, 4  ;;  %v2605_v36 = vor.u32 %v2604_v60, %v2600_v30  ;;  %v4059_v61 = vrot.slane %v3922_v20, 5  ;;  %v4421_v31 = vld [vmem:[#allocation2 + $0x94] sm:$0xf]  ;;  %v4422_v23 = vld [vmem:[#allocation2 + $0x98] sm:$0x1] }
 0x195   : > { %v11291_v1 = vcombine.low %v2625_v32, %v2635_v47  ;;  %v4062_v43 = vrot.slane %v3923_v0, 5  ;;  %v2601_v26 = vsel %vm13482_vm11, %v2596_v44, %v2600_v30  ;;  %v4703_v46 = vshrl.u32 %v4423_v6, 16 }
 0x196   : > { %4343 = vrot.lane.b32.xlu0 %v13087_v49, %s13319_s11  ;;  %v4070_v22 = vsel %vm13443_vm8, %v4068_v34, %v4069_v40  ;;  %v4706_v9 = vshll.u32 %v4423_v6, 16  ;;  %v2606_v25 = vrot.slane %v2605_v36, 4  ;;  %v14574_v50 = vsel %vm13443_vm8, %v11370_v37, %v4059_v61  ;;  %v2881_v6 = vld [vmem:[#allocation2 + $0x90] sm:$0xe]  ;;  %v2882_v49 = vld [vmem:[#allocation2 + $0x94] sm:$0xf]  ;;  %v14585_v36 = vpop.permute.xlu0 %4876 }
 0x197   : > { %2802 = vrot.lane.b32.xlu1 %v11291_v1, %s13316_s9  ;;  %v11387_v53 = vcombine.low %v4067_v41, %v4070_v22  ;;  %v4061_v48 = vrot.slane %v4059_v61, 4  ;;  %v4705_v8 = vrot.slane %v4703_v46, 4  ;;  %v4712_v30 = vshll.u32 %v4424_v39, 16  ;;  %v2883_v34 = vld [vmem:[#allocation2 + $0x98] sm:$0x1] }
 0x198   : > { %v4708_v13 = vrot.slane %v4706_v9, 5  ;;  %v4716_v4 = vshrl.u32 %v4424_v39, 16  ;;  %v2611_v33 = vsel %vm13482_vm11, %v2606_v25, %v2610_v2  ;;  %v4722_v62 = vshll.u32 %v4425_v58, 16  ;;  %v2878_v1 = vld [vmem:[#allocation2 + $0x84] sm:$0xe] }
 0x199   : > { %v14580_v32 = vsel %vm13443_vm8, %v4061_v48, %v4062_v43  ;;  %v4679_v20 = vshrl.u32 %v4420_v54, 16  ;;  %v11290_v0 = vcombine.low %v2601_v26, %v2611_v33  ;;  %v4714_v37 = vrot.slane %v4712_v30, 5  ;;  %v2879_v22 = vld [vmem:[#allocation2 + $0x88] sm:$0xf]  ;;  %v3382_v30 = vld [vmem:[#allocation2 + $0x9c] sm:$0xf] }
 0x19a   : > { %v11386_v60 = vcombine.low %v14574_v50, %v14580_v32  ;;  %v4709_v40 = vor.u32 %v4708_v13, %v4705_v8  ;;  %v4718_v47 = vrot.slane %v4716_v4, 4  ;;  %v4724_v2 = vrot.slane %v4722_v62, 5  ;;  %v2880_v50 = vld [vmem:[#allocation2 + $0x8c] sm:$0x1]  ;;  %v13089_v48 = vld [vmem:[#allocation2 + $0x84] sm:$0xff]  }
 0x19b   : > { %3303 = vrot.lane.b32.xlu1 %v13088_v27, %s13318_s10  ;;  %v4681_v44 = vrot.slane %v4679_v20, 4  ;;  %v4682_v41 = vshll.u32 %v4420_v54, 16  ;;  %2800 = vrot.lane.b32.xlu0 %v11290_v0, %s13316_s9  ;;  %v4688_v43 = vshll.u32 %v4421_v31, 16  ;;  %v4692_v39 = vshrl.u32 %v4421_v31, 16 }
 0x19c   : > { %v4710_v61 = vrot.slane %v4709_v40, 4  ;;  %v4698_v26 = vshll.u32 %v4422_v23, 16  ;;  %v4719_v58 = vor.u32 %v4718_v47, %v4714_v37  ;;  %v11308_v9 = vrot.slane %v2881_v6, 9 }
 0x19d   : > { %v4684_v46 = vrot.slane %v4682_v41, 5  ;;  %v3030_v25 = vrot.slane %v2882_v49, 5  ;;  %v4690_v27 = vrot.slane %v4688_v43, 5  ;;  %v4694_v8 = vrot.slane %v4692_v39, 4  ;;  %v3383_v49 = vld [vmem:[#allocation2 + $0xa0] sm:$0xf] }
 0x19e   : > { %v4715_v54 = vsel %vm13482_vm11, %v4710_v61, %v4714_v37  ;;  %v4700_v13 = vrot.slane %v4698_v26, 5  ;;  %v4720_v4 = vrot.slane %v4719_v58, 4  ;;  %v3033_v23 = vrot.slane %v2883_v34, 5  ;;  %v3379_v39 = vld [vmem:[#allocation2 + $0x90] sm:$0xf] }
 0x19f   : > { %4169 = vrot.lane.b32.xlu1 %v11387_v53, %s13320_s12  ;;  %v4685_v33 = vor.u32 %v4684_v46, %v4681_v44  ;;  %v3031_v32 = vsel %vm13443_vm8, %v11308_v9, %v3030_v25  ;;  %v3032_v62 = vrot.slane %v3030_v25, 4  ;;  %3301 = vrot.lane.b32.xlu0 %v13089_v48, %s13318_s10  ;;  %v4695_v31 = vor.u32 %v4694_v8, %v4690_v27  ;;  %v14596_v53 = vpop.permute.xlu1 %4880  ;;  %v2789_v44 = vpop.permute.xlu0 %2788  ;;  %v3380_v48 = vld [vmem:[#allocation2 + $0x94] sm:$0xf] }
 0x1a0   : > { %v11307_v20 = vrot.slane %v2878_v1, 9  ;;  %v3023_v0 = vrot.slane %v2879_v22, 5  ;;  %v4725_v40 = vsel %vm13482_vm11, %v4720_v4, %v4724_v2  ;;  %v3026_v6 = vrot.slane %v2880_v50, 5  ;;  %v3384_v1 = vld [vmem:[#allocation2 + $0xa4] sm:$0x1]  ;;  %2833 = vst.msk [vmem:[#allocation4 + $0x40] sm:$0xff] %vm2828_vm6, %v2789_v44 }
 0x1a1   : > { %v4686_v37 = vrot.slane %v4685_v33, 4  ;;  %v3683_v47 = vshrl.u32 %v3382_v30, 16  ;;  %v11419_v41 = vcombine.low %v4715_v54, %v4725_v40  ;;  %v4696_v61 = vrot.slane %v4695_v31, 4  ;;  %3157 = vst.msk [vmem:[#allocation4 + $0x40] sm:$0xff] %vm3152_vm7, %v14351_v45  ;;  %v3381_v45 = vld [vmem:[#allocation2 + $0x98] sm:$0x1] }
 0x1a2   : > { %v3034_v43 = vsel %vm13443_vm8, %v3032_v62, %v3033_v23  ;;  %v3024_v34 = vsel %vm13443_vm8, %v11307_v20, %v3023_v0  ;;  %v3025_v22 = vrot.slane %v3023_v0, 4  ;;  %v3686_v9 = vshll.u32 %v3382_v30, 16  ;;  %3334 = vst.msk [vmem:[#allocation4 + $0x40] sm:$0xff] %vm3329_vm9, %v14207_v56  ;;  %v2336_v31 = vld [vmem:[#allocation2 + $0x9c] sm:$0xf] }
 0x1a3   : > { %v4691_v2 = vsel %vm13482_vm11, %v4686_v37, %v4690_v27  ;;  %v11324_v26 = vcombine.low %v3031_v32, %v3034_v43  ;;  %v3685_v58 = vrot.slane %v3683_v47, 4  ;;  %4167 = vrot.lane.b32.xlu0 %v11386_v60, %s13320_s12  ;;  %4892 = vrot.lane.b32.xlu1 %v11419_v41, %s13322_s14  ;;  %v4701_v46 = vsel %vm13482_vm11, %v4696_v61, %v4700_v13  ;;  %v14615_v0 = vpop.permute.xlu1 %3838  ;;  %v2333_v43 = vld [vmem:[#allocation2 + $0x90] sm:$0xf] }
 0x1a4   : > { %v3692_v25 = vshll.u32 %v3383_v49, 16  ;;  %v3696_v50 = vshrl.u32 %v3383_v49, 16  ;;  %v11418_v54 = vcombine.low %v4691_v2, %v4701_v46  ;;  %v3027_v27 = vsel %vm13443_vm8, %v3025_v22, %v3026_v6  ;;  %v2337_v49 = vld [vmem:[#allocation2 + $0xa0] sm:$0xf]  ;;  %v2338_v22 = vld [vmem:[#allocation2 + $0xa4] sm:$0x1] }
 0x1a5   : > { %v3702_v8 = vshll.u32 %v3384_v1, 16  ;;  %v3659_v4 = vshrl.u32 %v3379_v39, 16  ;;  %v11323_v60 = vcombine.low %v3024_v34, %v3027_v27  ;;  %v3688_v33 = vrot.slane %v3686_v9, 5 }
 0x1a6   : > { %v3694_v32 = vrot.slane %v3692_v25, 5  ;;  %v3698_v62 = vrot.slane %v3696_v50, 4  ;;  %v3662_v23 = vshll.u32 %v3379_v39, 16  ;;  %v3668_v20 = vshll.u32 %v3380_v48, 16 }
 0x1a7   : > { %v3704_v13 = vrot.slane %v3702_v8, 5  ;;  %v3661_v30 = vrot.slane %v3659_v4, 4  ;;  %4890 = vrot.lane.b32.xlu0 %v11418_v54, %s13322_s14  ;;  %3128 = vrot.lane.b32.xlu1 %v11324_v26, %s13314_s28  ;;  %v3689_v56 = vor.u32 %v3688_v33, %v3685_v58  ;;  %v3672_v37 = vshrl.u32 %v3380_v48, 16  ;;  %v13119_v26 = vld [vmem:[#allocation2 + $0x9c] sm:$0xff]   ;;  %v13120_v58 = vld [vmem:[#allocation2 + $0x90] sm:$0xff]  }
 0x1a8   : > { %v3699_v40 = vor.u32 %v3698_v62, %v3694_v32  ;;  %v3678_v6 = vshll.u32 %v3381_v45, 16  ;;  %v3664_v47 = vrot.slane %v3662_v23, 5  ;;  %v3670_v44 = vrot.slane %v3668_v20, 5  ;;  %v2334_v45 = vld [vmem:[#allocation2 + $0x94] sm:$0xf]  ;;  %2294 = vst.msk [vmem:[#allocation4 + $0xd0] sm:$0xff] %vm2280_vm0, %v13119_v26 }
 0x1a9   : > { %v2661_v41 = vshrl.u32 %v2336_v31, 16  ;;  %v2664_v61 = vshll.u32 %v2336_v31, 16  ;;  %v3690_v34 = vrot.slane %v3689_v56, 4  ;;  %v3674_v39 = vrot.slane %v3672_v37, 4  ;;  %2293 = vst.msk [vmem:[#allocation4 + $0xc0] sm:$0xff] %vm2280_vm0, %v13120_v58 }
 0x1aa   : > { %v3700_v1 = vrot.slane %v3699_v40, 4  ;;  %v3680_v2 = vrot.slane %v3678_v6, 5  ;;  %v3665_v46 = vor.u32 %v3664_v47, %v3661_v30  ;;  %v2670_v50 = vshll.u32 %v2337_v49, 16  ;;  %v2335_v30 = vld [vmem:[#allocation2 + $0x98] sm:$0x1]  ;;  %v2795_v23 = vpop.permute.xlu1 %2794 }
 0x1ab   : > { %v2663_v9 = vrot.slane %v2661_v41, 4  ;;  %v2666_v25 = vrot.slane %v2664_v61, 5  ;;  %3126 = vrot.lane.b32.xlu0 %v11323_v60, %s13314_s28  ;;  %v3695_v48 = vsel %vm13482_vm11, %v3690_v34, %v3694_v32  ;;  %v3675_v27 = vor.u32 %v3674_v39, %v3670_v44  ;;  %v3930_v40 = vld [vmem:[#allocation2 + $0xa8] sm:$0xe]  ;;  %2836 = vst.msk [vmem:[#allocation4 + $0x70] sm:$0xff] %vm2828_vm6, %v2795_v23 }
 0x1ac   : > { %v3705_v54 = vsel %vm13482_vm11, %v3700_v1, %v3704_v13  ;;  %v2674_v8 = vshrl.u32 %v2337_v49, 16  ;;  %v3666_v33 = vrot.slane %v3665_v46, 4  ;;  %v2672_v31 = vrot.slane %v2670_v50, 5  ;;  %v3931_v47 = vld [vmem:[#allocation2 + $0xac] sm:$0xf]  ;;  %3160 = vst.msk [vmem:[#allocation4 + $0x70] sm:$0xff] %vm3152_vm7, %v14404_v16 }
 0x1ad   : > { %v11356_v4 = vcombine.low %v3695_v48, %v3705_v54  ;;  %v2667_v62 = vor.u32 %v2666_v25, %v2663_v9  ;;  %v3676_v60 = vrot.slane %v3675_v27, 4  ;;  %v2680_v56 = vshll.u32 %v2338_v22, 16  ;;  %v3932_v39 = vld [vmem:[#allocation2 + $0xb0] sm:$0x1]  ;;  %v3927_v22 = vld [vmem:[#allocation2 + $0x9c] sm:$0xe] }
 0x1ae   : > { %v2676_v20 = vrot.slane %v2674_v8, 4  ;;  %v2637_v32 = vshrl.u32 %v2333_v43, 16  ;;  %v3671_v13 = vsel %vm13482_vm11, %v3666_v33, %v3670_v44  ;;  %v2640_v6 = vshll.u32 %v2333_v43, 16  ;;  %3337 = vst.msk [vmem:[#allocation4 + $0x70] sm:$0xff] %vm3329_vm9, %v14262_v52  ;;  %v13092_v44 = vld [vmem:[#allocation2 + $0xa8] sm:$0xff]  }
 0x1af   : > { %3850 = vrot.lane.b32.xlu1 %v11356_v4, %s13321_s13  ;;  %v2668_v37 = vrot.slane %v2667_v62, 4  ;;  %v2646_v49 = vshll.u32 %v2334_v45, 16  ;;  %v3681_v41 = vsel %vm13482_vm11, %v3676_v60, %v3680_v2  ;;  %v2682_v34 = vrot.slane %v2680_v56, 5  ;;  %v3928_v50 = vld [vmem:[#allocation2 + $0xa0] sm:$0xf] }
 0x1b0   : > { %v2677_v61 = vor.u32 %v2676_v20, %v2672_v31  ;;  %v2639_v1 = vrot.slane %v2637_v32, 4  ;;  %v11355_v46 = vcombine.low %v3671_v13, %v3681_v41  ;;  %v2642_v9 = vrot.slane %v2640_v6, 5  ;;  %v3929_v52 = vld [vmem:[#allocation2 + $0xa4] sm:$0x1]  ;;  %v4429_v23 = vld [vmem:[#allocation2 + $0xb4] sm:$0xf] }
 0x1b1   : > { %v2673_v43 = vsel %vm13482_vm11, %v2668_v37, %v2672_v31  ;;  %v2648_v25 = vrot.slane %v2646_v49, 5  ;;  %v2650_v26 = vshrl.u32 %v2334_v45, 16  ;;  %v2656_v58 = vshll.u32 %v2335_v30, 16  ;;  %v13093_v60 = vld [vmem:[#allocation2 + $0x9c] sm:$0xff]   ;;  %v4430_v32 = vld [vmem:[#allocation2 + $0xb8] sm:$0xf] }
 0x1b2   : > { %v2678_v16 = vrot.slane %v2677_v61, 4  ;;  %v11373_v2 = vrot.slane %v3930_v40, 9  ;;  %3848 = vrot.lane.b32.xlu0 %v11355_v46, %s13321_s13  ;;  %v2643_v48 = vor.u32 %v2642_v9, %v2639_v1  ;;  %v4080_v54 = vrot.slane %v3931_v47, 5  ;;  %v4431_v41 = vld [vmem:[#allocation2 + $0xbc] sm:$0x1] }
 0x1b3   : > { %4349 = vrot.lane.b32.xlu1 %v13092_v44, %s13319_s11  ;;  %v4083_v27 = vrot.slane %v3932_v39, 5  ;;  %v11372_v8 = vrot.slane %v3927_v22, 9  ;;  %v2652_v33 = vrot.slane %v2650_v26, 4  ;;  %v2658_v62 = vrot.slane %v2656_v58, 5  ;;  %v4426_v1 = vld [vmem:[#allocation2 + $0xa8] sm:$0xf] }
 0x1b4   : > { %v2683_v4 = vsel %vm13482_vm11, %v2678_v16, %v2682_v34  ;;  %v4073_v31 = vrot.slane %v3928_v50, 5  ;;  %v2644_v30 = vrot.slane %v2643_v48, 4  ;;  %v4081_v20 = vsel %vm13443_vm8, %v11373_v2, %v4080_v54  ;;  %v4427_v26 = vld [vmem:[#allocation2 + $0xac] sm:$0xf] }
 0x1b5   : > { %v11293_v45 = vcombine.low %v2673_v43, %v2683_v4  ;;  %v4082_v56 = vrot.slane %v4080_v54, 4  ;;  %v2653_v40 = vor.u32 %v2652_v33, %v2648_v25  ;;  %v4076_v6 = vrot.slane %v3929_v52, 5  ;;  %v13096_v43 = vld [vmem:[#allocation2 + $0xa8] sm:$0xff]   ;;  %v4428_v54 = vld [vmem:[#allocation2 + $0xb0] sm:$0x1] }
 0x1b6   : > { %v14646_v13 = vsel %vm13443_vm8, %v11372_v8, %v4073_v31  ;;  %v4075_v37 = vrot.slane %v4073_v31, 4  ;;  %4347 = vrot.lane.b32.xlu0 %v13093_v60, %s13319_s11  ;;  %v2649_v49 = vsel %vm13482_vm11, %v2644_v30, %v2648_v25  ;;  %v4751_v61 = vshrl.u32 %v4429_v23, 16  ;;  %v2887_v30 = vld [vmem:[#allocation2 + $0xa8] sm:$0xe] }
 0x1b7   : > { %2806 = vrot.lane.b32.xlu1 %v11293_v45, %s13316_s9  ;;  %v4084_v47 = vsel %vm13443_vm8, %v4082_v56, %v4083_v27  ;;  %v4754_v34 = vshll.u32 %v4429_v23, 16  ;;  %v2654_v39 = vrot.slane %v2653_v40, 4  ;;  %v4760_v44 = vshll.u32 %v4430_v32, 16  ;;  %v13097_v56 = vld [vmem:[#allocation2 + $0x9c] sm:$0xff]  }
 0x1b8   : > { %v11389_v22 = vcombine.low %v4081_v20, %v4084_v47  ;;  %v14656_v46 = vsel %vm13443_vm8, %v4075_v37, %v4076_v6  ;;  %v4753_v50 = vrot.slane %v4751_v61, 4  ;;  %v4764_v16 = vshrl.u32 %v4430_v32, 16  ;;  %v4879_v20 = vpop.permute.xlu0 %4878  ;;  %v2888_v6 = vld [vmem:[#allocation2 + $0xac] sm:$0xf] }
 0x1b9   : > { %v11388_v9 = vcombine.low %v14646_v13, %v14656_v46  ;;  %v4756_v25 = vrot.slane %v4754_v34, 5  ;;  %v2659_v58 = vsel %vm13482_vm11, %v2654_v39, %v2658_v62  ;;  %v4762_v2 = vrot.slane %v4760_v44, 5  ;;  %v2884_v44 = vld [vmem:[#allocation2 + $0x9c] sm:$0xe] }
 0x1ba   : > { %v4770_v48 = vshll.u32 %v4431_v41, 16  ;;  %v4727_v27 = vshrl.u32 %v4426_v1, 16  ;;  %v11292_v52 = vcombine.low %v2649_v49, %v2659_v58  ;;  %v4766_v4 = vrot.slane %v4764_v16, 4  ;;  %v2889_v41 = vld [vmem:[#allocation2 + $0xb0] sm:$0x1] }
 0x1bb   : > { %3307 = vrot.lane.b32.xlu1 %v13096_v43, %s13318_s10  ;;  %v4757_v8 = vor.u32 %v4756_v25, %v4753_v50  ;;  %v4730_v33 = vshll.u32 %v4426_v1, 16  ;;  %v4736_v60 = vshll.u32 %v4427_v26, 16  ;;  %v4740_v45 = vshrl.u32 %v4427_v26, 16  ;;  %v2885_v43 = vld [vmem:[#allocation2 + $0xa0] sm:$0xf] }
 0x1bc   : > { %v4772_v31 = vrot.slane %v4770_v48, 5  ;;  %v4729_v23 = vrot.slane %v4727_v27, 4  ;;  %2804 = vrot.lane.b32.xlu0 %v11292_v52, %s13316_s9  ;;  %v4767_v32 = vor.u32 %v4766_v4, %v4762_v2  ;;  %v4746_v37 = vshll.u32 %v4428_v54, 16  ;;  %v2886_v50 = vld [vmem:[#allocation2 + $0xa4] sm:$0x1] }
 0x1bd   : > { %v4758_v62 = vrot.slane %v4757_v8, 4  ;;  %v4732_v40 = vrot.slane %v4730_v33, 5  ;;  %v14664_v49 = vrot.slane %v4736_v60, 5  ;;  %v4742_v47 = vrot.slane %v4740_v45, 4  ;;  %v3390_v25 = vld [vmem:[#allocation2 + $0xbc] sm:$0x1] }
 0x1be   : > { %vm3874_vm2 = vcmask 654848   ;;  %v4768_v34 = vrot.slane %v4767_v32, 4  ;;  %v4748_v39 = vrot.slane %v4746_v37, 5  ;;  %vm4373_vm5 = vcmask 917248   ;;  %v16989_v26 = vld [vmem:[#allocation11_spill] sm:$0xff]  ;;  %v16990_v8 = vld [vmem:[#allocation5_spill] sm:$0xff] }
 0x1bf   : > { %4173 = vrot.lane.b32.xlu1 %v11389_v22, %s13320_s12  ;;  %v4763_v61 = vsel %vm13482_vm11, %v4758_v62, %v4762_v2  ;;  %v4733_v1 = vor.u32 %v4732_v40, %v4729_v23  ;;  %3875 = vst.msk [vmem:[#allocation4] sm:$0xff] %vm3874_vm2, %v14445_v19  ;;  %3876 = vst.msk [vmem:[#allocation4 + $0x10] sm:$0xff] %vm3874_vm2, %v14460_v7  ;;  %v4743_v22 = vor.u32 %v4742_v47, %v14664_v49  ;;  %v3385_v27 = vld [vmem:[#allocation2 + $0xa8] sm:$0xf]  ;;  %v3386_v52 = vld [vmem:[#allocation2 + $0xac] sm:$0xf] }
 0x1c0   : > { %3877 = vst.msk [vmem:[#allocation4 + $0x20] sm:$0xff] %vm3874_vm2, %v14477_v63  ;;  %3878 = vst.msk [vmem:[#allocation4 + $0x30] sm:$0xff] %vm3874_vm2, %v14492_v18  ;;  %v11310_v19 = vrot.slane %v2887_v30, 9  ;;  %3305 = vrot.lane.b32.xlu0 %v13097_v56, %s13318_s10  ;;  %v4773_v7 = vsel %vm13482_vm11, %v4768_v34, %v4772_v31  ;;  %v3044_v63 = vrot.slane %v2888_v6, 5  ;;  %v3388_v18 = vld [vmem:[#allocation2 + $0xb4] sm:$0xf] }
 0x1c1   : > { %3879 = vst.msk [vmem:[#allocation4 + $0x40] sm:$0xff] %vm3874_vm2, %v14506_v42  ;;  %v3389_v42 = vld [vmem:[#allocation2 + $0xb8] sm:$0xf]  ;;  %v3731_v16 = vshrl.u32 %v3388_v18, 16  ;;  %v3734_v48 = vshll.u32 %v3388_v18, 16  ;;  %v3750_v45 = vshll.u32 %v3390_v25, 16 }
 0x1c2   : > { %4196 = vst.msk [vmem:[#allocation4] sm:$0xff] %vm4195_vm4, %v14288_v38  ;;  %4197 = vst.msk [vmem:[#allocation4 + $0x10] sm:$0xff] %vm4195_vm4, %v14304_v51  ;;  %v4734_v38 = vrot.slane %v4733_v1, 4  ;;  %v3047_v51 = vrot.slane %v2889_v41, 5  ;;  %v3740_v54 = vshll.u32 %v3389_v42, 16  ;;  %v3744_v23 = vshrl.u32 %v3389_v42, 16 }
 0x1c3   : > { %4198 = vst.msk [vmem:[#allocation4 + $0x20] sm:$0xff] %vm4195_vm4, %v14315_v28  ;;  %4199 = vst.msk [vmem:[#allocation4 + $0x30] sm:$0xff] %vm4195_vm4, %v14340_v29  ;;  %v11421_v28 = vcombine.low %v4763_v61, %v4773_v7  ;;  %v4744_v29 = vrot.slane %v4743_v22, 4  ;;  %v3733_v31 = vrot.slane %v3731_v16, 4  ;;  %v3387_v60 = vld [vmem:[#allocation2 + $0xb0] sm:$0x1] }
 0x1c4   : > { %4200 = vst.msk [vmem:[#allocation4 + $0x40] sm:$0xff] %vm4195_vm4, %v14355_v55  ;;  %v3037_v55 = vrot.slane %v2885_v43, 5  ;;  %4171 = vrot.lane.b32.xlu0 %v11388_v9, %s13320_s12  ;;  %v3736_v46 = vrot.slane %v3734_v48, 5  ;;  %v3742_v9 = vrot.slane %v3740_v54, 5  ;;  %v4938_v30 = vld [vmem:[#allocation2 + $0x24] sm:$0xe] }
 0x1c5   : > { %4374 = vst.msk [vmem:[#allocation4] sm:$0xff] %vm4373_vm5, %v14169_v3  ;;  %4375 = vst.msk [vmem:[#allocation4 + $0x10] sm:$0xff] %vm4373_vm5, %v14178_v11  ;;  %v11309_v3 = vrot.slane %v2884_v44, 9  ;;  %v3837_v11 = vpop.permute.xlu0 %3836  ;;  %4896 = vrot.lane.b32.xlu1 %v11421_v28, %s13322_s14  ;;  %v3707_v56 = vshrl.u32 %v3385_v27, 16  ;;  %v3710_v62 = vshll.u32 %v3385_v27, 16  ;;  %v3716_v32 = vshll.u32 %v3386_v52, 16 }
 0x1c6   : > { %4376 = vst.msk [vmem:[#allocation4 + $0x20] sm:$0xff] %vm4373_vm5, %v14190_v15  ;;  %4377 = vst.msk [vmem:[#allocation4 + $0x30] sm:$0xff] %vm4373_vm5, %v14203_v17  ;;  %v4739_v15 = vsel %vm13482_vm11, %v4734_v38, %v14664_v49  ;;  %v3045_v17 = vsel %vm13443_vm8, %v11310_v19, %v3044_v63  ;;  %v4939_v40 = vld [vmem:[#allocation2 + $0x28] sm:$0xf]  ;;  %v3737_v37 = vor.u32 %v3736_v46, %v3733_v31  ;;  %v3752_v6 = vrot.slane %v3750_v45, 5  ;;  %v13121_v18 = vld [vmem:[#allocation2 + $0xb4] sm:$0xff]  }
 0x1c7   : > { %4378 = vst.msk [vmem:[#allocation4 + $0x40] sm:$0xff] %vm4373_vm5, %v14221_v57  ;;  %v3046_v57 = vrot.slane %v3044_v63, 4  ;;  %v3720_v49 = vshrl.u32 %v3386_v52, 16  ;;  %v3726_v47 = vshll.u32 %v3387_v60, 16  ;;  %v3709_v34 = vrot.slane %v3707_v56, 4  ;;  %v13104_v46 = vld [vmem:[#allocation2 + $0xc0] sm:$0xff]  }
 0x1c8   : > { %4919 = vst.msk [vmem:[#allocation4] sm:$0xff] %vm4918_vm10, %v14436_v59  ;;  %4920 = vst.msk [vmem:[#allocation4 + $0x10] sm:$0xff] %vm4918_vm10, %v14475_v5  ;;  %v3040_v59 = vrot.slane %v2886_v50, 5  ;;  %v4749_v5 = vsel %vm13482_vm11, %v4744_v29, %v4748_v39  ;;  %v3712_v1 = vrot.slane %v3710_v62, 5  ;;  %v3718_v39 = vrot.slane %v3716_v32, 5 }
 0x1c9   : > { %4921 = vst.msk [vmem:[#allocation4 + $0x20] sm:$0xff] %vm4918_vm10, %v14511_v24  ;;  %4922 = vst.msk [vmem:[#allocation4 + $0x30] sm:$0xff] %vm4918_vm10, %v14585_v36  ;;  %v3038_v24 = vsel %vm13443_vm8, %v11309_v3, %v3037_v55  ;;  %v3039_v36 = vrot.slane %v3037_v55, 4  ;;  %v11420_v58 = vcombine.low %v4739_v15, %v4749_v5  ;;  %v3048_v2 = vsel %vm13443_vm8, %v3046_v57, %v3047_v51  ;;  %v2342_v44 = vld [vmem:[#allocation2 + $0xb4] sm:$0xf]  ;;  %v13122_v5 = vld [vmem:[#allocation2 + $0xa8] sm:$0xff]  }
 0x1ca   : > { %4923 = vst.msk [vmem:[#allocation4 + $0x40] sm:$0xff] %vm4918_vm10, %v4879_v20  ;;  %v11326_v4 = vcombine.low %v3045_v17, %v3048_v2  ;;  %v3746_v20 = vrot.slane %v3744_v23, 4  ;;  %v3738_v43 = vrot.slane %v3737_v37, 4  ;;  %v3722_v22 = vrot.slane %v3720_v49, 4  ;;  %v2343_v3 = vld [vmem:[#allocation2 + $0xb8] sm:$0xf] }
 0x1cb   : > { %3880 = vst.msk [vmem:[#allocation4 + $0x50] sm:$0xff] %vm3874_vm2, %v3837_v11  ;;  %v3041_v33 = vsel %vm13443_vm8, %v3039_v36, %v3040_v59  ;;  %4894 = vrot.lane.b32.xlu0 %v11420_v58, %s13322_s14  ;;  %v3728_v19 = vrot.slane %v3726_v47, 5  ;;  %v11425_v50 = vrot.slane %v4938_v30, 9  ;;  %v3713_v38 = vor.u32 %v3712_v1, %v3709_v34  ;;  %v2344_v59 = vld [vmem:[#allocation2 + $0xbc] sm:$0x1] }
 0x1cc   : > { %4201 = vst.msk [vmem:[#allocation4 + $0x50] sm:$0xff] %vm4195_vm4, %v16989_v26  ;;  %v11325_v13 = vcombine.low %v3038_v24, %v3041_v33  ;;  %3132 = vrot.lane.b32.xlu1 %v11326_v4, %s13314_s28  ;;  %v3747_v61 = vor.u32 %v3746_v20, %v3742_v9  ;;  %v5040_v63 = vrot.slane %v4939_v40, 5  ;;  %v3743_v28 = vsel %vm13482_vm11, %v3738_v43, %v3742_v9  ;;  %v2339_v26 = vld [vmem:[#allocation2 + $0xa8] sm:$0xf]  ;;  %v2340_v27 = vld [vmem:[#allocation2 + $0xac] sm:$0xf] }
 0x1cd   : > { %4379 = vst.msk [vmem:[#allocation4 + $0x50] sm:$0xff] %vm4373_vm5, %v16990_v8  ;;  %v3723_v29 = vor.u32 %v3722_v22, %v3718_v39  ;;  %v2709_v55 = vshrl.u32 %v2342_v44, 16  ;;  %v2712_v42 = vshll.u32 %v2342_v44, 16  ;;  %v3714_v15 = vrot.slane %v3713_v38, 4  ;;  %v2341_v52 = vld [vmem:[#allocation2 + $0xb0] sm:$0x1] }
 0x1ce   : > { %4924 = vst.msk [vmem:[#allocation4 + $0x50] sm:$0xff] %vm4918_vm10, %v14596_v53  ;;  %v4940_v53 = vld [vmem:[#allocation2 + $0x2c] sm:$0x1]  ;;  %v3748_v7 = vrot.slane %v3747_v61, 4  ;;  %v5041_v17 = vsel %vm13443_vm8, %v11425_v50, %v5040_v63  ;;  %v5042_v57 = vrot.slane %v5040_v63, 4  ;;  %v2718_v48 = vshll.u32 %v2343_v3, 16  ;;  %v14760_v63 = vpop.permute.xlu1 %4884 }
 0x1cf   : > { %v5223_v41 = vld [vmem:[#allocation4] sm:$0xff]  ;;  %v5043_v51 = vrot.slane %v4940_v53, 5  ;;  %3130 = vrot.lane.b32.xlu0 %v11325_v13, %s13314_s28  ;;  %2296 = vst.msk [vmem:[#allocation4 + $0xf0] sm:$0xff] %vm2280_vm0, %v13121_v18  ;;  %v3724_v36 = vrot.slane %v3723_v29, 4  ;;  %v2711_v25 = vrot.slane %v2709_v55, 4  ;;  %v2714_v16 = vrot.slane %v2712_v42, 5 }
 0x1d0   : > { %5415 = vmatmul.mubr.bf16.vlgmr.msra.gmra.mrb[0].mxu0 %v5223_v41  ;;  %v3753_v11 = vsel %vm13482_vm11, %v3748_v7, %v3752_v6  ;;  %v3719_v58 = vsel %vm13482_vm11, %v3714_v15, %v3718_v39  ;;  %v2722_v54 = vshrl.u32 %v2343_v3, 16  ;;  %2295 = vst.msk [vmem:[#allocation4 + $0xe0] sm:$0xff] %vm2280_vm0, %v13122_v5  ;;  %v2728_v31 = vshll.u32 %v2344_v59, 16  ;;  %v4941_v23 = vld [vmem:[#allocation2 + $0x30] sm:$0xe]  ;;  %v13105_v61 = vld [vmem:[#allocation2 + $0xb4] sm:$0xff]  }
 0x1d1   : > { %v11358_v24 = vcombine.low %v3743_v28, %v3753_v11  ;;  %v5044_v2 = vsel %vm13443_vm8, %v5042_v57, %v5043_v51  ;;  %v3729_v8 = vsel %vm13482_vm11, %v3724_v36, %v3728_v19  ;;  %v2715_v33 = vor.u32 %v2714_v16, %v2711_v25  ;;  %v4942_v60 = vld [vmem:[#allocation2 + $0x34] sm:$0xf]  ;;  %v4943_v20 = vld [vmem:[#allocation2 + $0x38] sm:$0x1]  ;;  %v3936_v37 = vld [vmem:[#allocation2 + $0xc0] sm:$0xe] }
 0x1d2   : > { %v11441_v4 = vcombine.low %v5041_v17, %v5044_v2  ;;  %v11357_v13 = vcombine.low %v3719_v58, %v3729_v8  ;;  %v2720_v9 = vrot.slane %v2718_v48, 5  ;;  %v2724_v45 = vrot.slane %v2722_v54, 4  ;;  %v3937_v53 = vld [vmem:[#allocation2 + $0xc4] sm:$0xf]  ;;  %v3938_v38 = vld [vmem:[#allocation2 + $0xc8] sm:$0x1] }
 0x1d3   : > { %3854 = vrot.lane.b32.xlu1 %v11358_v24, %s13321_s13  ;;  %v2685_v30 = vshrl.u32 %v2339_v26, 16  ;;  %v2716_v56 = vrot.slane %v2715_v33, 4  ;;  %v2730_v62 = vrot.slane %v2728_v31, 5  ;;  %v2688_v32 = vshll.u32 %v2339_v26, 16  ;;  %v3933_v3 = vld [vmem:[#allocation2 + $0xb4] sm:$0xe] }
 0x1d4   : > { %5208 = vst.msk [vmem:[#allocation4 + $0x18] sm:$0xff] %vm2280_vm0, %v11441_v4  ;;  %v2694_v40 = vshll.u32 %v2340_v27, 16  ;;  %3852 = vrot.lane.b32.xlu0 %v11357_v13, %s13321_s13  ;;  %v2725_v6 = vor.u32 %v2724_v45, %v2720_v9  ;;  %v2698_v47 = vshrl.u32 %v2340_v27, 16  ;;  %v2704_v41 = vshll.u32 %v2341_v52, 16  ;;  %v2793_v43 = vpop.permute.xlu0 %2792  ;;  %v16991_v55 = vld [vmem:[#allocation12_spill] sm:$0xff]  ;;  %v16992_v5 = vld [vmem:[#allocation6_spill] sm:$0xff] }
 0x1d5   : > { %v2687_v49 = vrot.slane %v2685_v30, 4  ;;  %v2721_v34 = vsel %vm13482_vm11, %v2716_v56, %v2720_v9  ;;  %v2690_v1 = vrot.slane %v2688_v32, 5  ;;  %v11426_v44 = vrot.slane %v4941_v23, 9  ;;  %2835 = vst.msk [vmem:[#allocation4 + $0x60] sm:$0xff] %vm2828_vm6, %v2793_v43  ;;  %v3934_v57 = vld [vmem:[#allocation2 + $0xb8] sm:$0xf] }
 0x1d6   : > { %v2696_v39 = vrot.slane %v2694_v40, 5  ;;  %v2726_v22 = vrot.slane %v2725_v6, 4  ;;  %v2700_v19 = vrot.slane %v2698_v47, 4  ;;  %v2706_v50 = vrot.slane %v2704_v41, 5  ;;  %3159 = vst.msk [vmem:[#allocation4 + $0x60] sm:$0xff] %vm3152_vm7, %v16991_v55  ;;  %v5225_v25 = vld [vmem:[#allocation4 + $0x10] sm:$0xff] }
 0x1d7   : > { %4353 = vrot.lane.b32.xlu1 %v13104_v46, %s13319_s11  ;;  %v5047_v7 = vrot.slane %v4942_v60, 5  ;;  %v2691_v51 = vor.u32 %v2690_v1, %v2687_v49  ;;  %v5050_v18 = vrot.slane %v4943_v20, 5  ;;  %v11375_v28 = vrot.slane %v3936_v37, 9  ;;  %v3935_v59 = vld [vmem:[#allocation2 + $0xbc] sm:$0x1]  ;;  %3336 = vst.msk [vmem:[#allocation4 + $0x60] sm:$0xff] %vm3329_vm9, %v16992_v5 }
 0x1d8   : > { %v4094_v29 = vrot.slane %v3937_v53, 5  ;;  %4351 = vrot.lane.b32.xlu0 %v13105_v61, %s13319_s11  ;;  %v2731_v42 = vsel %vm13482_vm11, %v2726_v22, %v2730_v62  ;;  %v2701_v11 = vor.u32 %v2700_v19, %v2696_v39  ;;  %v4432_v58 = vld [vmem:[#allocation2 + $0xc0] sm:$0xf]  ;;  %3881 = vst.msk [vmem:[#allocation4 + $0x60] sm:$0xff] %vm3874_vm2, %v14615_v0  ;;  %v4097_v27 = vrot.slane %v3938_v38, 5  ;;  %v16993_v8 = vld [vmem:[#allocation13_spill] sm:$0xff]  ;;  %v14792_v62 = vpop.permute.xlu1 %3842 }
 0x1d9   : > { %v5048_v15 = vsel %vm13443_vm8, %v11426_v44, %v5047_v7  ;;  %v5049_v17 = vrot.slane %v5047_v7, 4  ;;  %v11295_v24 = vcombine.low %v2721_v34, %v2731_v42  ;;  %v2692_v36 = vrot.slane %v2691_v51, 4  ;;  %4202 = vst.msk [vmem:[#allocation4 + $0x60] sm:$0xff] %vm4195_vm4, %v16993_v8  ;;  %v4433_v23 = vld [vmem:[#allocation2 + $0xc4] sm:$0xf] }
 0x1da   : > { %v14774_v16 = vsel %vm13443_vm8, %v11375_v28, %v4094_v29  ;;  %v4096_v26 = vrot.slane %v4094_v29, 4  ;;  %v2702_v48 = vrot.slane %v2701_v11, 4  ;;  %v11374_v52 = vrot.slane %v3933_v3, 9  ;;  %v4944_v60 = vld [vmem:[#allocation2 + $0x3c] sm:$0xe]  ;;  %v16994_v13 = vld [vmem:[#allocation7_spill] sm:$0xff] }
 0x1db   : > { %v5226_v2 = vld [vmem:[#allocation4 + $0x18] sm:$0xff]  ;;  %v5051_v54 = vsel %vm13443_vm8, %v5049_v17, %v5050_v18  ;;  %2810 = vrot.lane.b32.xlu1 %v11295_v24, %s13316_s9  ;;  %v2697_v4 = vsel %vm13482_vm11, %v2692_v36, %v2696_v39  ;;  %v4087_v31 = vrot.slane %v3934_v57, 5  ;;  %v4090_v0 = vrot.slane %v3935_v59, 5  ;;  %4380 = vst.msk [vmem:[#allocation4 + $0x60] sm:$0xff] %vm4373_vm5, %v16994_v13  ;;  %v4945_v56 = vld [vmem:[#allocation2 + $0x40] sm:$0xf] }
 0x1dc   : > { %11467 = vmatprep.mubr.msk.bf16.mxu0 %vm2280_vm0, %v5226_v2  ;;  %v11442_v33 = vcombine.low %v5048_v15, %v5051_v54  ;;  %v2707_v46 = vsel %vm13482_vm11, %v2702_v48, %v2706_v50  ;;  %v4098_v9 = vsel %vm13443_vm8, %v4096_v26, %v4097_v27  ;;  %v4434_v45 = vld [vmem:[#allocation2 + $0xc8] sm:$0x1]  ;;  %v4775_v30 = vshrl.u32 %v4432_v58, 16  ;;  %v13107_v40 = vld [vmem:[#allocation2 + $0xc0] sm:$0xff]   ;;  %v2890_v1 = vld [vmem:[#allocation2 + $0xb4] sm:$0xe] }
 0x1dd   : > { %5423 = vmatmul.mubr.bf16.gmra.mrb[4].mxu0 %v5225_v25  ;;  %v4778_v20 = vshll.u32 %v4432_v58, 16  ;;  %v11294_v32 = vcombine.low %v2697_v4, %v2707_v46  ;;  %v11391_v37 = vcombine.low %v14774_v16, %v4098_v9  ;;  %v4088_v6 = vsel %vm13443_vm8, %v11374_v52, %v4087_v31  ;;  %v4946_v47 = vld [vmem:[#allocation2 + $0x44] sm:$0x1]  ;;  %v2891_v19 = vld [vmem:[#allocation2 + $0xb8] sm:$0xf]  ;;  %v5227_v25 = vld [vmem:[#allocation4 + $0x20] sm:$0xff] }
 0x1de   : > { %5209 = vst.msk [vmem:[#allocation4 + $0x28] sm:$0xff] %vm2280_vm0, %v11442_v33  ;;  %v4089_v49 = vrot.slane %v4087_v31, 4  ;;  %v4777_v41 = vrot.slane %v4775_v30, 4  ;;  %v4784_v61 = vshll.u32 %v4433_v23, 16  ;;  %v4788_v34 = vshrl.u32 %v4433_v23, 16  ;;  %v13108_v29 = vld [vmem:[#allocation2 + $0xb4] sm:$0xff]  }
 0x1df   : > { %v4780_v53 = vrot.slane %v4778_v20, 5  ;;  %2808 = vrot.lane.b32.xlu0 %v11294_v32, %s13316_s9  ;;  %3311 = vrot.lane.b32.xlu1 %v13107_v40, %s13318_s10  ;;  %v4794_v44 = vshll.u32 %v4434_v45, 16  ;;  %v11427_v43 = vrot.slane %v4944_v60, 9  ;;  %v5054_v22 = vrot.slane %v4945_v56, 5  ;;  %v2892_v18 = vld [vmem:[#allocation2 + $0xbc] sm:$0x1] }
 0x1e0   : > { %v4091_v39 = vsel %vm13443_vm8, %v4089_v49, %v4090_v0  ;;  %v4786_v38 = vrot.slane %v4784_v61, 5  ;;  %v4790_v51 = vrot.slane %v4788_v34, 4  ;;  %v3391_v28 = vld [vmem:[#allocation2 + $0xc0] sm:$0xf]  ;;  %v5057_v11 = vrot.slane %v4946_v47, 5 }
 0x1e1   : > { %v11390_v50 = vcombine.low %v4088_v6, %v4091_v39  ;;  %v4781_v7 = vor.u32 %v4780_v53, %v4777_v41  ;;  %v4796_v3 = vrot.slane %v4794_v44, 5  ;;  %v5055_v55 = vsel %vm13443_vm8, %v11427_v43, %v5054_v22  ;;  %v3392_v15 = vld [vmem:[#allocation2 + $0xc4] sm:$0xf]  ;;  %v3393_v24 = vld [vmem:[#allocation2 + $0xc8] sm:$0x1]  ;;  %v2799_v36 = vpop.permute.xlu1 %2798 }
 0x1e2   : > { %v5056_v42 = vrot.slane %v5054_v22, 4  ;;  %v4791_v57 = vor.u32 %v4790_v51, %v4786_v38  ;;  %v11311_v59 = vrot.slane %v2890_v1, 9  ;;  %v3051_v5 = vrot.slane %v2891_v19, 5  ;;  %v4947_v48 = vld [vmem:[#allocation2 + $0x48] sm:$0xe]  ;;  %2838 = vst.msk [vmem:[#allocation4 + $0x90] sm:$0xff] %vm2828_vm6, %v2799_v36 }
 0x1e3   : > { %v4782_v17 = vrot.slane %v4781_v7, 4  ;;  %3309 = vrot.lane.b32.xlu0 %v13108_v29, %s13318_s10  ;;  %4177 = vrot.lane.b32.xlu1 %v11391_v37, %s13320_s12  ;;  %v3054_v26 = vrot.slane %v2892_v18, 5  ;;  %v3755_v58 = vshrl.u32 %v3391_v28, 16  ;;  %v3758_v2 = vshll.u32 %v3391_v28, 16  ;;  %v4948_v33 = vld [vmem:[#allocation2 + $0x4c] sm:$0xf]  ;;  %s16851_s10 = scalar_lea.vmem %s16926_s6, %s11942_s23 }
 0x1e4   : > { %v5058_v16 = vsel %vm13443_vm8, %v5056_v42, %v5057_v11  ;;  %v4792_v52 = vrot.slane %v4791_v57, 4  ;;  %v14813_v4 = vsel %vm13443_vm8, %v11311_v59, %v3051_v5  ;;  %v3053_v31 = vrot.slane %v3051_v5, 4  ;;  %v4949_v13 = vld [vmem:[#allocation2 + $0x50] sm:$0x1]  ;;  %v4435_v20 = vld [vmem:[#allocation2 + $0xcc] sm:$0xf] }
 0x1e5   : > { %v5228_v54 = vld [vmem:[#allocation4 + $0x28] sm:$0xff]  ;;  %v4787_v27 = vsel %vm13482_vm11, %v4782_v17, %v4786_v38  ;;  %v11443_v8 = vcombine.low %v5055_v55, %v5058_v16  ;;  %v3757_v0 = vrot.slane %v3755_v58, 4  ;;  %v3760_v23 = vrot.slane %v3758_v2, 5  ;;  %v4436_v49 = vld [vmem:[#allocation2 + $0xd0] sm:$0xf]  ;;  %v14824_v1 = vpop.permute.xlu1 %3299  ;;  %v5229_v5 = vld [vmem:[#allocation4 + $0x30] sm:$0xff] }
 0x1e6   : > { %11468 = vmatprep.mubr.msk.bf16.mxu0 %vm2280_vm0, %v5228_v54  ;;  %v3764_v60 = vshll.u32 %v3392_v15, 16  ;;  %v4797_v46 = vsel %vm13482_vm11, %v4792_v52, %v4796_v3  ;;  %v3768_v9 = vshrl.u32 %v3392_v15, 16  ;;  %v3774_v45 = vshll.u32 %v3393_v24, 16  ;;  %v4883_v56 = vpop.permute.xlu0 %4882  ;;  %v4950_v34 = vld [vmem:[#allocation2 + $0x54] sm:$0xe]  ;;  %v16995_v16 = vld [vmem:[#allocation14_spill] sm:$0xff] }
 0x1e7   : > { %5431 = vmatmul.mubr.bf16.gmra.mrb[8].mxu0 %v5227_v25  ;;  %5210 = vst.msk [vmem:[#allocation4 + $0x38] sm:$0xff] %vm2280_vm0, %v11443_v8  ;;  %v11428_v30 = vrot.slane %v4947_v48, 9  ;;  %4175 = vrot.lane.b32.xlu0 %v11390_v50, %s13320_s12  ;;  %v11422_v32 = vcombine.low %v4787_v27, %v4797_v46  ;;  %v3055_v40 = vsel %vm13443_vm8, %v3053_v31, %v3054_v26  ;;  %v5061_v61 = vrot.slane %v4948_v33, 5  ;;  %v4437_v43 = vld [vmem:[#allocation2 + $0xd4] sm:$0x1]  ;;  %v16996_v52 = vld [vmem:[#allocation8_spill] sm:$0xff] }
 0x1e8   : > { %v3761_v37 = vor.u32 %v3760_v23, %v3757_v0  ;;  %v3766_v6 = vrot.slane %v3764_v60, 5  ;;  %4925 = vst.msk [vmem:[#allocation4 + $0x60] sm:$0xff] %vm4918_vm10, %v4883_v56  ;;  %v11327_v47 = vcombine.low %v14813_v4, %v3055_v40  ;;  %v3770_v41 = vrot.slane %v3768_v9, 4  ;;  %v4951_v50 = vld [vmem:[#allocation2 + $0x58] sm:$0xf] }
 0x1e9   : > { %v3776_v53 = vrot.slane %v3774_v45, 5  ;;  %v5064_v44 = vrot.slane %v4949_v13, 5  ;;  %v4799_v22 = vshrl.u32 %v4435_v20, 16  ;;  %v4802_v19 = vshll.u32 %v4435_v20, 16  ;;  %v4952_v28 = vld [vmem:[#allocation2 + $0x5c] sm:$0x1]  ;;  %v14845_v23 = vpop.permute.xlu1 %4165 }
 0x1ea   : > { %v3762_v39 = vrot.slane %v3761_v37, 4  ;;  %v3771_v7 = vor.u32 %v3770_v41, %v3766_v6  ;;  %v5062_v38 = vsel %vm13443_vm8, %v11428_v30, %v5061_v61  ;;  %v5063_v51 = vrot.slane %v5061_v61, 4  ;;  %v3841_v29 = vpop.permute.xlu0 %3840  ;;  %v4953_v3 = vld [vmem:[#allocation2 + $0x60] sm:$0xe]  ;;  %v4954_v17 = vld [vmem:[#allocation2 + $0x64] sm:$0xf] }
 0x1eb   : > { %v4808_v18 = vshll.u32 %v4436_v49, 16  ;;  %4898 = vrot.lane.b32.xlu0 %v11422_v32, %s13322_s14  ;;  %v4801_v42 = vrot.slane %v4799_v22, 4  ;;  %v4804_v11 = vrot.slane %v4802_v19, 5  ;;  %v4812_v15 = vshrl.u32 %v4436_v49, 16  ;;  %3882 = vst.msk [vmem:[#allocation4 + $0x70] sm:$0xff] %vm3874_vm2, %v3841_v29 }
 0x1ec   : > { %v3767_v55 = vsel %vm13482_vm11, %v3762_v39, %v3766_v6  ;;  %v14832_v57 = vld [vmem:[#allocation2 + $0x68] sm:$0x1]  ;;  %v3772_v59 = vrot.slane %v3771_v7, 4  ;;  %v5065_v24 = vsel %vm13443_vm8, %v5063_v51, %v5064_v44  ;;  %v4818_v25 = vshll.u32 %v4437_v43, 16  ;;  %4203 = vst.msk [vmem:[#allocation4 + $0x70] sm:$0xff] %vm4195_vm4, %v16995_v16  ;;  %v13113_v7 = vld [vmem:[#allocation2 + $0xcc] sm:$0xff]  }
 0x1ed   : > { %v4810_v36 = vrot.slane %v4808_v18, 5  ;;  %v4956_v26 = vld [vmem:[#allocation2 + $0x6c] sm:$0xe]  ;;  %v11444_v2 = vcombine.low %v5062_v38, %v5065_v24  ;;  %v4805_v48 = vor.u32 %v4804_v11, %v4801_v42  ;;  %v4814_v54 = vrot.slane %v4812_v15, 4  ;;  %4381 = vst.msk [vmem:[#allocation4 + $0x70] sm:$0xff] %vm4373_vm5, %v16996_v52  ;;  %v16997_v42 = vld [vmem:[#allocation9_spill] sm:$0xff] }
 0x1ee   : > { %v5230_v58 = vld [vmem:[#allocation4 + $0x38] sm:$0xff]  ;;  %v11429_v27 = vrot.slane %v4950_v34, 9  ;;  %v4957_v8 = vld [vmem:[#allocation2 + $0x70] sm:$0xf]  ;;  %v3777_v4 = vsel %vm13482_vm11, %v3772_v59, %v3776_v53  ;;  %v4820_v33 = vrot.slane %v4818_v25, 5  ;;  %v5068_v31 = vrot.slane %v4951_v50, 5 }
 0x1ef   : > { %11469 = vmatprep.mubr.msk.bf16.mxu0 %vm2280_vm0, %v5230_v58  ;;  %v5071_v0 = vrot.slane %v4952_v28, 5  ;;  %4926 = vst.msk [vmem:[#allocation4 + $0x70] sm:$0xff] %vm4918_vm10, %v14760_v63  ;;  %v4958_v60 = vld [vmem:[#allocation2 + $0x74] sm:$0x1]  ;;  %3134 = vrot.lane.b32.xlu0 %v11327_v47, %s13314_s28  ;;  %v11359_v13 = vcombine.low %v3767_v55, %v3777_v4  ;;  %v4806_v46 = vrot.slane %v4805_v48, 4  ;;  %v4815_v9 = vor.u32 %v4814_v54, %v4810_v36  ;;  %v16998_v52 = vld [vmem:[#allocation10_spill] sm:$0xff] }
 0x1f0   : > { %5439 = vmatmul.mubr.bf16.gmra.mrb[12].mxu0 %v5229_v5  ;;  %5211 = vst.msk [vmem:[#allocation4 + $0x48] sm:$0xff] %vm2280_vm0, %v11444_v2  ;;  %v11430_v45 = vrot.slane %v4953_v3, 9  ;;  %v4959_v30 = vld [vmem:[#allocation2 + $0x78] sm:$0xe]  ;;  %v4960_v20 = vld [vmem:[#allocation2 + $0x7c] sm:$0xf]  ;;  %v5069_v56 = vsel %vm13443_vm8, %v11429_v27, %v5068_v31  ;;  %v2797_v41 = vpop.permute.xlu0 %2796 }
 0x1f1   : > { %v5070_v32 = vrot.slane %v5068_v31, 4  ;;  %v5075_v40 = vrot.slane %v4954_v17, 5  ;;  %v5078_v63 = vrot.slane %v14832_v57, 5  ;;  %v4961_v37 = vld [vmem:[#allocation2 + $0x80] sm:$0x1]  ;;  %v4811_v49 = vsel %vm13482_vm11, %v4806_v46, %v4810_v36  ;;  %2837 = vst.msk [vmem:[#allocation4 + $0x80] sm:$0xff] %vm2828_vm6, %v2797_v41 }
 0x1f2   : > { %v4962_v6 = vld [vmem:[#allocation2 + $0x84] sm:$0xe]  ;;  %v4816_v47 = vrot.slane %v4815_v9, 4  ;;  %v11431_v53 = vrot.slane %v4956_v26, 9  ;;  %v5082_v61 = vrot.slane %v4957_v8, 5  ;;  %v5085_v22 = vrot.slane %v4958_v60, 5 }
 0x1f3   : > { %v4963_v34 = vld [vmem:[#allocation2 + $0x88] sm:$0xf]  ;;  %v5072_v39 = vsel %vm13443_vm8, %v5070_v32, %v5071_v0  ;;  %v5076_v44 = vsel %vm13443_vm8, %v11430_v45, %v5075_v40  ;;  %v5077_v43 = vrot.slane %v5075_v40, 4  ;;  %v14859_v19 = vld [vmem:[#allocation2 + $0x8c] sm:$0x1]  ;;  %vm392_vm12 = vcmask 1040384   ;;  %3856 = vrot.lane.b32.xlu0 %v11359_v13, %s13321_s13 }
 0x1f4   : > { %v4965_v50 = vld [vmem:[#allocation2 + $0x90] sm:$0xe]  ;;  %v4821_v38 = vsel %vm13482_vm11, %v4816_v47, %v4820_v33  ;;  %v11445_v51 = vcombine.low %v5069_v56, %v5072_v39  ;;  %3161 = vst.msk [vmem:[#allocation4 + $0x80] sm:$0xff] %vm3152_vm7, %v14420_v12  ;;  %v5083_v18 = vsel %vm13443_vm8, %v11431_v53, %v5082_v61  ;;  %v5084_v28 = vrot.slane %v5082_v61, 4  ;;  %v4966_v29 = vld [vmem:[#allocation2 + $0x94] sm:$0xf]  ;;  %v14872_v15 = vpop.permute.xlu1 %4888  ;;  %vm14919_vm13 = vmand %vm392_vm12, %vm284_vm1 }
 0x1f5   : > { %v4967_v3 = vld [vmem:[#allocation2 + $0x98] sm:$0x1]  ;;  %v11423_v55 = vcombine.low %v4811_v49, %v4821_v38  ;;  %3338 = vst.msk [vmem:[#allocation4 + $0x80] sm:$0xff] %vm3329_vm9, %v16997_v42  ;;  %v5079_v11 = vsel %vm13443_vm8, %v5077_v43, %v5078_v63  ;;  %v11432_v17 = vrot.slane %v4959_v30, 9  ;;  %v5089_v57 = vrot.slane %v4960_v20, 5  ;;  %v5231_v12 = vld [vmem:[#allocation4 + $0x40] sm:$0xff]  ;;  %vm14970_vm1 = vmand %vm392_vm12, %vm334_vm3 }
 0x1f6   : > { %v4968_v59 = vld [vmem:[#allocation2 + $0x9c] sm:$0xe]  ;;  %v4969_v5 = vld [vmem:[#allocation2 + $0xa0] sm:$0xf]  ;;  %5212 = vst.msk [vmem:[#allocation4 + $0x58] sm:$0xff] %vm2280_vm0, %v11445_v51  ;;  %v11446_v24 = vcombine.low %v5076_v44, %v5079_v11  ;;  %v5086_v36 = vsel %vm13443_vm8, %v5084_v28, %v5085_v22  ;;  %v5092_v25 = vrot.slane %v4961_v37, 5 }
 0x1f7   : > { %3883 = vst.msk [vmem:[#allocation4 + $0x80] sm:$0xff] %vm3874_vm2, %v14792_v62  ;;  %v11433_v16 = vrot.slane %v4962_v6, 9  ;;  %v4970_v26 = vld [vmem:[#allocation2 + $0xa4] sm:$0x1]  ;;  %v5232_v58 = vld [vmem:[#allocation4 + $0x48] sm:$0xff]  ;;  %4900 = vrot.lane.b32.xlu1 %v11423_v55, %s13322_s14  ;;  %v11447_v2 = vcombine.low %v5083_v18, %v5086_v36  ;;  %v5090_v48 = vsel %vm13443_vm8, %v11432_v17, %v5089_v57  ;;  %v5091_v54 = vrot.slane %v5089_v57, 4  ;;  %4355 = vrot.lane.b32.xlu0 %v13113_v7, %s13319_s11 }
 0x1f8   : > { %4204 = vst.msk [vmem:[#allocation4 + $0x80] sm:$0xff] %vm4195_vm4, %v14416_v14  ;;  %v5096_v27 = vrot.slane %v4963_v34, 5  ;;  %v4971_v62 = vld [vmem:[#allocation2 + $0xa8] sm:$0xe]  ;;  %11470 = vmatprep.mubr.msk.bf16.mxu0 %vm2280_vm0, %v5232_v58  ;;  %v5099_v8 = vrot.slane %v14859_v19, 5  ;;  %v11434_v4 = vrot.slane %v4965_v50, 9  ;;  %v4887_v30 = vpop.permute.xlu0 %4886  ;;  %v14898_v6 = vpop.permute.xlu1 %3124 }
 0x1f9   : > { %5213 = vst.msk [vmem:[#allocation4 + $0x68] sm:$0xff] %vm2280_vm0, %v11446_v24  ;;  %v5103_v14 = vrot.slane %v4966_v29, 5  ;;  %v5106_v33 = vrot.slane %v4967_v3, 5  ;;  %v4972_v31 = vld [vmem:[#allocation2 + $0xac] sm:$0xf]  ;;  %5447 = vmatmul.mubr.bf16.gmra.mrb[16].mxu0 %v5231_v12  ;;  %5214 = vst.msk [vmem:[#allocation4 + $0x78] sm:$0xff] %vm2280_vm0, %v11447_v2  ;;  %v5093_v0 = vsel %vm13443_vm8, %v5091_v54, %v5092_v25 }
 0x1fa   : > { %4382 = vst.msk [vmem:[#allocation4 + $0x80] sm:$0xff] %vm4373_vm5, %v16998_v52  ;;  %v5097_v60 = vsel %vm13443_vm8, %v11433_v16, %v5096_v27  ;;  %v5098_v13 = vrot.slane %v5096_v27, 4  ;;  %v11435_v46 = vrot.slane %v4968_v59, 9  ;;  %v4973_v9 = vld [vmem:[#allocation2 + $0xb0] sm:$0x1]  ;;  %v11448_v20 = vcombine.low %v5090_v48, %v5093_v0  ;;  %v5233_v16 = vld [vmem:[#allocation4 + $0x50] sm:$0xff] }
 0x1fb   : > { %v4974_v45 = vld [vmem:[#allocation2 + $0xb4] sm:$0xe]  ;;  %v5104_v56 = vsel %vm13443_vm8, %v11434_v4, %v5103_v14  ;;  %v5105_v32 = vrot.slane %v5103_v14, 4  ;;  %v5110_v40 = vrot.slane %v4969_v5, 5  ;;  %v4975_v63 = vld [vmem:[#allocation2 + $0xb8] sm:$0xf] }
 0x1fc   : > { %v4976_v37 = vld [vmem:[#allocation2 + $0xbc] sm:$0x1]  ;;  %4927 = vst.msk [vmem:[#allocation4 + $0x80] sm:$0xff] %vm4918_vm10, %v4887_v30  ;;  %v5100_v49 = vsel %vm13443_vm8, %v5098_v13, %v5099_v8  ;;  %v5113_v47 = vrot.slane %v4970_v26, 5  ;;  %v11436_v41 = vrot.slane %v4971_v62, 9  ;;  %v5117_v53 = vrot.slane %v4972_v31, 5  ;;  %v3123_v29 = vpop.permute.xlu0 %3122 }
 0x1fd   : > { %v4977_v61 = vld [vmem:[#allocation2 + $0xc0] sm:$0xe]  ;;  %5215 = vst.msk [vmem:[#allocation4 + $0x88] sm:$0xff] %vm2280_vm0, %v11448_v20  ;;  %v11449_v34 = vcombine.low %v5097_v60, %v5100_v49  ;;  %v5107_v39 = vsel %vm13443_vm8, %v5105_v32, %v5106_v33  ;;  %v5111_v44 = vsel %vm13443_vm8, %v11435_v46, %v5110_v40  ;;  %v5112_v43 = vrot.slane %v5110_v40, 4  ;;  %v4978_v22 = vld [vmem:[#allocation2 + $0xc4] sm:$0xf] }
 0x1fe   : > { %v4979_v19 = vld [vmem:[#allocation2 + $0xc8] sm:$0x1]  ;;  %v11450_v7 = vcombine.low %v5104_v56, %v5107_v39  ;;  %v5118_v38 = vsel %vm13443_vm8, %v11436_v41, %v5117_v53  ;;  %v5119_v51 = vrot.slane %v5117_v53, 4  ;;  %v5120_v18 = vrot.slane %v4973_v9, 5  ;;  %v4980_v28 = vld [vmem:[#allocation2 + $0xcc] sm:$0xe] }
 0x1ff   : > { %v5234_v50 = vld [vmem:[#allocation4 + $0x58] sm:$0xff]  ;;  %5216 = vst.msk [vmem:[#allocation4 + $0x98] sm:$0xff] %vm2280_vm0, %v11449_v34  ;;  %v5114_v3 = vsel %vm13443_vm8, %v5112_v43, %v5113_v47  ;;  %v11437_v55 = vrot.slane %v4974_v45, 9  ;;  %v5124_v42 = vrot.slane %v4975_v63, 5  ;;  %v5127_v11 = vrot.slane %v4976_v37, 5  ;;  %v3847_v27 = vpop.permute.xlu1 %3846  ;;  %v5235_v56 = vld [vmem:[#allocation4 + $0x60] sm:$0xff] }
 0x200   : > { %11471 = vmatprep.mubr.msk.bf16.mxu0 %vm2280_vm0, %v5234_v50  ;;  %v4981_v17 = vld [vmem:[#allocation2 + $0xd0] sm:$0xf]  ;;  %3162 = vst.msk [vmem:[#allocation4 + $0x90] sm:$0xff] %vm3152_vm7, %v3123_v29  ;;  %v11451_v57 = vcombine.low %v5111_v44, %v5114_v3  ;;  %v5121_v59 = vsel %vm13443_vm8, %v5119_v51, %v5120_v18  ;;  %v11438_v5 = vrot.slane %v4977_v61, 9  ;;  %v5131_v12 = vrot.slane %v4978_v22, 5  ;;  %v5236_v54 = vld [vmem:[#allocation4 + $0x68] sm:$0xff] }
 0x201   : > { %5217 = vst.msk [vmem:[#allocation4 + $0xa8] sm:$0xff] %vm2280_vm0, %v11450_v7  ;;  %v4982_v24 = vld [vmem:[#allocation2 + $0xd4] sm:$0x1]  ;;  %v394_v25 = vld [vmem:[#allocation3 + $0xc] sm:$0x1]  ;;  %v11452_v26 = vcombine.low %v5118_v38, %v5121_v59  ;;  %v5125_v58 = vsel %vm13443_vm8, %v11437_v55, %v5124_v42  ;;  %v5126_v2 = vrot.slane %v5124_v42, 4  ;;  %5455 = vmatmul.mubr.bf16.gmra.mrb[20].mxu0 %v5233_v16 }
 0x202   : > { %3339 = vst.msk [vmem:[#allocation4 + $0x90] sm:$0xff] %vm3329_vm9, %v14824_v1  ;;  %v5134_v48 = vrot.slane %v4979_v19, 5  ;;  %v5132_v62 = vsel %vm13443_vm8, %v11438_v5, %v5131_v12  ;;  %v5133_v52 = vrot.slane %v5131_v12, 4  ;;  %v11439_v8 = vrot.slane %v4980_v28, 9  ;;  %11472 = vmatprep.mubr.msk.bf16.mxu0 %vm2280_vm0, %v5236_v54  ;;  %v5238_v32 = vld [vmem:[#allocation4 + $0x78] sm:$0xff]  ;;  %v5237_v47 = vld [vmem:[#allocation4 + $0x70] sm:$0xff] }
 0x203   : > { %5218 = vst.msk [vmem:[#allocation4 + $0xb8] sm:$0xff] %vm2280_vm0, %v11451_v57  ;;  %v5138_v4 = vrot.slane %v4981_v17, 5  ;;  %5219 = vst.msk [vmem:[#allocation4 + $0xc8] sm:$0xff] %vm2280_vm0, %v11452_v26  ;;  %v5128_v1 = vsel %vm13443_vm8, %v5126_v2, %v5127_v11  ;;  %v5141_v14 = vrot.slane %v4982_v24, 5  ;;  %v395_v33 = vsel %vm14919_vm13, 0, %v394_v25  ;;  %v4346_v45 = vpop.permute.xlu1 %4345  ;;  %v5239_v34 = vld [vmem:[#allocation4 + $0x80] sm:$0xff] }
 0x204   : > { %v11453_v31 = vcombine.low %v5125_v58, %v5128_v1  ;;  %v5135_v0 = vsel %vm13443_vm8, %v5133_v52, %v5134_v48  ;;  %396 = vst [vmem:[#allocation3 + $0xc] sm:$0x1] %v395_v33  ;;  %v3845_v9 = vpop.permute.xlu0 %3844  ;;  %v443_v55 = vld [vmem:[#allocation3 + $0x14] sm:$0x1]  ;;  %v13123_v17 = vld [vmem:[%s16924_s4 + $0x40] sm:$0xff]   ;;  %vm5991_vm14 = vcmask 1043456  }
 0x205   : > { %v5139_v60 = vsel %vm13443_vm8, %v11439_v8, %v5138_v4  ;;  %v5140_v13 = vrot.slane %v5138_v4, 4  ;;  %v11454_v46 = vcombine.low %v5132_v62, %v5135_v0  ;;  %3884 = vst.msk [vmem:[#allocation4 + $0x90] sm:$0xff] %vm3874_vm2, %v3845_v9  ;;  %v444_v42 = vsel %vm14970_vm1, 0, %v443_v55  ;;  %v13124_v57 = vld [vmem:[%s16924_s4 + $0x48] sm:$0xff]   ;;  %v397_v59 = vld [vmem:[#allocation3 + $0x18] sm:$0x1]  ;;  %12319 = vmatprep.subr.bf16.mxu0 %v13123_v17 }
 0x206   : > { %5220 = vst.msk [vmem:[#allocation4 + $0xd8] sm:$0xff] %vm2280_vm0, %v11453_v31  ;;  %v5242_v39 = vld [vmem:[#allocation4 + $0x98] sm:$0xff]  ;;  %445 = vst [vmem:[#allocation3 + $0x14] sm:$0x1] %v444_v42  ;;  %v398_v5 = vsel %vm14919_vm13, 0, %v397_v59  ;;  %12320 = vmatpush3.bf16.msra.mxu0 %v13123_v17  ;;  %v13125_v8 = vld [vmem:[%s16924_s4 + $0x50] sm:$0xff]  }
 0x207   : > { %v5142_v30 = vsel %vm13443_vm8, %v5140_v13, %v5141_v14  ;;  %5221 = vst.msk [vmem:[#allocation4 + $0xe8] sm:$0xff] %vm2280_vm0, %v11454_v46  ;;  %399 = vst [vmem:[#allocation3 + $0x18] sm:$0x1] %v398_v5  ;;  %12321 = vmatprep.subr.bf16.mxu0 %v13124_v57  ;;  %v13126_v4 = vld [vmem:[%s16924_s4 + $0x58] sm:$0xff]   ;;  %v449_v46 = vld [vmem:[#allocation3 + $0x2c] sm:$0x1] }
 0x208   : > { %v11455_v20 = vcombine.low %v5139_v60, %v5142_v30  ;;  %4205 = vst.msk [vmem:[#allocation4 + $0x90] sm:$0xff] %vm4195_vm4, %v14845_v23  ;;  %v4344_v40 = vpop.permute.xlu0 %4343  ;;  %v5240_v23 = vld [vmem:[#allocation4 + $0x88] sm:$0xff]  ;;  %v450_v9 = vsel %vm14970_vm1, 0, %v449_v46  ;;  %v13127_v30 = vld [vmem:[%s16924_s4 + $0x60] sm:$0xff]   ;;  %v458_v59 = vld [vmem:[#allocation3 + $0x50] sm:$0x1] }
 0x209   : > { %5463 = vmatmul.mubr.bf16.gmra.mrb[24].mxu0 %v5235_v56  ;;  %4383 = vst.msk [vmem:[#allocation4 + $0x90] sm:$0xff] %vm4373_vm5, %v4344_v40  ;;  %v2803_v63 = vpop.permute.xlu1 %2802  ;;  %v5244_v19 = vld [vmem:[#allocation4 + $0xa8] sm:$0xff]  ;;  %451 = vst [vmem:[#allocation3 + $0x2c] sm:$0x1] %v450_v9  ;;  %v403_v56 = vld [vmem:[#allocation3 + $0x30] sm:$0x1] }
 0x20a   : > { %5222 = vst.msk [vmem:[#allocation4 + $0xf8] sm:$0xff] %vm2280_vm0, %v11455_v20  ;;  %11473 = vmatprep.mubr.msk.bf16.mxu0 %vm2280_vm0, %v5238_v32  ;;  %v5246_v18 = vld [vmem:[#allocation4 + $0xb8] sm:$0xff]  ;;  %v5248_v26 = vld [vmem:[#allocation4 + $0xc8] sm:$0xff]  ;;  %12322 = vmatpush3.bf16.msra.mxu0 %v13124_v57  ;;  %v404_v32 = vsel %vm14919_vm13, 0, %v403_v56  ;;  %v6153_v5 = vld [vmem:[#allocation3 + $0x8] sm:$0x1] }
 0x20b   : > { %4928 = vst.msk [vmem:[#allocation4 + $0x90] sm:$0xff] %vm4918_vm10, %v14872_v15  ;;  %v400_v1 = vld [vmem:[#allocation3 + $0x24] sm:$0x1]  ;;  %12323 = vmatprep.subr.bf16.mxu0 %v13125_v8  ;;  %v13128_v20 = vld [vmem:[%s16924_s4 + $0x68] sm:$0xff]   ;;  %405 = vst [vmem:[#allocation3 + $0x30] sm:$0x1] %v404_v32 }
 0x20c   : > { %2840 = vst.msk [vmem:[#allocation4 + $0xb0] sm:$0xff] %vm2828_vm6, %v2803_v63  ;;  %v401_v14 = vsel %vm14919_vm13, 0, %v400_v1  ;;  %v452_v63 = vld [vmem:[#allocation3 + $0x38] sm:$0x1]  ;;  %v464_v9 = vld [vmem:[#allocation3 + $0x68] sm:$0x1] }
 0x20d   : > { %v3304_v37 = vpop.permute.xlu1 %3303  ;;  %v2801_v49 = vpop.permute.xlu0 %2800  ;;  %402 = vst [vmem:[#allocation3 + $0x24] sm:$0x1] %v401_v14  ;;  %v5250_v0 = vld [vmem:[#allocation4 + $0xd8] sm:$0xff]  ;;  %v461_v14 = vld [vmem:[#allocation3 + $0x5c] sm:$0x1] }
 0x20e   : > { %2839 = vst.msk [vmem:[#allocation4 + $0xa0] sm:$0xff] %vm2828_vm6, %v2801_v49  ;;  %12324 = vmatpush3.bf16.msra.mxu0 %v13125_v8  ;;  %v453_v49 = vsel %vm14970_vm1, 0, %v452_v63  ;;  %v467_v32 = vld [vmem:[#allocation3 + $0x74] sm:$0x1]  ;;  %v13131_v63 = vld [vmem:[%s16924_s4 + $0xc0] sm:$0xff]  }
 0x20f   : > { %3163 = vst.msk [vmem:[#allocation4 + $0xa0] sm:$0xff] %vm3152_vm7, %v14898_v6  ;;  %12325 = vmatprep.subr.bf16.mxu0 %v13126_v4  ;;  %454 = vst [vmem:[#allocation3 + $0x38] sm:$0x1] %v453_v49  ;;  %v421_v49 = vld [vmem:[#allocation3 + $0x78] sm:$0x1]  ;;  %12751 = vmatprep.subr.bf16.mxu1 %v13131_v63 }
 0x210   : > { %12759 = vmatpush3.bf16.msra.mxu1 %v13131_v63 }
 0x211   : > { %5471 = vmatmul.mubr.bf16.gmra.mrb[28].mxu0 %v5237_v47  ;;  %v4170_v41 = vpop.permute.xlu1 %4169  ;;  %v3302_v53 = vpop.permute.xlu0 %3301 }
 0x212   : > { %11474 = vmatprep.mubr.msk.bf16.mxu0 %vm2280_vm0, %v5240_v23  ;;  %3340 = vst.msk [vmem:[#allocation4 + $0xa0] sm:$0xff] %vm3329_vm9, %v3302_v53  ;;  %v5241_v22 = vld [vmem:[#allocation4 + $0x90] sm:$0xff]  ;;  %12326 = vmatpush3.bf16.msra.mxu0 %v13126_v4  ;;  %v13129_v23 = vld [vmem:[%s16924_s4 + $0x70] sm:$0xff]   ;;  %v13130_v53 = vld [vmem:[%s16924_s4 + $0x78] sm:$0xff]  }
 0x213   : > { %3885 = vst.msk [vmem:[#allocation4 + $0xa0] sm:$0xff] %vm3874_vm2, %v3847_v27  ;;  %v446_v27 = vld [vmem:[#allocation3 + $0x20] sm:$0x1]  ;;  %12327 = vmatprep.subr.bf16.mxu0 %v13127_v30 }
 0x214   : > { %v447_v62 = vsel %vm14970_vm1, 0, %v446_v27  ;;  %v6189_v27 = vshll.u32 %v6153_v5, 16 }
 0x215   : > { %v4168_v15 = vpop.permute.xlu0 %4167  ;;  %v4893_v61 = vpop.permute.xlu1 %4892  ;;  %448 = vst [vmem:[#allocation3 + $0x20] sm:$0x1] %v447_v62 }
 0x216   : > { %4206 = vst.msk [vmem:[#allocation4 + $0xa0] sm:$0xff] %vm4195_vm4, %v4168_v15  ;;  %12328 = vmatpush3.bf16.msra.mxu0 %v13127_v30  ;;  %v406_v15 = vld [vmem:[#allocation3 + $0x3c] sm:$0x1]  ;;  %v6191_v1 = vrot.slane %v6189_v27, 5  ;;  %v465_v30 = vsel %vm14970_vm1, 0, %v464_v9 }
 0x217   : > { %4384 = vst.msk [vmem:[#allocation4 + $0xa0] sm:$0xff] %vm4373_vm5, %v4346_v45  ;;  %12329 = vmatprep.subr.bf16.mxu0 %v13128_v20  ;;  %466 = vst [vmem:[#allocation3 + $0x68] sm:$0x1] %v465_v30 }
 0x219   : > { %5479 = vmatmul.mubr.bf16.gmra.mrb[32].mxu0 %v5239_v34  ;;  %v4891_v6 = vpop.permute.xlu0 %4890  ;;  %v3129_v44 = vpop.permute.xlu1 %3128  ;;  %v407_v34 = vsel %vm14919_vm13, 0, %v406_v15  ;;  %v424_v15 = vld [vmem:[#allocation3 + $0x84] sm:$0x1] }
 0x21a   : > { %11475 = vmatprep.mubr.msk.bf16.mxu0 %vm2280_vm0, %v5242_v39  ;;  %4929 = vst.msk [vmem:[#allocation4 + $0xa0] sm:$0xff] %vm4918_vm10, %v4891_v6  ;;  %12330 = vmatpush3.bf16.msra.mxu0 %v13128_v20  ;;  %408 = vst [vmem:[#allocation3 + $0x3c] sm:$0x1] %v407_v34  ;;  %v455_v6 = vld [vmem:[#allocation3 + $0x44] sm:$0x1]  ;;  %v425_v34 = vsel %vm14919_vm13, 0, %v424_v15 }
 0x21b   : > { %12331 = vmatprep.subr.bf16.mxu0 %v13129_v23  ;;  %v418_v20 = vld [vmem:[#allocation3 + $0x6c] sm:$0x1]  ;;  %426 = vst [vmem:[#allocation3 + $0x84] sm:$0x1] %v425_v34 }
 0x21c   : > { %v419_v56 = vsel %vm14919_vm13, 0, %v418_v20 }
 0x21d   : > { %v3127_v43 = vpop.permute.xlu0 %3126  ;;  %420 = vst [vmem:[#allocation3 + $0x6c] sm:$0x1] %v419_v56 }
 0x21e   : > { %3164 = vst.msk [vmem:[#allocation4 + $0xb0] sm:$0xff] %vm3152_vm7, %v3127_v43  ;;  %12332 = vmatpush3.bf16.msra.mxu0 %v13129_v23  ;;  %v6105_v43 = vld [vmem:[#allocation3] sm:$0xf] }
 0x21f   : > { %3341 = vst.msk [vmem:[#allocation4 + $0xb0] sm:$0xff] %vm3329_vm9, %v3304_v37  ;;  %12333 = vmatprep.subr.bf16.mxu0 %v13130_v53  ;;  %v470_v23 = vld [vmem:[#allocation3 + $0x80] sm:$0x1] }
 0x221   : > { %5487 = vmatmul.mubr.bf16.gmra.mrb[36].mxu0 %v5241_v22  ;;  %v3851_v50 = vpop.permute.xlu1 %3850  ;;  %v5243_v38 = vld [vmem:[#allocation4 + $0xa0] sm:$0xff]  ;;  %v6106_v22 = vld [vmem:[#allocation3 + $0x4] sm:$0xf] }
 0x222   : > { %11476 = vmatprep.mubr.msk.bf16.mxu0 %vm2280_vm0, %v5244_v19  ;;  %12334 = vmatpush3.bf16.msra.mxu0 %v13130_v53  ;;  %v13133_v53 = vld [vmem:[%s16924_s4 + $0xd0] sm:$0xff]  }
 0x224   : > { %v3849_v7 = vpop.permute.xlu0 %3848 }
 0x225   : > { %v4350_v51 = vpop.permute.xlu1 %4349  ;;  %3886 = vst.msk [vmem:[#allocation4 + $0xb0] sm:$0xff] %vm3874_vm2, %v3849_v7  ;;  %v6173_v7 = vshll.u32 %v6105_v43, 16 }
 0x226   : > { %4207 = vst.msk [vmem:[#allocation4 + $0xb0] sm:$0xff] %vm4195_vm4, %v4170_v41  ;;  %v5252_v41 = vld [vmem:[#allocation4 + $0xe8] sm:$0xff] }
 0x228   : > { %v4348_v29 = vpop.permute.xlu0 %4347 }
 0x229   : > { %5495 = vmatmul.mubr.bf16.gmra.mrb[40].mxu0 %v5243_v38  ;;  %v2807_v3 = vpop.permute.xlu1 %2806  ;;  %4385 = vst.msk [vmem:[#allocation4 + $0xb0] sm:$0xff] %vm4373_vm5, %v4348_v29  ;;  %v6179_v38 = vshll.u32 %v6106_v22, 16  ;;  %v409_v29 = vld [vmem:[#allocation3 + $0x48] sm:$0x1] }
 0x22a   : > { %11477 = vmatprep.mubr.msk.bf16.mxu0 %vm2280_vm0, %v5246_v18  ;;  %2842 = vst.msk [vmem:[#allocation4 + $0xd0] sm:$0xff] %vm2828_vm6, %v2807_v3  ;;  %v410_v3 = vsel %vm14919_vm13, 0, %v409_v29 }
 0x22b   : > { %4930 = vst.msk [vmem:[#allocation4 + $0xb0] sm:$0xff] %vm4918_vm10, %v4893_v61  ;;  %v6181_v17 = vrot.slane %v6179_v38, 5  ;;  %411 = vst [vmem:[#allocation3 + $0x48] sm:$0x1] %v410_v3  ;;  %v476_v38 = vld [vmem:[#allocation3 + $0x98] sm:$0x1] }
 0x22d   : > { %v3308_v11 = vpop.permute.xlu1 %3307 }
 0x22e   : > { %v2805_v12 = vpop.permute.xlu0 %2804 }
 0x22f   : > { %2841 = vst.msk [vmem:[#allocation4 + $0xc0] sm:$0xff] %vm2828_vm6, %v2805_v12  ;;  %v459_v12 = vsel %vm14970_vm1, 0, %v458_v59  ;;  %v430_v59 = vld [vmem:[#allocation3 + $0x9c] sm:$0x1] }
 0x230   : > { %3165 = vst.msk [vmem:[#allocation4 + $0xc0] sm:$0xff] %vm3152_vm7, %v3129_v44  ;;  %v456_v44 = vsel %vm14970_vm1, 0, %v455_v6  ;;  %460 = vst [vmem:[#allocation3 + $0x50] sm:$0x1] %v459_v12  ;;  %v473_v6 = vld [vmem:[#allocation3 + $0x8c] sm:$0x1] }
 0x231   : > { %v4174_v24 = vpop.permute.xlu1 %4173  ;;  %457 = vst [vmem:[#allocation3 + $0x44] sm:$0x1] %v456_v44  ;;  %v474_v44 = vsel %vm14970_vm1, 0, %v473_v6  ;;  %v431_v5 = vsel %vm14919_vm13, 0, %v430_v59 }
 0x232   : > { %v5245_v25 = vld [vmem:[#allocation4 + $0xb0] sm:$0xff]  ;;  %v3306_v16 = vpop.permute.xlu0 %3305  ;;  %475 = vst [vmem:[#allocation3 + $0x8c] sm:$0x1] %v474_v44  ;;  %432 = vst [vmem:[#allocation3 + $0x9c] sm:$0x1] %v431_v5 }
 0x233   : > { %5503 = vmatmul.mubr.bf16.gmra.mrb[44].mxu0 %v5245_v25  ;;  %3342 = vst.msk [vmem:[#allocation4 + $0xc0] sm:$0xff] %vm3329_vm9, %v3306_v16  ;;  %v5254_v16 = vld [vmem:[#allocation4 + $0xf8] sm:$0xff] }
 0x234   : > { %11478 = vmatprep.mubr.msk.bf16.mxu0 %vm2280_vm0, %v5248_v26  ;;  %3887 = vst.msk [vmem:[#allocation4 + $0xc0] sm:$0xff] %vm3874_vm2, %v3851_v50  ;;  %v6170_v50 = vshrl.u32 %v6105_v43, 16  ;;  %v13136_v43 = vld [vmem:[%s16924_s4 + $0xe8] sm:$0xff]  }
 0x235   : > { %v482_v44 = vld [vmem:[#allocation3 + $0xb0] sm:$0x1] }
 0x236   : > { %v4172_v58 = vpop.permute.xlu0 %4171  ;;  %v6172_v42 = vrot.slane %v6170_v50, 4 }
 0x237   : > { %v4897_v2 = vpop.permute.xlu1 %4896  ;;  %4208 = vst.msk [vmem:[#allocation4 + $0xc0] sm:$0xff] %vm4195_vm4, %v4172_v58 }
 0x238   : > { %4386 = vst.msk [vmem:[#allocation4 + $0xc0] sm:$0xff] %vm4373_vm5, %v4350_v51  ;;  %v6183_v51 = vshrl.u32 %v6106_v22, 16  ;;  %v13137_v22 = vld [vmem:[%s16924_s4 + $0xf0] sm:$0xff]  }
 0x23a   : > { %v6185_v57 = vrot.slane %v6183_v51, 4  ;;  %v477_v51 = vsel %vm14970_vm1, 0, %v476_v38 }
 0x23b   : > { %478 = vst [vmem:[#allocation3 + $0x98] sm:$0x1] %v477_v51  ;;  %v483_v51 = vsel %vm14970_vm1, 0, %v482_v44 }
 0x23c   : > { %484 = vst [vmem:[#allocation3 + $0xb0] sm:$0x1] %v483_v51 }
 0x23d   : > { %v4895_v48 = vpop.permute.xlu0 %4894 }
 0x23e   : > { %4931 = vst.msk [vmem:[#allocation4 + $0xc0] sm:$0xff] %vm4918_vm10, %v4895_v48  ;;  %v3133_v54 = vpop.permute.xlu1 %3132 }
 0x241   : > { %v3131_v52 = vpop.permute.xlu0 %3130 }
 0x242   : > { %3166 = vst.msk [vmem:[#allocation4 + $0xd0] sm:$0xff] %vm3152_vm7, %v3131_v52 }
 0x243   : > { %3343 = vst.msk [vmem:[#allocation4 + $0xd0] sm:$0xff] %vm3329_vm9, %v3308_v11  ;;  %v6175_v11 = vrot.slane %v6173_v7, 5  ;;  %v13139_v7 = vld [vmem:[%s16924_s4 + $0xf8] sm:$0xff]  }
 0x245   : > { %v3855_v33 = vpop.permute.xlu1 %3854  ;;  %v5247_v31 = vld [vmem:[#allocation4 + $0xc0] sm:$0xff]  ;;  %v6176_v48 = vor.u32 %v6175_v11, %v6172_v42 }
 0x246   : > { %5511 = vmatmul.mubr.bf16.gmra.mrb[48].mxu0 %v5247_v31  ;;  %v3853_v60 = vpop.permute.xlu0 %3852  ;;  %v415_v31 = vld [vmem:[#allocation3 + $0x60] sm:$0x1] }
 0x247   : > { %11479 = vmatprep.mubr.msk.bf16.mxu0 %vm2280_vm0, %v5250_v0  ;;  %3888 = vst.msk [vmem:[#allocation4 + $0xd0] sm:$0xff] %vm3874_vm2, %v3853_v60  ;;  %v6177_v8 = vrot.slane %v6176_v48, 4 }
 0x248   : > { %4209 = vst.msk [vmem:[#allocation4 + $0xd0] sm:$0xff] %vm4195_vm4, %v4174_v24  ;;  %v412_v24 = vld [vmem:[#allocation3 + $0x54] sm:$0x1] }
 0x249   : > { %v4354_v13 = vpop.permute.xlu1 %4353  ;;  %v413_v26 = vsel %vm14919_vm13, 0, %v412_v24  ;;  %v6182_v0 = vsel %vm13482_vm11, %v6177_v8, %v6181_v17 }
 0x24a   : > { %v4352_v45 = vpop.permute.xlu0 %4351  ;;  %414 = vst [vmem:[#allocation3 + $0x54] sm:$0x1] %v413_v26  ;;  %v479_v26 = vld [vmem:[#allocation3 + $0xa4] sm:$0x1] }
 0x24b   : > { %4387 = vst.msk [vmem:[#allocation4 + $0xd0] sm:$0xff] %vm4373_vm5, %v4352_v45 }
 0x24c   : > { %4932 = vst.msk [vmem:[#allocation4 + $0xd0] sm:$0xff] %vm4918_vm10, %v4897_v2 }
 0x24d   : > { %v2811_v40 = vpop.permute.xlu1 %2810 }
 0x24e   : > { %2844 = vst.msk [vmem:[#allocation4 + $0xf0] sm:$0xff] %vm2828_vm6, %v2811_v40  ;;  %v468_v40 = vsel %vm14970_vm1, 0, %v467_v32 }
 0x24f   : > { %469 = vst [vmem:[#allocation3 + $0x74] sm:$0x1] %v468_v40 }
 0x251   : > { %v2809_v37 = vpop.permute.xlu0 %2808  ;;  %v3312_v18 = vpop.permute.xlu1 %3311 }
 0x252   : > { %2843 = vst.msk [vmem:[#allocation4 + $0xe0] sm:$0xff] %vm2828_vm6, %v2809_v37  ;;  %v13132_v37 = vld [vmem:[%s16924_s4 + $0xc8] sm:$0xff]  }
 0x253   : > { %3167 = vst.msk [vmem:[#allocation4 + $0xe0] sm:$0xff] %vm3152_vm7, %v3133_v54  ;;  %v5249_v47 = vld [vmem:[#allocation4 + $0xd0] sm:$0xff]  ;;  %v6186_v54 = vor.u32 %v6185_v57, %v6181_v17  ;;  %12752 = vmatprep.subr.bf16.mxu1 %v13132_v37 }
 0x254   : > { %5519 = vmatmul.mubr.bf16.gmra.mrb[52].mxu0 %v5249_v47  ;;  %v422_v47 = vsel %vm14919_vm13, 0, %v421_v49  ;;  %12760 = vmatpush3.bf16.msra.mxu1 %v13132_v37 }
 0x255   : > { %v3310_v61 = vpop.permute.xlu0 %3309  ;;  %11480 = vmatprep.mubr.msk.bf16.mxu0 %vm2280_vm0, %v5252_v41  ;;  %v4178_v25 = vpop.permute.xlu1 %4177  ;;  %v6187_v4 = vrot.slane %v6186_v54, 4  ;;  %423 = vst [vmem:[#allocation3 + $0x78] sm:$0x1] %v422_v47  ;;  %v471_v41 = vsel %vm14970_vm1, 0, %v470_v23  ;;  %12753 = vmatprep.subr.bf16.mxu1 %v13133_v53  ;;  %v480_v54 = vsel %vm14970_vm1, 0, %v479_v26 }
 0x256   : > { %3344 = vst.msk [vmem:[#allocation4 + $0xe0] sm:$0xff] %vm3329_vm9, %v3310_v61  ;;  %472 = vst [vmem:[#allocation3 + $0x80] sm:$0x1] %v471_v41  ;;  %v13134_v61 = vld [vmem:[%s16924_s4 + $0xd8] sm:$0xff]  }
 0x257   : > { %3889 = vst.msk [vmem:[#allocation4 + $0xe0] sm:$0xff] %vm3874_vm2, %v3855_v33  ;;  %v462_v33 = vsel %vm14970_vm1, 0, %v461_v14  ;;  %v6192_v60 = vsel %vm13482_vm11, %v6187_v4, %v6191_v1  ;;  %481 = vst [vmem:[#allocation3 + $0xa4] sm:$0x1] %v480_v54 }
 0x258   : > { %463 = vst [vmem:[#allocation3 + $0x5c] sm:$0x1] %v462_v33  ;;  %v11530_v46 = vcombine.low %v6182_v0, %v6192_v60  ;;  %12761 = vmatpush3.bf16.msra.mxu1 %v13133_v53  ;;  %v5997_v33 = vld [vmem:[#allocation3 + $0x14] sm:$0x1] }
 0x259   : > { %v4176_v39 = vpop.permute.xlu0 %4175  ;;  %12754 = vmatprep.subr.bf16.mxu1 %v13134_v61 }
 0x25a   : > { %4210 = vst.msk [vmem:[#allocation4 + $0xe0] sm:$0xff] %vm4195_vm4, %v4176_v39  ;;  %v13135_v39 = vld [vmem:[%s16924_s4 + $0xe0] sm:$0xff]  }
 0x25b   : > { %4388 = vst.msk [vmem:[#allocation4 + $0xe0] sm:$0xff] %vm4373_vm5, %v4354_v13  ;;  %v416_v13 = vsel %vm14919_vm13, 0, %v415_v31 }
 0x25c   : > { %417 = vst [vmem:[#allocation3 + $0x60] sm:$0x1] %v416_v13  ;;  %12762 = vmatpush3.bf16.msra.mxu1 %v13134_v61 }
 0x25d   : > { %v4899_v19 = vpop.permute.xlu0 %4898  ;;  %12755 = vmatprep.subr.bf16.mxu1 %v13135_v39 }
 0x25e   : > { %4933 = vst.msk [vmem:[#allocation4 + $0xe0] sm:$0xff] %vm4918_vm10, %v4899_v19  ;;  %v427_v19 = vld [vmem:[#allocation3 + $0x90] sm:$0x1] }
 0x25f   : > { %v428_v50 = vsel %vm14919_vm13, 0, %v427_v19 }
 0x260   : > { %12763 = vmatpush3.bf16.msra.mxu1 %v13135_v39  ;;  %429 = vst [vmem:[#allocation3 + $0x90] sm:$0x1] %v428_v50 }
 0x261   : > { %v3135_v55 = vpop.permute.xlu0 %3134  ;;  %12756 = vmatprep.subr.bf16.mxu1 %v13136_v43 }
 0x262   : > { %3168 = vst.msk [vmem:[#allocation4 + $0xf0] sm:$0xff] %vm3152_vm7, %v3135_v55 }
 0x263   : > { %3345 = vst.msk [vmem:[#allocation4 + $0xf0] sm:$0xff] %vm3329_vm9, %v3312_v18  ;;  %v15110_v18 = vld [vmem:[%s16923_s3] ss:$0 sm:$0xff] }
 0x264   : > { %12764 = vmatpush3.bf16.msra.mxu1 %v13136_v43 }
 0x265   : > { %v3857_v58 = vpop.permute.xlu0 %3856  ;;  %v5251_v2 = vld [vmem:[#allocation4 + $0xe0] sm:$0xff]  ;;  %12757 = vmatprep.subr.bf16.mxu1 %v13137_v22 }
 0x266   : > { %3890 = vst.msk [vmem:[#allocation4 + $0xf0] sm:$0xff] %vm3874_vm2, %v3857_v58  ;;  %5527 = vmatmul.mubr.bf16.gmra.mrb[56].mxu0 %v5251_v2 }
 0x267   : > { %4211 = vst.msk [vmem:[#allocation4 + $0xf0] sm:$0xff] %vm4195_vm4, %v4178_v25  ;;  %11481 = vmatprep.mubr.msk.bf16.mxu0 %vm2280_vm0, %v5254_v16  ;;  %vm15119_vm0 = vmand %vm5991_vm14, %vm334_vm3 }
 0x268   : > { %12765 = vmatpush3.bf16.msra.mxu1 %v13137_v22 }
 0x269   : > { %v4901_v62 = vpop.permute.xlu1 %4900  ;;  %v4356_v52 = vpop.permute.xlu0 %4355  ;;  %12758 = vmatprep.subr.bf16.mxu1 %v13139_v7 }
 0x26a   : > { %4389 = vst.msk [vmem:[#allocation4 + $0xf0] sm:$0xff] %vm4373_vm5, %v4356_v52  ;;  %v433_v52 = vld [vmem:[#allocation3 + $0xa8] sm:$0x1] }
 0x26b   : > { %4934 = vst.msk [vmem:[#allocation4 + $0xf0] sm:$0xff] %vm4918_vm10, %v4901_v62  ;;  %v5993_v62 = vld [vmem:[#allocation3 + $0xc] sm:$0xf]  ;;  %v434_v14 = vsel %vm14919_vm13, 0, %v433_v52 }
 0x26c   : > { %12766 = vmatpush3.bf16.msra.mxu1 %v13139_v7  ;;  %435 = vst [vmem:[#allocation3 + $0xa8] sm:$0x1] %v434_v14 }
 0x272   : > { %v5253_v45 = vld [vmem:[#allocation4 + $0xf0] sm:$0xff] }
 0x273   : > { %5535 = vmatmul.mubr.bf16.gmra.mrb[60].mxu0 %v5253_v45 }
 0x274   : > { %12335 = vmatprep.mubr.bf16.mxu0 %v11530_v46 }
 0x2a3   : > { %v5416_v29 = vpop.f32.mrb[0].mxu0 }
 0x2a4   : > { %v5417_v3 = vadd.f32 %v15110_v18, %v5416_v29  ;;  %v5418_v55 = vpop.f32.mrb[1].mxu0  ;;  %v436_v29 = vld [vmem:[#allocation3 + $0xb4] sm:$0x1] }
 0x2a5   : > { %v5419_v42 = vpop.f32.mrb[2].mxu0  ;;  %v437_v5 = vsel %vm14919_vm13, 0, %v436_v29 }
 0x2a6   : > { %v5543_v11 = vmax.f32 %v5417_v3, 0.0  ;;  %v5420_v17 = vadd.f32 %v15110_v18, %v5419_v42  ;;  %v5421_v57 = vpop.f32.mrb[3].mxu0  ;;  %438 = vst [vmem:[#allocation3 + $0xb4] sm:$0x1] %v437_v5 }
 0x2a8   : > { %v11944_v12 = vpack.c.bf16 %v5543_v11, %v5543_v11  ;;  %v5544_v24 = vmax.f32 %v5420_v17, 0.0  ;;  %v6000_v11 = vld [vmem:[#allocation3 + $0x18] sm:$0xf] }
 0x2aa   : > { %v5672_v25 = vshrl.u32 %v11944_v12, 16  ;;  %v11945_v16 = vpack.c.bf16 %v5544_v24, %v5544_v24  ;;  %v5675_v2 = vshll.u32 %v11944_v12, 16 }
 0x2ac   : > { %v5674_v58 = vrot.slane %v5672_v25, 7  ;;  %v5680_v48 = vshrl.u32 %v11945_v16, 16  ;;  %v5683_v1 = vshll.u32 %v11945_v16, 16 }
 0x2ae   : > { %v5677_v8 = vor.u32 %v5675_v2, %v5674_v58  ;;  %v5682_v4 = vrot.slane %v5680_v48, 7  ;;  %v5678_v31 = vrot.slane %v5674_v58, 4  ;;  %v6004_v2 = vld [vmem:[#allocation3 + $0x20] sm:$0x1] }
 0x2b0   : > { %v5994_v0 = vsel %vm15119_vm0, %v5677_v8, %v5993_v62  ;;  %v5685_v60 = vor.u32 %v5683_v1, %v5682_v4  ;;  %v5687_v13 = vrot.slane %v5682_v4, 4  ;;  %v5424_v45 = vpop.f32.mrb[4].mxu0 }
 0x2b1   : > { %5995 = vst [vmem:[#allocation3 + $0xc] sm:$0xf] %v5994_v0  ;;  %v5425_v30 = vadd.f32 %v15110_v18, %v5424_v45  ;;  %v5426_v20 = vpop.f32.mrb[5].mxu0 }
 0x2b2   : > { %v5686_v46 = vsel %vm13659_vm15, %v5678_v31, %v5685_v60  ;;  %v5998_v9 = vsel %vm14919_vm13, %v5687_v13, %v5997_v33  ;;  %v5427_v56 = vpop.f32.mrb[6].mxu0 }
 0x2b3   : > { %5996 = vst [vmem:[#allocation3 + $0x10] sm:$0xf] %v5686_v46  ;;  %5999 = vst [vmem:[#allocation3 + $0x14] sm:$0x1] %v5998_v9  ;;  %v5545_v32 = vmax.f32 %v5425_v30, 0.0  ;;  %v5428_v40 = vadd.f32 %v15110_v18, %v5427_v56  ;;  %v5429_v63 = vpop.f32.mrb[7].mxu0 }
 0x2b4   : > { %v6007_v63 = vld [vmem:[#allocation3 + $0x24] sm:$0xf] }
 0x2b5   : > { %v11946_v23 = vpack.c.bf16 %v5545_v32, %v5545_v32  ;;  %v5546_v41 = vmax.f32 %v5428_v40, 0.0 }
 0x2b7   : > { %v5689_v43 = vshrl.u32 %v11946_v23, 16  ;;  %v11947_v22 = vpack.c.bf16 %v5546_v41, %v5546_v41  ;;  %v5692_v55 = vshll.u32 %v11946_v23, 16 }
 0x2b8   : > { %v6107_v37 = vld [vmem:[#allocation3 + $0xc] sm:$0xf] }
 0x2b9   : > { %v6194_v49 = vshrl.u32 %v6107_v37, 16  ;;  %v6197_v47 = vshll.u32 %v6107_v37, 16  ;;  %v5691_v3 = vrot.slane %v5689_v43, 7  ;;  %v5697_v42 = vshrl.u32 %v11947_v22, 16 }
 0x2ba   : > { %v6108_v53 = vld [vmem:[#allocation3 + $0x10] sm:$0xf]  ;;  %v6154_v15 = vld [vmem:[#allocation3 + $0x14] sm:$0x1]  ;;  %v5432_v17 = vpop.f32.mrb[8].mxu0  ;;  %v5700_v25 = vshll.u32 %v11947_v22, 16 }
 0x2bb   : > { %v6196_v61 = vrot.slane %v6194_v49, 4  ;;  %v6199_v34 = vrot.slane %v6197_v47, 5  ;;  %v6203_v39 = vshll.u32 %v6108_v53, 16  ;;  %v6207_v6 = vshrl.u32 %v6108_v53, 16  ;;  %v5434_v26 = vpop.f32.mrb[9].mxu0 }
 0x2bc   : > { %v6213_v19 = vshll.u32 %v6154_v15, 16  ;;  %v5694_v12 = vor.u32 %v5692_v55, %v5691_v3  ;;  %v5699_v24 = vrot.slane %v5697_v42, 7  ;;  %v5433_v16 = vadd.f32 %v15110_v18, %v5432_v17  ;;  %v5435_v48 = vpop.f32.mrb[10].mxu0  ;;  %v6011_v53 = vld [vmem:[#allocation3 + $0x2c] sm:$0x1] }
 0x2bd   : > { %v6200_v50 = vor.u32 %v6199_v34, %v6196_v61  ;;  %v6205_v7 = vrot.slane %v6203_v39, 5  ;;  %v6209_v38 = vrot.slane %v6207_v6, 4  ;;  %v5695_v58 = vrot.slane %v5691_v3, 4  ;;  %v5437_v14 = vpop.f32.mrb[11].mxu0  ;;  %v485_v42 = vld [vmem:[#allocation3 + $0xbc] sm:$0x1] }
 0x2be   : > { %v6215_v62 = vrot.slane %v6213_v19, 5  ;;  %v6001_v52 = vsel %vm15119_vm0, %v5694_v12, %v6000_v11  ;;  %v5702_v8 = vor.u32 %v5700_v25, %v5699_v24  ;;  %v5704_v4 = vrot.slane %v5699_v24, 4  ;;  %v439_v26 = vld [vmem:[#allocation3 + $0xc0] sm:$0x1]  ;;  %v6014_v14 = vld [vmem:[#allocation3 + $0x30] sm:$0xf] }
 0x2bf   : > { %v6201_v57 = vrot.slane %v6200_v50, 4  ;;  %v6210_v59 = vor.u32 %v6209_v38, %v6205_v7  ;;  %v5547_v1 = vmax.f32 %v5433_v16, 0.0  ;;  %6002 = vst [vmem:[#allocation3 + $0x18] sm:$0xf] %v6001_v52  ;;  %v5436_v33 = vadd.f32 %v15110_v18, %v5435_v48  ;;  %v13144_v16 = vld [vmem:[%s16924_s4] sm:$0xff]  }
 0x2c0   : > { %v5703_v60 = vsel %vm13659_vm15, %v5695_v58, %v5702_v8  ;;  %v6005_v13 = vsel %vm14919_vm13, %v5704_v4, %v6004_v2  ;;  %v486_v4 = vsel %vm14970_vm1, 0, %v485_v42  ;;  %12367 = vmatprep.subr.bf16.mxu0 %v13144_v16 }
 0x2c1   : > { %v6211_v54 = vrot.slane %v6210_v59, 4  ;;  %v6206_v31 = vsel %vm13482_vm11, %v6201_v57, %v6205_v7  ;;  %v11948_v46 = vpack.c.bf16 %v5547_v1, %v5547_v1  ;;  %6003 = vst [vmem:[#allocation3 + $0x1c] sm:$0xf] %v5703_v60  ;;  %6006 = vst [vmem:[#allocation3 + $0x20] sm:$0x1] %v6005_v13  ;;  %v5548_v45 = vmax.f32 %v5436_v33, 0.0 }
 0x2c2   : > { %v440_v1 = vsel %vm14919_vm13, 0, %v439_v26  ;;  %487 = vst [vmem:[#allocation3 + $0xbc] sm:$0x1] %v486_v4 }
 0x2c3   : > { %v6216_v0 = vsel %vm13482_vm11, %v6211_v54, %v6215_v62  ;;  %v5706_v30 = vshrl.u32 %v11948_v46, 16  ;;  %v11949_v20 = vpack.c.bf16 %v5548_v45, %v5548_v45  ;;  %v5709_v32 = vshll.u32 %v11948_v46, 16  ;;  %v5440_v40 = vpop.f32.mrb[12].mxu0  ;;  %441 = vst [vmem:[#allocation3 + $0xc0] sm:$0x1] %v440_v1  ;;  %v13147_v1 = vld [vmem:[%s16924_s4 + $0x8] sm:$0xff]  }
 0x2c4   : > { %v11531_v9 = vcombine.low %v6206_v31, %v6216_v0  ;;  %v5441_v49 = vadd.f32 %v15110_v18, %v5440_v40  ;;  %v5442_v47 = vpop.f32.mrb[13].mxu0 }
 0x2c5   : > { %v5708_v56 = vrot.slane %v5706_v30, 7  ;;  %v5714_v37 = vshrl.u32 %v11949_v20, 16  ;;  %v5717_v41 = vshll.u32 %v11949_v20, 16  ;;  %v5443_v15 = vpop.f32.mrb[14].mxu0 }
 0x2c6   : > { %12336 = vmatmul.mubr.bf16.vlgmr.msra.gmra.mrb[64].mxu0 %v11531_v9  ;;  %v6109_v61 = vld [vmem:[#allocation3 + $0x18] sm:$0xf]  ;;  %v5549_v39 = vmax.f32 %v5441_v49, 0.0  ;;  %v5444_v6 = vadd.f32 %v15110_v18, %v5443_v15  ;;  %v5445_v44 = vpop.f32.mrb[15].mxu0 }
 0x2c7   : > { %v5711_v23 = vor.u32 %v5709_v32, %v5708_v56  ;;  %v5716_v34 = vrot.slane %v5714_v37, 7  ;;  %v6218_v43 = vshrl.u32 %v6109_v61, 16  ;;  %v5712_v22 = vrot.slane %v5708_v56, 4  ;;  %12368 = vmatpush3.bf16.msra.mxu0 %v13144_v16  ;;  %v6018_v9 = vld [vmem:[#allocation3 + $0x38] sm:$0x1] }
 0x2c8   : > { %v6110_v50 = vld [vmem:[#allocation3 + $0x1c] sm:$0xf]  ;;  %v6155_v7 = vld [vmem:[#allocation3 + $0x20] sm:$0x1]  ;;  %v6221_v38 = vshll.u32 %v6109_v61, 16  ;;  %v11950_v3 = vpack.c.bf16 %v5549_v39, %v5549_v39  ;;  %v5550_v55 = vmax.f32 %v5444_v6, 0.0  ;;  %12369 = vmatprep.subr.bf16.mxu0 %v13147_v1 }
 0x2c9   : > { %v6008_v19 = vsel %vm15119_vm0, %v5711_v23, %v6007_v63  ;;  %v5719_v51 = vor.u32 %v5717_v41, %v5716_v34  ;;  %v5721_v29 = vrot.slane %v5716_v34, 4  ;;  %v6220_v11 = vrot.slane %v6218_v43, 4 }
 0x2ca   : > { %6009 = vst [vmem:[#allocation3 + $0x24] sm:$0xf] %v6008_v19  ;;  %v6223_v17 = vrot.slane %v6221_v38, 5  ;;  %v6227_v57 = vshll.u32 %v6110_v50, 16  ;;  %v6231_v59 = vshrl.u32 %v6110_v50, 16  ;;  %v5723_v24 = vshrl.u32 %v11950_v3, 16 }
 0x2cb   : > { %v5720_v5 = vsel %vm13659_vm15, %v5712_v22, %v5719_v51  ;;  %v6012_v12 = vsel %vm14919_vm13, %v5721_v29, %v6011_v53  ;;  %v5726_v25 = vshll.u32 %v11950_v3, 16  ;;  %v11951_v58 = vpack.c.bf16 %v5550_v55, %v5550_v55  ;;  %v6021_v29 = vld [vmem:[#allocation3 + $0x3c] sm:$0xf]  ;;  %12370 = vmatpush3.bf16.msra.mxu0 %v13147_v1 }
 0x2cc   : > { %6010 = vst [vmem:[#allocation3 + $0x28] sm:$0xf] %v5720_v5  ;;  %6013 = vst [vmem:[#allocation3 + $0x2c] sm:$0x1] %v6012_v12  ;;  %v6224_v2 = vor.u32 %v6223_v17, %v6220_v11  ;;  %v6229_v48 = vrot.slane %v6227_v57, 5  ;;  %v6233_v54 = vrot.slane %v6231_v59, 4 }
 0x2cd   : > { %v5725_v62 = vrot.slane %v5723_v24, 7  ;;  %v5448_v52 = vpop.f32.mrb[16].mxu0  ;;  %v6237_v8 = vshll.u32 %v6155_v7, 16  ;;  %v5731_v33 = vshrl.u32 %v11951_v58, 16  ;;  %v5734_v31 = vshll.u32 %v11951_v58, 16 }
 0x2ce   : > { %v5449_v0 = vadd.f32 %v15110_v18, %v5448_v52  ;;  %v5450_v60 = vpop.f32.mrb[17].mxu0  ;;  %v6225_v30 = vrot.slane %v6224_v2, 4  ;;  %v6234_v20 = vor.u32 %v6233_v54, %v6229_v48 }
 0x2cf   : > { %v5728_v13 = vor.u32 %v5726_v25, %v5725_v62  ;;  %v5729_v46 = vrot.slane %v5725_v62, 4  ;;  %v5451_v45 = vpop.f32.mrb[18].mxu0  ;;  %v5733_v56 = vrot.slane %v5731_v33, 7  ;;  %v6239_v37 = vrot.slane %v6237_v8, 5  ;;  %v15180_v25 = vld [vmem:[%s16924_s4 + $0x100] sm:$0xff]  }
 0x2d0   : > { %v5551_v32 = vmax.f32 %v5449_v0, 0.0  ;;  %v5452_v40 = vadd.f32 %v15110_v18, %v5451_v45  ;;  %v5453_v63 = vpop.f32.mrb[19].mxu0  ;;  %v6235_v23 = vrot.slane %v6234_v20, 4  ;;  %v6230_v51 = vsel %vm13482_vm11, %v6225_v30, %v6229_v48  ;;  %12511 = vmatprep.subr.bf16.mxu1 %v15180_v25  ;;  %v13149_v20 = vld [vmem:[%s16924_s4 + $0x10] sm:$0xff]  }
 0x2d1   : > { %v6111_v49 = vld [vmem:[#allocation3 + $0x24] sm:$0xf]  ;;  %v6015_v47 = vsel %vm15119_vm0, %v5728_v13, %v6014_v14  ;;  %v5736_v15 = vor.u32 %v5734_v31, %v5733_v56  ;;  %v5738_v61 = vrot.slane %v5733_v56, 4  ;;  %12371 = vmatprep.subr.bf16.mxu0 %v13149_v20 }
 0x2d2   : > { %v6242_v41 = vshrl.u32 %v6111_v49, 16  ;;  %v6245_v53 = vshll.u32 %v6111_v49, 16  ;;  %6016 = vst [vmem:[#allocation3 + $0x30] sm:$0xf] %v6015_v47  ;;  %v11952_v34 = vpack.c.bf16 %v5551_v32, %v5551_v32  ;;  %v5552_v39 = vmax.f32 %v5452_v40, 0.0  ;;  %12372 = vmatpush3.bf16.msra.mxu0 %v13149_v20 }
 0x2d3   : > { %v6240_v6 = vsel %vm13482_vm11, %v6235_v23, %v6239_v37  ;;  %v6112_v44 = vld [vmem:[#allocation3 + $0x28] sm:$0xf]  ;;  %v6156_v43 = vld [vmem:[#allocation3 + $0x2c] sm:$0x1]  ;;  %v5737_v50 = vsel %vm13659_vm15, %v5729_v46, %v5736_v15  ;;  %v6019_v7 = vsel %vm14919_vm13, %v5738_v61, %v6018_v9  ;;  %v6025_v46 = vld [vmem:[#allocation3 + $0x44] sm:$0x1] }
 0x2d4   : > { %v6244_v22 = vrot.slane %v6242_v41, 4  ;;  %v6247_v19 = vrot.slane %v6245_v53, 5  ;;  %v5740_v38 = vshrl.u32 %v11952_v34, 16  ;;  %6017 = vst [vmem:[#allocation3 + $0x34] sm:$0xf] %v5737_v50  ;;  %v11953_v3 = vpack.c.bf16 %v5552_v39, %v5552_v39  ;;  %v5456_v55 = vpop.f32.mrb[20].mxu0 }
 0x2d5   : > { %6020 = vst [vmem:[#allocation3 + $0x38] sm:$0x1] %v6019_v7  ;;  %v11532_v42 = vcombine.low %v6230_v51, %v6240_v6  ;;  %v6251_v17 = vshll.u32 %v6112_v44, 16  ;;  %v5743_v59 = vshll.u32 %v11952_v34, 16  ;;  %v5457_v5 = vadd.f32 %v15110_v18, %v5456_v55  ;;  %v5458_v12 = vpop.f32.mrb[21].mxu0  ;;  %v13151_v53 = vld [vmem:[%s16924_s4 + $0x18] sm:$0xff]  }
 0x2d6   : > { %v6248_v11 = vor.u32 %v6247_v19, %v6244_v22  ;;  %v5742_v57 = vrot.slane %v5740_v38, 7  ;;  %v6255_v24 = vshrl.u32 %v6112_v44, 16  ;;  %v5748_v16 = vshrl.u32 %v11953_v3, 16  ;;  %v5459_v26 = vpop.f32.mrb[22].mxu0  ;;  %v6028_v7 = vld [vmem:[#allocation3 + $0x48] sm:$0xf]  ;;  %12373 = vmatprep.subr.bf16.mxu0 %v13151_v53 }
 0x2d7   : > { %12339 = vmatprep.mubr.bf16.mxu0 %v11532_v42  ;;  %v15184_v2 = vrot.slane %v6251_v17, 5  ;;  %v6261_v48 = vshll.u32 %v6156_v43, 16  ;;  %v5751_v62 = vshll.u32 %v11953_v3, 16  ;;  %v5553_v52 = vmax.f32 %v5457_v5, 0.0  ;;  %v5461_v4 = vpop.f32.mrb[23].mxu0  ;;  %12374 = vmatpush3.bf16.msra.mxu0 %v13151_v53 }
 0x2d8   : > { %v15182_v58 = vrot.slane %v6248_v11, 4  ;;  %v5745_v54 = vor.u32 %v5743_v59, %v5742_v57  ;;  %v5460_v8 = vadd.f32 %v15110_v18, %v5459_v26  ;;  %v5746_v14 = vrot.slane %v5742_v57, 4  ;;  %v6032_v12 = vld [vmem:[#allocation3 + $0x50] sm:$0x1] }
 0x2d9   : > { %v5750_v33 = vrot.slane %v5748_v16, 7  ;;  %v6257_v0 = vrot.slane %v6255_v24, 4  ;;  %v6113_v60 = vld [vmem:[#allocation3 + $0x30] sm:$0xf]  ;;  %v11954_v9 = vpack.c.bf16 %v5553_v52, %v5553_v52  ;;  %v6263_v23 = vrot.slane %v6261_v48, 5 }
 0x2da   : > { %v6254_v31 = vsel %vm13482_vm11, %v15182_v58, %v15184_v2  ;;  %v6022_v13 = vsel %vm15119_vm0, %v5745_v54, %v6021_v29  ;;  %v5554_v45 = vmax.f32 %v5460_v8, 0.0  ;;  %v6266_v30 = vshrl.u32 %v6113_v60, 16 }
 0x2db   : > { %6023 = vst [vmem:[#allocation3 + $0x3c] sm:$0xf] %v6022_v13  ;;  %v5753_v56 = vor.u32 %v5751_v62, %v5750_v33  ;;  %v5755_v32 = vrot.slane %v5750_v33, 4  ;;  %v6258_v40 = vor.u32 %v6257_v0, %v15184_v2  ;;  %v6269_v63 = vshll.u32 %v6113_v60, 16  ;;  %v6114_v41 = vld [vmem:[#allocation3 + $0x34] sm:$0xf] }
 0x2dc   : > { %v5757_v37 = vshrl.u32 %v11954_v9, 16  ;;  %v5760_v49 = vshll.u32 %v11954_v9, 16  ;;  %v11955_v47 = vpack.c.bf16 %v5554_v45, %v5554_v45  ;;  %v5464_v34 = vpop.f32.mrb[24].mxu0  ;;  %v6268_v6 = vrot.slane %v6266_v30, 4  ;;  %v6157_v5 = vld [vmem:[#allocation3 + $0x38] sm:$0x1] }
 0x2dd   : > { %v5754_v15 = vsel %vm13659_vm15, %v5746_v14, %v5753_v56  ;;  %v6026_v61 = vsel %vm14919_vm13, %v5755_v32, %v6025_v46  ;;  %v6259_v39 = vrot.slane %v6258_v40, 4  ;;  %v5465_v19 = vadd.f32 %v15110_v18, %v5464_v34  ;;  %v5466_v50 = vpop.f32.mrb[25].mxu0  ;;  %v13154_v2 = vld [vmem:[%s16924_s4 + $0x20] sm:$0xff]   ;;  %v6035_v46 = vld [vmem:[#allocation3 + $0x54] sm:$0xf] }
 0x2de   : > { %6024 = vst [vmem:[#allocation3 + $0x40] sm:$0xf] %v5754_v15  ;;  %6027 = vst [vmem:[#allocation3 + $0x44] sm:$0x1] %v6026_v61  ;;  %v5759_v44 = vrot.slane %v5757_v37, 7  ;;  %v5765_v43 = vshrl.u32 %v11955_v47, 16  ;;  %12375 = vmatprep.subr.bf16.mxu0 %v13154_v2 }
 0x2df   : > { %v5768_v22 = vshll.u32 %v11955_v47, 16  ;;  %v5467_v38 = vpop.f32.mrb[26].mxu0  ;;  %v6264_v51 = vsel %vm13482_vm11, %v6259_v39, %v6263_v23  ;;  %v6271_v29 = vrot.slane %v6269_v63, 5  ;;  %v6275_v3 = vshll.u32 %v6114_v41, 16  ;;  %v13156_v40 = vld [vmem:[%s16924_s4 + $0x28] sm:$0xff]   ;;  %12376 = vmatpush3.bf16.msra.mxu0 %v13154_v2 }
 0x2e0   : > { %v6279_v55 = vshrl.u32 %v6114_v41, 16  ;;  %v5762_v42 = vor.u32 %v5760_v49, %v5759_v44  ;;  %v5763_v11 = vrot.slane %v5759_v44, 4  ;;  %v5767_v17 = vrot.slane %v5765_v43, 7  ;;  %v5469_v59 = vpop.f32.mrb[27].mxu0  ;;  %12377 = vmatprep.subr.bf16.mxu0 %v13156_v40 }
 0x2e1   : > { %v5555_v57 = vmax.f32 %v5465_v19, 0.0  ;;  %v5468_v24 = vadd.f32 %v15110_v18, %v5467_v38  ;;  %v11533_v16 = vcombine.low %v6254_v31, %v6264_v51  ;;  %v6272_v26 = vor.u32 %v6271_v29, %v6268_v6  ;;  %v13158_v51 = vld [vmem:[%s16924_s4 + $0x30] sm:$0xff]  }
 0x2e2   : > { %v6277_v58 = vrot.slane %v6275_v3, 5  ;;  %v6029_v48 = vsel %vm15119_vm0, %v5762_v42, %v6028_v7  ;;  %v5770_v54 = vor.u32 %v5768_v22, %v5767_v17  ;;  %v5772_v62 = vrot.slane %v5767_v17, 4  ;;  %v6115_v8 = vld [vmem:[#allocation3 + $0x3c] sm:$0xf] }
 0x2e3   : > { %v11956_v52 = vpack.c.bf16 %v5555_v57, %v5555_v57  ;;  %6030 = vst [vmem:[#allocation3 + $0x48] sm:$0xf] %v6029_v48  ;;  %v5556_v4 = vmax.f32 %v5468_v24, 0.0  ;;  %12340 = vmatmul.mubr.bf16.gmra.mrb[68].mxu0 %v11533_v16  ;;  %v6273_v1 = vrot.slane %v6272_v26, 4  ;;  %v6281_v14 = vrot.slane %v6279_v55, 4 }
 0x2e4   : > { %v6285_v33 = vshll.u32 %v6157_v5, 16  ;;  %v5771_v31 = vsel %vm13659_vm15, %v5763_v11, %v5770_v54  ;;  %v6033_v0 = vsel %vm14919_vm13, %v5772_v62, %v6032_v12  ;;  %v5472_v45 = vpop.f32.mrb[28].mxu0  ;;  %v6290_v47 = vshrl.u32 %v6115_v8, 16  ;;  %v6039_v3 = vld [vmem:[#allocation3 + $0x5c] sm:$0x1]  ;;  %12378 = vmatpush3.bf16.msra.mxu0 %v13156_v40 }
 0x2e5   : > { %v5774_v60 = vshrl.u32 %v11956_v52, 16  ;;  %v5777_v13 = vshll.u32 %v11956_v52, 16  ;;  %6031 = vst [vmem:[#allocation3 + $0x4c] sm:$0xf] %v5771_v31  ;;  %6034 = vst [vmem:[#allocation3 + $0x50] sm:$0x1] %v6033_v0  ;;  %v11957_v9 = vpack.c.bf16 %v5556_v4, %v5556_v4  ;;  %v6278_v30 = vsel %vm13482_vm11, %v6273_v1, %v6277_v58  ;;  %12379 = vmatprep.subr.bf16.mxu0 %v13158_v51 }
 0x2e6   : > { %v6282_v20 = vor.u32 %v6281_v14, %v6277_v58  ;;  %v6287_v56 = vrot.slane %v6285_v33, 5  ;;  %v6116_v32 = vld [vmem:[#allocation3 + $0x40] sm:$0xf]  ;;  %v5473_v37 = vadd.f32 %v15110_v18, %v5472_v45  ;;  %v5474_v49 = vpop.f32.mrb[29].mxu0  ;;  %v6293_v23 = vshll.u32 %v6115_v8, 16 }
 0x2e7   : > { %v5776_v63 = vrot.slane %v5774_v60, 7  ;;  %v5782_v41 = vshrl.u32 %v11957_v9, 16  ;;  %v5785_v53 = vshll.u32 %v11957_v9, 16  ;;  %v5475_v15 = vpop.f32.mrb[30].mxu0  ;;  %v6299_v34 = vshll.u32 %v6116_v32, 16  ;;  %v13160_v4 = vld [vmem:[%s16924_s4 + $0x38] sm:$0xff]  }
 0x2e8   : > { %v6283_v61 = vrot.slane %v6282_v20, 4  ;;  %v5557_v44 = vmax.f32 %v5473_v37, 0.0  ;;  %v5476_v43 = vadd.f32 %v15110_v18, %v5475_v15  ;;  %v5477_v22 = vpop.f32.mrb[31].mxu0  ;;  %v6292_v7 = vrot.slane %v6290_v47, 4  ;;  %v6158_v17 = vld [vmem:[#allocation3 + $0x44] sm:$0x1]  ;;  %12380 = vmatpush3.bf16.msra.mxu0 %v13158_v51 }
 0x2e9   : > { %v5779_v39 = vor.u32 %v5777_v13, %v5776_v63  ;;  %v5780_v6 = vrot.slane %v5776_v63, 4  ;;  %v5784_v19 = vrot.slane %v5782_v41, 7  ;;  %v6295_v38 = vrot.slane %v6293_v23, 5  ;;  %v6042_v14 = vld [vmem:[#allocation3 + $0x60] sm:$0xf]  ;;  %12381 = vmatprep.subr.bf16.mxu0 %v13160_v4 }
 0x2ea   : > { %v6288_v50 = vsel %vm13482_vm11, %v6283_v61, %v6287_v56  ;;  %v11958_v55 = vpack.c.bf16 %v5557_v44, %v5557_v44  ;;  %v5558_v42 = vmax.f32 %v5476_v43, 0.0  ;;  %v15235_v12 = vrot.slane %v6299_v34, 5  ;;  %v6117_v2 = vld [vmem:[#allocation3 + $0x48] sm:$0xf] }
 0x2eb   : > { %v6036_v29 = vsel %vm15119_vm0, %v5779_v39, %v6035_v46  ;;  %v11534_v11 = vcombine.low %v6278_v30, %v6288_v50  ;;  %v5787_v57 = vor.u32 %v5785_v53, %v5784_v19  ;;  %v5789_v59 = vrot.slane %v5784_v19, 4  ;;  %v6046_v49 = vld [vmem:[#allocation3 + $0x68] sm:$0x1] }
 0x2ec   : > { %6037 = vst [vmem:[#allocation3 + $0x54] sm:$0xf] %v6036_v29  ;;  %v6296_v5 = vor.u32 %v6295_v38, %v6292_v7  ;;  %v5791_v24 = vshrl.u32 %v11958_v55, 16  ;;  %v5794_v16 = vshll.u32 %v11958_v55, 16  ;;  %v11959_v26 = vpack.c.bf16 %v5558_v42, %v5558_v42  ;;  %v5480_v62 = vpop.f32.mrb[32].mxu0  ;;  %12382 = vmatpush3.bf16.msra.mxu0 %v13160_v4 }
 0x2ed   : > { %12343 = vmatprep.mubr.bf16.mxu0 %v11534_v11  ;;  %v6303_v58 = vshrl.u32 %v6116_v32, 16  ;;  %v5788_v48 = vsel %vm13659_vm15, %v5780_v6, %v5787_v57  ;;  %v6040_v54 = vsel %vm14919_vm13, %v5789_v59, %v6039_v3  ;;  %v6309_v8 = vshll.u32 %v6158_v17, 16  ;;  %v5482_v60 = vpop.f32.mrb[33].mxu0  ;;  %v6118_v37 = vld [vmem:[#allocation3 + $0x4c] sm:$0xf] }
 0x2ee   : > { %v6297_v52 = vrot.slane %v6296_v5, 4  ;;  %6038 = vst [vmem:[#allocation3 + $0x58] sm:$0xf] %v5788_v48  ;;  %6041 = vst [vmem:[#allocation3 + $0x5c] sm:$0x1] %v6040_v54  ;;  %v5793_v1 = vrot.slane %v5791_v24, 7  ;;  %v5481_v0 = vadd.f32 %v15110_v18, %v5480_v62 }
 0x2ef   : > { %v5799_v33 = vshrl.u32 %v11959_v26, 16  ;;  %v5802_v31 = vshll.u32 %v11959_v26, 16  ;;  %v5483_v13 = vpop.f32.mrb[34].mxu0  ;;  %v6305_v9 = vrot.slane %v6303_v58, 4  ;;  %v6311_v45 = vrot.slane %v6309_v8, 5 }
 0x2f0   : > { %v6302_v46 = vsel %vm13482_vm11, %v6297_v52, %v15235_v12  ;;  %v6314_v30 = vshrl.u32 %v6117_v2, 16  ;;  %v5796_v20 = vor.u32 %v5794_v16, %v5793_v1  ;;  %v5797_v56 = vrot.slane %v5793_v1, 4  ;;  %v5485_v63 = vpop.f32.mrb[35].mxu0  ;;  %v6159_v51 = vld [vmem:[#allocation3 + $0x50] sm:$0x1] }
 0x2f1   : > { %v5801_v32 = vrot.slane %v5799_v33, 7  ;;  %v5559_v40 = vmax.f32 %v5481_v0, 0.0  ;;  %v5484_v47 = vadd.f32 %v15110_v18, %v5483_v13  ;;  %v6306_v23 = vor.u32 %v6305_v9, %v15235_v12  ;;  %v6049_v29 = vld [vmem:[#allocation3 + $0x6c] sm:$0xf]  ;;  %v6053_v13 = vld [vmem:[#allocation3 + $0x74] sm:$0x1] }
 0x2f2   : > { %v6316_v41 = vrot.slane %v6314_v30, 4  ;;  %v6317_v53 = vshll.u32 %v6117_v2, 16  ;;  %v6043_v15 = vsel %vm15119_vm0, %v5796_v20, %v6042_v14  ;;  %v6323_v22 = vshll.u32 %v6118_v37, 16 }
 0x2f3   : > { %v5804_v61 = vor.u32 %v5802_v31, %v5801_v32  ;;  %v5806_v34 = vrot.slane %v5801_v32, 4  ;;  %v11960_v39 = vpack.c.bf16 %v5559_v40, %v5559_v40  ;;  %6044 = vst [vmem:[#allocation3 + $0x60] sm:$0xf] %v6043_v15  ;;  %v5560_v6 = vmax.f32 %v5484_v47, 0.0  ;;  %v6119_v57 = vld [vmem:[#allocation3 + $0x54] sm:$0xf] }
 0x2f4   : > { %v6307_v44 = vrot.slane %v6306_v23, 4  ;;  %v6319_v43 = vrot.slane %v6317_v53, 5  ;;  %v5488_v42 = vpop.f32.mrb[36].mxu0  ;;  %v6325_v17 = vrot.slane %v6323_v22, 5  ;;  %v6327_v16 = vshrl.u32 %v6118_v37, 16 }
 0x2f5   : > { %v5805_v19 = vsel %vm13659_vm15, %v5797_v56, %v5804_v61  ;;  %v6047_v50 = vsel %vm14919_vm13, %v5806_v34, %v6046_v49  ;;  %v5808_v7 = vshrl.u32 %v11960_v39, 16  ;;  %v5811_v38 = vshll.u32 %v11960_v39, 16  ;;  %v5490_v24 = vpop.f32.mrb[37].mxu0  ;;  %v6120_v49 = vld [vmem:[#allocation3 + $0x58] sm:$0xf] }
 0x2f6   : > { %6045 = vst [vmem:[#allocation3 + $0x64] sm:$0xf] %v5805_v19  ;;  %6048 = vst [vmem:[#allocation3 + $0x68] sm:$0x1] %v6047_v50  ;;  %v11961_v3 = vpack.c.bf16 %v5560_v6, %v5560_v6  ;;  %v6312_v55 = vsel %vm13482_vm11, %v6307_v44, %v6311_v45  ;;  %v6320_v11 = vor.u32 %v6319_v43, %v6316_v41  ;;  %v5491_v2 = vpop.f32.mrb[38].mxu0  ;;  %v6333_v54 = vshll.u32 %v6159_v51, 16 }
 0x2f7   : > { %v5810_v59 = vrot.slane %v5808_v7, 7  ;;  %v11535_v5 = vcombine.low %v6302_v46, %v6312_v55  ;;  %v5489_v12 = vadd.f32 %v15110_v18, %v5488_v42  ;;  %v5492_v4 = vadd.f32 %v15110_v18, %v5491_v2  ;;  %v5493_v1 = vpop.f32.mrb[39].mxu0  ;;  %v6056_v39 = vld [vmem:[#allocation3 + $0x78] sm:$0xf]  ;;  %v6060_v19 = vld [vmem:[#allocation3 + $0x80] sm:$0x1] }
 0x2f8   : > { %v5816_v26 = vshrl.u32 %v11961_v3, 16  ;;  %v5819_v58 = vshll.u32 %v11961_v3, 16  ;;  %v6321_v48 = vrot.slane %v6320_v11, 4  ;;  %v6329_v31 = vrot.slane %v6327_v16, 4 }
 0x2f9   : > { %v5813_v62 = vor.u32 %v5811_v38, %v5810_v59  ;;  %v5814_v52 = vrot.slane %v5810_v59, 4  ;;  %12344 = vmatmul.mubr.bf16.gmra.mrb[72].mxu0 %v11535_v5  ;;  %v5561_v8 = vmax.f32 %v5489_v12, 0.0  ;;  %v6335_v0 = vrot.slane %v6333_v54, 5 }
 0x2fa   : > { %v5818_v14 = vrot.slane %v5816_v26, 7  ;;  %v6326_v33 = vsel %vm13482_vm11, %v6321_v48, %v6325_v17  ;;  %v5562_v9 = vmax.f32 %v5492_v4, 0.0  ;;  %v6338_v45 = vshrl.u32 %v6119_v57, 16  ;;  %v6121_v16 = vld [vmem:[#allocation3 + $0x60] sm:$0xf] }
 0x2fb   : > { %v6050_v60 = vsel %vm15119_vm0, %v5813_v62, %v6049_v29  ;;  %v11962_v46 = vpack.c.bf16 %v5561_v8, %v5561_v8  ;;  %v6330_v56 = vor.u32 %v6329_v31, %v6325_v17  ;;  %v6341_v32 = vshll.u32 %v6119_v57, 16  ;;  %v6160_v17 = vld [vmem:[#allocation3 + $0x5c] sm:$0x1] }
 0x2fc   : > { %6051 = vst [vmem:[#allocation3 + $0x6c] sm:$0xf] %v6050_v60  ;;  %v5821_v30 = vor.u32 %v5819_v58, %v5818_v14  ;;  %v5823_v20 = vrot.slane %v5818_v14, 4  ;;  %v11963_v37 = vpack.c.bf16 %v5562_v9, %v5562_v9  ;;  %v6340_v47 = vrot.slane %v6338_v45, 4  ;;  %v5496_v15 = vpop.f32.mrb[40].mxu0 }
 0x2fd   : > { %v5825_v40 = vshrl.u32 %v11962_v46, 16  ;;  %v5828_v63 = vshll.u32 %v11962_v46, 16  ;;  %v6331_v53 = vrot.slane %v6330_v56, 4  ;;  %v6343_v61 = vrot.slane %v6341_v32, 5  ;;  %v5498_v22 = vpop.f32.mrb[41].mxu0 }
 0x2fe   : > { %v5822_v23 = vsel %vm13659_vm15, %v5814_v52, %v5821_v30  ;;  %v6054_v41 = vsel %vm14919_vm13, %v5823_v20, %v6053_v13  ;;  %v5833_v6 = vshrl.u32 %v11963_v37, 16  ;;  %v5836_v44 = vshll.u32 %v11963_v37, 16  ;;  %v5499_v7 = vpop.f32.mrb[42].mxu0  ;;  %v6122_v4 = vld [vmem:[#allocation3 + $0x64] sm:$0xf] }
 0x2ff   : > { %6052 = vst [vmem:[#allocation3 + $0x70] sm:$0xf] %v5822_v23  ;;  %6055 = vst [vmem:[#allocation3 + $0x74] sm:$0x1] %v6054_v41  ;;  %v5827_v34 = vrot.slane %v5825_v40, 7  ;;  %v5497_v43 = vadd.f32 %v15110_v18, %v5496_v15  ;;  %v6336_v50 = vsel %vm13482_vm11, %v6331_v53, %v6335_v0  ;;  %v6344_v38 = vor.u32 %v6343_v61, %v6340_v47  ;;  %v5501_v57 = vpop.f32.mrb[43].mxu0 }
 0x300   : > { %v6347_v51 = vshll.u32 %v6120_v49, 16  ;;  %v6351_v29 = vshrl.u32 %v6120_v49, 16  ;;  %v5835_v42 = vrot.slane %v5833_v6, 7  ;;  %v11536_v11 = vcombine.low %v6326_v33, %v6336_v50  ;;  %v6161_v1 = vld [vmem:[#allocation3 + $0x68] sm:$0x1] }
 0x301   : > { %v5830_v3 = vor.u32 %v5828_v63, %v5827_v34  ;;  %v5831_v55 = vrot.slane %v5827_v34, 4  ;;  %v5563_v59 = vmax.f32 %v5497_v43, 0.0  ;;  %v5500_v5 = vadd.f32 %v15110_v18, %v5499_v7  ;;  %v6063_v40 = vld [vmem:[#allocation3 + $0x84] sm:$0xf]  ;;  %v6067_v47 = vld [vmem:[#allocation3 + $0x8c] sm:$0x1] }
 0x302   : > { %v6345_v12 = vrot.slane %v6344_v38, 4  ;;  %v6349_v24 = vrot.slane %v6347_v51, 5  ;;  %v5838_v58 = vor.u32 %v5836_v44, %v5835_v42  ;;  %v5840_v2 = vrot.slane %v5835_v42, 4  ;;  %12347 = vmatprep.mubr.bf16.mxu0 %v11536_v11  ;;  %v15288_v51 = vld [vmem:[%s16923_s3] ss:$0 sm:$0xff] }
 0x303   : > { %v6057_v26 = vsel %vm15119_vm0, %v5830_v3, %v6056_v39  ;;  %v6353_v48 = vrot.slane %v6351_v29, 4  ;;  %v11964_v54 = vpack.c.bf16 %v5563_v59, %v5563_v59  ;;  %v5564_v62 = vmax.f32 %v5500_v5, 0.0  ;;  %v6123_v22 = vld [vmem:[#allocation3 + $0x6c] sm:$0xf]  ;;  %v13148_v5 = vld [vmem:[%s16924_s4 + $0x108] sm:$0xff]  }
 0x304   : > { %6058 = vst [vmem:[#allocation3 + $0x78] sm:$0xf] %v6057_v26  ;;  %v6350_v52 = vsel %vm13482_vm11, %v6345_v12, %v6349_v24  ;;  %v6357_v8 = vshll.u32 %v6160_v17, 16  ;;  %v5839_v18 = vsel %vm13659_vm15, %v5831_v55, %v5838_v58  ;;  %v6061_v14 = vsel %vm14919_vm13, %v5840_v2, %v6060_v19  ;;  %v13177_v19 = vld [vmem:[%s16924_s4 + $0x80] sm:$0xff]  }
 0x305   : > { %v6354_v33 = vor.u32 %v6353_v48, %v6349_v24  ;;  %v6362_v31 = vshrl.u32 %v6121_v16, 16  ;;  %6059 = vst [vmem:[#allocation3 + $0x7c] sm:$0xf] %v5839_v18  ;;  %6062 = vst [vmem:[#allocation3 + $0x80] sm:$0x1] %v6061_v14  ;;  %v5842_v0 = vshrl.u32 %v11964_v54, 16  ;;  %v11965_v13 = vpack.c.bf16 %v5564_v62, %v5564_v62  ;;  %12415 = vmatprep.subr.bf16.mxu0 %v13177_v19 }
 0x306   : > { %v5845_v60 = vshll.u32 %v11964_v54, 16  ;;  %v6359_v46 = vrot.slane %v6357_v8, 5  ;;  %v13138_v9 = vld [vmem:[#allocation3 + $0x6c] sm:$0xff]   ;;  %v6365_v20 = vshll.u32 %v6121_v16, 16  ;;  %v6371_v56 = vshll.u32 %v6122_v4, 16  ;;  %v5504_v61 = vpop.f32.mrb[44].mxu0 }
 0x307   : > { %v6355_v45 = vrot.slane %v6354_v33, 4  ;;  %v6364_v30 = vrot.slane %v6362_v31, 4  ;;  %v5844_v32 = vrot.slane %v5842_v0, 7  ;;  %v5850_v63 = vshrl.u32 %v11965_v13, 16  ;;  %12495 = vmatprep.mubr.bf16.mxu1 %v13138_v9  ;;  %v5506_v43 = vpop.f32.mrb[45].mxu0 }
 0x308   : > { %v5853_v37 = vshll.u32 %v11965_v13, 16  ;;  %v6375_v49 = vshrl.u32 %v6122_v4, 16  ;;  %v6367_v41 = vrot.slane %v6365_v20, 5  ;;  %v6373_v53 = vrot.slane %v6371_v56, 5  ;;  %v5507_v3 = vpop.f32.mrb[46].mxu0 }
 0x309   : > { %v6360_v23 = vsel %vm13482_vm11, %v6355_v45, %v6359_v46  ;;  %v6381_v15 = vshll.u32 %v6161_v1, 16  ;;  %v5847_v34 = vor.u32 %v5845_v60, %v5844_v32  ;;  %v5848_v39 = vrot.slane %v5844_v32, 4  ;;  %v5509_v57 = vpop.f32.mrb[47].mxu0  ;;  %v6124_v59 = vld [vmem:[#allocation3 + $0x70] sm:$0xf] }
 0x30a   : > { %v5852_v6 = vrot.slane %v5850_v63, 7  ;;  %v11537_v44 = vcombine.low %v6350_v52, %v6360_v23  ;;  %v6368_v50 = vor.u32 %v6367_v41, %v6364_v30  ;;  %v6377_v7 = vrot.slane %v6375_v49, 4  ;;  %v6162_v62 = vld [vmem:[#allocation3 + $0x74] sm:$0x1]  ;;  %v13150_v30 = vld [vmem:[%s16924_s4 + $0x110] sm:$0xff]  }
 0x30b   : > { %v6383_v38 = vrot.slane %v6381_v15, 5  ;;  %v5505_v29 = vadd.f32 %v15288_v51, %v5504_v61  ;;  %v6064_v55 = vsel %vm15119_vm0, %v5847_v34, %v6063_v40  ;;  %v5508_v17 = vadd.f32 %v15288_v51, %v5507_v3  ;;  %v6125_v45 = vld [vmem:[#allocation3 + $0x78] sm:$0xf]  ;;  %v6070_v56 = vld [vmem:[#allocation3 + $0x90] sm:$0xf] }
 0x30c   : > { %v5855_v42 = vor.u32 %v5853_v37, %v5852_v6  ;;  %v5857_v11 = vrot.slane %v5852_v6, 4  ;;  %12348 = vmatmul.mubr.bf16.gmra.mrb[76].mxu0 %v11537_v44  ;;  %6065 = vst [vmem:[#allocation3 + $0x84] sm:$0xf] %v6064_v55  ;;  %v6369_v12 = vrot.slane %v6368_v50, 4  ;;  %v6378_v24 = vor.u32 %v6377_v7, %v6373_v53  ;;  %v13140_v26 = vld [vmem:[#allocation3 + $0x78] sm:$0xff]  }
 0x30d   : > { %v5565_v16 = vmax.f32 %v5505_v29, 0.0  ;;  %v6386_v58 = vshrl.u32 %v6123_v22, 16  ;;  %v5566_v54 = vmax.f32 %v5508_v17, 0.0  ;;  %v6389_v52 = vshll.u32 %v6123_v22, 16  ;;  %12496 = vmatmul.mubr.bf16.vlgmr.msra.gmra.mrb[0].mxu1 %v13140_v26  ;;  %v15309_v37 = vld [vmem:[#allocation3 + $0x7c] sm:$0xf] }
 0x30e   : > { %v5856_v2 = vsel %vm13659_vm15, %v5848_v39, %v5855_v42  ;;  %v6068_v48 = vsel %vm14919_vm13, %v5857_v11, %v6067_v47  ;;  %v6374_v8 = vsel %vm13482_vm11, %v6369_v12, %v6373_v53  ;;  %v6379_v4 = vrot.slane %v6378_v24, 4  ;;  %12512 = vmatpush3.bf16.msra.mxu1 %v15180_v25  ;;  %v6074_v49 = vld [vmem:[#allocation3 + $0x98] sm:$0x1]  ;;  %v13153_v53 = vld [vmem:[%s16924_s4 + $0x118] sm:$0xff]  }
 0x30f   : > { %6066 = vst [vmem:[#allocation3 + $0x88] sm:$0xf] %v5856_v2  ;;  %6069 = vst [vmem:[#allocation3 + $0x8c] sm:$0x1] %v6068_v48  ;;  %v11966_v1 = vpack.c.bf16 %v5565_v16, %v5565_v16  ;;  %v6388_v18 = vrot.slane %v6386_v58, 4  ;;  %v11967_v14 = vpack.c.bf16 %v5566_v54, %v5566_v54  ;;  %v6391_v33 = vrot.slane %v6389_v52, 5  ;;  %12513 = vmatprep.subr.bf16.mxu1 %v13148_v5 }
 0x310   : > { %v6395_v31 = vshll.u32 %v6124_v59, 16  ;;  %v6399_v0 = vshrl.u32 %v6124_v59, 16  ;;  %v6384_v60 = vsel %vm13482_vm11, %v6379_v4, %v6383_v38  ;;  %v6405_v9 = vshll.u32 %v6162_v62, 16  ;;  %v6163_v22 = vld [vmem:[#allocation3 + $0x80] sm:$0x1]  ;;  %v13155_v54 = vld [vmem:[%s16924_s4 + $0x120] sm:$0xff]  }
 0x311   : > { %v5859_v13 = vshrl.u32 %v11966_v1, 16  ;;  %v5862_v46 = vshll.u32 %v11966_v1, 16  ;;  %v11538_v20 = vcombine.low %v6374_v8, %v6384_v60  ;;  %v5867_v32 = vshrl.u32 %v11967_v14, 16  ;;  %v488_v1 = vld [vmem:[#allocation3 + $0xc8] sm:$0x1] }
 0x312   : > { %v5870_v40 = vshll.u32 %v11967_v14, 16  ;;  %v6392_v63 = vor.u32 %v6391_v33, %v6388_v18  ;;  %v6397_v47 = vrot.slane %v6395_v31, 5  ;;  %v6401_v23 = vrot.slane %v6399_v0, 4  ;;  %12514 = vmatpush3.bf16.msra.mxu1 %v13148_v5 }
 0x313   : > { %v5861_v25 = vrot.slane %v5859_v13, 7  ;;  %v6407_v41 = vrot.slane %v6405_v9, 5  ;;  %12351 = vmatprep.mubr.bf16.mxu0 %v11538_v20  ;;  %v5869_v15 = vrot.slane %v5867_v32, 7  ;;  %v6410_v34 = vshrl.u32 %v6125_v45, 16  ;;  %v6127_v50 = vld [vmem:[#allocation3 + $0x84] sm:$0xf]  ;;  %12515 = vmatprep.subr.bf16.mxu1 %v13150_v30 }
 0x314   : > { %v6393_v61 = vrot.slane %v6392_v63, 4  ;;  %v6413_v39 = vshll.u32 %v6125_v45, 16  ;;  %v6402_v43 = vor.u32 %v6401_v23, %v6397_v47  ;;  %v6419_v19 = vshll.u32 %v15309_v37, 16  ;;  %v13157_v63 = vld [vmem:[%s16924_s4 + $0x128] sm:$0xff]  }
 0x315   : > { %v5864_v6 = vor.u32 %v5862_v46, %v5861_v25  ;;  %v5865_v44 = vrot.slane %v5861_v25, 4  ;;  %v5872_v7 = vor.u32 %v5870_v40, %v5869_v15  ;;  %v5874_v38 = vrot.slane %v5869_v15, 4 }
 0x316   : > { %v6398_v29 = vsel %vm13482_vm11, %v6393_v61, %v6397_v47  ;;  %v6412_v3 = vrot.slane %v6410_v34, 4  ;;  %v13141_v55 = vld [vmem:[#allocation3 + $0x84] sm:$0xff]   ;;  %v6403_v11 = vrot.slane %v6402_v43, 4  ;;  %v6415_v17 = vrot.slane %v6413_v39, 5  ;;  %12516 = vmatpush3.bf16.msra.mxu1 %v13150_v30  ;;  %v6164_v33 = vld [vmem:[#allocation3 + $0x8c] sm:$0x1] }
 0x317   : > { %v6071_v42 = vsel %vm15119_vm0, %v5864_v6, %v6070_v56  ;;  %v6421_v57 = vrot.slane %v6419_v19, 5  ;;  %v6128_v59 = vld [vmem:[#allocation3 + $0x88] sm:$0xf]  ;;  %v5873_v5 = vsel %vm13659_vm15, %v5865_v44, %v5872_v7  ;;  %v6075_v12 = vsel %vm14919_vm13, %v5874_v38, %v6074_v49  ;;  %12499 = vmatprep.mubr.bf16.mxu1 %v13141_v55  ;;  %12517 = vmatprep.subr.bf16.mxu1 %v13153_v53  ;;  %v13159_v7 = vld [vmem:[%s16924_s4 + $0x130] sm:$0xff]  }
 0x318   : > { %6072 = vst [vmem:[#allocation3 + $0x90] sm:$0xf] %v6071_v42  ;;  %v6423_v24 = vshrl.u32 %v15309_v37, 16  ;;  %v6429_v16 = vshll.u32 %v6163_v22, 16  ;;  %6073 = vst [vmem:[#allocation3 + $0x94] sm:$0xf] %v5873_v5  ;;  %v6408_v26 = vsel %vm13482_vm11, %v6403_v11, %v6407_v41  ;;  %v6416_v58 = vor.u32 %v6415_v17, %v6412_v3 }
 0x319   : > { %6076 = vst [vmem:[#allocation3 + $0x98] sm:$0x1] %v6075_v12  ;;  %v6434_v2 = vshrl.u32 %v6127_v50, 16  ;;  %v6437_v48 = vshll.u32 %v6127_v50, 16  ;;  %v11539_v62 = vcombine.low %v6398_v29, %v6408_v26  ;;  %v5512_v8 = vpop.f32.mrb[48].mxu0  ;;  %v6443_v4 = vshll.u32 %v6128_v59, 16 }
 0x31a   : > { %v6425_v52 = vrot.slane %v6423_v24, 4  ;;  %v5513_v18 = vadd.f32 %v15288_v51, %v5512_v8  ;;  %v5514_v14 = vpop.f32.mrb[49].mxu0  ;;  %v6417_v60 = vrot.slane %v6416_v58, 4  ;;  %v6447_v45 = vshrl.u32 %v6128_v59, 16  ;;  %12518 = vmatpush3.bf16.msra.mxu1 %v13153_v53  ;;  %v6077_v5 = vld [vmem:[#allocation3 + $0x9c] sm:$0xf] }
 0x31b   : > { %v6436_v31 = vrot.slane %v6434_v2, 4  ;;  %v6439_v0 = vrot.slane %v6437_v48, 5  ;;  %12352 = vmatmul.mubr.bf16.gmra.mrb[80].mxu0 %v11539_v62  ;;  %v5515_v46 = vpop.f32.mrb[50].mxu0  ;;  %v6445_v9 = vrot.slane %v6443_v4, 5  ;;  %v6431_v30 = vrot.slane %v6429_v16, 5  ;;  %12519 = vmatprep.subr.bf16.mxu1 %v13155_v54  ;;  %v13163_v62 = vld [vmem:[%s16924_s4 + $0x138] sm:$0xff]  }
 0x31c   : > { %v6426_v13 = vor.u32 %v6425_v52, %v6421_v57  ;;  %v5567_v20 = vmax.f32 %v5513_v18, 0.0  ;;  %v5516_v56 = vadd.f32 %v15288_v51, %v5515_v46  ;;  %v5517_v32 = vpop.f32.mrb[51].mxu0  ;;  %v6449_v49 = vrot.slane %v6447_v45, 4  ;;  %v6081_v52 = vld [vmem:[#allocation3 + $0xa4] sm:$0x1]  ;;  %v15359_v45 = vld [vmem:[%s16924_s4 + $0x140] sm:$0xff]  }
 0x31d   : > { %v6440_v40 = vor.u32 %v6439_v0, %v6436_v31  ;;  %v6453_v47 = vshll.u32 %v6164_v33, 16  ;;  %v489_v23 = vsel %vm14970_vm1, 0, %v488_v1  ;;  %v6422_v34 = vsel %vm13482_vm11, %v6417_v60, %v6421_v57 }
 0x31e   : > { %v6427_v25 = vrot.slane %v6426_v13, 4  ;;  %v11968_v41 = vpack.c.bf16 %v5567_v20, %v5567_v20  ;;  %v5568_v15 = vmax.f32 %v5516_v56, 0.0  ;;  %490 = vst [vmem:[#allocation3 + $0xc8] sm:$0x1] %v489_v23  ;;  %v6450_v6 = vor.u32 %v6449_v49, %v6445_v9  ;;  %12520 = vmatpush3.bf16.msra.mxu1 %v13155_v54 }
 0x31f   : > { %v6441_v53 = vrot.slane %v6440_v40, 4  ;;  %v6129_v61 = vld [vmem:[#allocation3 + $0x90] sm:$0xf]  ;;  %v6130_v43 = vld [vmem:[#allocation3 + $0x94] sm:$0xf]  ;;  %12521 = vmatprep.subr.bf16.mxu1 %v13157_v63  ;;  %v6455_v29 = vrot.slane %v6453_v47, 5 }
 0x320   : > { %v6432_v39 = vsel %vm13482_vm11, %v6427_v25, %v6431_v30  ;;  %v13142_v44 = vld [vmem:[#allocation3 + $0x90] sm:$0xff]   ;;  %v6458_v22 = vshrl.u32 %v6129_v61, 16  ;;  %v5876_v50 = vshrl.u32 %v11968_v41, 16  ;;  %v11969_v28 = vpack.c.bf16 %v5568_v15, %v5568_v15  ;;  %v6165_v57 = vld [vmem:[#allocation3 + $0x98] sm:$0x1] }
 0x321   : > { %v11540_v19 = vcombine.low %v6422_v34, %v6432_v39  ;;  %v6451_v38 = vrot.slane %v6450_v6, 4  ;;  %12500 = vmatmul.mubr.bf16.gmra.mrb[4].mxu1 %v13142_v44  ;;  %v6461_v55 = vshll.u32 %v6129_v61, 16  ;;  %v5879_v11 = vshll.u32 %v11968_v41, 16 }
 0x322   : > { %v6460_v3 = vrot.slane %v6458_v22, 4  ;;  %v5878_v42 = vrot.slane %v5876_v50, 7  ;;  %v5884_v17 = vshrl.u32 %v11969_v28, 16  ;;  %v6467_v59 = vshll.u32 %v6130_v43, 16  ;;  %12522 = vmatpush3.bf16.msra.mxu1 %v13157_v63 }
 0x323   : > { %12355 = vmatprep.mubr.bf16.mxu0 %v11540_v19  ;;  %v6446_v12 = vsel %vm13482_vm11, %v6441_v53, %v6445_v9  ;;  %v6456_v24 = vsel %vm13482_vm11, %v6451_v38, %v6455_v29  ;;  %v6463_v16 = vrot.slane %v6461_v55, 5  ;;  %v6471_v26 = vshrl.u32 %v6130_v43, 16  ;;  %12523 = vmatprep.subr.bf16.mxu1 %v13159_v7  ;;  %v6084_v19 = vld [vmem:[#allocation3 + $0xa8] sm:$0xf]  ;;  %v8017_v38 = vld [vmem:[#allocation3 + $0x10] sm:$0xf] }
 0x324   : > { %v5881_v58 = vor.u32 %v5879_v11, %v5878_v42  ;;  %v5886_v2 = vrot.slane %v5884_v17, 7  ;;  %v5887_v48 = vshll.u32 %v11969_v28, 16  ;;  %v11541_v54 = vcombine.low %v6446_v12, %v6456_v24  ;;  %v6088_v17 = vld [vmem:[#allocation3 + $0xb0] sm:$0x1] }
 0x325   : > { %v6464_v8 = vor.u32 %v6463_v16, %v6460_v3  ;;  %v6469_v4 = vrot.slane %v6467_v59, 5  ;;  %v6473_v1 = vrot.slane %v6471_v26, 4  ;;  %v6477_v18 = vshll.u32 %v6165_v57, 16 }
 0x326   : > { %v5882_v14 = vrot.slane %v5878_v42, 4  ;;  %v6078_v33 = vsel %vm15119_vm0, %v5881_v58, %v6077_v5  ;;  %v5889_v31 = vor.u32 %v5887_v48, %v5886_v2  ;;  %v5891_v0 = vrot.slane %v5886_v2, 4  ;;  %12356 = vmatmul.mubr.bf16.gmra.mrb[84].mxu0 %v11541_v54  ;;  %12524 = vmatpush3.bf16.msra.mxu1 %v13159_v7  ;;  %v8016_v5 = vld [vmem:[#allocation3 + $0xc] sm:$0xf]  ;;  %v8018_v58 = vld [vmem:[#allocation3 + $0x14] sm:$0x1] }
 0x327   : > { %6079 = vst [vmem:[#allocation3 + $0x9c] sm:$0xf] %v6078_v33  ;;  %v6465_v60 = vrot.slane %v6464_v8, 4  ;;  %v6474_v13 = vor.u32 %v6473_v1, %v6469_v4  ;;  %12525 = vmatprep.subr.bf16.mxu1 %v13163_v62  ;;  %v5520_v30 = vpop.f32.mrb[52].mxu0  ;;  %v6479_v56 = vrot.slane %v6477_v18, 5 }
 0x328   : > { %v5890_v46 = vsel %vm13659_vm15, %v5882_v14, %v5889_v31  ;;  %v6082_v9 = vsel %vm14919_vm13, %v5891_v0, %v6081_v52  ;;  %v5521_v32 = vadd.f32 %v15288_v51, %v5520_v30  ;;  %v5522_v40 = vpop.f32.mrb[53].mxu0  ;;  %v8019_v2 = vld [vmem:[#allocation3 + $0x18] sm:$0xf]  ;;  %v8078_v52 = vshrl.u32 %v8017_v38, 16 }
 0x329   : > { %6080 = vst [vmem:[#allocation3 + $0xa0] sm:$0xf] %v5890_v46  ;;  %6083 = vst [vmem:[#allocation3 + $0xa4] sm:$0x1] %v6082_v9  ;;  %v6475_v20 = vrot.slane %v6474_v13, 4  ;;  %v5523_v63 = vpop.f32.mrb[54].mxu0  ;;  %v6470_v25 = vsel %vm13482_vm11, %v6465_v60, %v6469_v4 }
 0x32a   : > { %12526 = vmatpush3.bf16.msra.mxu1 %v13163_v62  ;;  %v5569_v47 = vmax.f32 %v5521_v32, 0.0  ;;  %v5524_v23 = vadd.f32 %v15288_v51, %v5523_v63  ;;  %v5525_v41 = vpop.f32.mrb[55].mxu0  ;;  %v8074_v62 = vshll.u32 %v8017_v38, 16  ;;  %v8065_v60 = vshrl.u32 %v8016_v5, 16 }
 0x32b   : > { %v6480_v49 = vsel %vm13482_vm11, %v6475_v20, %v6479_v56  ;;  %12559 = vmatprep.subr.bf16.mxu1 %v15359_v45  ;;  %v8068_v13 = vshll.u32 %v8016_v5, 16  ;;  %v8084_v30 = vshll.u32 %v8018_v58, 16  ;;  %v8089_v20 = vshrl.u32 %v8019_v2, 16 }
 0x32c   : > { %v11542_v15 = vcombine.low %v6470_v25, %v6480_v49  ;;  %v11970_v53 = vpack.c.bf16 %v5569_v47, %v5569_v47  ;;  %v5570_v61 = vmax.f32 %v5524_v23, 0.0  ;;  %v15374_v56 = vrot.slane %v8074_v62, 5  ;;  %v8020_v49 = vld [vmem:[#allocation3 + $0x1c] sm:$0xf] }
 0x32d   : > { %v8080_v32 = vrot.slane %v8078_v52, 4  ;;  %v8092_v47 = vshll.u32 %v8019_v2, 16 }
 0x32e   : > { %12359 = vmatprep.mubr.bf16.mxu0 %v11542_v15  ;;  %v6131_v34 = vld [vmem:[#allocation3 + $0x9c] sm:$0xf]  ;;  %v5893_v44 = vshrl.u32 %v11970_v53, 16  ;;  %v11971_v43 = vpack.c.bf16 %v5570_v61, %v5570_v61  ;;  %v5896_v3 = vshll.u32 %v11970_v53, 16  ;;  %v15381_v53 = vrot.slane %v8065_v60, 4 }
 0x32f   : > { %v6482_v39 = vshrl.u32 %v6131_v34, 16  ;;  %v6485_v6 = vshll.u32 %v6131_v34, 16  ;;  %v15383_v61 = vrot.slane %v8068_v13, 5 }
 0x330   : > { %v13143_v22 = vld [vmem:[#allocation3 + $0x9c] sm:$0xff]   ;;  %v5895_v29 = vrot.slane %v5893_v44, 7  ;;  %v5901_v55 = vshrl.u32 %v11971_v43, 16  ;;  %v6166_v42 = vld [vmem:[#allocation3 + $0xa4] sm:$0x1]  ;;  %v5904_v16 = vshll.u32 %v11971_v43, 16 }
 0x331   : > { %v6132_v50 = vld [vmem:[#allocation3 + $0xa0] sm:$0xf]  ;;  %v6484_v28 = vrot.slane %v6482_v39, 4  ;;  %v6487_v7 = vrot.slane %v6485_v6, 5  ;;  %12503 = vmatprep.mubr.bf16.mxu1 %v13143_v22  ;;  %v6501_v54 = vshll.u32 %v6166_v42, 16  ;;  %v15385_v39 = vrot.slane %v8084_v30, 5 }
 0x332   : > { %v6491_v11 = vshll.u32 %v6132_v50, 16  ;;  %v6495_v59 = vshrl.u32 %v6132_v50, 16  ;;  %v5898_v12 = vor.u32 %v5896_v3, %v5895_v29  ;;  %v5903_v24 = vrot.slane %v5901_v55, 7  ;;  %v8022_v30 = vld [vmem:[#allocation3 + $0x24] sm:$0xf] }
 0x333   : > { %v6488_v57 = vor.u32 %v6487_v7, %v6484_v28  ;;  %v5899_v8 = vrot.slane %v5895_v29, 4  ;;  %v6503_v9 = vrot.slane %v6501_v54, 5  ;;  %v15387_v6 = vrot.slane %v8089_v20, 4  ;;  %v15393_v28 = vld [vmem:[#allocation3] sm:$0xf] }
 0x334   : > { %v6493_v26 = vrot.slane %v6491_v11, 5  ;;  %v6497_v48 = vrot.slane %v6495_v59, 4  ;;  %v6085_v4 = vsel %vm15119_vm0, %v5898_v12, %v6084_v19  ;;  %v5906_v1 = vor.u32 %v5904_v16, %v5903_v24  ;;  %v15395_v7 = vld [vmem:[#allocation3 + $0x4] sm:$0xf]  ;;  %v15407_v12 = vld [vmem:[#allocation3 + $0xc] sm:$0xf] }
 0x335   : > { %v5908_v18 = vrot.slane %v5903_v24, 4  ;;  %6086 = vst [vmem:[#allocation3 + $0xa8] sm:$0xf] %v6085_v4  ;;  %v6489_v14 = vrot.slane %v6488_v57, 4  ;;  %v8081_v50 = vor.u32 %v8080_v32, %v15374_v56  ;;  %v11554_v38 = vcombine.low %v15393_v28, %v15395_v7  ;;  %v15409_v24 = vld [vmem:[#allocation3 + $0x10] sm:$0xf] }
 0x336   : > { %v6498_v33 = vor.u32 %v6497_v48, %v6493_v26  ;;  %v5907_v31 = vsel %vm13659_vm15, %v5899_v8, %v5906_v1  ;;  %v15401_v55 = vrot.slane %v8092_v47, 5  ;;  %v8098_v42 = vshll.u32 %v8020_v49, 16  ;;  %v8021_v4 = vld [vmem:[#allocation3 + $0x20] sm:$0x1]  ;;  %v6095_v20 = vld [vmem:[#allocation3 + $0xbc] sm:$0x1] }
 0x337   : > { %v6089_v0 = vsel %vm14919_vm13, %v5908_v18, %v6088_v17  ;;  %6087 = vst [vmem:[#allocation3 + $0xac] sm:$0xf] %v5907_v31  ;;  %v6494_v63 = vsel %vm13482_vm11, %v6489_v14, %v6493_v26  ;;  %v8071_v5 = vor.u32 %v15383_v61, %v15381_v53  ;;  %v11555_v16 = vcombine.low %v15407_v12, %v15409_v24  ;;  %v6091_v18 = vld [vmem:[#allocation3 + $0xb4] sm:$0xf]  ;;  %v15571_v28 = vld [vmem:[#allocation3 + $0x50] sm:$0x1] }
 0x338   : > { %6090 = vst [vmem:[#allocation3 + $0xb0] sm:$0x1] %v6089_v0  ;;  %v6499_v46 = vrot.slane %v6498_v33, 4  ;;  %v15415_v8 = vrot.slane %v8081_v50, 4  ;;  %v8102_v1 = vshrl.u32 %v8020_v49, 16  ;;  %17011 = vst [vmem:[#allocation14_spill] sm:$0xff] %v15571_v28 }
 0x339   : > { %v5528_v40 = vpop.f32.mrb[56].mxu0 }
 0x33a   : > { %v6504_v25 = vsel %vm13482_vm11, %v6499_v46, %v6503_v9  ;;  %v5529_v23 = vadd.f32 %v15288_v51, %v5528_v40  ;;  %v5530_v41 = vpop.f32.mrb[57].mxu0  ;;  %v8095_v9 = vor.u32 %v15401_v55, %v15387_v6 }
 0x33b   : > { %v11543_v15 = vcombine.low %v6494_v63, %v6504_v25  ;;  %v5531_v34 = vpop.f32.mrb[58].mxu0  ;;  %v15419_v63 = vrot.slane %v8098_v42, 5  ;;  %v8108_v25 = vshll.u32 %v8021_v4, 16  ;;  %v8104_v41 = vrot.slane %v8102_v1, 4  ;;  %v8025_v42 = vld [vmem:[#allocation3 + $0x30] sm:$0xf] }
 0x33c   : > { %v5571_v44 = vmax.f32 %v5529_v23, 0.0  ;;  %v5532_v43 = vadd.f32 %v15288_v51, %v5531_v34  ;;  %v5533_v22 = vpop.f32.mrb[59].mxu0  ;;  %v15390_v19 = vld [vmem:[#allocation3 + $0xa8] sm:$0xf] }
 0x33d   : > { %12360 = vmatmul.mubr.bf16.gmra.mrb[88].mxu0 %v11543_v15  ;;  %v6506_v29 = vshrl.u32 %v15390_v19, 16  ;;  %v6509_v3 = vshll.u32 %v15390_v19, 16  ;;  %v15421_v15 = vld [vmem:[#allocation3 + $0x28] sm:$0xf]  ;;  %v8116_v22 = vshll.u32 %v8022_v30, 16 }
 0x33e   : > { %v11972_v11 = vpack.c.bf16 %v5571_v44, %v5571_v44  ;;  %v5572_v17 = vmax.f32 %v5532_v43, 0.0  ;;  %v13145_v57 = vld [vmem:[#allocation3 + $0xa8] sm:$0xff]   ;;  %v8113_v43 = vshrl.u32 %v8022_v30, 16  ;;  %v8126_v4 = vshrl.u32 %v15421_v15, 16 }
 0x33f   : > { %v15403_v59 = vld [vmem:[#allocation3 + $0xac] sm:$0xf]  ;;  %v6167_v26 = vld [vmem:[#allocation3 + $0xb0] sm:$0x1]  ;;  %v6508_v58 = vrot.slane %v6506_v29, 4  ;;  %v6511_v2 = vrot.slane %v6509_v3, 5  ;;  %12504 = vmatmul.mubr.bf16.gmra.mrb[8].mxu1 %v13145_v57 }
 0x340   : > { %v6515_v48 = vshll.u32 %v15403_v59, 16  ;;  %v6519_v54 = vshrl.u32 %v15403_v59, 16  ;;  %v5910_v62 = vshrl.u32 %v11972_v11, 16  ;;  %v11973_v52 = vpack.c.bf16 %v5572_v17, %v5572_v17 }
 0x341   : > { %v6512_v14 = vor.u32 %v6511_v2, %v6508_v58  ;;  %v6525_v0 = vshll.u32 %v6167_v26, 16  ;;  %v5913_v13 = vshll.u32 %v11972_v11, 16  ;;  %v8122_v58 = vshll.u32 %v15421_v15, 16 }
 0x342   : > { %v6517_v33 = vrot.slane %v6515_v48, 5  ;;  %v6521_v31 = vrot.slane %v6519_v54, 4  ;;  %v5912_v60 = vrot.slane %v5910_v62, 7  ;;  %v5918_v46 = vshrl.u32 %v11973_v52, 16 }
 0x343   : > { %v6513_v32 = vrot.slane %v6512_v14, 4  ;;  %v5921_v23 = vshll.u32 %v11973_v52, 16  ;;  %v6527_v44 = vrot.slane %v6525_v0, 5  ;;  %v15435_v52 = vld [vmem:[#allocation3 + $0x2c] sm:$0x1]  ;;  %v8137_v0 = vshrl.u32 %v8025_v42, 16 }
 0x344   : > { %v6522_v40 = vor.u32 %v6521_v31, %v6517_v33  ;;  %v5915_v47 = vor.u32 %v5913_v13, %v5912_v60  ;;  %v5920_v49 = vrot.slane %v5918_v46, 7  ;;  %v5916_v50 = vrot.slane %v5912_v60, 4  ;;  %17005 = vst [vmem:[#allocation11_spill] sm:$0xff] %v15435_v52  ;;  %v15440_v31 = vld [vmem:[#allocation3 + $0x34] sm:$0xf] }
 0x345   : > { %v6518_v57 = vsel %vm13482_vm11, %v6513_v32, %v6517_v33  ;;  %v8105_v33 = vor.u32 %v8104_v41, %v15419_v63  ;;  %v8072_v60 = vrot.slane %v8071_v5, 4  ;;  %v15445_v13 = vrot.slane %v8095_v9, 4 }
 0x346   : > { %v6523_v34 = vrot.slane %v6522_v40, 4  ;;  %v6092_v6 = vsel %vm15119_vm0, %v5915_v47, %v6091_v18  ;;  %v5923_v29 = vor.u32 %v5921_v23, %v5920_v49  ;;  %v5925_v3 = vrot.slane %v5920_v49, 4  ;;  %v5536_v55 = vpop.f32.mrb[60].mxu0 }
 0x347   : > { %6093 = vst [vmem:[#allocation3 + $0xb4] sm:$0xf] %v6092_v6  ;;  %v5537_v11 = vadd.f32 %v15288_v51, %v5536_v55  ;;  %v5538_v17 = vpop.f32.mrb[61].mxu0  ;;  %v15447_v46 = vrot.slane %v8108_v25, 5  ;;  %v8140_v30 = vshll.u32 %v8025_v42, 16  ;;  %v15453_v40 = vrot.slane %v8113_v43, 4 }
 0x348   : > { %v6528_v26 = vsel %vm13482_vm11, %v6523_v34, %v6527_v44  ;;  %v5924_v2 = vsel %vm13659_vm15, %v5916_v50, %v5923_v29  ;;  %v6096_v48 = vsel %vm14919_vm13, %v5925_v3, %v6095_v20  ;;  %v5539_v54 = vpop.f32.mrb[62].mxu0  ;;  %v15455_v47 = vrot.slane %v8116_v22, 5  ;;  %v15473_v34 = vld [vmem:[#allocation3 + $0x1c] sm:$0xf]  ;;  %v6098_v29 = vld [vmem:[#allocation3 + $0xc0] sm:$0xf] }
 0x349   : > { %v11544_v62 = vcombine.low %v6518_v57, %v6528_v26  ;;  %6094 = vst [vmem:[#allocation3 + $0xb8] sm:$0xf] %v5924_v2  ;;  %6097 = vst [vmem:[#allocation3 + $0xbc] sm:$0x1] %v6096_v48  ;;  %v5573_v1 = vmax.f32 %v5537_v11, 0.0  ;;  %v5540_v18 = vadd.f32 %v15288_v51, %v5539_v54  ;;  %v5541_v14 = vpop.f32.mrb[63].mxu0  ;;  %v8087_v51 = vsel %vm13482_vm11, %v15415_v8, %v15385_v39 }
 0x34a   : > { %v15457_v49 = vrot.slane %v8122_v58, 5  ;;  %v15459_v53 = vrot.slane %v8126_v4, 4  ;;  %v8132_v61 = vshll.u32 %v15435_v52, 16  ;;  %v15462_v25 = vrot.slane %v8105_v33, 4  ;;  %v15471_v8 = vld [vmem:[#allocation3 + $0x18] sm:$0xf] }
 0x34b   : > { %12363 = vmatprep.mubr.bf16.mxu0 %v11544_v62  ;;  %v11974_v20 = vpack.c.bf16 %v5573_v1, %v5573_v1  ;;  %v5574_v32 = vmax.f32 %v5540_v18, 0.0  ;;  %v15464_v23 = vrot.slane %v8137_v0, 4  ;;  %v8077_v39 = vsel %vm13482_vm11, %v8072_v60, %v15374_v56  ;;  %v15488_v26 = vld [vmem:[#allocation3 + $0x24] sm:$0xf]  ;;  %v15490_v58 = vld [vmem:[#allocation3 + $0x28] sm:$0xf] }
 0x34c   : > { %v11556_v44 = vcombine.low %v15471_v8, %v15473_v34  ;;  %v15477_v43 = vrot.slane %v8140_v30, 5  ;;  %v8146_v22 = vshll.u32 %v15440_v31, 16  ;;  %v15484_v17 = vcombine.low %v8077_v39, %v8087_v51  ;;  %v8028_v48 = vld [vmem:[#allocation3 + $0x3c] sm:$0xf]  ;;  %v6102_v14 = vld [vmem:[#allocation3 + $0xc8] sm:$0x1] }
 0x34d   : > { %v5927_v5 = vshrl.u32 %v11974_v20, 16  ;;  %v11975_v9 = vpack.c.bf16 %v5574_v32, %v5574_v32  ;;  %v5930_v6 = vshll.u32 %v11974_v20, 16  ;;  %v8129_v57 = vor.u32 %v15459_v53, %v15457_v49 }
 0x34e   : > { %v15466_v41 = vld [vmem:[#allocation3 + $0xb4] sm:$0xf]  ;;  %v8150_v30 = vshrl.u32 %v15440_v31, 16  ;;  %v8111_v10 = vsel %vm13482_vm11, %v15462_v25, %v15447_v46  ;;  %v8119_v36 = vor.u32 %v15455_v47, %v15453_v40 }
 0x34f   : > { %v5929_v50 = vrot.slane %v5927_v5, 7  ;;  %v5935_v3 = vshrl.u32 %v11975_v9, 16  ;;  %v6530_v55 = vshrl.u32 %v15466_v41, 16  ;;  %v6533_v56 = vshll.u32 %v15466_v41, 16  ;;  %v15499_v5 = vld [vmem:[#allocation3 + $0x40] sm:$0xf] }
 0x350   : > { %v13152_v42 = vld [vmem:[#allocation3 + $0xb4] sm:$0xff]   ;;  %v5938_v4 = vshll.u32 %v11975_v9, 16  ;;  %v6168_v1 = vld [vmem:[#allocation3 + $0xbc] sm:$0x1]  ;;  %17006 = vst [vmem:[#allocation5_spill] sm:$0xff] %v15499_v5 }
 0x351   : > { %v15481_v11 = vld [vmem:[#allocation3 + $0xb8] sm:$0xf]  ;;  %v5932_v54 = vor.u32 %v5930_v6, %v5929_v50  ;;  %v5937_v62 = vrot.slane %v5935_v3, 7  ;;  %v6532_v18 = vrot.slane %v6530_v55, 4  ;;  %12507 = vmatprep.mubr.bf16.mxu1 %v13152_v42  ;;  %v6535_v33 = vrot.slane %v6533_v56, 5 }
 0x352   : > { %v6539_v0 = vshll.u32 %v15481_v11, 16  ;;  %v6543_v60 = vshrl.u32 %v15481_v11, 16  ;;  %v5933_v20 = vrot.slane %v5929_v50, 4  ;;  %v6549_v3 = vshll.u32 %v6168_v1, 16 }
 0x353   : > { %v6099_v32 = vsel %vm15119_vm0, %v5932_v54, %v6098_v29  ;;  %v5940_v51 = vor.u32 %v5938_v4, %v5937_v62  ;;  %v5942_v53 = vrot.slane %v5937_v62, 4  ;;  %v6536_v9 = vor.u32 %v6535_v33, %v6532_v18  ;;  %v15517_v33 = vld [vmem:[#allocation3 + $0x38] sm:$0x1] }
 0x354   : > { %6100 = vst [vmem:[#allocation3 + $0xc0] sm:$0xf] %v6099_v32  ;;  %v6541_v39 = vrot.slane %v6539_v0, 5  ;;  %v6545_v6 = vrot.slane %v6543_v60, 4  ;;  %v8161_v56 = vshrl.u32 %v8028_v48, 16  ;;  %v8164_v50 = vshll.u32 %v8028_v48, 16 }
 0x355   : > { %v5941_v55 = vsel %vm13659_vm15, %v5933_v20, %v5940_v51  ;;  %v6103_v42 = vsel %vm14919_vm13, %v5942_v53, %v6102_v14  ;;  %v6537_v27 = vrot.slane %v6536_v9, 4  ;;  %v8170_v54 = vshll.u32 %v15499_v5, 16  ;;  %17007 = vst [vmem:[#allocation12_spill] sm:$0xff] %v15517_v33  ;;  %v15521_v60 = vld [vmem:[#allocation3 + $0x4c] sm:$0xf] }
 0x356   : > { %6101 = vst [vmem:[#allocation3 + $0xc4] sm:$0xf] %v5941_v55  ;;  %6104 = vst [vmem:[#allocation3 + $0xc8] sm:$0x1] %v6103_v42  ;;  %v6546_v29 = vor.u32 %v6545_v6, %v6541_v39  ;;  %v8174_v62 = vshrl.u32 %v15499_v5, 16  ;;  %v8101_v4 = vsel %vm13482_vm11, %v15445_v13, %v15419_v63  ;;  %v8134_v48 = vrot.slane %v8132_v61, 5 }
 0x357   : > { %v6551_v18 = vrot.slane %v6549_v3, 5  ;;  %v8130_v14 = vrot.slane %v8129_v57, 4  ;;  %v8143_v0 = vor.u32 %v15477_v43, %v15464_v23  ;;  %17008 = vst [vmem:[#allocation6_spill] sm:$0xff] %v15521_v60  ;;  %v15523_v63 = vrot.slane %v8146_v22, 5  ;;  %v15525_v20 = vld [vmem:[#allocation3 + $0x44] sm:$0x1] }
 0x358   : > { %v6547_v1 = vrot.slane %v6546_v29, 4  ;;  %v8152_v13 = vrot.slane %v8150_v30, 4  ;;  %17009 = vst [vmem:[#allocation13_spill] sm:$0xff] %v15525_v20  ;;  %v8163_v46 = vrot.slane %v8161_v56, 4  ;;  %v8166_v25 = vrot.slane %v8164_v50, 5 }
 0x359   : > { %v6542_v40 = vsel %vm13482_vm11, %v6537_v27, %v6541_v39  ;;  %v15531_v61 = vrot.slane %v8170_v54, 5  ;;  %v8176_v57 = vrot.slane %v8174_v62, 4  ;;  %v8031_v32 = vld [vmem:[#allocation3 + $0x48] sm:$0xf]  ;;  %v8120_v43 = vrot.slane %v8119_v36, 4 }
 0x35a   : > { %v6552_v47 = vsel %vm13482_vm11, %v6547_v1, %v6551_v18  ;;  %v8194_v22 = vshll.u32 %v15521_v60, 16  ;;  %v8198_v30 = vshrl.u32 %v15521_v60, 16  ;;  %v15535_v51 = vcombine.low %v8101_v4, %v8111_v10  ;;  %v15537_v53 = vld [vmem:[#allocation3 + $0x30] sm:$0xf]  ;;  %v15539_v9 = vld [vmem:[#allocation3 + $0x34] sm:$0xf] }
 0x35b   : > { %v11545_v23 = vcombine.low %v6542_v40, %v6552_v47  ;;  %v15543_v6 = vrot.slane %v8143_v0, 4  ;;  %v15545_v3 = vld [vmem:[#allocation3 + $0x3c] sm:$0xf]  ;;  %v15547_v55 = vld [vmem:[#allocation3 + $0x40] sm:$0xf]  ;;  %v8135_v50 = vsel %vm13482_vm11, %v8130_v14, %v8134_v48  ;;  %v8153_v27 = vor.u32 %v8152_v13, %v15523_v63 }
 0x35c   : > { %v8156_v29 = vshll.u32 %v15517_v33, 16  ;;  %v8167_v54 = vor.u32 %v8166_v25, %v8163_v46  ;;  %v15555_v62 = vld [vmem:[#allocation3 + $0x58] sm:$0xf]  ;;  %v8177_v4 = vor.u32 %v8176_v57, %v15531_v61  ;;  %v8180_v10 = vshll.u32 %v15525_v20, 16  ;;  %v15565_v18 = vld [vmem:[#allocation3 + $0x48] sm:$0xf] }
 0x35d   : > { %12364 = vmatmul.mubr.bf16.gmra.mrb[92].mxu0 %v11545_v23  ;;  %v13161_v56 = vld [vmem:[#allocation3 + $0xc0] sm:$0xff]   ;;  %17010 = vst [vmem:[#allocation7_spill] sm:$0xff] %v15555_v62  ;;  %v8185_v36 = vshrl.u32 %v8031_v32, 16  ;;  %v8188_v1 = vshll.u32 %v8031_v32, 16  ;;  %v8125_v48 = vsel %vm13482_vm11, %v8120_v43, %v15457_v49  ;;  %v15567_v14 = vld [vmem:[#allocation3 + $0x4c] sm:$0xf]  ;;  %v8149_v49 = vsel %vm13482_vm11, %v15543_v6, %v15523_v63 }
 0x35e   : > { %12383 = vmatprep.mubr.bf16.mxu0 %v11554_v38  ;;  %12508 = vmatmul.mubr.bf16.gmra.mrb[12].mxu1 %v13161_v56  ;;  %v15573_v38 = vrot.slane %v8194_v22, 5  ;;  %v8200_v13 = vrot.slane %v8198_v30, 4  ;;  %v11692_v46 = vcombine.low %v8125_v48, %v8135_v50  ;;  %v8034_v25 = vld [vmem:[#allocation3 + $0x54] sm:$0xf]  ;;  %v8218_v40 = vshll.u32 %v15555_v62, 16 }
 0x35f   : > { %12527 = vmatprep.mubr.bf16.mxu1 %v15484_v17  ;;  %v8222_v47 = vshrl.u32 %v15555_v62, 16  ;;  %v8037_v57 = vld [vmem:[#allocation3 + $0x60] sm:$0xf]  ;;  %v8154_v32 = vrot.slane %v8153_v27, 4  ;;  %v8158_v23 = vrot.slane %v8156_v29, 5  ;;  %v8168_v43 = vrot.slane %v8167_v54, 4 }
 0x360   : > { %v15582_v22 = vld [vmem:[#allocation3 + $0x54] sm:$0xf]  ;;  %v15584_v30 = vld [vmem:[#allocation3 + $0x58] sm:$0xf]  ;;  %v8178_v56 = vrot.slane %v8177_v4, 4  ;;  %v8182_v50 = vrot.slane %v8180_v10, 5  ;;  %v8201_v0 = vor.u32 %v8200_v13, %v15573_v38 }
 0x361   : > { %v8187_v48 = vrot.slane %v8185_v36, 4  ;;  %v8190_v63 = vrot.slane %v8188_v1, 5  ;;  %v15588_v6 = vld [vmem:[#allocation3 + $0x64] sm:$0xf]  ;;  %v8204_v42 = vshll.u32 %v15571_v28, 16  ;;  %v8209_v27 = vshrl.u32 %v8034_v25, 16 }
 0x362   : > { %17012 = vst [vmem:[#allocation8_spill] sm:$0xff] %v15588_v6  ;;  %v8212_v29 = vshll.u32 %v8034_v25, 16  ;;  %v13180_v54 = vld [vmem:[%s16924_s4 + $0x88] sm:$0xff]   ;;  %v15595_v39 = vld [vmem:[#allocation3 + $0x5c] sm:$0x1]  ;;  %v15597_v2 = vrot.slane %v8218_v40, 5  ;;  %v8159_v13 = vsel %vm13482_vm11, %v8154_v32, %v8158_v23  ;;  %v8173_v12 = vsel %vm13482_vm11, %v8168_v43, %v15531_v61 }
 0x363   : > { %17013 = vst [vmem:[#allocation9_spill] sm:$0xff] %v15595_v39  ;;  %v8224_v4 = vrot.slane %v8222_v47, 4  ;;  %v8233_v10 = vshrl.u32 %v8037_v57, 16  ;;  %v8236_v36 = vshll.u32 %v8037_v57, 16  ;;  %v13169_v1 = vld [vmem:[%s16924_s4 + $0x148] sm:$0xff]   ;;  %v8242_v47 = vshll.u32 %v15588_v6, 16 }
 0x364   : > { %v15607_v25 = vld [vmem:[#allocation3 + $0x60] sm:$0xf]  ;;  %v15609_v17 = vld [vmem:[#allocation3 + $0x64] sm:$0xf]  ;;  %v8246_v57 = vshrl.u32 %v15588_v6, 16  ;;  %v8191_v32 = vor.u32 %v8190_v63, %v8187_v48  ;;  %v13262_v40 = vld [vmem:[%s16924_s4 + $0x80] sm:$0xff]  }
 0x365   : > { %12384 = vmatmul.mubr.bf16.vlgmr.msra.gmra.mrb[64].mxu0 %v11555_v16  ;;  %v8183_v16 = vsel %vm13482_vm11, %v8178_v56, %v8182_v50  ;;  %v15623_v23 = vld [vmem:[#allocation3 + $0x70] sm:$0xf]  ;;  %v15629_v6 = vrot.slane %v8201_v0, 4  ;;  %v15631_v8 = vrot.slane %v8209_v27, 4  ;;  %v8228_v61 = vshll.u32 %v15595_v39, 16  ;;  %v13182_v43 = vld [vmem:[%s16924_s4 + $0x90] sm:$0xff]  }
 0x366   : > { %12387 = vmatprep.mubr.bf16.mxu0 %v11556_v44  ;;  %17014 = vst [vmem:[#allocation10_spill] sm:$0xff] %v15623_v23  ;;  %12416 = vmatpush3.bf16.msra.mxu0 %v13262_v40  ;;  %v15633_v44 = vrot.slane %v8212_v29, 5  ;;  %v15643_v0 = vrot.slane %v8204_v42, 5  ;;  %v8225_v56 = vor.u32 %v8224_v4, %v15597_v2  ;;  %v15646_v50 = vld [vmem:[#allocation3 + $0x68] sm:$0x1]  ;;  %v8235_v48 = vrot.slane %v8233_v10, 4 }
 0x367   : > { %12528 = vmatmul.mubr.bf16.vlgmr.msra.gmra.mrb[16].mxu1 %v15535_v51  ;;  %12417 = vmatprep.subr.bf16.mxu0 %v13180_v54  ;;  %v13172_v51 = vld [vmem:[%s16924_s4 + $0x150] sm:$0xff]   ;;  %17015 = vst [vmem:[#allocation15_spill] sm:$0xff] %v15646_v50  ;;  %v8238_v63 = vrot.slane %v8236_v36, 5  ;;  %v15648_v27 = vrot.slane %v8242_v47, 5  ;;  %v8248_v29 = vrot.slane %v8246_v57, 4  ;;  %v11693_v39 = vcombine.low %v8149_v49, %v8159_v13 }
 0x368   : > { %12560 = vmatpush3.bf16.msra.mxu1 %v15359_v45  ;;  %12531 = vmatprep.mubr.bf16.mxu1 %v11692_v46  ;;  %v8040_v40 = vld [vmem:[#allocation3 + $0x6c] sm:$0xf]  ;;  %v8266_v45 = vshll.u32 %v15623_v23, 16  ;;  %v8270_v46 = vshrl.u32 %v15623_v23, 16  ;;  %v11694_v28 = vcombine.low %v8173_v12, %v8183_v16  ;;  %v15652_v62 = vrot.slane %v8191_v32, 4  ;;  %v13175_v12 = vld [vmem:[%s16924_s4 + $0x158] sm:$0xff]  }
 0x369   : > { %12561 = vmatprep.subr.bf16.mxu1 %v13169_v1  ;;  %v15654_v42 = vld [vmem:[#allocation3 + $0x6c] sm:$0xf]  ;;  %v15656_v4 = vld [vmem:[#allocation3 + $0x70] sm:$0xf]  ;;  %v8043_v36 = vld [vmem:[#allocation3 + $0x78] sm:$0xf]  ;;  %v8215_v49 = vor.u32 %v15633_v44, %v15631_v8  ;;  %v17017_v23 = vcombine.low %v15488_v26, %v15490_v58  ;;  %v8239_v60 = vor.u32 %v8238_v63, %v8235_v48  ;;  %v8249_v20 = vor.u32 %v8248_v29, %v15648_v27 }
 0x36a   : > { %12418 = vmatpush3.bf16.msra.mxu0 %v13180_v54  ;;  %v15666_v13 = vrot.slane %v8228_v61, 5  ;;  %v15668_v57 = vld [vmem:[#allocation3 + $0x78] sm:$0xf]  ;;  %v15672_v16 = vld [vmem:[#allocation3 + $0x7c] sm:$0xf]  ;;  %v13185_v54 = vld [vmem:[%s16924_s4 + $0x98] sm:$0xff]  }
 0x36b   : > { %17016 = vst [vmem:[#allocation16_spill] sm:$0xff] %v15672_v16  ;;  %v8046_v32 = vld [vmem:[#allocation3 + $0x84] sm:$0xf]  ;;  %12419 = vmatprep.subr.bf16.mxu0 %v13182_v43  ;;  %v8226_v10 = vrot.slane %v8225_v56, 4  ;;  %v8252_v47 = vshll.u32 %v15646_v50, 16  ;;  %v8257_v8 = vshrl.u32 %v8040_v40, 16 }
 0x36c   : > { %12562 = vmatpush3.bf16.msra.mxu1 %v13169_v1  ;;  %v8260_v44 = vshll.u32 %v8040_v40, 16  ;;  %v15678_v61 = vld [vmem:[#allocation3 + $0x88] sm:$0xf]  ;;  %v15687_v1 = vrot.slane %v8266_v45, 5  ;;  %v8272_v56 = vrot.slane %v8270_v46, 4  ;;  %v17018_v40 = vcombine.low %v15537_v53, %v15539_v9 }
 0x36d   : > { %12388 = vmatmul.mubr.bf16.gmra.mrb[68].mxu0 %v17017_v23  ;;  %12563 = vmatprep.subr.bf16.mxu1 %v13172_v51  ;;  %v8281_v50 = vshrl.u32 %v8043_v36, 16  ;;  %v8284_v33 = vshll.u32 %v8043_v36, 16  ;;  %v8290_v26 = vshll.u32 %v15672_v16, 16  ;;  %v8294_v23 = vshrl.u32 %v15672_v16, 16  ;;  %v13187_v53 = vld [vmem:[%s16924_s4 + $0xa0] sm:$0xff]  }
 0x36e   : > { %12391 = vmatprep.mubr.bf16.mxu0 %v17018_v40  ;;  %12420 = vmatpush3.bf16.msra.mxu0 %v13182_v43  ;;  %v8305_v5 = vshrl.u32 %v8046_v32, 16  ;;  %v8308_v52 = vshll.u32 %v8046_v32, 16  ;;  %v8314_v48 = vshll.u32 %v15678_v61, 16  ;;  %v8318_v63 = vshrl.u32 %v15678_v61, 16  ;;  %v15702_v40 = vld [vmem:[#allocation3 + $0x74] sm:$0x1] }
 0x36f   : > { %12532 = vmatmul.mubr.bf16.gmra.mrb[20].mxu1 %v11693_v39  ;;  %12421 = vmatprep.subr.bf16.mxu0 %v13185_v54  ;;  %v8216_v29 = vrot.slane %v8215_v49, 4  ;;  %v8254_v45 = vrot.slane %v8252_v47, 5  ;;  %v8259_v46 = vrot.slane %v8257_v8, 4  ;;  %v8262_v36 = vrot.slane %v8260_v44, 5 }
 0x370   : > { %12535 = vmatprep.mubr.bf16.mxu1 %v11694_v28  ;;  %12564 = vmatpush3.bf16.msra.mxu1 %v13172_v51  ;;  %v8231_v39 = vsel %vm13482_vm11, %v8226_v10, %v15666_v13  ;;  %v8240_v43 = vrot.slane %v8239_v60, 4  ;;  %v8250_v32 = vrot.slane %v8249_v20, 4  ;;  %v8273_v16 = vor.u32 %v8272_v56, %v15687_v1  ;;  %v13179_v28 = vld [vmem:[%s16924_s4 + $0x160] sm:$0xff]   ;;  %v15708_v51 = vld [vmem:[#allocation3 + $0x80] sm:$0x1]  ;;  %v13190_v56 = vld [vmem:[%s16924_s4 + $0xa8] sm:$0xff]  }
 0x371   : > { %12565 = vmatprep.subr.bf16.mxu1 %v13175_v12  ;;  %17019 = vst [vmem:[#allocation17_spill] sm:$0xff] %v15708_v51  ;;  %v8283_v47 = vrot.slane %v8281_v50, 4  ;;  %v8286_v49 = vrot.slane %v8284_v33, 5  ;;  %v15710_v8 = vrot.slane %v8290_v26, 5  ;;  %v8296_v44 = vrot.slane %v8294_v23, 4 }
 0x372   : > { %12422 = vmatpush3.bf16.msra.mxu0 %v13185_v54  ;;  %v8307_v10 = vrot.slane %v8305_v5, 4  ;;  %v8310_v13 = vrot.slane %v8308_v52, 5  ;;  %v15712_v60 = vrot.slane %v8314_v48, 5  ;;  %v8320_v20 = vrot.slane %v8318_v63, 4 }
 0x373   : > { %12423 = vmatprep.subr.bf16.mxu0 %v13187_v53  ;;  %v8197_v50 = vsel %vm13482_vm11, %v15652_v62, %v15573_v38  ;;  %v8221_v33 = vsel %vm13482_vm11, %v8216_v29, %v15597_v2  ;;  %v8263_v5 = vor.u32 %v8262_v36, %v8259_v46  ;;  %v8276_v52 = vshll.u32 %v15702_v40, 16  ;;  %v13184_v2 = vld [vmem:[%s16924_s4 + $0x168] sm:$0xff]   ;;  %v15745_v29 = vld [vmem:[#allocation3 + $0x8c] sm:$0x1] }
 0x374   : > { %12566 = vmatpush3.bf16.msra.mxu1 %v13175_v12  ;;  %v17020_v54 = vcombine.low %v15545_v3, %v15547_v55  ;;  %v17021_v26 = vsel %vm13482_vm11, %v15629_v6, %v15643_v0  ;;  %v11696_v48 = vcombine.low %v8221_v33, %v8231_v39  ;;  %v8255_v62 = vsel %vm13482_vm11, %v8250_v32, %v8254_v45  ;;  %v15738_v38 = vld [vmem:[#allocation3 + $0x94] sm:$0xf]  ;;  %v15747_v45 = vld [vmem:[#allocation3 + $0xa0] sm:$0xf] }
 0x375   : > { %v11695_v23 = vcombine.low %v8197_v50, %v17021_v26  ;;  %12567 = vmatprep.subr.bf16.mxu1 %v13179_v28  ;;  %v17022_v3 = vcombine.low %v15565_v18, %v15567_v14  ;;  %v8274_v12 = vrot.slane %v8273_v16, 4  ;;  %v8287_v63 = vor.u32 %v8286_v49, %v8283_v47  ;;  %v13192_v16 = vld [vmem:[%s16924_s4 + $0xb0] sm:$0xff]   ;;  %v8049_v47 = vld [vmem:[#allocation3 + $0x90] sm:$0xf] }
 0x376   : > { %12392 = vmatmul.mubr.bf16.gmra.mrb[72].mxu0 %v17020_v54  ;;  %v8297_v6 = vor.u32 %v8296_v44, %v15710_v8  ;;  %v8300_v0 = vshll.u32 %v15708_v51, 16  ;;  %v8245_v46 = vsel %vm13482_vm11, %v8240_v43, %v15648_v27  ;;  %v8311_v36 = vor.u32 %v8310_v13, %v8307_v10  ;;  %v8052_v43 = vld [vmem:[#allocation3 + $0x9c] sm:$0xf] }
 0x377   : > { %12395 = vmatprep.mubr.bf16.mxu0 %v17022_v3  ;;  %12424 = vmatpush3.bf16.msra.mxu0 %v13187_v53  ;;  %v8321_v18 = vor.u32 %v8320_v20, %v15712_v60  ;;  %v8264_v39 = vrot.slane %v8263_v5, 4  ;;  %v8278_v32 = vrot.slane %v8276_v52, 5  ;;  %v8338_v53 = vshll.u32 %v15738_v38, 16  ;;  %v13189_v20 = vld [vmem:[%s16924_s4 + $0x170] sm:$0xff]  }
 0x378   : > { %12536 = vmatmul.mubr.bf16.gmra.mrb[24].mxu1 %v11695_v23  ;;  %12425 = vmatprep.subr.bf16.mxu0 %v13190_v56  ;;  %v8342_v49 = vshrl.u32 %v15738_v38, 16  ;;  %v11697_v44 = vcombine.low %v8245_v46, %v8255_v62  ;;  %v8324_v27 = vshll.u32 %v15745_v29, 16  ;;  %v8362_v10 = vshll.u32 %v15747_v45, 16 }
 0x379   : > { %12539 = vmatprep.mubr.bf16.mxu1 %v11696_v48  ;;  %12568 = vmatpush3.bf16.msra.mxu1 %v13179_v28  ;;  %v8366_v13 = vshrl.u32 %v15747_v45, 16  ;;  %v8279_v28 = vsel %vm13482_vm11, %v8274_v12, %v8278_v32  ;;  %v8288_v50 = vrot.slane %v8287_v63, 4  ;;  %v8298_v33 = vrot.slane %v8297_v6, 4  ;;  %v13194_v48 = vld [vmem:[%s16924_s4 + $0xb8] sm:$0xff]  }
 0x37a   : > { %12569 = vmatprep.subr.bf16.mxu1 %v13184_v2  ;;  %v8302_v5 = vrot.slane %v8300_v0, 5  ;;  %v8312_v52 = vrot.slane %v8311_v36, 4  ;;  %v8322_v54 = vrot.slane %v8321_v18, 4  ;;  %v8329_v26 = vshrl.u32 %v8049_v47, 16  ;;  %v8055_v36 = vld [vmem:[#allocation3 + $0xa8] sm:$0xf] }
 0x37b   : > { %12426 = vmatpush3.bf16.msra.mxu0 %v13190_v56  ;;  %v8332_v23 = vshll.u32 %v8049_v47, 16  ;;  %v15769_v62 = vrot.slane %v8338_v53, 5  ;;  %v8344_v3 = vrot.slane %v8342_v49, 4  ;;  %v8353_v46 = vshrl.u32 %v8052_v43, 16 }
 0x37c   : > { %12427 = vmatprep.subr.bf16.mxu0 %v13192_v16  ;;  %v8356_v51 = vshll.u32 %v8052_v43, 16  ;;  %v17023_v12 = vcombine.low %v15582_v22, %v15584_v30  ;;  %v8269_v56 = vsel %vm13482_vm11, %v8264_v39, %v15687_v1  ;;  %v8326_v63 = vrot.slane %v8324_v27, 5  ;;  %v15790_v39 = vld [vmem:[#allocation3 + $0xac] sm:$0xf]  ;;  %v8058_v27 = vld [vmem:[#allocation3 + $0xb4] sm:$0xf] }
 0x37d   : > { %12570 = vmatpush3.bf16.msra.mxu1 %v13184_v2  ;;  %v15777_v6 = vrot.slane %v8362_v10, 5  ;;  %v8368_v0 = vrot.slane %v8366_v13, 4  ;;  %v13193_v2 = vld [vmem:[%s16924_s4 + $0x178] sm:$0xff]   ;;  %v17024_v18 = vcombine.low %v15607_v25, %v15609_v17  ;;  %v11698_v22 = vcombine.low %v8269_v56, %v8279_v28  ;;  %v15797_v43 = vld [vmem:[#allocation3 + $0xb8] sm:$0xf]  ;;  %v15818_v56 = vld [vmem:[%s16924_s4 + $0xc0] sm:$0xff]  }
 0x37e   : > { %12396 = vmatmul.mubr.bf16.gmra.mrb[76].mxu0 %v17023_v12  ;;  %12571 = vmatprep.subr.bf16.mxu1 %v13189_v20  ;;  %v8293_v32 = vsel %vm13482_vm11, %v8288_v50, %v15710_v8  ;;  %v8303_v1 = vsel %vm13482_vm11, %v8298_v33, %v8302_v5  ;;  %v8317_v47 = vsel %vm13482_vm11, %v8312_v52, %v15712_v60  ;;  %v8331_v53 = vrot.slane %v8329_v26, 4  ;;  %v15799_v8 = vld [vmem:[#allocation3 + $0x98] sm:$0x1]  ;;  %v15802_v28 = vld [vmem:[#allocation3 + $0xa4] sm:$0x1]  ;;  %v15810_v52 = vld [vmem:[%s16924_s4 + $0x180] sm:$0xff]  }
 0x37f   : > { %12399 = vmatprep.mubr.bf16.mxu0 %v17024_v18  ;;  %12428 = vmatpush3.bf16.msra.mxu0 %v13192_v16  ;;  %v8327_v25 = vsel %vm13482_vm11, %v8322_v54, %v8326_v63  ;;  %v8334_v49 = vrot.slane %v8332_v23, 5  ;;  %v8345_v10 = vor.u32 %v8344_v3, %v15769_v62  ;;  %v8355_v16 = vrot.slane %v8353_v46, 4 }
 0x380   : > { %12540 = vmatmul.mubr.bf16.gmra.mrb[28].mxu1 %v11697_v44  ;;  %12429 = vmatprep.subr.bf16.mxu0 %v13194_v48  ;;  %v8358_v44 = vrot.slane %v8356_v51, 5  ;;  %v8377_v13 = vshrl.u32 %v8055_v36, 16  ;;  %v8369_v60 = vor.u32 %v8368_v0, %v15777_v6  ;;  %v8380_v50 = vshll.u32 %v8055_v36, 16 }
 0x381   : > { %12543 = vmatprep.mubr.bf16.mxu1 %v11698_v22  ;;  %12572 = vmatpush3.bf16.msra.mxu1 %v13189_v20  ;;  %v8386_v33 = vshll.u32 %v15790_v39, 16  ;;  %v8390_v5 = vshrl.u32 %v15790_v39, 16  ;;  %v8401_v54 = vshrl.u32 %v8058_v27, 16  ;;  %v8404_v26 = vshll.u32 %v8058_v27, 16  ;;  %v15822_v22 = vld [vmem:[#allocation3 + $0xc4] sm:$0xf] }
 0x382   : > { %12573 = vmatprep.subr.bf16.mxu1 %v13193_v2  ;;  %v8410_v51 = vshll.u32 %v15797_v43, 16  ;;  %v8414_v20 = vshrl.u32 %v15797_v43, 16  ;;  %v11699_v23 = vcombine.low %v8293_v32, %v8303_v1  ;;  %v11700_v3 = vcombine.low %v8317_v47, %v8327_v25 }
 0x383   : > { %12430 = vmatpush3.bf16.msra.mxu0 %v13194_v48  ;;  %v8335_v46 = vor.u32 %v8334_v49, %v8331_v53  ;;  %v8348_v12 = vshll.u32 %v15799_v8, 16  ;;  %v8346_v63 = vrot.slane %v8345_v10, 4  ;;  %v8359_v0 = vor.u32 %v8358_v44, %v8355_v16  ;;  %v8061_v16 = vld [vmem:[#allocation3 + $0xc0] sm:$0xf] }
 0x384   : > { %12463 = vmatprep.subr.bf16.mxu0 %v15818_v56  ;;  %v8372_v36 = vshll.u32 %v15802_v28, 16  ;;  %v8379_v18 = vrot.slane %v8377_v13, 4  ;;  %v17025_v48 = vcombine.low %v15654_v42, %v15656_v4  ;;  %v8370_v32 = vrot.slane %v8369_v60, 4 }
 0x385   : > { %12574 = vmatpush3.bf16.msra.mxu1 %v13193_v2  ;;  %v8382_v1 = vrot.slane %v8380_v50, 5  ;;  %v15827_v47 = vrot.slane %v8386_v33, 5  ;;  %v8392_v25 = vrot.slane %v8390_v5, 4  ;;  %v17026_v53 = vcombine.low %v15668_v57, %v15309_v37  ;;  %v13267_v50 = vld [vmem:[#allocation3 + $0x84] sm:$0xf] }
 0x386   : > { %12400 = vmatmul.mubr.bf16.gmra.mrb[80].mxu0 %v17025_v48  ;;  %12607 = vmatprep.subr.bf16.mxu1 %v15810_v52  ;;  %v8403_v49 = vrot.slane %v8401_v54, 4  ;;  %v8406_v27 = vrot.slane %v8404_v26, 5  ;;  %v15833_v10 = vrot.slane %v8410_v51, 5  ;;  %v8416_v2 = vrot.slane %v8414_v20, 4  ;;  %v15837_v33 = vld [vmem:[#allocation3 + $0x88] sm:$0xf] }
 0x387   : > { %12403 = vmatprep.mubr.bf16.mxu0 %v17026_v53  ;;  %v8336_v42 = vrot.slane %v8335_v46, 4  ;;  %v8350_v44 = vrot.slane %v8348_v12, 5  ;;  %v8434_v13 = vshll.u32 %v15822_v22, 16  ;;  %v8438_v60 = vshrl.u32 %v15822_v22, 16  ;;  %v15842_v26 = vld [vmem:[#allocation3 + $0xb0] sm:$0x1] }
 0x388   : > { %12544 = vmatmul.mubr.bf16.gmra.mrb[0].mxu1 %v11699_v23  ;;  %v11565_v37 = vcombine.low %v13267_v50, %v15837_v33  ;;  %v8360_v57 = vrot.slane %v8359_v0, 4  ;;  %v8374_v5 = vrot.slane %v8372_v36, 5  ;;  %v8383_v51 = vor.u32 %v8382_v1, %v8379_v18  ;;  %v15844_v20 = vld [vmem:[#allocation3 + $0xbc] sm:$0x1]  ;;  %v13269_v0 = vld [vmem:[#allocation3 + $0x90] sm:$0xf] }
 0x389   : > { %12547 = vmatprep.mubr.bf16.mxu1 %v11700_v3  ;;  %v8351_v54 = vsel %vm13482_vm11, %v8346_v63, %v8350_v44  ;;  %v8425_v23 = vshrl.u32 %v8061_v16, 16  ;;  %v8428_v46 = vshll.u32 %v8061_v16, 16  ;;  %v8393_v12 = vor.u32 %v8392_v25, %v15827_v47  ;;  %v15850_v36 = vld [vmem:[#allocation3 + $0x94] sm:$0xf] }
 0x38a   : > { %v8375_v3 = vsel %vm13482_vm11, %v8370_v32, %v8374_v5  ;;  %v8407_v48 = vor.u32 %v8406_v27, %v8403_v49  ;;  %v8417_v53 = vor.u32 %v8416_v2, %v15833_v10  ;;  %v11566_v63 = vcombine.low %v13269_v0, %v15850_v36 }
 0x38b   : > { %v8341_v18 = vsel %vm13482_vm11, %v8336_v42, %v15769_v62  ;;  %v15856_v1 = vrot.slane %v8434_v13, 5  ;;  %v8440_v16 = vrot.slane %v8438_v60, 4  ;;  %v8365_v32 = vsel %vm13482_vm11, %v8360_v57, %v15777_v6  ;;  %v15863_v13 = vld [vmem:[#allocation3 + $0xc8] sm:$0x1]  ;;  %v13271_v60 = vld [vmem:[#allocation3 + $0x10] sm:$0xf] }
 0x38c   : > { %v11701_v44 = vcombine.low %v8341_v18, %v8351_v54  ;;  %v8396_v25 = vshll.u32 %v15842_v26, 16  ;;  %v8420_v49 = vshll.u32 %v15844_v20, 16  ;;  %v11702_v27 = vcombine.low %v8365_v32, %v8375_v3  ;;  %v13272_v18 = vld [vmem:[#allocation3 + $0x9c] sm:$0xf]  ;;  %v7148_v3 = vld [vmem:[#allocation3] sm:$0xe] }
 0x38d   : > { %v8384_v2 = vrot.slane %v8383_v51, 4  ;;  %v8427_v50 = vrot.slane %v8425_v23, 4  ;;  %v8430_v5 = vrot.slane %v8428_v46, 5  ;;  %v8394_v0 = vrot.slane %v8393_v12, 4 }
 0x38e   : > { %12404 = vmatmul.mubr.bf16.gmra.mrb[84].mxu0 %v11565_v37  ;;  %v8408_v62 = vrot.slane %v8407_v48, 4  ;;  %v8418_v42 = vrot.slane %v8417_v53, 4  ;;  %v8836_v54 = vrot.slane %v13271_v60, 5  ;;  %v8441_v6 = vor.u32 %v8440_v16, %v15856_v1  ;;  %v15867_v37 = vld [vmem:[#allocation3 + $0xa0] sm:$0xf] }
 0x38f   : > { %12407 = vmatprep.mubr.bf16.mxu0 %v11566_v63  ;;  %v7198_v57 = vrot.slane %v15395_v7, 5  ;;  %17027 = vst [vmem:[#allocation18_spill] sm:$0xff] %v15867_v37  ;;  %v11567_v51 = vcombine.low %v13272_v18, %v15867_v37  ;;  %v8398_v23 = vrot.slane %v8396_v25, 5  ;;  %v8422_v46 = vrot.slane %v8420_v49, 5  ;;  %v8770_v16 = vld [vmem:[#allocation3 + $0xc] sm:$0xe] }
 0x390   : > { %12548 = vmatmul.mubr.bf16.gmra.mrb[4].mxu1 %v11701_v44  ;;  %v7205_v12 = vrot.slane %v15409_v24, 5  ;;  %v11568_v48 = vcombine.low %v15390_v19, %v15403_v59  ;;  %v8389_v53 = vsel %vm13482_vm11, %v8384_v2, %v15827_v47  ;;  %v8431_v63 = vor.u32 %v8430_v5, %v8427_v50  ;;  %v7149_v2 = vld [vmem:[#allocation3 + $0xc] sm:$0xe]  ;;  %v13275_v5 = vld [vmem:[#allocation3 + $0x14] sm:$0x1] }
 0x391   : > { %12551 = vmatprep.mubr.bf16.mxu1 %v11702_v27  ;;  %v8444_v7 = vshll.u32 %v15863_v13, 16  ;;  %v8399_v44 = vsel %vm13482_vm11, %v8394_v0, %v8398_v23  ;;  %v8413_v32 = vsel %vm13482_vm11, %v8408_v62, %v15833_v10  ;;  %v8423_v24 = vsel %vm13482_vm11, %v8418_v42, %v8422_v46  ;;  %v13274_v27 = vld [vmem:[#allocation3 + $0x8] sm:$0x1] }
 0x392   : > { %v8838_v25 = vrot.slane %v8836_v54, 4  ;;  %v8442_v19 = vrot.slane %v8441_v6, 4  ;;  %v11578_v59 = vrot.slane %v7148_v3, 9  ;;  %v7200_v49 = vrot.slane %v7198_v57, 4  ;;  %v13276_v3 = vld [vmem:[#allocation3 + $0x14] sm:$0x1] }
 0x393   : > { %v7201_v47 = vrot.slane %v13274_v27, 5  ;;  %v11714_v50 = vrot.slane %v8770_v16, 9  ;;  %v8839_v60 = vrot.slane %v13275_v5, 5  ;;  %v7207_v18 = vrot.slane %v7205_v12, 4 }
 0x394   : > { %v7212_v0 = vrot.slane %v15473_v34, 5  ;;  %v11703_v23 = vcombine.low %v8389_v53, %v8399_v44  ;;  %v11704_v37 = vcombine.low %v8413_v32, %v8423_v24  ;;  %v8432_v10 = vrot.slane %v8431_v63, 4  ;;  %v13277_v53 = vld [vmem:[#allocation3 + $0x1c] sm:$0xf]  ;;  %v8771_v44 = vld [vmem:[#allocation3 + $0x18] sm:$0xe] }
 0x395   : > { %v8446_v62 = vrot.slane %v8444_v7, 5  ;;  %v8837_v42 = vsel %vm13443_vm8, %v11714_v50, %v8836_v54  ;;  %v8840_v6 = vsel %vm13443_vm8, %v8838_v25, %v8839_v60  ;;  %v11579_v46 = vrot.slane %v7149_v2, 9  ;;  %v8772_v50 = vld [vmem:[#allocation3 + $0x24] sm:$0xe] }
 0x396   : > { %12408 = vmatmul.mubr.bf16.gmra.mrb[88].mxu0 %v11567_v51  ;;  %v7208_v16 = vrot.slane %v13276_v3, 5  ;;  %v7199_v34 = vsel %vm13443_vm8, %v11578_v59, %v7198_v57  ;;  %v7202_v51 = vsel %vm13443_vm8, %v7200_v49, %v7201_v47  ;;  %v8843_v63 = vrot.slane %v13277_v53, 5  ;;  %v13278_v47 = vld [vmem:[#allocation3 + $0x20] sm:$0x1] }
 0x397   : > { %12411 = vmatprep.mubr.bf16.mxu0 %v11568_v48  ;;  %v8447_v27 = vsel %vm13482_vm11, %v8442_v19, %v8446_v62  ;;  %v7150_v48 = vld [vmem:[#allocation3 + $0x18] sm:$0xe]  ;;  %v7214_v7 = vrot.slane %v7212_v0, 4  ;;  %v8850_v32 = vrot.slane %v15421_v15, 5  ;;  %v7219_v24 = vrot.slane %v15490_v58, 5 }
 0x398   : > { %12552 = vmatmul.mubr.bf16.gmra.mrb[8].mxu1 %v11703_v23  ;;  %v15897_v54 = vsel %vm13443_vm8, %v7207_v18, %v7208_v16  ;;  %v11569_v57 = vcombine.low %v15466_v41, %v15481_v11  ;;  %v8437_v25 = vsel %vm13482_vm11, %v8432_v10, %v15856_v1  ;;  %v11746_v19 = vcombine.low %v8837_v42, %v8840_v6  ;;  %v7151_v18 = vld [vmem:[#allocation3 + $0x24] sm:$0xe]  ;;  %v13279_v10 = vld [vmem:[#allocation3 + $0x20] sm:$0x1] }
 0x399   : > { %12555 = vmatprep.mubr.bf16.mxu1 %v11704_v37  ;;  %v11610_v59 = vcombine.low %v7199_v34, %v7202_v51  ;;  %v7206_v37 = vsel %vm13443_vm8, %v11579_v46, %v7205_v12  ;;  %v11580_v49 = vrot.slane %v7150_v48, 9  ;;  %v7215_v2 = vrot.slane %v13278_v47, 5  ;;  %v17028_v46 = vld [vmem:[#allocation11_spill] sm:$0xff]  ;;  %v7152_v51 = vld [vmem:[#allocation3 + $0x30] sm:$0xe]  ;;  %v17029_v48 = vld [vmem:[#allocation5_spill] sm:$0xff] }
 0x39a   : > { %v11705_v5 = vcombine.low %v8437_v25, %v8447_v27  ;;  %v11611_v15 = vcombine.low %v7206_v37, %v15897_v54  ;;  %v11715_v58 = vrot.slane %v8771_v44, 9  ;;  %v8845_v60 = vrot.slane %v8843_v63, 4  ;;  %v13280_v27 = vld [vmem:[#allocation3 + $0x2c] sm:$0x1]  ;;  %v8774_v47 = vld [vmem:[#allocation3 + $0x3c] sm:$0xe] }
 0x39b   : > { %v7216_v41 = vsel %vm13443_vm8, %v7214_v7, %v7215_v2  ;;  %v8852_v11 = vrot.slane %v8850_v32, 4  ;;  %v7221_v1 = vrot.slane %v7219_v24, 4  ;;  %v7226_v23 = vrot.slane %v15539_v9, 5  ;;  %v8773_v7 = vld [vmem:[#allocation3 + $0x30] sm:$0xe] }
 0x39c   : > { %v7213_v12 = vsel %vm13443_vm8, %v11580_v49, %v7212_v0  ;;  %v8846_v62 = vrot.slane %v13279_v10, 5  ;;  %v11716_v42 = vrot.slane %v8772_v50, 9  ;;  %v8857_v6 = vrot.slane %v15440_v31, 5  ;;  %v13281_v2 = vld [vmem:[#allocation3 + $0x38] sm:$0x1] }
 0x39d   : > { %v8853_v3 = vrot.slane %v17028_v46, 5  ;;  %v11581_v16 = vrot.slane %v7151_v18, 9  ;;  %v7222_v34 = vrot.slane %v13280_v27, 5  ;;  %v8864_v53 = vrot.slane %v17029_v48, 5  ;;  %v17030_v18 = vld [vmem:[#allocation12_spill] sm:$0xff]  ;;  %v17031_v10 = vld [vmem:[#allocation13_spill] sm:$0xff] }
 0x39e   : > { %12412 = vmatmul.mubr.bf16.gmra.mrb[92].mxu0 %v11569_v57  ;;  %v11612_v9 = vcombine.low %v7213_v12, %v7216_v41  ;;  %v8844_v54 = vsel %vm13443_vm8, %v11715_v58, %v8843_v63  ;;  %v8847_v0 = vsel %vm13443_vm8, %v8845_v60, %v8846_v62  ;;  %v7233_v31 = vrot.slane %v15547_v55, 5 }
 0x39f   : > { %12431 = vmatprep.mubr.bf16.mxu0 %v11610_v59  ;;  %v8851_v44 = vsel %vm13443_vm8, %v11716_v42, %v8850_v32  ;;  %v8854_v57 = vsel %vm13443_vm8, %v8852_v11, %v8853_v3  ;;  %v15928_v25 = vsel %vm13443_vm8, %v7221_v1, %v7222_v34  ;;  %v7228_v59 = vrot.slane %v7226_v23, 4  ;;  %v7153_v11 = vld [vmem:[#allocation3 + $0x3c] sm:$0xe]  ;;  %v13196_v42 = vld [vmem:[%s16924_s4 + $0x188] sm:$0xff]   ;;  %v13282_v3 = vld [vmem:[#allocation3 + $0x44] sm:$0x1] }
 0x3a0   : > { %12556 = vmatmul.mubr.bf16.gmra.mrb[12].mxu1 %v11705_v5  ;;  %v15932_v63 = vsel %vm13443_vm8, %v11581_v16, %v7219_v24  ;;  %v11582_v37 = vrot.slane %v7152_v51, 9  ;;  %v8859_v49 = vrot.slane %v8857_v6, 4  ;;  %v7240_v55 = vrot.slane %v15567_v14, 5  ;;  %v17032_v34 = vld [vmem:[#allocation6_spill] sm:$0xff] }
 0x3a1   : > { %12575 = vmatprep.mubr.bf16.mxu1 %v11746_v19  ;;  %v11747_v19 = vcombine.low %v8844_v54, %v8847_v0  ;;  %v7229_v32 = vrot.slane %v13281_v2, 5  ;;  %v11717_v50 = vrot.slane %v8773_v7, 9  ;;  %v8866_v5 = vrot.slane %v8864_v53, 4  ;;  %v8775_v54 = vld [vmem:[#allocation3 + $0x48] sm:$0xe] }
 0x3a2   : > { %v11748_v58 = vcombine.low %v8851_v44, %v8854_v57  ;;  %v11613_v60 = vcombine.low %v15932_v63, %v15928_v25  ;;  %v8860_v41 = vrot.slane %v17030_v18, 5  ;;  %v7235_v1 = vrot.slane %v7233_v31, 4  ;;  %v17033_v0 = vld [vmem:[#allocation7_spill] sm:$0xff] }
 0x3a3   : > { %v15940_v24 = vsel %vm13443_vm8, %v11582_v37, %v7226_v23  ;;  %v15944_v14 = vsel %vm13443_vm8, %v7228_v59, %v7229_v32  ;;  %v11718_v12 = vrot.slane %v8774_v47, 9  ;;  %v8867_v62 = vrot.slane %v17031_v10, 5  ;;  %v7154_v23 = vld [vmem:[#allocation3 + $0x48] sm:$0xe]  ;;  %v13283_v59 = vld [vmem:[#allocation3 + $0x50] sm:$0x1] }
 0x3a4   : > { %v15952_v46 = vsel %vm13443_vm8, %v8859_v49, %v8860_v41  ;;  %v7236_v16 = vrot.slane %v13282_v3, 5  ;;  %v7242_v27 = vrot.slane %v7240_v55, 4  ;;  %v8871_v51 = vrot.slane %v17032_v34, 5  ;;  %v13284_v37 = vld [vmem:[%s16924_s4 + $0xc8] sm:$0xff]   ;;  %v17034_v41 = vld [vmem:[#allocation14_spill] sm:$0xff]  ;;  %v13285_v10 = vld [vmem:[%s16924_s4 + $0xd0] sm:$0xff]  }
 0x3a5   : > { %v15957_v48 = vsel %vm13443_vm8, %v8866_v5, %v8867_v62  ;;  %v8878_v7 = vrot.slane %v17033_v0, 5  ;;  %v7247_v44 = vrot.slane %v15584_v30, 5  ;;  %v11614_v57 = vcombine.low %v15940_v24, %v15944_v14  ;;  %v8776_v47 = vld [vmem:[#allocation3 + $0x54] sm:$0xe]  ;;  %v17035_v24 = vld [vmem:[#allocation9_spill] sm:$0xff] }
 0x3a6   : > { %12432 = vmatmul.mubr.bf16.vlgmr.msra.gmra.mrb[64].mxu0 %v11611_v15  ;;  %v11583_v15 = vrot.slane %v7153_v11, 9  ;;  %v8858_v25 = vsel %vm13443_vm8, %v11717_v50, %v8857_v6  ;;  %v7243_v63 = vrot.slane %v13283_v59, 5  ;;  %v11584_v49 = vrot.slane %v7154_v23, 9 }
 0x3a7   : > { %12435 = vmatprep.mubr.bf16.mxu0 %v11612_v9  ;;  %12464 = vmatpush3.bf16.msra.mxu0 %v15818_v56  ;;  %v15968_v9 = vsel %vm13443_vm8, %v7235_v1, %v7236_v16  ;;  %v11749_v30 = vcombine.low %v8858_v25, %v15952_v46  ;;  %v8865_v56 = vsel %vm13443_vm8, %v11718_v12, %v8864_v53  ;;  %v11719_v50 = vrot.slane %v8775_v54, 9  ;;  %v8780_v16 = vld [vmem:[#allocation3 + $0x84] sm:$0xe]  ;;  %v17036_v54 = vld [vmem:[#allocation8_spill] sm:$0xff] }
 0x3a8   : > { %12576 = vmatmul.mubr.bf16.vlgmr.msra.gmra.mrb[16].mxu1 %v11747_v19  ;;  %12465 = vmatprep.subr.bf16.mxu0 %v13284_v37  ;;  %v15979_v6 = vsel %vm13443_vm8, %v11583_v15, %v7233_v31  ;;  %v7155_v19 = vld [vmem:[#allocation3 + $0x54] sm:$0xe]  ;;  %v11750_v2 = vcombine.low %v8865_v56, %v15957_v48  ;;  %v15984_v32 = vsel %vm13443_vm8, %v7242_v27, %v7243_v63  ;;  %v8873_v53 = vrot.slane %v8871_v51, 4  ;;  %v7156_v48 = vld [vmem:[#allocation3 + $0x60] sm:$0xe] }
 0x3a9   : > { %12608 = vmatpush3.bf16.msra.mxu1 %v15810_v52  ;;  %12579 = vmatprep.mubr.bf16.mxu1 %v11748_v58  ;;  %v13197_v52 = vld [vmem:[%s16924_s4 + $0x190] sm:$0xff]   ;;  %v11615_v31 = vcombine.low %v15979_v6, %v15968_v9  ;;  %v15993_v5 = vsel %vm13443_vm8, %v11584_v49, %v7240_v55  ;;  %v8880_v58 = vrot.slane %v8878_v7, 4  ;;  %v7249_v18 = vrot.slane %v7247_v44, 4  ;;  %v16031_v15 = vld [vmem:[#allocation3 + $0x60] sm:$0xe] }
 0x3aa   : > { %12609 = vmatprep.subr.bf16.mxu1 %v13196_v42  ;;  %v8874_v11 = vrot.slane %v17034_v41, 5  ;;  %v11720_v1 = vrot.slane %v8776_v47, 9  ;;  %v8881_v14 = vrot.slane %v17035_v24, 5  ;;  %v11585_v12 = vrot.slane %v7155_v19, 9  ;;  %v13286_v55 = vld [vmem:[#allocation3 + $0x5c] sm:$0x1] }
 0x3ab   : > { %12466 = vmatpush3.bf16.msra.mxu0 %v13284_v37  ;;  %v11616_v62 = vcombine.low %v15993_v5, %v15984_v32  ;;  %v7250_v46 = vrot.slane %v13286_v55, 5  ;;  %v7254_v3 = vrot.slane %v15609_v17, 5  ;;  %v8906_v23 = vrot.slane %v15678_v61, 5  ;;  %v13198_v17 = vld [vmem:[%s16924_s4 + $0x198] sm:$0xff]   ;;  %v13288_v47 = vld [vmem:[#allocation3 + $0x68] sm:$0x1] }
 0x3ac   : > { %12467 = vmatprep.subr.bf16.mxu0 %v13285_v10  ;;  %v16006_v27 = vsel %vm13443_vm8, %v11719_v50, %v8871_v51  ;;  %v16010_v34 = vsel %vm13443_vm8, %v8873_v53, %v8874_v11  ;;  %v16021_v61 = vsel %vm13443_vm8, %v8880_v58, %v8881_v14  ;;  %v8885_v0 = vrot.slane %v17036_v54, 5  ;;  %v8778_v50 = vld [vmem:[#allocation3 + $0x6c] sm:$0xe]  ;;  %v8781_v24 = vld [vmem:[#allocation3 + $0x90] sm:$0xe] }
 0x3ad   : > { %12610 = vmatpush3.bf16.msra.mxu1 %v13196_v42  ;;  %v16014_v42 = vsel %vm13443_vm8, %v11720_v1, %v8878_v7  ;;  %v16029_v51 = vsel %vm13443_vm8, %v7249_v18, %v7250_v46  ;;  %v17037_v7 = vld [vmem:[#allocation10_spill] sm:$0xff]  ;;  %v11724_v25 = vrot.slane %v8780_v16, 9  ;;  %v8908_v59 = vrot.slane %v8906_v23, 4  ;;  %v13199_v53 = vld [vmem:[%s16924_s4 + $0x1a0] sm:$0xff]   ;;  %v8782_v55 = vld [vmem:[#allocation3 + $0x9c] sm:$0xe] }
 0x3ae   : > { %12436 = vmatmul.mubr.bf16.gmra.mrb[68].mxu0 %v11613_v60  ;;  %12611 = vmatprep.subr.bf16.mxu1 %v13197_v52  ;;  %v16025_v60 = vsel %vm13443_vm8, %v11585_v12, %v7247_v44  ;;  %v8909_v63 = vrot.slane %v15745_v29, 5  ;;  %v13287_v44 = vld [vmem:[%s16924_s4 + $0xd8] sm:$0xff]   ;;  %v11751_v37 = vcombine.low %v16006_v27, %v16010_v34  ;;  %v11586_v56 = vrot.slane %v7156_v48, 9  ;;  %v16063_v11 = vld [vmem:[#allocation3 + $0x6c] sm:$0xe]  ;;  %v17039_v54 = vld [vmem:[#allocation16_spill] sm:$0xff] }
 0x3af   : > { %12439 = vmatprep.mubr.bf16.mxu0 %v11614_v57  ;;  %12468 = vmatpush3.bf16.msra.mxu0 %v13285_v10  ;;  %v8892_v57 = vrot.slane %v17037_v7, 5  ;;  %v7256_v49 = vrot.slane %v7254_v3, 4  ;;  %v11752_v19 = vcombine.low %v16014_v42, %v16021_v61  ;;  %v11721_v29 = vrot.slane %v16031_v15, 9  ;;  %v16110_v5 = vld [vmem:[#allocation3 + $0x7c] sm:$0xf] }
 0x3b0   : > { %12580 = vmatmul.mubr.bf16.gmra.mrb[20].mxu1 %v11749_v30  ;;  %12469 = vmatprep.subr.bf16.mxu0 %v13287_v44  ;;  %v7257_v30 = vrot.slane %v13288_v47, 5  ;;  %v11617_v58 = vcombine.low %v16025_v60, %v16029_v51  ;;  %v16059_v18 = vsel %vm13443_vm8, %v11586_v56, %v7254_v3  ;;  %v8887_v41 = vrot.slane %v8885_v0, 4  ;;  %v13289_v3 = vld [vmem:[%s16924_s4 + $0xe0] sm:$0xff]   ;;  %v13294_v7 = vld [vmem:[%s16924_s4 + $0xf0] sm:$0xff]  }
 0x3b1   : > { %12583 = vmatprep.mubr.bf16.mxu1 %v11750_v2  ;;  %12612 = vmatpush3.bf16.msra.mxu1 %v13197_v52  ;;  %v16049_v2 = vsel %vm13443_vm8, %v11724_v25, %v8906_v23  ;;  %v16053_v52 = vsel %vm13443_vm8, %v8908_v59, %v8909_v63  ;;  %v8894_v14 = vrot.slane %v8892_v57, 4  ;;  %v7261_v12 = vrot.slane %v15656_v4, 5  ;;  %v17038_v23 = vld [vmem:[#allocation15_spill] sm:$0xff]  ;;  %v8779_v51 = vld [vmem:[#allocation3 + $0x78] sm:$0xe] }
 0x3b2   : > { %12613 = vmatprep.subr.bf16.mxu1 %v13198_v17  ;;  %v11756_v1 = vcombine.low %v16049_v2, %v16053_v52  ;;  %v8913_v10 = vrot.slane %v15738_v38, 5  ;;  %v8920_v46 = vrot.slane %v15747_v45, 5  ;;  %v16077_v16 = vsel %vm13443_vm8, %v7256_v49, %v7257_v30  ;;  %v13200_v45 = vld [vmem:[%s16924_s4 + $0x1a8] sm:$0xff]  }
 0x3b3   : > { %12470 = vmatpush3.bf16.msra.mxu0 %v13287_v44  ;;  %v8888_v27 = vrot.slane %v17038_v23, 5  ;;  %v11722_v34 = vrot.slane %v8778_v50, 9  ;;  %v8895_v42 = vrot.slane %v15702_v40, 5  ;;  %v11587_v38 = vrot.slane %v16063_v11, 9  ;;  %v13292_v49 = vld [vmem:[#allocation3 + $0x74] sm:$0x1] }
 0x3b4   : > { %12471 = vmatprep.subr.bf16.mxu0 %v13289_v3  ;;  %v11725_v48 = vrot.slane %v8781_v24, 9  ;;  %v8915_v61 = vrot.slane %v8913_v10, 4  ;;  %v8916_v15 = vrot.slane %v15799_v8, 5  ;;  %v11726_v9 = vrot.slane %v8782_v55, 9  ;;  %v8783_v50 = vld [vmem:[#allocation3 + $0xa8] sm:$0xe] }
 0x3b5   : > { %12614 = vmatpush3.bf16.msra.mxu1 %v13198_v17  ;;  %v8889_v40 = vsel %vm13443_vm8, %v8887_v41, %v8888_v27  ;;  %v8922_v6 = vrot.slane %v8920_v46, 4  ;;  %v8896_v17 = vsel %vm13443_vm8, %v8894_v14, %v8895_v42  ;;  %v7263_v25 = vrot.slane %v7261_v12, 4  ;;  %v13293_v55 = vld [vmem:[#allocation3 + $0x80] sm:$0x1]  ;;  %v17040_v23 = vld [vmem:[#allocation17_spill] sm:$0xff] }
 0x3b6   : > { %12440 = vmatmul.mubr.bf16.gmra.mrb[72].mxu0 %v11615_v31  ;;  %12615 = vmatprep.subr.bf16.mxu1 %v13199_v53  ;;  %v8923_v31 = vrot.slane %v15802_v28, 5  ;;  %v16101_v8 = vsel %vm13443_vm8, %v11725_v48, %v8913_v10  ;;  %v16105_v32 = vsel %vm13443_vm8, %v8915_v61, %v8916_v15  ;;  %v13290_v28 = vld [vmem:[%s16924_s4 + $0xe8] sm:$0xff]   ;;  %v16117_v63 = vsel %vm13443_vm8, %v11726_v9, %v8920_v46  ;;  %v7158_v61 = vld [vmem:[#allocation3 + $0x78] sm:$0xe] }
 0x3b7   : > { %12443 = vmatprep.mubr.bf16.mxu0 %v11616_v62  ;;  %12472 = vmatpush3.bf16.msra.mxu0 %v13289_v3  ;;  %v7268_v62 = vrot.slane %v16110_v5, 5  ;;  %v11757_v59 = vcombine.low %v16101_v8, %v16105_v32  ;;  %v8886_v56 = vsel %vm13443_vm8, %v11721_v29, %v8885_v0  ;;  %v7264_v47 = vrot.slane %v13292_v49, 5  ;;  %v8784_v29 = vld [vmem:[#allocation3 + $0xb4] sm:$0xe]  ;;  %v13296_v5 = vld [vmem:[#allocation3 + $0x8c] sm:$0x1] }
 0x3b8   : > { %12584 = vmatmul.mubr.bf16.gmra.mrb[24].mxu1 %v11751_v37  ;;  %12473 = vmatprep.subr.bf16.mxu0 %v13290_v28  ;;  %v16121_v44 = vsel %vm13443_vm8, %v8922_v6, %v8923_v31  ;;  %v11618_v37 = vcombine.low %v16059_v18, %v16077_v16  ;;  %v8899_v18 = vrot.slane %v17039_v54, 5  ;;  %v8927_v0 = vrot.slane %v15790_v39, 5  ;;  %v13203_v16 = vld [vmem:[%s16924_s4 + $0x1b8] sm:$0xff]  }
 0x3b9   : > { %12587 = vmatprep.mubr.bf16.mxu1 %v11752_v19  ;;  %12616 = vmatpush3.bf16.msra.mxu1 %v13199_v53  ;;  %v11758_v30 = vcombine.low %v16117_v63, %v16121_v44  ;;  %v13201_v19 = vld [vmem:[%s16924_s4 + $0x1b0] sm:$0xff]   ;;  %v8893_v53 = vsel %vm13443_vm8, %v11722_v34, %v8892_v57  ;;  %v8934_v41 = vrot.slane %v15797_v43, 5  ;;  %v11753_v24 = vcombine.low %v8886_v56, %v8889_v40  ;;  %v13295_v31 = vld [vmem:[%s16924_s4 + $0xf8] sm:$0xff]   ;;  %v7163_v44 = vld [vmem:[#allocation3 + $0xb4] sm:$0xe] }
 0x3ba   : > { %12617 = vmatprep.subr.bf16.mxu1 %v13200_v45  ;;  %v11754_v14 = vcombine.low %v8893_v53, %v8896_v17  ;;  %v7265_v10 = vsel %vm13443_vm8, %v7263_v25, %v7264_v47  ;;  %v7271_v46 = vrot.slane %v13293_v55, 5  ;;  %v7270_v57 = vrot.slane %v7268_v62, 4  ;;  %v16195_v47 = vld [vmem:[%s16924_s4 + $0x1c0] sm:$0xff]  }
 0x3bb   : > { %12474 = vmatpush3.bf16.msra.mxu0 %v13290_v28  ;;  %v11727_v39 = vrot.slane %v8783_v50, 9  ;;  %v8929_v3 = vrot.slane %v8927_v0, 4  ;;  %v8930_v43 = vrot.slane %v15842_v26, 5  ;;  %v8902_v27 = vrot.slane %v17040_v23, 5 }
 0x3bc   : > { %12475 = vmatprep.subr.bf16.mxu0 %v13294_v7  ;;  %v11728_v34 = vrot.slane %v8784_v29, 9  ;;  %v8936_v42 = vrot.slane %v8934_v41, 4  ;;  %v8937_v48 = vrot.slane %v15844_v20, 5  ;;  %v8901_v15 = vrot.slane %v8899_v18, 4  ;;  %v7159_v29 = vld [vmem:[#allocation3 + $0x84] sm:$0xe] }
 0x3bd   : > { %12618 = vmatpush3.bf16.msra.mxu1 %v13200_v45  ;;  %v8785_v45 = vld [vmem:[#allocation3 + $0xc0] sm:$0xe]  ;;  %v16159_v26 = vsel %vm13443_vm8, %v11727_v39, %v8927_v0  ;;  %v16163_v40 = vsel %vm13443_vm8, %v8929_v3, %v8930_v43  ;;  %v8941_v60 = vrot.slane %v15822_v22, 5  ;;  %v8944_v25 = vrot.slane %v15863_v13, 5  ;;  %v13298_v3 = vld [vmem:[#allocation3 + $0xac] sm:$0xf] }
 0x3be   : > { %12444 = vmatmul.mubr.bf16.gmra.mrb[76].mxu0 %v11617_v58  ;;  %12619 = vmatprep.subr.bf16.mxu1 %v13201_v19  ;;  %v7275_v58 = vrot.slane %v15837_v33, 5  ;;  %v11759_v20 = vcombine.low %v16159_v26, %v16163_v40  ;;  %v16171_v9 = vsel %vm13443_vm8, %v11728_v34, %v8934_v41  ;;  %v16175_v6 = vsel %vm13443_vm8, %v8936_v42, %v8937_v48  ;;  %v13299_v42 = vld [vmem:[#allocation3 + $0xa4] sm:$0x1]  ;;  %v13205_v26 = vld [vmem:[#allocation3 + $0x18] sm:$0xff]  }
 0x3bf   : > { %12447 = vmatprep.mubr.bf16.mxu0 %v11618_v37  ;;  %12476 = vmatpush3.bf16.msra.mxu0 %v13294_v7  ;;  %v11760_v22 = vcombine.low %v16171_v9, %v16175_v6  ;;  %v11729_v33 = vrot.slane %v8785_v45, 9  ;;  %v8943_v17 = vrot.slane %v8941_v60, 4  ;;  %v7262_v28 = vsel %vm13443_vm8, %v11587_v38, %v7261_v12  ;;  %v7162_v45 = vld [vmem:[#allocation3 + $0xa8] sm:$0xe]  ;;  %v13212_v9 = vld [vmem:[%s16924_s4 + $0x1c8] sm:$0xff]  }
 0x3c0   : > { %12588 = vmatmul.mubr.bf16.gmra.mrb[28].mxu1 %v11753_v24  ;;  %12477 = vmatprep.subr.bf16.mxu0 %v13295_v31  ;;  %v11588_v37 = vrot.slane %v7158_v61, 9  ;;  %v7272_v56 = vsel %vm13443_vm8, %v7270_v57, %v7271_v46  ;;  %v7282_v49 = vrot.slane %v15850_v36, 5  ;;  %v11723_v13 = vrot.slane %v8779_v51, 9  ;;  %v17041_v46 = vld [vmem:[#allocation18_spill] sm:$0xff]  ;;  %v13300_v61 = vld [vmem:[#allocation3 + $0xb0] sm:$0x1] }
 0x3c1   : > { %12591 = vmatprep.mubr.bf16.mxu1 %v11754_v14  ;;  %12620 = vmatpush3.bf16.msra.mxu1 %v13201_v19  ;;  %v8903_v4 = vsel %vm13443_vm8, %v8901_v15, %v8902_v27  ;;  %v16201_v11 = vsel %vm13443_vm8, %v11729_v33, %v8941_v60  ;;  %v16205_v12 = vsel %vm13443_vm8, %v8943_v17, %v8944_v25  ;;  %v7277_v54 = vrot.slane %v7275_v58, 4  ;;  %v7160_v14 = vld [vmem:[#allocation3 + $0x90] sm:$0xe]  ;;  %v7161_v27 = vld [vmem:[#allocation3 + $0x9c] sm:$0xe]  ;;  %v13206_v40 = vld [vmem:[#allocation3 + $0x24] sm:$0xff]  }
 0x3c2   : > { %12621 = vmatprep.subr.bf16.mxu1 %v13203_v16  ;;  %v11619_v36 = vcombine.low %v7262_v28, %v7265_v10  ;;  %v7269_v38 = vsel %vm13443_vm8, %v11588_v37, %v7268_v62  ;;  %v11761_v19 = vcombine.low %v16201_v11, %v16205_v12  ;;  %v8900_v53 = vsel %vm13443_vm8, %v11723_v13, %v8899_v18  ;;  %v13297_v62 = vld [vmem:[#allocation3 + $0x98] sm:$0x1]  ;;  %v13209_v6 = vld [vmem:[#allocation3 + $0x30] sm:$0xff]   ;;  %v13211_v12 = vld [vmem:[#allocation3 + $0x3c] sm:$0xff]  }
 0x3c3   : > { %12478 = vmatpush3.bf16.msra.mxu0 %v13295_v31  ;;  %v11620_v50 = vcombine.low %v7269_v38, %v7272_v56  ;;  %v11755_v0 = vcombine.low %v8900_v53, %v8903_v4  ;;  %v7284_v41 = vrot.slane %v7282_v49, 4  ;;  %v7278_v24 = vrot.slane %v13296_v5, 5  ;;  %v13202_v4 = vld [vmem:[#allocation3 + $0xc] sm:$0xff]   ;;  %v13213_v38 = vld [vmem:[#allocation3 + $0x3c] sm:$0xff]   ;;  %v9655_v53 = vld [vmem:[#allocation3 + $0x18] sm:$0xf] }
 0x3c4   : > { %v7285_v10 = vrot.slane %v13297_v62, 5  ;;  %v11589_v18 = vrot.slane %v7159_v29, 9  ;;  %v7289_v7 = vrot.slane %v17041_v46, 5  ;;  %v11590_v57 = vrot.slane %v7160_v14, 9  ;;  %v13210_v11 = vld [vmem:[#allocation3 + $0x30] sm:$0xff]   ;;  %v13224_v29 = vld [vmem:[%s16924_s4 + $0x1e0] sm:$0xff]  }
 0x3c5   : > { %12622 = vmatpush3.bf16.msra.mxu1 %v13203_v16  ;;  %v7279_v55 = vsel %vm13443_vm8, %v7277_v54, %v7278_v24  ;;  %v7296_v43 = vrot.slane %v13298_v3, 5  ;;  %v7292_v48 = vrot.slane %v13299_v42, 5  ;;  %v7299_v15 = vrot.slane %v13300_v61, 5  ;;  %v9659_v54 = vld [vmem:[#allocation3 + $0x28] sm:$0xf]  ;;  %v13218_v3 = vld [vmem:[#allocation3 + $0x54] sm:$0xff]  }
 0x3c6   : > { %12448 = vmatmul.mubr.bf16.gmra.mrb[80].mxu0 %v11619_v36  ;;  %12655 = vmatprep.subr.bf16.mxu1 %v16195_v47  ;;  %v7286_v39 = vsel %vm13443_vm8, %v7284_v41, %v7285_v10  ;;  %v7276_v16 = vsel %vm13443_vm8, %v11589_v18, %v7275_v58  ;;  %v7283_v2 = vsel %vm13443_vm8, %v11590_v57, %v7282_v49  ;;  %v11591_v60 = vrot.slane %v7161_v27, 9  ;;  %v13301_v58 = vld [vmem:[#allocation3 + $0xb8] sm:$0xf]  ;;  %v9658_v24 = vld [vmem:[#allocation3 + $0x24] sm:$0xf]  ;;  %v13215_v46 = vld [vmem:[#allocation3 + $0x48] sm:$0xff]  }
 0x3c7   : > { %12451 = vmatprep.mubr.bf16.mxu0 %v11620_v50  ;;  %v11621_v23 = vcombine.low %v7276_v16, %v7279_v55  ;;  %v11622_v52 = vcombine.low %v7283_v2, %v7286_v39  ;;  %v7298_v34 = vrot.slane %v7296_v43, 4  ;;  %v7303_v31 = vrot.slane %v13301_v58, 5  ;;  %v13204_v36 = vld [vmem:[#allocation3 + $0x18] sm:$0xff]   ;;  %v13214_v50 = vld [vmem:[#allocation3 + $0x48] sm:$0xff]   ;;  %v9661_v55 = vld [vmem:[#allocation3 + $0x30] sm:$0xf] }
 0x3c8   : > { %12592 = vmatmul.mubr.bf16.gmra.mrb[0].mxu1 %v11755_v0  ;;  %v11592_v33 = vrot.slane %v7162_v45, 9  ;;  %v7290_v8 = vsel %vm13443_vm8, %v11591_v60, %v7289_v7  ;;  %v11593_v37 = vrot.slane %v7163_v44, 9  ;;  %v16267_v0 = vld [vmem:[#allocation3 + $0x34] sm:$0xf]  ;;  %v9704_v41 = vshrl.u32 %v9655_v53, 16 }
 0x3c9   : > { %12595 = vmatprep.mubr.bf16.mxu1 %v11756_v1  ;;  %v7291_v1 = vrot.slane %v7289_v7, 4  ;;  %v7300_v17 = vsel %vm13443_vm8, %v7298_v34, %v7299_v15  ;;  %v7305_v63 = vrot.slane %v7303_v31, 4  ;;  %v9707_v5 = vshll.u32 %v9655_v53, 16  ;;  %v13216_v39 = vld [vmem:[#allocation3 + $0x54] sm:$0xff]   ;;  %v16279_v42 = vld [vmem:[#allocation3 + $0x20] sm:$0x1] }
 0x3ca   : > { %v7304_v49 = vsel %vm13443_vm8, %v11593_v37, %v7303_v31  ;;  %v9737_v10 = vshll.u32 %v9659_v54, 16  ;;  %v9741_v18 = vshrl.u32 %v9659_v54, 16  ;;  %v9761_v7 = vshll.u32 %v16267_v0, 16  ;;  %v13227_v2 = vld [vmem:[%s16924_s4 + $0x1e8] sm:$0xff]   ;;  %v9664_v58 = vld [vmem:[#allocation3 + $0x3c] sm:$0xf] }
 0x3cb   : > { %v7293_v51 = vsel %vm13443_vm8, %v7291_v1, %v7292_v48  ;;  %v9765_v57 = vshrl.u32 %v16267_v0, 16  ;;  %v9731_v16 = vshll.u32 %v9658_v24, 16  ;;  %v9709_v1 = vrot.slane %v9707_v5, 5  ;;  %v16297_v37 = vld [vmem:[#allocation3 + $0x38] sm:$0x1] }
 0x3cc   : > { %v11623_v32 = vcombine.low %v7290_v8, %v7293_v51  ;;  %v9752_v27 = vshrl.u32 %v9661_v55, 16  ;;  %v9755_v34 = vshll.u32 %v9661_v55, 16  ;;  %v16283_v61 = vrot.slane %v9737_v10, 5  ;;  %v13230_v8 = vld [vmem:[%s16924_s4 + $0x1f0] sm:$0xff]  }
 0x3cd   : > { %v9743_v15 = vrot.slane %v9741_v18, 4  ;;  %v16285_v60 = vrot.slane %v9761_v7, 5  ;;  %v9767_v51 = vrot.slane %v9765_v57, 4  ;;  %v16316_v57 = vld [vmem:[%s16924_s4 + $0x200] sm:$0xff]  }
 0x3ce   : > { %12452 = vmatmul.mubr.bf16.gmra.mrb[84].mxu0 %v11621_v23  ;;  %v13219_v23 = vld [vmem:[#allocation3 + $0x60] sm:$0xff]  }
 0x3cf   : > { %12455 = vmatprep.mubr.bf16.mxu0 %v11622_v52  ;;  %v9706_v52 = vrot.slane %v9704_v41, 4  ;;  %v16307_v41 = vld [vmem:[#allocation3 + $0x4c] sm:$0xf] }
 0x3d0   : > { %12596 = vmatmul.mubr.bf16.gmra.mrb[4].mxu1 %v11757_v59  ;;  %v7297_v59 = vsel %vm13443_vm8, %v11592_v33, %v7296_v43  ;;  %v9728_v43 = vshrl.u32 %v9658_v24, 16  ;;  %v9733_v33 = vrot.slane %v9731_v16, 5  ;;  %v16309_v24 = vld [vmem:[#allocation3 + $0x44] sm:$0x1]  ;;  %v9813_v16 = vshrl.u32 %v16307_v41, 16 }
 0x3d1   : > { %12599 = vmatprep.mubr.bf16.mxu1 %v11758_v30  ;;  %v11624_v25 = vcombine.low %v7297_v59, %v7300_v17  ;;  %v13302_v30 = vld [vmem:[#allocation3 + $0xbc] sm:$0x1]  ;;  %v16287_v17 = vld [vmem:[#allocation3 + $0x40] sm:$0xf]  ;;  %v16293_v59 = vld [vmem:[#allocation3 + $0x2c] sm:$0x1]  ;;  %v9710_v44 = vor.u32 %v9709_v1, %v9706_v52 }
 0x3d2   : > { %v7306_v28 = vrot.slane %v13302_v30, 5  ;;  %v9730_v31 = vrot.slane %v9728_v43, 4  ;;  %v9809_v43 = vshll.u32 %v16307_v41, 16  ;;  %v10485_v21 = vrot.slane %v16293_v59, 5 }
 0x3d4   : > { %v7307_v56 = vsel %vm13443_vm8, %v7305_v63, %v7306_v28  ;;  %v9757_v63 = vrot.slane %v9755_v34, 5  ;;  %v9744_v28 = vor.u32 %v9743_v15, %v16283_v61 }
 0x3d5   : > { %v11625_v13 = vcombine.low %v7304_v49, %v7307_v56  ;;  %v9776_v56 = vshrl.u32 %v9664_v58, 16  ;;  %v13220_v49 = vld [vmem:[#allocation3 + $0x60] sm:$0xff]  }
 0x3d6   : > { %12456 = vmatmul.mubr.bf16.gmra.mrb[88].mxu0 %v11623_v32  ;;  %v9723_v32 = vshll.u32 %v16279_v42, 16  ;;  %v9745_v54 = vrot.slane %v9744_v28, 4 }
 0x3d7   : > { %12459 = vmatprep.mubr.bf16.mxu0 %v11624_v25  ;;  %v9754_v25 = vrot.slane %v9752_v27, 4 }
 0x3d8   : > { %12600 = vmatmul.mubr.bf16.gmra.mrb[8].mxu1 %v11759_v20  ;;  %v13208_v20 = vld [vmem:[#allocation3 + $0x24] sm:$0xff]  }
 0x3d9   : > { %12603 = vmatprep.mubr.bf16.mxu1 %v11760_v22  ;;  %v13217_v22 = vld [vmem:[%s16924_s4 + $0x1d0] sm:$0xff]  }
 0x3de   : > { %12460 = vmatmul.mubr.bf16.gmra.mrb[92].mxu0 %v11625_v13  ;;  %v9768_v13 = vor.u32 %v9767_v51, %v16285_v60  ;;  %v16331_v51 = vld [vmem:[#allocation3 + $0x50] sm:$0x1] }
 0x3df   : > { %12479 = vmatprep.mubr.bf16.mxu0 %v13202_v4  ;;  %v9779_v4 = vshll.u32 %v9664_v58, 16 }
 0x3e0   : > { %12604 = vmatmul.mubr.bf16.gmra.mrb[12].mxu1 %v11761_v19  ;;  %v13221_v19 = vld [vmem:[%s16924_s4 + $0x1d8] sm:$0xff]   ;;  %v9769_v5 = vrot.slane %v9768_v13, 4 }
 0x3e1   : > { %12623 = vmatprep.mubr.bf16.mxu1 %v13204_v36  ;;  %v9785_v36 = vshll.u32 %v16287_v17, 16 }
 0x3e6   : > { %12480 = vmatmul.mubr.bf16.vlgmr.msra.gmra.mrb[64].mxu0 %v13205_v26  ;;  %v9789_v26 = vshrl.u32 %v16287_v17, 16 }
 0x3e7   : > { %12483 = vmatprep.mubr.bf16.mxu0 %v13206_v40  ;;  %v13222_v40 = vld [vmem:[#allocation3 + $0x6c] sm:$0xff]  }
 0x3e8   : > { %12624 = vmatmul.mubr.bf16.vlgmr.msra.gmra.mrb[16].mxu1 %v13208_v20  ;;  %v9734_v20 = vor.u32 %v9733_v33, %v9730_v31  ;;  %v9791_v10 = vrot.slane %v9789_v26, 4  ;;  %v10412_v26 = vld [vmem:[#allocation3 + $0x3c] sm:$0xe] }
 0x3e9   : > { %12656 = vmatpush3.bf16.msra.mxu1 %v16195_v47  ;;  %12627 = vmatprep.mubr.bf16.mxu1 %v13209_v6  ;;  %v16265_v47 = vld [vmem:[#allocation3 + $0x1c] sm:$0xf] }
 0x3ea   : > { %12657 = vmatprep.subr.bf16.mxu1 %v13212_v9  ;;  %v9713_v14 = vshll.u32 %v16265_v47, 16  ;;  %v9717_v62 = vshrl.u32 %v16265_v47, 16  ;;  %v13223_v6 = vld [vmem:[#allocation3 + $0x78] sm:$0xff]   ;;  %v9735_v18 = vrot.slane %v9734_v20, 4  ;;  %v13232_v20 = vld [vmem:[#allocation3 + $0xc0] sm:$0xff]  }
 0x3ec   : > { %v16281_v48 = vrot.slane %v9713_v14, 5  ;;  %v9719_v45 = vrot.slane %v9717_v62, 4  ;;  %v9781_v14 = vrot.slane %v9779_v4, 5  ;;  %v16311_v62 = vrot.slane %v9785_v36, 5  ;;  %v13231_v4 = vld [vmem:[#allocation3 + $0xb4] sm:$0xff]  }
 0x3ed   : > { %12658 = vmatpush3.bf16.msra.mxu1 %v13212_v9  ;;  %v9747_v9 = vshll.u32 %v16293_v59, 16  ;;  %v9740_v33 = vsel %vm13482_vm11, %v9735_v18, %v16283_v61  ;;  %v16358_v61 = vld [vmem:[#allocation3 + $0x58] sm:$0xf]  ;;  %v10489_v36 = vrot.slane %v16267_v0, 5 }
 0x3ee   : > { %12484 = vmatmul.mubr.bf16.gmra.mrb[68].mxu0 %v13210_v11  ;;  %12659 = vmatprep.subr.bf16.mxu1 %v13217_v22  ;;  %v9720_v30 = vor.u32 %v9719_v45, %v16281_v48  ;;  %v9725_v11 = vrot.slane %v9723_v32, 5  ;;  %v9792_v34 = vor.u32 %v9791_v10, %v16311_v62  ;;  %v13225_v45 = vld [vmem:[#allocation3 + $0x84] sm:$0xff]   ;;  %v16344_v32 = vrot.slane %v9809_v43, 5 }
 0x3ef   : > { %12487 = vmatprep.mubr.bf16.mxu0 %v13211_v12  ;;  %v9758_v12 = vor.u32 %v9757_v63, %v9754_v25  ;;  %v9749_v55 = vrot.slane %v9747_v9, 5  ;;  %v16346_v25 = vrot.slane %v9813_v16, 4  ;;  %v10411_v63 = vld [vmem:[#allocation3 + $0x30] sm:$0xe]  ;;  %v10491_v0 = vrot.slane %v10489_v36, 4 }
 0x3f0   : > { %12628 = vmatmul.mubr.bf16.gmra.mrb[20].mxu1 %v13213_v38  ;;  %v9771_v38 = vshll.u32 %v16297_v37, 16  ;;  %v9721_v53 = vrot.slane %v9720_v30, 4  ;;  %v16362_v13 = vrot.slane %v9792_v34, 4  ;;  %v16384_v10 = vld [vmem:[#allocation3 + $0x68] sm:$0x1]  ;;  %v10510_v43 = vrot.slane %v16358_v61, 5 }
 0x3f1   : > { %12631 = vmatprep.mubr.bf16.mxu1 %v13214_v50  ;;  %12660 = vmatpush3.bf16.msra.mxu1 %v13217_v22  ;;  %v13233_v22 = vld [vmem:[%s16924_s4 + $0x1f8] sm:$0xff]   ;;  %v9711_v50 = vrot.slane %v9710_v44, 4  ;;  %v9750_v52 = vsel %vm13482_vm11, %v9745_v54, %v9749_v55  ;;  %v13226_v44 = vld [vmem:[#allocation3 + $0x90] sm:$0xff]   ;;  %v10499_v55 = vrot.slane %v16309_v24, 5  ;;  %v13229_v34 = vld [vmem:[#allocation3 + $0xa8] sm:$0xff]  }
 0x3f2   : > { %12661 = vmatprep.subr.bf16.mxu1 %v13221_v19  ;;  %v16352_v28 = vcombine.low %v9740_v33, %v9750_v52  ;;  %v10415_v16 = vld [vmem:[#allocation3 + $0x60] sm:$0xe]  ;;  %v16400_v52 = vld [vmem:[#allocation3 + $0x7c] sm:$0xf] }
 0x3f3   : > { %v9716_v15 = vsel %vm13482_vm11, %v9711_v50, %v16281_v48  ;;  %v16348_v48 = vld [vmem:[#allocation3 + $0x54] sm:$0xf]  ;;  %v10492_v50 = vrot.slane %v16297_v37, 5  ;;  %v10503_v37 = vrot.slane %v16307_v41, 5 }
 0x3f5   : > { %12662 = vmatpush3.bf16.msra.mxu1 %v13221_v19  ;;  %v9667_v19 = vld [vmem:[#allocation3 + $0x48] sm:$0xf]  ;;  %v16388_v18 = vsel %vm13443_vm8, %v10491_v0, %v10492_v50  ;;  %v10417_v0 = vld [vmem:[#allocation3 + $0x78] sm:$0xe] }
 0x3f6   : > { %12488 = vmatmul.mubr.bf16.gmra.mrb[72].mxu0 %v13215_v46  ;;  %12663 = vmatprep.subr.bf16.mxu1 %v13224_v29  ;;  %v9800_v46 = vshrl.u32 %v9667_v19, 16  ;;  %v9803_v7 = vshll.u32 %v9667_v19, 16  ;;  %v16375_v19 = vld [vmem:[#allocation3 + $0x64] sm:$0xf]  ;;  %v16428_v50 = vld [vmem:[#allocation3 + $0x88] sm:$0xf] }
 0x3f7   : > { %12491 = vmatprep.mubr.bf16.mxu0 %v13216_v39  ;;  %v9759_v39 = vrot.slane %v9758_v12, 4  ;;  %v16372_v12 = vld [vmem:[#allocation3 + $0x5c] sm:$0x1] }
 0x3f8   : > { %12632 = vmatmul.mubr.bf16.gmra.mrb[24].mxu1 %v13218_v3  ;;  %v9773_v3 = vrot.slane %v9771_v38, 5  ;;  %v16333_v58 = vrot.slane %v9800_v46, 4  ;;  %v16335_v31 = vrot.slane %v9803_v7, 5  ;;  %v16392_v7 = vld [vmem:[#allocation3 + $0x70] sm:$0xf]  ;;  %v10513_v33 = vrot.slane %v16372_v12, 5 }
 0x3f9   : > { %12635 = vmatprep.mubr.bf16.mxu1 %v13219_v23  ;;  %12664 = vmatpush3.bf16.msra.mxu1 %v13224_v29  ;;  %v9778_v29 = vrot.slane %v9776_v56, 4  ;;  %v9726_v23 = vsel %vm13482_vm11, %v9721_v53, %v9725_v11  ;;  %v10420_v38 = vld [vmem:[#allocation3 + $0x9c] sm:$0xe] }
 0x3fa   : > { %12665 = vmatprep.subr.bf16.mxu1 %v13227_v2  ;;  %v9774_v1 = vsel %vm13482_vm11, %v9769_v5, %v9773_v3  ;;  %v16350_v30 = vcombine.low %v9716_v15, %v9726_v23  ;;  %v10496_v5 = vrot.slane %v16287_v17, 5  ;;  %v10506_v17 = vrot.slane %v16331_v51, 5  ;;  %v13228_v23 = vld [vmem:[#allocation3 + $0x9c] sm:$0xff]  }
 0x3fb   : > { %v9782_v27 = vor.u32 %v9781_v14, %v9778_v29  ;;  %v11853_v29 = vrot.slane %v10412_v26, 9  ;;  %v10414_v14 = vld [vmem:[#allocation3 + $0x54] sm:$0xe]  ;;  %v10512_v15 = vrot.slane %v10510_v43, 4 }
 0x3fc   : > { %v10498_v3 = vrot.slane %v10496_v5, 4 }
 0x3fd   : > { %12666 = vmatpush3.bf16.msra.mxu1 %v13227_v2  ;;  %v9795_v2 = vshll.u32 %v16309_v24, 16  ;;  %v16404_v24 = vsel %vm13443_vm8, %v11853_v29, %v10496_v5  ;;  %v16430_v29 = vld [vmem:[#allocation3 + $0x8c] sm:$0x1]  ;;  %v10419_v5 = vld [vmem:[#allocation3 + $0x90] sm:$0xe] }
 0x3fe   : > { %12492 = vmatmul.mubr.bf16.gmra.mrb[76].mxu0 %v13220_v49  ;;  %12667 = vmatprep.subr.bf16.mxu1 %v13230_v8  ;;  %v10541_v9 = vrot.slane %v16430_v29, 5 }
 0x3ff   : > { %v16356_v49 = vrot.slane %v9795_v2, 5  ;;  %v16398_v2 = vld [vmem:[#allocation3 + $0x74] sm:$0x1] }
 0x400   : > { %12636 = vmatmul.mubr.bf16.gmra.mrb[28].mxu1 %v13222_v40 }
 0x401   : > { %12639 = vmatprep.mubr.bf16.mxu1 %v13223_v6  ;;  %12668 = vmatpush3.bf16.msra.mxu1 %v13230_v8  ;;  %v9764_v8 = vsel %vm13482_vm11, %v9759_v39, %v16285_v60  ;;  %v16360_v60 = vrot.slane %v9782_v27, 4  ;;  %v11852_v6 = vrot.slane %v10411_v63, 9  ;;  %v11855_v27 = vrot.slane %v10414_v14, 9  ;;  %v10416_v63 = vld [vmem:[#allocation3 + $0x6c] sm:$0xe] }
 0x402   : > { %12669 = vmatprep.subr.bf16.mxu1 %v13233_v22  ;;  %v16354_v56 = vcombine.low %v9764_v8, %v9774_v1  ;;  %v10505_v1 = vrot.slane %v10503_v37, 4  ;;  %v10517_v8 = vrot.slane %v16375_v19, 5  ;;  %v16436_v14 = vsel %vm13443_vm8, %v10512_v15, %v10513_v33  ;;  %v16462_v39 = vld [vmem:[#allocation3 + $0xa4] sm:$0x1] }
 0x403   : > { %v16381_v54 = vsel %vm13443_vm8, %v11852_v6, %v10489_v36  ;;  %v16426_v6 = vsel %vm13443_vm8, %v11855_v27, %v10510_v43  ;;  %17045 = vst [vmem:[#allocation13_spill] sm:$0xff] %v16436_v14  ;;  %v11857_v43 = vrot.slane %v10416_v63, 9  ;;  %v11858_v15 = vrot.slane %v10417_v0, 9  ;;  %v16460_v36 = vld [vmem:[#allocation3 + $0xa0] sm:$0xf] }
 0x404   : > { %v16422_v26 = vsel %vm13443_vm8, %v10505_v1, %v10506_v17  ;;  %17044 = vst [vmem:[#allocation12_spill] sm:$0xff] %v16426_v6  ;;  %v16448_v1 = vld [vmem:[#allocation3 + $0x98] sm:$0x1]  ;;  %v10531_v33 = vrot.slane %v16400_v52, 5 }
 0x405   : > { %12670 = vmatpush3.bf16.msra.mxu1 %v13233_v22  ;;  %v10413_v22 = vld [vmem:[#allocation3 + $0x48] sm:$0xe]  ;;  %17043 = vst [vmem:[#allocation5_spill] sm:$0xff] %v16422_v26  ;;  %v9673_v26 = vld [vmem:[#allocation3 + $0x60] sm:$0xf] }
 0x406   : > { %12703 = vmatprep.subr.bf16.mxu1 %v16316_v57  ;;  %v11854_v46 = vrot.slane %v10413_v22, 9  ;;  %v11856_v22 = vrot.slane %v10415_v16, 9  ;;  %v10524_v16 = vrot.slane %v16392_v7, 5  ;;  %v16470_v0 = vsel %vm13443_vm8, %v11858_v15, %v10531_v33 }
 0x407   : > { %17049 = vst [vmem:[#allocation9_spill] sm:$0xff] %v16470_v0  ;;  %v11860_v15 = vrot.slane %v10419_v5, 9  ;;  %v16510_v0 = vld [vmem:[#allocation3 + $0xc4] sm:$0xf] }
 0x408   : > { %12640 = vmatmul.mubr.bf16.gmra.mrb[0].mxu1 %v13225_v45  ;;  %v16408_v41 = vsel %vm13443_vm8, %v11854_v46, %v10503_v37  ;;  %v16412_v45 = vsel %vm13443_vm8, %v10498_v3, %v10499_v55  ;;  %v10519_v55 = vrot.slane %v10517_v8, 4  ;;  %v10520_v46 = vrot.slane %v16384_v10, 5  ;;  %v16439_v37 = vld [vmem:[#allocation3 + $0x94] sm:$0xf] }
 0x409   : > { %12643 = vmatprep.mubr.bf16.mxu1 %v13226_v44  ;;  %17042 = vst [vmem:[#allocation11_spill] sm:$0xff] %v16408_v41  ;;  %v16416_v44 = vld [vmem:[#allocation3 + $0x80] sm:$0x1]  ;;  %v16445_v17 = vsel %vm13443_vm8, %v11856_v22, %v10517_v8  ;;  %v10526_v8 = vrot.slane %v10524_v16, 4  ;;  %v10538_v22 = vrot.slane %v16428_v50, 5  ;;  %v10545_v53 = vrot.slane %v16439_v37, 5 }
 0x40a   : > { %17046 = vst [vmem:[#allocation6_spill] sm:$0xff] %v16445_v17  ;;  %v16452_v27 = vsel %vm13443_vm8, %v10519_v55, %v10520_v46  ;;  %v10534_v63 = vrot.slane %v16416_v44, 5  ;;  %v16466_v55 = vsel %vm13443_vm8, %v11857_v43, %v10524_v16  ;;  %v10533_v46 = vrot.slane %v10531_v33, 4  ;;  %v16478_v43 = vld [vmem:[#allocation3 + $0xac] sm:$0xf] }
 0x40b   : > { %17047 = vst [vmem:[#allocation7_spill] sm:$0xff] %v16452_v27  ;;  %17048 = vst [vmem:[#allocation14_spill] sm:$0xff] %v16466_v55  ;;  %v10540_v40 = vrot.slane %v10538_v22, 4  ;;  %v10421_v33 = vld [vmem:[#allocation3 + $0xa8] sm:$0xe]  ;;  %v16507_v5 = vsel %vm13443_vm8, %v11860_v15, %v10545_v53  ;;  %v10552_v17 = vrot.slane %v16460_v36, 5 }
 0x40c   : > { %v16492_v27 = vld [vmem:[#allocation3 + $0xb8] sm:$0xf]  ;;  %17054 = vst [vmem:[#allocation17_spill] sm:$0xff] %v16507_v5  ;;  %v16522_v55 = vld [vmem:[#allocation3 + $0xc8] sm:$0x1]  ;;  %v10573_v6 = vrot.slane %v16510_v0, 5 }
 0x40d   : > { %v16498_v16 = vsel %vm13443_vm8, %v10540_v40, %v10541_v9  ;;  %v11862_v9 = vrot.slane %v10421_v33, 9  ;;  %v10566_v15 = vrot.slane %v16492_v27, 5  ;;  %v10576_v41 = vrot.slane %v16522_v55, 5 }
 0x40e   : > { %17053 = vst [vmem:[#allocation16_spill] sm:$0xff] %v16498_v16  ;;  %v10423_v16 = vld [vmem:[#allocation3 + $0xc0] sm:$0xe] }
 0x410   : > { %12644 = vmatmul.mubr.bf16.gmra.mrb[4].mxu1 %v13228_v23  ;;  %v10418_v23 = vld [vmem:[#allocation3 + $0x84] sm:$0xe] }
 0x411   : > { %12647 = vmatprep.mubr.bf16.mxu1 %v13229_v34  ;;  %v10527_v34 = vrot.slane %v16398_v2, 5  ;;  %v11859_v3 = vrot.slane %v10418_v23, 9  ;;  %v16484_v23 = vsel %vm13443_vm8, %v10533_v46, %v10534_v63  ;;  %v10547_v63 = vrot.slane %v10545_v53, 4  ;;  %v17078_v35 = vld [vmem:[#allocation6_spill] sm:$0xff] }
 0x412   : > { %17051 = vst [vmem:[#allocation10_spill] sm:$0xff] %v16484_v23  ;;  %v10548_v46 = vrot.slane %v16448_v1, 5  ;;  %v10422_v23 = vld [vmem:[#allocation3 + $0xb4] sm:$0xe]  ;;  %v10554_v53 = vrot.slane %v10552_v17, 4 }
 0x413   : > { %v16474_v11 = vsel %vm13443_vm8, %v10526_v8, %v10527_v34  ;;  %v16488_v34 = vsel %vm13443_vm8, %v11859_v3, %v10538_v22  ;;  %v16490_v8 = vld [vmem:[#allocation3 + $0xb0] sm:$0x1]  ;;  %v16501_v3 = vld [vmem:[#allocation3 + $0xbc] sm:$0x1]  ;;  %v11861_v22 = vrot.slane %v10420_v38, 9  ;;  %v11863_v14 = vrot.slane %v10422_v23, 9 }
 0x414   : > { %17050 = vst [vmem:[#allocation8_spill] sm:$0xff] %v16474_v11  ;;  %17052 = vst [vmem:[#allocation15_spill] sm:$0xff] %v16488_v34  ;;  %v16514_v40 = vsel %vm13443_vm8, %v10547_v63, %v10548_v46  ;;  %v10559_v11 = vrot.slane %v16478_v43, 5  ;;  %v10562_v38 = vrot.slane %v16490_v8, 5  ;;  %v13234_v34 = vld [vmem:[#allocation3 + $0xcc] sm:$0xff]   ;;  %v10569_v5 = vrot.slane %v16501_v3, 5 }
 0x415   : > { %17055 = vst [vmem:[#allocation18_spill] sm:$0xff] %v16514_v40  ;;  %v16526_v63 = vsel %vm13443_vm8, %v11861_v22, %v10552_v17  ;;  %v10568_v40 = vrot.slane %v10566_v15, 4  ;;  %v11864_v23 = vrot.slane %v10423_v16, 9  ;;  %v17061_v17 = vshrl.u32 %v16348_v48, 16 }
 0x416   : > { %v16530_v33 = vsel %vm13443_vm8, %v11862_v9, %v10559_v11  ;;  %v10561_v46 = vrot.slane %v10559_v11, 4  ;;  %v16546_v11 = vsel %vm13443_vm8, %v11863_v14, %v10566_v15  ;;  %v17063_v14 = vshrl.u32 %v16358_v61, 16 }
 0x417   : > { %17056 = vst [vmem:[#allocation19_spill] sm:$0xff] %v16530_v33  ;;  %17059 = vst [vmem:[#allocation22_spill] sm:$0xff] %v16546_v11  ;;  %v16552_v9 = vsel %vm13443_vm8, %v10568_v40, %v10569_v5  ;;  %v17064_v5 = vshll.u32 %v16348_v48, 16  ;;  %v9788_v15 = vsel %vm13482_vm11, %v16360_v60, %v16311_v62  ;;  %v9843_v62 = vshll.u32 %v16372_v12, 16 }
 0x418   : > { %12648 = vmatmul.mubr.bf16.gmra.mrb[8].mxu1 %v13231_v4  ;;  %v16542_v22 = vsel %vm13443_vm8, %v10561_v46, %v10562_v38  ;;  %17060 = vst [vmem:[#allocation23_spill] sm:$0xff] %v16552_v9  ;;  %v9826_v38 = vrot.slane %v17061_v17, 4  ;;  %v17062_v46 = vshll.u32 %v16358_v61, 16  ;;  %v9839_v16 = vrot.slane %v17063_v14, 4  ;;  %v10424_v14 = vld [vmem:[#allocation3 + $0xcc] sm:$0xe] }
 0x419   : > { %12651 = vmatprep.mubr.bf16.mxu1 %v13232_v20  ;;  %v10555_v20 = vrot.slane %v16462_v39, 5  ;;  %17058 = vst [vmem:[#allocation21_spill] sm:$0xff] %v16542_v22  ;;  %v9829_v40 = vrot.slane %v17064_v5, 5  ;;  %v16570_v22 = vld [vmem:[#allocation3 + $0xd4] sm:$0x1]  ;;  %v16574_v17 = vsel %vm13443_vm8, %v11864_v23, %v10573_v6  ;;  %v9861_v9 = vshrl.u32 %v16375_v19, 16 }
 0x41a   : > { %17065 = vst [vmem:[#allocation24_spill] sm:$0xff] %v16574_v17  ;;  %v10583_v5 = vrot.slane %v16570_v22, 5  ;;  %v9857_v17 = vshll.u32 %v16375_v19, 16  ;;  %v17069_v19 = vshll.u32 %v16331_v51, 16  ;;  %v9881_v12 = vshll.u32 %v16392_v7, 16 }
 0x41b   : > { %v16534_v4 = vsel %vm13443_vm8, %v10554_v53, %v10555_v20  ;;  %v10575_v53 = vrot.slane %v10573_v6, 4  ;;  %v9848_v20 = vshrl.u32 %v9673_v26, 16  ;;  %v17067_v6 = vor.u32 %v16335_v31, %v16333_v58  ;;  %v13236_v31 = vld [vmem:[%s16924_s4 + $0x208] sm:$0xff]   ;;  %v9679_v51 = vld [vmem:[#allocation3 + $0x78] sm:$0xf] }
 0x41c   : > { %17057 = vst [vmem:[#allocation20_spill] sm:$0xff] %v16534_v4  ;;  %v16559_v4 = vrot.slane %v17062_v46, 5  ;;  %v9851_v46 = vshll.u32 %v9673_v26, 16  ;;  %v9830_v33 = vor.u32 %v9829_v40, %v9826_v38  ;;  %v9821_v38 = vrot.slane %v17069_v19, 5 }
 0x41d   : > { %v16578_v61 = vsel %vm13443_vm8, %v10575_v53, %v10576_v41  ;;  %v9807_v23 = vrot.slane %v17067_v6, 4  ;;  %v17068_v41 = vor.u32 %v16346_v25, %v16344_v32  ;;  %v9676_v53 = vld [vmem:[#allocation3 + $0x6c] sm:$0xf]  ;;  %v9850_v60 = vrot.slane %v9848_v20, 4 }
 0x41e   : > { %17066 = vst [vmem:[#allocation25_spill] sm:$0xff] %v16578_v61  ;;  %v9840_v61 = vor.u32 %v9839_v16, %v16559_v4  ;;  %v9853_v25 = vrot.slane %v9851_v46, 5  ;;  %v9875_v16 = vshll.u32 %v9676_v53, 16  ;;  %v9885_v20 = vshrl.u32 %v16392_v7, 16 }
 0x41f   : > { %v9817_v26 = vrot.slane %v17068_v41, 4  ;;  %v9798_v46 = vsel %vm13482_vm11, %v16362_v13, %v16356_v49  ;;  %v9812_v7 = vsel %vm13482_vm11, %v9807_v23, %v16344_v32  ;;  %v9845_v41 = vrot.slane %v9843_v62, 5  ;;  %v13237_v49 = vld [vmem:[%s16924_s4 + $0x210] sm:$0xff]  }
 0x420   : > { %12652 = vmatmul.mubr.bf16.gmra.mrb[12].mxu1 %v13234_v34  ;;  %v16568_v34 = vld [vmem:[#allocation3 + $0xd0] sm:$0xf]  ;;  %v9854_v13 = vor.u32 %v9853_v25, %v9850_v60  ;;  %v9899_v32 = vshll.u32 %v9679_v51, 16  ;;  %v9909_v62 = vshrl.u32 %v16400_v52, 16  ;;  %v11829_v19 = vcombine.low %v9788_v15, %v9798_v46 }
 0x421   : > { %12671 = vmatprep.mubr.bf16.mxu1 %v16350_v30  ;;  %v10580_v48 = vrot.slane %v16568_v34, 5  ;;  %v11865_v30 = vrot.slane %v10424_v14, 9  ;;  %v9872_v14 = vshrl.u32 %v9676_v53, 16  ;;  %v9896_v53 = vshrl.u32 %v9679_v51, 16  ;;  %v9685_v46 = vld [vmem:[#allocation3 + $0x90] sm:$0xf] }
 0x422   : > { %v9855_v25 = vrot.slane %v9854_v13, 4  ;;  %v9944_v13 = vshrl.u32 %v9685_v46, 16 }
 0x423   : > { %v10582_v11 = vrot.slane %v10580_v48, 4  ;;  %v16600_v58 = vsel %vm13443_vm8, %v11865_v30, %v10580_v48  ;;  %v9841_v30 = vrot.slane %v9840_v61, 4  ;;  %v9863_v48 = vrot.slane %v9861_v9, 4 }
 0x424   : > { %v9867_v9 = vshll.u32 %v16384_v10, 16  ;;  %v9887_v61 = vrot.slane %v9885_v20, 4  ;;  %v9898_v15 = vrot.slane %v9896_v53, 4 }
 0x425   : > { %v16607_v6 = vsel %vm13443_vm8, %v10582_v11, %v10583_v5  ;;  %v16620_v11 = vrot.slane %v9857_v17, 5  ;;  %v9831_v5 = vrot.slane %v9830_v33, 4  ;;  %v9877_v17 = vrot.slane %v9875_v16, 5  ;;  %v13238_v16 = vld [vmem:[%s16924_s4 + $0x218] sm:$0xff]  }
 0x426   : > { %v11897_v40 = vcombine.low %v16600_v58, %v16607_v6  ;;  %v9846_v23 = vsel %vm13482_vm11, %v9841_v30, %v9845_v41  ;;  %v13239_v41 = vld [vmem:[%s16924_s4 + $0x220] sm:$0xff]  }
 0x427   : > { %v9864_v33 = vor.u32 %v9863_v48, %v16620_v11  ;;  %v9836_v10 = vsel %vm13482_vm11, %v9831_v5, %v16559_v4  ;;  %v9911_v4 = vrot.slane %v9909_v62, 4  ;;  %v9929_v5 = vshll.u32 %v16428_v50, 16 }
 0x428   : > { %12672 = vmatmul.mubr.bf16.vlgmr.msra.gmra.mrb[16].mxu1 %v16352_v28  ;;  %v9822_v28 = vsel %vm13482_vm11, %v9817_v26, %v9821_v38  ;;  %v9905_v26 = vshll.u32 %v16400_v52, 16  ;;  %v9891_v38 = vshll.u32 %v16398_v2, 16  ;;  %v11831_v20 = vcombine.low %v9836_v10, %v9846_v23  ;;  %v9688_v10 = vld [vmem:[#allocation3 + $0x9c] sm:$0xf] }
 0x429   : > { %12704 = vmatpush3.bf16.msra.mxu1 %v16316_v57  ;;  %12675 = vmatprep.mubr.bf16.mxu1 %v16354_v56  ;;  %v9874_v57 = vrot.slane %v9872_v14, 4  ;;  %v16633_v56 = vrot.slane %v9881_v12, 5  ;;  %v11830_v60 = vcombine.low %v9812_v7, %v9822_v28  ;;  %v9869_v14 = vrot.slane %v9867_v9, 5  ;;  %v9682_v12 = vld [vmem:[#allocation3 + $0x84] sm:$0xf] }
 0x42a   : > { %12705 = vmatprep.subr.bf16.mxu1 %v13236_v31  ;;  %v9865_v30 = vrot.slane %v9864_v33, 4  ;;  %v16648_v51 = vrot.slane %v9905_v26, 5  ;;  %v9920_v7 = vshrl.u32 %v9682_v12, 16  ;;  %v9923_v28 = vshll.u32 %v9682_v12, 16 }
 0x42b   : > { %v9888_v52 = vor.u32 %v9887_v61, %v16633_v56  ;;  %v9878_v48 = vor.u32 %v9877_v17, %v9874_v57  ;;  %v9933_v2 = vshrl.u32 %v16428_v50, 16  ;;  %v9947_v9 = vshll.u32 %v9685_v46, 16 }
 0x42c   : > { %v9953_v57 = vshll.u32 %v16439_v37, 16  ;;  %v9957_v17 = vshrl.u32 %v16439_v37, 16  ;;  %v9893_v53 = vrot.slane %v9891_v38, 5  ;;  %v9870_v50 = vsel %vm13482_vm11, %v9865_v30, %v9869_v14  ;;  %v13240_v14 = vld [vmem:[%s16924_s4 + $0x228] sm:$0xff]  }
 0x42d   : > { %12706 = vmatpush3.bf16.msra.mxu1 %v13236_v31  ;;  %v9901_v31 = vrot.slane %v9899_v32, 5  ;;  %v9889_v61 = vrot.slane %v9888_v52, 4  ;;  %v9879_v23 = vrot.slane %v9878_v48, 4  ;;  %v9912_v33 = vor.u32 %v9911_v4, %v16648_v51 }
 0x42e   : > { %12707 = vmatprep.subr.bf16.mxu1 %v13237_v49  ;;  %v9915_v26 = vshll.u32 %v16416_v44, 16  ;;  %v9922_v62 = vrot.slane %v9920_v7, 4  ;;  %v9935_v37 = vrot.slane %v9933_v2, 4  ;;  %v16666_v38 = vrot.slane %v9953_v57, 5  ;;  %v9691_v57 = vld [vmem:[#allocation3 + $0xa8] sm:$0xf] }
 0x42f   : > { %v9902_v32 = vor.u32 %v9901_v31, %v9898_v15  ;;  %v9959_v12 = vrot.slane %v9957_v17, 4  ;;  %v9894_v44 = vsel %vm13482_vm11, %v9889_v61, %v9893_v53  ;;  %v9884_v15 = vsel %vm13482_vm11, %v9879_v23, %v16633_v56 }
 0x430   : > { %12676 = vmatmul.mubr.bf16.gmra.mrb[20].mxu1 %v11829_v19  ;;  %v9925_v19 = vrot.slane %v9923_v28, 5  ;;  %v9913_v31 = vrot.slane %v9912_v33, 4  ;;  %v9968_v48 = vshrl.u32 %v9688_v10, 16  ;;  %v9971_v4 = vshll.u32 %v9688_v10, 16 }
 0x431   : > { %12679 = vmatprep.mubr.bf16.mxu1 %v11830_v60  ;;  %12708 = vmatpush3.bf16.msra.mxu1 %v13237_v49  ;;  %v9860_v49 = vsel %vm13482_vm11, %v9855_v25, %v16620_v11  ;;  %v16664_v60 = vrot.slane %v9929_v5, 5  ;;  %v9946_v11 = vrot.slane %v9944_v13, 4  ;;  %v9949_v25 = vrot.slane %v9947_v9, 5 }
 0x432   : > { %12709 = vmatprep.subr.bf16.mxu1 %v13238_v16  ;;  %v11832_v52 = vcombine.low %v9860_v49, %v9870_v50  ;;  %v9926_v46 = vor.u32 %v9925_v19, %v9922_v62  ;;  %v11833_v7 = vcombine.low %v9884_v15, %v9894_v44  ;;  %v9917_v28 = vrot.slane %v9915_v26, 5 }
 0x433   : > { %v9936_v30 = vor.u32 %v9935_v37, %v16664_v60  ;;  %v9950_v5 = vor.u32 %v9949_v25, %v9946_v11  ;;  %v9960_v2 = vor.u32 %v9959_v12, %v16666_v38  ;;  %v9939_v13 = vshll.u32 %v16430_v29, 16  ;;  %v9694_v12 = vld [vmem:[#allocation3 + $0xb4] sm:$0xf] }
 0x434   : > { %v9981_v9 = vshrl.u32 %v16460_v36, 16  ;;  %v9918_v17 = vsel %vm13482_vm11, %v9913_v31, %v9917_v28  ;;  %v9963_v49 = vshll.u32 %v16448_v1, 16  ;;  %v10001_v61 = vshll.u32 %v16478_v43, 16  ;;  %v9697_v28 = vld [vmem:[#allocation3 + $0xc0] sm:$0xf] }
 0x435   : > { %12710 = vmatpush3.bf16.msra.mxu1 %v13238_v16  ;;  %v9903_v16 = vrot.slane %v9902_v32, 4  ;;  %v10005_v53 = vshrl.u32 %v16478_v43, 16  ;;  %v9927_v32 = vrot.slane %v9926_v46, 4  ;;  %v9937_v50 = vrot.slane %v9936_v30, 4 }
 0x436   : > { %12711 = vmatprep.subr.bf16.mxu1 %v13239_v41  ;;  %v9970_v23 = vrot.slane %v9968_v48, 4  ;;  %v9951_v29 = vrot.slane %v9950_v5, 4  ;;  %v9961_v33 = vrot.slane %v9960_v2, 4  ;;  %v9992_v26 = vshrl.u32 %v9691_v57, 16 }
 0x437   : > { %v9908_v56 = vsel %vm13482_vm11, %v9903_v16, %v16648_v51  ;;  %v9973_v51 = vrot.slane %v9971_v4, 5  ;;  %v9995_v62 = vshll.u32 %v9691_v57, 16  ;;  %v9941_v1 = vrot.slane %v9939_v13, 5 }
 0x438   : > { %12680 = vmatmul.mubr.bf16.gmra.mrb[24].mxu1 %v11831_v20  ;;  %v13241_v20 = vld [vmem:[%s16924_s4 + $0x230] sm:$0xff]   ;;  %v11834_v19 = vcombine.low %v9908_v56, %v9918_v17  ;;  %v9983_v10 = vrot.slane %v9981_v9, 4  ;;  %v9965_v43 = vrot.slane %v9963_v49, 5  ;;  %v16697_v11 = vrot.slane %v10001_v61, 5  ;;  %v9700_v61 = vld [vmem:[#allocation3 + $0xcc] sm:$0xf] }
 0x439   : > { %12683 = vmatprep.mubr.bf16.mxu1 %v11832_v52  ;;  %12712 = vmatpush3.bf16.msra.mxu1 %v13239_v41  ;;  %v9977_v41 = vshll.u32 %v16460_v36, 16  ;;  %v13242_v36 = vld [vmem:[%s16924_s4 + $0x238] sm:$0xff]   ;;  %v10007_v25 = vrot.slane %v10005_v53, 4  ;;  %v9942_v52 = vsel %vm13482_vm11, %v9937_v50, %v9941_v1  ;;  %v9974_v44 = vor.u32 %v9973_v51, %v9970_v23 }
 0x43a   : > { %12713 = vmatprep.subr.bf16.mxu1 %v13240_v14  ;;  %v9987_v16 = vshll.u32 %v16462_v39, 16  ;;  %v9956_v15 = vsel %vm13482_vm11, %v9951_v29, %v16666_v38  ;;  %v9966_v31 = vsel %vm13482_vm11, %v9961_v33, %v9965_v43  ;;  %v9994_v46 = vrot.slane %v9992_v26, 4 }
 0x43b   : > { %v16695_v37 = vrot.slane %v9977_v41, 5  ;;  %v9997_v30 = vrot.slane %v9995_v62, 5  ;;  %v10025_v4 = vshll.u32 %v16492_v27, 16  ;;  %v10008_v39 = vor.u32 %v10007_v25, %v16697_v11 }
 0x43c   : > { %v10019_v5 = vshll.u32 %v9694_v12, 16  ;;  %v10049_v2 = vshll.u32 %v16510_v0, 16  ;;  %v10053_v38 = vshrl.u32 %v16510_v0, 16  ;;  %v11836_v56 = vcombine.low %v9956_v15, %v9966_v31 }
 0x43d   : > { %12714 = vmatpush3.bf16.msra.mxu1 %v13240_v14  ;;  %v9932_v14 = vsel %vm13482_vm11, %v9927_v32, %v16664_v60  ;;  %v9984_v48 = vor.u32 %v9983_v10, %v16695_v37  ;;  %v10016_v60 = vshrl.u32 %v9694_v12, 16  ;;  %v9975_v13 = vrot.slane %v9974_v44, 4 }
 0x43e   : > { %12715 = vmatprep.subr.bf16.mxu1 %v13241_v20  ;;  %v9989_v41 = vrot.slane %v9987_v16, 5  ;;  %v9998_v9 = vor.u32 %v9997_v30, %v9994_v46  ;;  %v10011_v57 = vshll.u32 %v16490_v8, 16  ;;  %v10040_v17 = vshrl.u32 %v9697_v28, 16 }
 0x43f   : > { %v10043_v49 = vshll.u32 %v9697_v28, 16  ;;  %v10018_v53 = vrot.slane %v10016_v60, 4  ;;  %v10027_v32 = vrot.slane %v10025_v4, 5  ;;  %v10009_v23 = vrot.slane %v10008_v39, 4 }
 0x440   : > { %12684 = vmatmul.mubr.bf16.gmra.mrb[28].mxu1 %v11833_v7  ;;  %v10029_v7 = vshrl.u32 %v16492_v27, 16  ;;  %v9985_v27 = vrot.slane %v9984_v48, 4  ;;  %v10021_v51 = vrot.slane %v10019_v5, 5  ;;  %v10051_v29 = vrot.slane %v10049_v2, 5 }
 0x441   : > { %12687 = vmatprep.mubr.bf16.mxu1 %v11834_v19  ;;  %12716 = vmatpush3.bf16.msra.mxu1 %v13241_v20  ;;  %v11835_v20 = vcombine.low %v9932_v14, %v9942_v52  ;;  %v10055_v0 = vrot.slane %v10053_v38, 4  ;;  %v10064_v33 = vshrl.u32 %v9700_v61, 16  ;;  %v10067_v26 = vshll.u32 %v9700_v61, 16 }
 0x442   : > { %12717 = vmatprep.subr.bf16.mxu1 %v13242_v36  ;;  %v10031_v50 = vrot.slane %v10029_v7, 4  ;;  %v10073_v62 = vshll.u32 %v16568_v34, 16  ;;  %v9999_v8 = vrot.slane %v9998_v9, 4  ;;  %v10013_v19 = vrot.slane %v10011_v57, 5 }
 0x443   : > { %v10042_v1 = vrot.slane %v10040_v17, 4  ;;  %v10045_v10 = vrot.slane %v10043_v49, 5  ;;  %v9980_v43 = vsel %vm13482_vm11, %v9975_v13, %v16695_v37  ;;  %v9990_v25 = vsel %vm13482_vm11, %v9985_v27, %v9989_v41 }
 0x444   : > { %v10032_v12 = vor.u32 %v10031_v50, %v10027_v32  ;;  %v10014_v14 = vsel %vm13482_vm11, %v10009_v23, %v10013_v19  ;;  %v10022_v52 = vor.u32 %v10021_v51, %v10018_v53  ;;  %v10035_v44 = vshll.u32 %v16501_v3, 16  ;;  %v10409_v50 = vld [vmem:[#allocation3 + $0x18] sm:$0xe]  ;;  %v13303_v23 = vld [vmem:[#allocation3 + $0x28] sm:$0xf] }
 0x445   : > { %12718 = vmatpush3.bf16.msra.mxu1 %v13242_v36  ;;  %v10077_v36 = vshrl.u32 %v16568_v34, 16  ;;  %v10056_v16 = vor.u32 %v10055_v0, %v10051_v29  ;;  %v10066_v34 = vrot.slane %v10064_v33, 4  ;;  %v10069_v15 = vrot.slane %v10067_v26, 5 }
 0x446   : > { %v10075_v31 = vrot.slane %v10073_v62, 5  ;;  %v11837_v30 = vcombine.low %v9980_v43, %v9990_v25  ;;  %v10004_v37 = vsel %vm13482_vm11, %v9999_v8, %v16697_v11  ;;  %v10046_v48 = vor.u32 %v10045_v10, %v10042_v1  ;;  %v10410_v8 = vld [vmem:[#allocation3 + $0x24] sm:$0xe] }
 0x447   : > { %v10079_v46 = vrot.slane %v10077_v36, 4  ;;  %v10059_v60 = vshll.u32 %v16522_v55, 16  ;;  %v11838_v4 = vcombine.low %v10004_v37, %v10014_v14  ;;  %v10033_v7 = vrot.slane %v10032_v12, 4  ;;  %v17072_v12 = vld [vmem:[#allocation11_spill] sm:$0xff]  ;;  %v17073_v14 = vld [vmem:[#allocation5_spill] sm:$0xff]  ;;  %v17088_v37 = vld [vmem:[#allocation16_spill] sm:$0xff] }
 0x448   : > { %12688 = vmatmul.mubr.bf16.gmra.mrb[0].mxu1 %v11835_v20  ;;  %v10037_v28 = vrot.slane %v10035_v44, 5  ;;  %v10057_v39 = vrot.slane %v10056_v16, 4  ;;  %v10023_v3 = vrot.slane %v10022_v52, 4  ;;  %v10070_v5 = vor.u32 %v10069_v15, %v10066_v34  ;;  %v17075_v52 = vld [vmem:[#allocation12_spill] sm:$0xff]  ;;  %v17076_v44 = vld [vmem:[#allocation13_spill] sm:$0xff]  ;;  %v17079_v34 = vld [vmem:[#allocation7_spill] sm:$0xff] }
 0x449   : > { %12691 = vmatprep.mubr.bf16.mxu1 %v11836_v56  ;;  %v10080_v2 = vor.u32 %v10079_v46, %v10075_v31  ;;  %v10083_v38 = vshll.u32 %v16570_v22, 16  ;;  %v10047_v20 = vrot.slane %v10046_v48, 4  ;;  %v10061_v56 = vrot.slane %v10059_v60, 5  ;;  %v17082_v46 = vld [vmem:[#allocation8_spill] sm:$0xff]  ;;  %v17090_v60 = vld [vmem:[#allocation17_spill] sm:$0xff] }
 0x44a   : > { %v10038_v13 = vsel %vm13482_vm11, %v10033_v7, %v10037_v28  ;;  %v10475_v55 = vrot.slane %v16265_v47, 5  ;;  %v10028_v41 = vsel %vm13482_vm11, %v10023_v3, %v10027_v32  ;;  %v10071_v9 = vrot.slane %v10070_v5, 4  ;;  %v17093_v28 = vld [vmem:[#allocation20_spill] sm:$0xff]  ;;  %v17095_v3 = vld [vmem:[#allocation19_spill] sm:$0xff]  ;;  %v17096_v5 = vld [vmem:[#allocation21_spill] sm:$0xff] }
 0x44b   : > { %v10062_v11 = vsel %vm13482_vm11, %v10057_v39, %v10061_v56  ;;  %v10081_v57 = vrot.slane %v10080_v2, 4  ;;  %v10085_v17 = vrot.slane %v10083_v38, 5  ;;  %v11839_v49 = vcombine.low %v10028_v41, %v10038_v13  ;;  %v17098_v38 = vld [vmem:[#allocation22_spill] sm:$0xff] }
 0x44c   : > { %v10052_v22 = vsel %vm13482_vm11, %v10047_v20, %v10051_v29  ;;  %v10477_v27 = vrot.slane %v10475_v55, 4  ;;  %v10076_v53 = vsel %vm13482_vm11, %v10071_v9, %v10075_v31  ;;  %v10478_v32 = vrot.slane %v16279_v42, 5  ;;  %v17081_v31 = vld [vmem:[#allocation14_spill] sm:$0xff]  ;;  %v17099_v20 = vld [vmem:[#allocation23_spill] sm:$0xff] }
 0x44d   : > { %v11840_v61 = vcombine.low %v10052_v22, %v10062_v11  ;;  %v10086_v47 = vsel %vm13482_vm11, %v10081_v57, %v10085_v17  ;;  %v10482_v51 = vrot.slane %v13303_v23, 5  ;;  %v11850_v33 = vrot.slane %v10409_v50, 9  ;;  %v17101_v11 = vld [vmem:[#allocation24_spill] sm:$0xff] }
 0x44e   : > { %v11841_v0 = vcombine.low %v10076_v53, %v10086_v47  ;;  %v10479_v29 = vsel %vm13443_vm8, %v10477_v27, %v10478_v32  ;;  %v11851_v19 = vrot.slane %v10410_v8, 9  ;;  %v17070_v43 = vcombine.low %v16381_v54, %v16388_v18  ;;  %v17084_v18 = vld [vmem:[#allocation9_spill] sm:$0xff] }
 0x44f   : > { %v10476_v26 = vsel %vm13443_vm8, %v11850_v33, %v10475_v55  ;;  %v10484_v36 = vrot.slane %v10482_v51, 4  ;;  %v17071_v25 = vcombine.low %v16404_v24, %v16412_v45  ;;  %v17074_v59 = vcombine.low %v17072_v12, %v17073_v14  ;;  %v17087_v45 = vld [vmem:[#allocation15_spill] sm:$0xff]  ;;  %v17102_v55 = vld [vmem:[#allocation25_spill] sm:$0xff] }
 0x450   : > { %12692 = vmatmul.mubr.bf16.gmra.mrb[4].mxu1 %v11837_v30  ;;  %v11882_v62 = vcombine.low %v10476_v26, %v10479_v29  ;;  %v10483_v1 = vsel %vm13443_vm8, %v11851_v19, %v10482_v51  ;;  %v17077_v16 = vcombine.low %v17075_v52, %v17076_v44  ;;  %v17080_v15 = vcombine.low %v17078_v35, %v17079_v34  ;;  %v17085_v30 = vld [vmem:[#allocation10_spill] sm:$0xff]  ;;  %v16840_v14 = vld [vmem:[%s16925_s5] ss:$0 sm:$0xff] }
 0x451   : > { %12695 = vmatprep.mubr.bf16.mxu1 %v11838_v4  ;;  %v10486_v42 = vsel %vm13443_vm8, %v10484_v36, %v10485_v21  ;;  %v17083_v54 = vcombine.low %v17081_v31, %v17082_v46  ;;  %v17086_v24 = vcombine.low %v17084_v18, %v17085_v30  ;;  %v17089_v48 = vcombine.low %v17087_v45, %v17088_v37  ;;  %v17091_v4 = vld [vmem:[#allocation18_spill] sm:$0xff] }
 0x452   : > { %v11883_v10 = vcombine.low %v10483_v1, %v10486_v42  ;;  %v17092_v7 = vcombine.low %v17090_v60, %v17091_v4  ;;  %v17094_v39 = vcombine.low %v16526_v63, %v17093_v28  ;;  %v17097_v2 = vcombine.low %v17095_v3, %v17096_v5 }
 0x453   : > { %v17100_v56 = vcombine.low %v17098_v38, %v17099_v20  ;;  %v17103_v41 = vcombine.low %v17101_v11, %v17102_v55 }
 0x458   : > { %12696 = vmatmul.mubr.bf16.gmra.mrb[8].mxu1 %v11839_v49 }
 0x459   : > { %12699 = vmatprep.mubr.bf16.mxu1 %v11840_v61 }
 0x460   : > { %12700 = vmatmul.mubr.bf16.gmra.mrb[12].mxu1 %v11841_v0 }
 0x461   : > { %12719 = vmatprep.mubr.bf16.mxu1 %v11882_v62 }
 0x468   : > { %12720 = vmatmul.mubr.bf16.vlgmr.msra.gmra.mrb[16].mxu1 %v11883_v10 }
 0x469   : > { %12723 = vmatprep.mubr.bf16.mxu1 %v17070_v43 }
 0x470   : > { %12724 = vmatmul.mubr.bf16.gmra.mrb[20].mxu1 %v17071_v25 }
 0x471   : > { %12727 = vmatprep.mubr.bf16.mxu1 %v17074_v59 }
 0x478   : > { %12728 = vmatmul.mubr.bf16.gmra.mrb[24].mxu1 %v17077_v16 }
 0x479   : > { %12731 = vmatprep.mubr.bf16.mxu1 %v17080_v15 }
 0x480   : > { %12732 = vmatmul.mubr.bf16.gmra.mrb[28].mxu1 %v17083_v54 }
 0x481   : > { %12735 = vmatprep.mubr.bf16.mxu1 %v17086_v24 }
 0x488   : > { %12736 = vmatmul.mubr.bf16.gmra.mrb[0].mxu1 %v17089_v48 }
 0x489   : > { %12739 = vmatprep.mubr.bf16.mxu1 %v17092_v7 }
 0x490   : > { %12740 = vmatmul.mubr.bf16.gmra.mrb[4].mxu1 %v17094_v39 }
 0x491   : > { %12743 = vmatprep.mubr.bf16.mxu1 %v17097_v2 }
 0x498   : > { %12744 = vmatmul.mubr.bf16.gmra.mrb[8].mxu1 %v17100_v56 }
 0x499   : > { %v16791_v13 = vpop.f32.mrb[80].mxu0  ;;  %12747 = vmatprep.mubr.bf16.mxu1 %v17103_v41 }
 0x49a   : > { %v16796_v9 = vpop.f32.mrb[81].mxu0 }
 0x49b   : > { %v16798_v57 = vpop.f32.mrb[82].mxu0 }
 0x49c   : > { %v16800_v63 = vpop.f32.mrb[83].mxu0 }
 0x4a0   : > { %12748 = vmatmul.mubr.bf16.gmra.mrb[12].mxu1 %v11897_v40 }
 0x4a1   : > { %v16805_v17 = vpop.f32.mrb[84].mxu0 }
 0x4a2   : > { %v16807_v49 = vpop.f32.mrb[85].mxu0 }
 0x4a3   : > { %v16809_v22 = vpop.f32.mrb[86].mxu0 }
 0x4a4   : > { %v16811_v61 = vpop.f32.mrb[87].mxu0 }
 0x4a9   : > { %v16813_v27 = vpop.f32.mrb[88].mxu0 }
 0x4aa   : > { %v16815_v53 = vpop.f32.mrb[89].mxu0 }
 0x4ab   : > { %v16817_v47 = vpop.f32.mrb[90].mxu0 }
 0x4ac   : > { %v16819_v50 = vpop.f32.mrb[91].mxu0 }
 0x4b1   : > { %v16821_v32 = vpop.f32.mrb[92].mxu0 }
 0x4b2   : > { %v16823_v58 = vpop.f32.mrb[93].mxu0 }
 0x4b3   : > { %v16825_v6 = vpop.f32.mrb[94].mxu0 }
 0x4b4   : > { %v16827_v40 = vpop.f32.mrb[95].mxu0 }
 0x4b9   : > { %v12481_v23 = vpop.f32.mrb[64].mxu0 }
 0x4ba   : > { %v7857_v51 = vpop.f32.mrb[65].mxu0 }
 0x4bb   : > { %v12482_v0 = vpop.f32.mrb[66].mxu0 }
 0x4bc   : > { %v7860_v33 = vpop.f32.mrb[67].mxu0 }
 0x4c1   : > { %v12485_v29 = vpop.f32.mrb[68].mxu0 }
 0x4c2   : > { %v7873_v26 = vpop.f32.mrb[69].mxu0 }
 0x4c3   : > { %v12486_v62 = vpop.f32.mrb[70].mxu0 }
 0x4c4   : > { %v7876_v36 = vpop.f32.mrb[71].mxu0 }
 0x4c9   : > { %v12489_v8 = vpop.f32.mrb[72].mxu0 }
 0x4ca   : > { %v7889_v21 = vpop.f32.mrb[73].mxu0 }
 0x4cb   : > { %v12490_v19 = vpop.f32.mrb[74].mxu0 }
 0x4cc   : > { %v7892_v42 = vpop.f32.mrb[75].mxu0 }
 0x4d1   : > { %v16829_v1 = vpop.f32.mrb[76].mxu0 }
 0x4d2   : > { %v16831_v10 = vpop.f32.mrb[77].mxu0 }
 0x4d3   : > { %v16833_v43 = vpop.f32.mrb[78].mxu0 }
 0x4d4   : > { %v16835_v25 = vpop.f32.mrb[79].mxu0 }
 0x53b   : > { %v12721_v12 = vpop.f32.mrb[16].mxu1 }
 0x53c   : > { %v12767_v59 = vadd.f32 %v12721_v12, %v12481_v23  ;;  %v10748_v52 = vpop.f32.mrb[17].mxu1 }
 0x53d   : > { %v12768_v44 = vadd.f32 %v10748_v52, %v7857_v51  ;;  %v12722_v16 = vpop.f32.mrb[18].mxu1 }
 0x53e   : > { %v10916_v35 = vadd.f32 %v12767_v59, %v16840_v14  ;;  %v12769_v34 = vadd.f32 %v12722_v16, %v12482_v0  ;;  %v10751_v15 = vpop.f32.mrb[19].mxu1 }
 0x53f   : > { %v10914_v31 = vadd.f32 %v12768_v44, %v16840_v14  ;;  %v12770_v46 = vadd.f32 %v10751_v15, %v7860_v33 }
 0x540   : > { %v10917_v54 = vadd.f32 %v12769_v34, %v16840_v14  ;;  %v10948_v30 = vmax.f32 %v10916_v35, 0.0 }
 0x541   : > { %v10915_v18 = vadd.f32 %v12770_v46, %v16840_v14  ;;  %v10946_v45 = vmax.f32 %v10914_v31, 0.0 }
 0x542   : > { %v10949_v24 = vmax.f32 %v10917_v54, 0.0 }
 0x543   : > { %v10947_v37 = vmax.f32 %v10915_v18, 0.0  ;;  %v12725_v48 = vpop.f32.mrb[20].mxu1 }
 0x544   : > { %v12016_v60 = vpack.c.bf16 %v10949_v24, %v10948_v30  ;;  %v12771_v4 = vadd.f32 %v12725_v48, %v12485_v29  ;;  %v10764_v7 = vpop.f32.mrb[21].mxu1 }
 0x545   : > { %v12011_v28 = vpack.c.bf16 %v10947_v37, %v10946_v45  ;;  %v12772_v39 = vadd.f32 %v10764_v7, %v7873_v26  ;;  %v12726_v3 = vpop.f32.mrb[22].mxu1 }
 0x546   : > { %12088 = vst [vmem:[%s16851_s10 + $0x8] sm:$0xff] %v12016_v60   ;;  %v10920_v5 = vadd.f32 %v12771_v4, %v16840_v14  ;;  %v12773_v2 = vadd.f32 %v12726_v3, %v12486_v62  ;;  %v10767_v38 = vpop.f32.mrb[23].mxu1 }
 0x547   : > { %12012 = vst [vmem:[%s16851_s10] sm:$0xff] %v12011_v28   ;;  %v10918_v20 = vadd.f32 %v12772_v39, %v16840_v14  ;;  %v12774_v56 = vadd.f32 %v10767_v38, %v7876_v36 }
 0x548   : > { %v10921_v11 = vadd.f32 %v12773_v2, %v16840_v14  ;;  %v10952_v41 = vmax.f32 %v10920_v5, 0.0 }
 0x549   : > { %v10919_v55 = vadd.f32 %v12774_v56, %v16840_v14  ;;  %v10950_v51 = vmax.f32 %v10918_v20, 0.0 }
 0x54a   : > { %v10953_v23 = vmax.f32 %v10921_v11, 0.0 }
 0x54b   : > { %v10951_v0 = vmax.f32 %v10919_v55, 0.0  ;;  %v12729_v33 = vpop.f32.mrb[24].mxu1 }
 0x54c   : > { %v12026_v29 = vpack.c.bf16 %v10953_v23, %v10952_v41  ;;  %v12775_v26 = vadd.f32 %v12729_v33, %v12489_v8  ;;  %v10780_v12 = vpop.f32.mrb[25].mxu1 }
 0x54d   : > { %v12021_v62 = vpack.c.bf16 %v10951_v0, %v10950_v51  ;;  %v12776_v59 = vadd.f32 %v10780_v12, %v7889_v21  ;;  %v12730_v52 = vpop.f32.mrb[26].mxu1 }
 0x54e   : > { %12090 = vst [vmem:[%s16851_s10 + $0x18] sm:$0xff] %v12026_v29   ;;  %v10924_v44 = vadd.f32 %v12775_v26, %v16840_v14  ;;  %v12777_v36 = vadd.f32 %v12730_v52, %v12490_v19  ;;  %v10783_v16 = vpop.f32.mrb[27].mxu1 }
 0x54f   : > { %12089 = vst [vmem:[%s16851_s10 + $0x10] sm:$0xff] %v12021_v62   ;;  %v10922_v35 = vadd.f32 %v12776_v59, %v16840_v14  ;;  %v12778_v34 = vadd.f32 %v10783_v16, %v7892_v42 }
 0x550   : > { %v10925_v15 = vadd.f32 %v12777_v36, %v16840_v14  ;;  %v10956_v8 = vmax.f32 %v10924_v44, 0.0 }
 0x551   : > { %v10923_v31 = vadd.f32 %v12778_v34, %v16840_v14  ;;  %v10954_v54 = vmax.f32 %v10922_v35, 0.0 }
 0x552   : > { %v10957_v46 = vmax.f32 %v10925_v15, 0.0 }
 0x553   : > { %v10955_v21 = vmax.f32 %v10923_v31, 0.0  ;;  %v12733_v18 = vpop.f32.mrb[28].mxu1 }
 0x554   : > { %v12036_v30 = vpack.c.bf16 %v10957_v46, %v10956_v8  ;;  %v12779_v24 = vadd.f32 %v12733_v18, %v16829_v1  ;;  %v10796_v19 = vpop.f32.mrb[29].mxu1 }
 0x555   : > { %v12031_v45 = vpack.c.bf16 %v10955_v21, %v10954_v54  ;;  %v12780_v37 = vadd.f32 %v10796_v19, %v16831_v10  ;;  %v12734_v48 = vpop.f32.mrb[30].mxu1 }
 0x556   : > { %12092 = vst [vmem:[%s16851_s10 + $0x28] sm:$0xff] %v12036_v30   ;;  %v10928_v42 = vadd.f32 %v12779_v24, %v16840_v14  ;;  %v12781_v60 = vadd.f32 %v12734_v48, %v16833_v43  ;;  %v10799_v4 = vpop.f32.mrb[31].mxu1 }
 0x557   : > { %12091 = vst [vmem:[%s16851_s10 + $0x20] sm:$0xff] %v12031_v45   ;;  %v10926_v7 = vadd.f32 %v12780_v37, %v16840_v14  ;;  %v12782_v28 = vadd.f32 %v10799_v4, %v16835_v25 }
 0x558   : > { %v10929_v39 = vadd.f32 %v12781_v60, %v16840_v14  ;;  %v10960_v3 = vmax.f32 %v10928_v42, 0.0 }
 0x559   : > { %v10927_v1 = vadd.f32 %v12782_v28, %v16840_v14  ;;  %v10958_v5 = vmax.f32 %v10926_v7, 0.0 }
 0x55a   : > { %v10961_v10 = vmax.f32 %v10929_v39, 0.0 }
 0x55b   : > { %v10959_v2 = vmax.f32 %v10927_v1, 0.0  ;;  %v12737_v38 = vpop.f32.mrb[0].mxu1 }
 0x55c   : > { %v12046_v20 = vpack.c.bf16 %v10961_v10, %v10960_v3  ;;  %v12783_v43 = vadd.f32 %v12737_v38, %v16791_v13  ;;  %v10812_v56 = vpop.f32.mrb[1].mxu1 }
 0x55d   : > { %v12041_v11 = vpack.c.bf16 %v10959_v2, %v10958_v5  ;;  %v12784_v55 = vadd.f32 %v10812_v56, %v16796_v9  ;;  %v12738_v41 = vpop.f32.mrb[2].mxu1 }
 0x55e   : > { %12094 = vst [vmem:[%s16851_s10 + $0x38] sm:$0xff] %v12046_v20   ;;  %v10932_v25 = vadd.f32 %v12783_v43, %v16840_v14  ;;  %v12785_v23 = vadd.f32 %v12738_v41, %v16798_v57  ;;  %v10815_v51 = vpop.f32.mrb[3].mxu1 }
 0x55f   : > { %12093 = vst [vmem:[%s16851_s10 + $0x30] sm:$0xff] %v12041_v11   ;;  %v10930_v0 = vadd.f32 %v12784_v55, %v16840_v14  ;;  %v12786_v33 = vadd.f32 %v10815_v51, %v16800_v63 }
 0x560   : > { %v10933_v29 = vadd.f32 %v12785_v23, %v16840_v14  ;;  %v10964_v26 = vmax.f32 %v10932_v25, 0.0 }
 0x561   : > { %v10931_v13 = vadd.f32 %v12786_v33, %v16840_v14  ;;  %v10962_v12 = vmax.f32 %v10930_v0, 0.0 }
 0x562   : > { %v10965_v9 = vmax.f32 %v10933_v29, 0.0 }
 0x563   : > { %v10963_v62 = vmax.f32 %v10931_v13, 0.0  ;;  %v12741_v59 = vpop.f32.mrb[4].mxu1 }
 0x564   : > { %v12056_v52 = vpack.c.bf16 %v10965_v9, %v10964_v26  ;;  %v12787_v57 = vadd.f32 %v12741_v59, %v16805_v17  ;;  %v10828_v44 = vpop.f32.mrb[5].mxu1 }
 0x565   : > { %v12051_v36 = vpack.c.bf16 %v10963_v62, %v10962_v12  ;;  %v12788_v16 = vadd.f32 %v10828_v44, %v16807_v49  ;;  %v12742_v35 = vpop.f32.mrb[6].mxu1 }
 0x566   : > { %12096 = vst [vmem:[%s16851_s10 + $0x48] sm:$0xff] %v12056_v52   ;;  %v10936_v63 = vadd.f32 %v12787_v57, %v16840_v14  ;;  %v12789_v34 = vadd.f32 %v12742_v35, %v16809_v22  ;;  %v10831_v15 = vpop.f32.mrb[7].mxu1 }
 0x567   : > { %12095 = vst [vmem:[%s16851_s10 + $0x40] sm:$0xff] %v12051_v36   ;;  %v10934_v31 = vadd.f32 %v12788_v16, %v16840_v14  ;;  %v12790_v8 = vadd.f32 %v10831_v15, %v16811_v61 }
 0x568   : > { %v10937_v46 = vadd.f32 %v12789_v34, %v16840_v14  ;;  %v10968_v54 = vmax.f32 %v10936_v63, 0.0 }
 0x569   : > { %v10935_v17 = vadd.f32 %v12790_v8, %v16840_v14  ;;  %v10966_v21 = vmax.f32 %v10934_v31, 0.0 }
 0x56a   : > { %v10969_v49 = vmax.f32 %v10937_v46, 0.0 }
 0x56b   : > { %v10967_v18 = vmax.f32 %v10935_v17, 0.0  ;;  %v12745_v30 = vpop.f32.mrb[8].mxu1 }
 0x56c   : > { %v12066_v24 = vpack.c.bf16 %v10969_v49, %v10968_v54  ;;  %v12791_v22 = vadd.f32 %v12745_v30, %v16813_v27  ;;  %v10844_v19 = vpop.f32.mrb[9].mxu1 }
 0x56d   : > { %v12061_v45 = vpack.c.bf16 %v10967_v18, %v10966_v21  ;;  %v12792_v37 = vadd.f32 %v10844_v19, %v16815_v53  ;;  %v12746_v48 = vpop.f32.mrb[10].mxu1 }
 0x56e   : > { %12098 = vst [vmem:[%s16851_s10 + $0x58] sm:$0xff] %v12066_v24   ;;  %v10940_v61 = vadd.f32 %v12791_v22, %v16840_v14  ;;  %v12793_v42 = vadd.f32 %v12746_v48, %v16817_v47  ;;  %v10847_v60 = vpop.f32.mrb[11].mxu1 }
 0x56f   : > { %12097 = vst [vmem:[%s16851_s10 + $0x50] sm:$0xff] %v12061_v45   ;;  %v10938_v4 = vadd.f32 %v12792_v37, %v16840_v14  ;;  %v12794_v7 = vadd.f32 %v10847_v60, %v16819_v50 }
 0x570   : > { %v10941_v28 = vadd.f32 %v12793_v42, %v16840_v14  ;;  %v10972_v39 = vmax.f32 %v10940_v61, 0.0 }
 0x571   : > { %v10939_v27 = vadd.f32 %v12794_v7, %v16840_v14  ;;  %v10970_v1 = vmax.f32 %v10938_v4, 0.0 }
 0x572   : > { %v10973_v53 = vmax.f32 %v10941_v28, 0.0 }
 0x573   : > { %v10971_v3 = vmax.f32 %v10939_v27, 0.0  ;;  %v12749_v10 = vpop.f32.mrb[12].mxu1 }
 0x574   : > { %v12076_v5 = vpack.c.bf16 %v10973_v53, %v10972_v39  ;;  %v12795_v47 = vadd.f32 %v12749_v10, %v16821_v32  ;;  %v10860_v2 = vpop.f32.mrb[13].mxu1 }
 0x575   : > { %v12071_v38 = vpack.c.bf16 %v10971_v3, %v10970_v1  ;;  %v12796_v20 = vadd.f32 %v10860_v2, %v16823_v58  ;;  %v12750_v43 = vpop.f32.mrb[14].mxu1 }
 0x576   : > { %12100 = vst [vmem:[%s16851_s10 + $0x68] sm:$0xff] %v12076_v5   ;;  %v10944_v50 = vadd.f32 %v12795_v47, %v16840_v14  ;;  %v12797_v56 = vadd.f32 %v12750_v43, %v16825_v6  ;;  %v10863_v11 = vpop.f32.mrb[15].mxu1 }
 0x577   : > { %12099 = vst [vmem:[%s16851_s10 + $0x60] sm:$0xff] %v12071_v38   ;;  %v10942_v55 = vadd.f32 %v12796_v20, %v16840_v14  ;;  %v12798_v41 = vadd.f32 %v10863_v11, %v16827_v40 }
 0x578   : > { %v10945_v32 = vadd.f32 %v12797_v56, %v16840_v14  ;;  %v10976_v23 = vmax.f32 %v10944_v50, 0.0 }
 0x579   : > { %v10943_v25 = vadd.f32 %v12798_v41, %v16840_v14  ;;  %v10974_v51 = vmax.f32 %v10942_v55, 0.0 }
 0x57a   : > { %v10977_v58 = vmax.f32 %v10945_v32, 0.0 }
 0x57b   : > { %v10975_v0 = vmax.f32 %v10943_v25, 0.0 }
 0x57c   : > { %v12086_v33 = vpack.c.bf16 %v10977_v58, %v10976_v23 }
 0x57d   : > { %v12081_v29 = vpack.c.bf16 %v10975_v0, %v10974_v51 }
 0x57e   : > { %12102 = vst [vmem:[%s16851_s10 + $0x78] sm:$0xff] %v12086_v33  }
 0x57f   : > { %12101 = vst [vmem:[%s16851_s10 + $0x70] sm:$0xff] %v12081_v29  }
 0x580 PF: > { %s16_s21 = sadd.s32 1, %s13310_s21  }
 0x581   : > { %p13_p4 = scmp.ge.s32.totalorder %s16_s21, 4  }
 0x583   :  { %15 = sbr.rel (!%p13_p4) target bundleno = 1 (0x1), region = 91 }

</bundles_post_ra>
